<compile_context>
chip_gen: v5e
topology: v5e:2x2
jax: 0.10.0
libtpu: 0.0.40
codegen_flags: <defaults>
</compile_context>

<pallas_src>
import functools
import math

import jax
import jax.numpy as jnp
from jax.experimental import pallas as pl
from jax.experimental.pallas import tpu as pltpu


_VMEM_LIMIT = 32 * 1024 * 1024  # explicit, safe on v5e/v6e/v7x


def _round_up(x, m):
    return ((x + m - 1) // m) * m


def _compiler_params():
    return pltpu.CompilerParams(
        dimension_semantics=("parallel",),
        vmem_limit_bytes=_VMEM_LIMIT,
    )


def _pad_lanes(a, target):
    m = a.shape[-1]
    if target == m:
        return a
    return jnp.pad(a, ((0, 0), (0, target - m)))


def _lane_tiles(m, max_tl=1024):
    """Tile the lane (last) axis: returns (tile, grid, padded_lanes).

    Always returns a tile that is a multiple of 128 so stores are lane-dense.
    """
    mp = _round_up(m, 128)
    if mp <= max_tl:
        return mp, 1, mp
    tl = max_tl                      # multiple of 128
    g = -(-m // tl)
    return tl, g, g * tl


# ----------------------------- Pallas kernels -----------------------------

def _conv3x3_kernel(*refs, n_src, taps, relu):
    # refs: [xm_0, xh_0, ..., xm_{s-1}, xh_{s-1}, w_0, ..., w_{s-1}, b, out]
    o_ref = refs[-1]
    b_ref = refs[-2]
    cout, tl = o_ref.shape
    acc = jnp.zeros((cout, tl), jnp.float32)
    for s in range(n_src):
        # (Cin_s, TL + HL) lane window: current tile + narrow halo.
        window = jnp.concatenate([refs[2 * s][...], refs[2 * s + 1][...]], axis=1)
        w_ref = refs[2 * n_src + s]                      # (9, Cout, Cin_s) bf16
        for t, d in enumerate(taps):
            xa = window[:, d:d + tl]                     # static lane-shifted slice
            acc = acc + jnp.dot(w_ref[t], xa, preferred_element_type=jnp.float32)
    acc = acc + b_ref[...]                               # (Cout, 1) broadcasts
    if relu:
        acc = jnp.maximum(acc, 0.0)
    o_ref[...] = acc.astype(o_ref.dtype)


def _max4_kernel(a_ref, b_ref, c_ref, d_ref, o_ref):
    o_ref[...] = jnp.maximum(jnp.maximum(a_ref[...], b_ref[...]),
                             jnp.maximum(c_ref[...], d_ref[...]))


def _matmul_cf_kernel(*refs, n_out, relu):
    # refs: [x, w_0..w_{n-1}, b, o_0..o_{n-1}];  o_k = w_k @ x + b
    x = refs[0][...]
    b = refs[n_out + 1][...]
    for k in range(n_out):
        acc = jnp.dot(refs[1 + k][...], x, preferred_element_type=jnp.float32) + b
        if relu:
            acc = jnp.maximum(acc, 0.0)
        o_ref = refs[n_out + 2 + k]
        o_ref[...] = acc.astype(o_ref.dtype)


# ----------------------------- layer wrappers ------------------------------

def conv3x3(sources, bias, *, relu=True, max_tl=1024):
    """Conv2d(k=3, padding=1) (+ReLU) on channels-first activations.

    sources: list of (x, w) with x (Cin_s, N, H, W) and w (Cout, Cin_s, 3, 3).
    Multiple sources are accumulated => fused channel-concat conv.
    """
    _, n, h, w = sources[0][0].shape
    cout = sources[0][1].shape[0]
    hp, wp = h + 2, w + 2
    m = n * hp * wp                                  # flattened padded pixels
    max_shift = 2 * wp + 2                           # largest tap column shift
    hl = _round_up(max_shift, 128)                   # narrow halo block width
    tl = min(max_tl, _round_up(m, 128))
    tl = _round_up(max(tl, hl), hl)                  # tl multiple of hl, >= hl
    g = -(-m // tl)
    mp = g * tl + hl                                 # + trailing zero halo lanes
    hb = tl // hl                                    # halo block index stride
    taps = tuple(ky * wp + kx for ky in range(3) for kx in range(3))

    operands, in_specs = [], []
    weight_ops, weight_specs = [], []
    flops, bytes_accessed = 0, 0
    for x, w_pt in sources:
        cin = x.shape[0]
        xp = jnp.pad(x.astype(jnp.bfloat16), ((0, 0), (0, 0), (1, 1), (1, 1)))
        xf = _pad_lanes(xp.reshape(cin, m), mp)
        operands += [xf, xf]
        in_specs += [
            pl.BlockSpec((cin, tl), lambda i: (0, i)),                 # main tile
            pl.BlockSpec((cin, hl), lambda i: (0, (i + 1) * hb)),      # narrow halo
        ]
        w9 = jnp.transpose(w_pt, (2, 3, 0, 1)).reshape(9, cout, cin)
        weight_ops.append(w9.astype(jnp.bfloat16))
        weight_specs.append(pl.BlockSpec((9, cout, cin), lambda i: (0, 0, 0)))
        flops += 2 * 9 * cin * cout * g * tl
        bytes_accessed += (g * (tl + hl)) * cin * 2 + 9 * cin * cout * 2
    operands += weight_ops
    in_specs += weight_specs
    operands.append(bias.reshape(cout, 1).astype(jnp.float32))
    in_specs.append(pl.BlockSpec((cout, 1), lambda i: (0, 0)))
    bytes_accessed += cout * 4 + g * tl * cout * 2

    out = pl.pallas_call(
        functools.partial(_conv3x3_kernel, n_src=len(sources), taps=taps, relu=relu),
        grid=(g,),
        in_specs=in_specs,
        out_specs=pl.BlockSpec((cout, tl), lambda i: (0, i)),
        out_shape=jax.ShapeDtypeStruct((cout, g * tl), jnp.bfloat16),
        compiler_params=_compiler_params(),
        cost_estimate=pl.CostEstimate(flops=flops, transcendentals=0,
                                      bytes_accessed=bytes_accessed),
    )(*operands)
    # drop junk columns (padded rows/cols of the flat grid)
    return out[:, :m].reshape(cout, n, hp, wp)[:, :, :h, :w]


def maxpool2x2(x):
    """MaxPool2d(2, stride=2, ceil_mode=True) on channels-first (C, N, H, W)."""
    c, n, h, w = x.shape
    ho, wo = -(-h // 2), -(-w // 2)
    ph, pw = 2 * ho - h, 2 * wo - w
    if ph or pw:
        x = jnp.pad(x, ((0, 0), (0, 0), (0, ph), (0, pw)),
                    constant_values=-jnp.inf)
    m = n * ho * wo
    tl, g, mp = _lane_tiles(m)
    parts = [_pad_lanes(x[:, :, dy::2, dx::2].reshape(c, m), mp)
             for dy in (0, 1) for dx in (0, 1)]
    out = pl.pallas_call(
        _max4_kernel,
        grid=(g,),
        in_specs=[pl.BlockSpec((c, tl), lambda i: (0, i))] * 4,
        out_specs=pl.BlockSpec((c, tl), lambda i: (0, i)),
        out_shape=jax.ShapeDtypeStruct((c, mp), x.dtype),
        compiler_params=_compiler_params(),
    )(*parts)
    return out[:, :m].reshape(c, n, ho, wo)


def _matmul_cf(x2, weights, bias, out_dtype, relu=False):
    """out_k (Cout, M) = weights[k] (Cout, Cin) @ x2 (Cin, M) + bias."""
    cin, m = x2.shape
    cout = weights[0].shape[0]
    tl, g, mp = _lane_tiles(m)
    xp = _pad_lanes(x2, mp)
    n_out = len(weights)
    outs = pl.pallas_call(
        functools.partial(_matmul_cf_kernel, n_out=n_out, relu=relu),
        grid=(g,),
        in_specs=[pl.BlockSpec((cin, tl), lambda i: (0, i))]
        + [pl.BlockSpec((cout, cin), lambda i: (0, 0))] * n_out
        + [pl.BlockSpec((cout, 1), lambda i: (0, 0))],
        out_specs=[pl.BlockSpec((cout, tl), lambda i: (0, i))] * n_out,
        out_shape=[jax.ShapeDtypeStruct((cout, mp), out_dtype)] * n_out,
        compiler_params=_compiler_params(),
        cost_estimate=pl.CostEstimate(
            flops=2 * cin * cout * mp * n_out, transcendentals=0,
            bytes_accessed=xp.size * 2 + n_out * (cin * cout * 2 + mp * cout * 2)
            + cout * 4),
    )(xp, *[wk.astype(jnp.bfloat16) for wk in weights],
      bias.reshape(cout, 1).astype(jnp.float32))
    return [o[:, :m] for o in outs]


def conv_transpose2x2(x, wt_pt, bias):
    """ConvTranspose2d(k=2, stride=2) on channels-first x (Cin, N, H, W)."""
    cin, n, h, w = x.shape
    cout = wt_pt.shape[1]
    ws = [jnp.transpose(wt_pt[:, :, dy, dx], (1, 0))            # (Cout, Cin)
          for dy in (0, 1) for dx in (0, 1)]
    outs = _matmul_cf(x.reshape(cin, n * h * w), ws, bias, jnp.bfloat16)
    o = [t.reshape(cout, n, h, w) for t in outs]                # order 00,01,10,11
    row0 = jnp.stack([o[0], o[1]], axis=-1).reshape(cout, n, h, 2 * w)
    row1 = jnp.stack([o[2], o[3]], axis=-1).reshape(cout, n, h, 2 * w)
    return jnp.stack([row0, row1], axis=3).reshape(cout, n, 2 * h, 2 * w)


def conv1x1(x, w_pt, bias):
    """Conv2d(k=1) on channels-first x (Cin, N, H, W); f32 output."""
    cin, n, h, w = x.shape
    cout = w_pt.shape[0]
    (out,) = _matmul_cf(x.reshape(cin, n * h * w),
                        [w_pt.reshape(cout, cin)], bias, jnp.float32)
    return out.reshape(cout, n, h, w)


# ----------------------------- parameter init ------------------------------

def _xavier_normal(key, shape):
    cout, cin, kh, kw = shape
    fan_in, fan_out = cin * kh * kw, cout * kh * kw
    std = math.sqrt(2.0 / (fan_in + fan_out))
    return std * jax.random.normal(key, shape, dtype=jnp.float32)


def init_unet_params(key, in_channels, num_classes, depth, first_conv_channels):
    params = {"downers": [], "uppers": []}
    keys = iter(jax.random.split(key, 8 * depth + 8))
    out_c = first_conv_channels
    for i in range(depth):
        if i == 0:
            in_c, out_c, pool = in_channels, first_conv_channels, True
        else:
            in_c = out_c
            out_c = first_conv_channels * 2 ** i
            pool = (i != depth - 1)
        params["downers"].append({
            "pool": pool,
            "w1": _xavier_normal(next(keys), (out_c, in_c, 3, 3)),
            "b1": jnp.zeros((out_c,), jnp.float32),
            "w2": _xavier_normal(next(keys), (out_c, out_c, 3, 3)),
            "b2": jnp.zeros((out_c,), jnp.float32),
        })
    for i in range(depth - 1):
        in_c = out_c
        out_c = in_c // 2
        params["uppers"].append({
            # ConvTranspose2d keeps a simple deterministic init (PyTorch default
            # is not xavier); forward-pass semantics are unaffected.
            "wt": 0.05 * jax.random.normal(next(keys), (in_c, out_c, 2, 2),
                                           dtype=jnp.float32),
            "bt": jnp.zeros((out_c,), jnp.float32),
            "w1": _xavier_normal(next(keys), (out_c, in_c, 3, 3)),
            "b1": jnp.zeros((out_c,), jnp.float32),
            "w2": _xavier_normal(next(keys), (out_c, out_c, 3, 3)),
            "b2": jnp.zeros((out_c,), jnp.float32),
        })
    params["last"] = {
        "w": _xavier_normal(next(keys), (num_classes, out_c, 1, 1)),
        "b": jnp.zeros((num_classes,), jnp.float32),
    }
    return params


# ------------------------------- forward pass ------------------------------

def unet_forward(x_nchw, params):
    # NCHW -> channels-first 4D (C, N, H, W); activations carried in bf16.
    x = jnp.transpose(x_nchw, (1, 0, 2, 3)).astype(jnp.bfloat16)
    caches = []
    # Down path
    for p in params["downers"]:
        act = conv3x3([(x, p["w1"])], p["b1"])
        act = conv3x3([(act, p["w2"])], p["b2"])
        caches.append(act)
        x = maxpool2x2(act) if p["pool"] else act
    # Up path (concat=True); the channel concat is fused into the first conv.
    for i, p in enumerate(params["uppers"]):
        cache = caches[-(i + 2)]
        up = conv_transpose2x2(x, p["wt"], p["bt"])
        cc = cache.shape[0]
        x = conv3x3([(cache, p["w1"][:, :cc]), (up, p["w1"][:, cc:])], p["b1"])
        x = conv3x3([(x, p["w2"])], p["b2"])
    # Final 1x1 conv (f32 output)
    out = conv1x1(x, params["last"]["w"], params["last"]["b"])
    return jnp.transpose(out, (1, 0, 2, 3))          # -> NCHW


# ----------------------------------- main -----------------------------------

if __name__ == "__main__":
    IN_CH, NUM_CLASSES, DEPTH, FIRST_CH = 3, 5, 3, 8   # small, same topology
    key = jax.random.PRNGKey(0)
    pkey, xkey = jax.random.split(key)
    params = init_unet_params(pkey, IN_CH, NUM_CLASSES, DEPTH, FIRST_CH)

    x = jax.random.normal(xkey, (2, IN_CH, 16, 16), dtype=jnp.float32)  # NCHW

    out = jax.jit(lambda inp: unet_forward(inp, params))(x)
    out = jax.block_until_ready(out)
    assert out.shape == (2, NUM_CLASSES, 16, 16), out.shape
    assert out.dtype == jnp.float32
    assert bool(jnp.isfinite(out).all())
    print("KERNEL_OK")
</pallas_src>

<mosaic_0001>
module attributes {stable_mosaic.version = 11 : i64} {
  func.func @_conv3x3_kernel(%arg0: i32, %arg1: memref<3x768xbf16, #tpu.memory_space<vmem>>, %arg2: memref<3x128xbf16, #tpu.memory_space<vmem>>, %arg3: memref<9x8x3xbf16, #tpu.memory_space<vmem>>, %arg4: memref<8x1xf32, #tpu.memory_space<vmem>>, %arg5: memref<8x768xbf16, #tpu.memory_space<vmem>>) attributes {dimension_semantics = [#tpu.dimension_semantics<parallel>], iteration_bounds = array<i64: 1>, scalar_prefetch = 0 : i64, scratch_operands = 0 : i64, tpu.core_type = #tpu.core_type<tc>, window_params = [{transform_indices = @transform_0, window_bounds = array<i64: 3, 768>}, {transform_indices = @transform_1, window_bounds = array<i64: 3, 128>}, {pipeline_mode = #tpu.pipeline_mode<synchronous>, transform_indices = @transform_2, window_bounds = array<i64: 9, 8, 3>}, {pipeline_mode = #tpu.pipeline_mode<synchronous>, transform_indices = @transform_3, window_bounds = array<i64: 8, 1>}, {transform_indices = @transform_4, window_bounds = array<i64: 8, 768>}]} {
    %cst = arith.constant 0.000000e+00 : f32
    %0 = vector.broadcast %cst : f32 to vector<8x768xf32>
    %c0 = arith.constant 0 : index
    %c0_0 = arith.constant 0 : index
    %1 = vector.load %arg1[%c0, %c0_0] : memref<3x768xbf16, #tpu.memory_space<vmem>>, vector<3x768xbf16>
    %c0_1 = arith.constant 0 : index
    %c0_2 = arith.constant 0 : index
    %2 = vector.load %arg2[%c0_1, %c0_2] : memref<3x128xbf16, #tpu.memory_space<vmem>>, vector<3x128xbf16>
    %3 = tpu.concatenate %1, %2 in 1 : vector<3x768xbf16>, vector<3x128xbf16> -> vector<3x896xbf16>
    %4 = vector.extract_strided_slice %3 {offsets = [0, 0], sizes = [3, 768], strides = [1, 1]} : vector<3x896xbf16> to vector<3x768xbf16>
    %c0_3 = arith.constant 0 : index
    %c0_4 = arith.constant 0 : index
    %c0_5 = arith.constant 0 : index
    %5 = vector.load %arg3[%c0_3, %c0_4, %c0_5] : memref<9x8x3xbf16, #tpu.memory_space<vmem>>, vector<1x8x3xbf16>
    %6 = vector.shape_cast %5 : vector<1x8x3xbf16> to vector<8x3xbf16>
    %cst_6 = arith.constant dense<0.000000e+00> : vector<8x768xf32>
    %7 = tpu.matmul %6, %4, %cst_6 {dimension_numbers = #tpu.dot_dimension_numbers<[1], [0], [0], [1], [0, 0, 1, 1], [], []>} : vector<8x3xbf16>, vector<3x768xbf16>, vector<8x768xf32> -> vector<8x768xf32>
    %8 = arith.addf %0, %7 : vector<8x768xf32>
    %9 = vector.extract_strided_slice %3 {offsets = [0, 1], sizes = [3, 768], strides = [1, 1]} : vector<3x896xbf16> to vector<3x768xbf16>
    %c1 = arith.constant 1 : index
    %c0_7 = arith.constant 0 : index
    %c0_8 = arith.constant 0 : index
    %10 = vector.load %arg3[%c1, %c0_7, %c0_8] : memref<9x8x3xbf16, #tpu.memory_space<vmem>>, vector<1x8x3xbf16>
    %11 = vector.shape_cast %10 : vector<1x8x3xbf16> to vector<8x3xbf16>
    %cst_9 = arith.constant dense<0.000000e+00> : vector<8x768xf32>
    %12 = tpu.matmul %11, %9, %cst_9 {dimension_numbers = #tpu.dot_dimension_numbers<[1], [0], [0], [1], [0, 0, 1, 1], [], []>} : vector<8x3xbf16>, vector<3x768xbf16>, vector<8x768xf32> -> vector<8x768xf32>
    %13 = arith.addf %8, %12 : vector<8x768xf32>
    %14 = vector.extract_strided_slice %3 {offsets = [0, 2], sizes = [3, 768], strides = [1, 1]} : vector<3x896xbf16> to vector<3x768xbf16>
    %c2 = arith.constant 2 : index
    %c0_10 = arith.constant 0 : index
    %c0_11 = arith.constant 0 : index
    %15 = vector.load %arg3[%c2, %c0_10, %c0_11] : memref<9x8x3xbf16, #tpu.memory_space<vmem>>, vector<1x8x3xbf16>
    %16 = vector.shape_cast %15 : vector<1x8x3xbf16> to vector<8x3xbf16>
    %cst_12 = arith.constant dense<0.000000e+00> : vector<8x768xf32>
    %17 = tpu.matmul %16, %14, %cst_12 {dimension_numbers = #tpu.dot_dimension_numbers<[1], [0], [0], [1], [0, 0, 1, 1], [], []>} : vector<8x3xbf16>, vector<3x768xbf16>, vector<8x768xf32> -> vector<8x768xf32>
    %18 = arith.addf %13, %17 : vector<8x768xf32>
    %19 = vector.extract_strided_slice %3 {offsets = [0, 18], sizes = [3, 768], strides = [1, 1]} : vector<3x896xbf16> to vector<3x768xbf16>
    %c3 = arith.constant 3 : index
    %c0_13 = arith.constant 0 : index
    %c0_14 = arith.constant 0 : index
    %20 = vector.load %arg3[%c3, %c0_13, %c0_14] : memref<9x8x3xbf16, #tpu.memory_space<vmem>>, vector<1x8x3xbf16>
    %21 = vector.shape_cast %20 : vector<1x8x3xbf16> to vector<8x3xbf16>
    %cst_15 = arith.constant dense<0.000000e+00> : vector<8x768xf32>
    %22 = tpu.matmul %21, %19, %cst_15 {dimension_numbers = #tpu.dot_dimension_numbers<[1], [0], [0], [1], [0, 0, 1, 1], [], []>} : vector<8x3xbf16>, vector<3x768xbf16>, vector<8x768xf32> -> vector<8x768xf32>
    %23 = arith.addf %18, %22 : vector<8x768xf32>
    %24 = vector.extract_strided_slice %3 {offsets = [0, 19], sizes = [3, 768], strides = [1, 1]} : vector<3x896xbf16> to vector<3x768xbf16>
    %c4 = arith.constant 4 : index
    %c0_16 = arith.constant 0 : index
    %c0_17 = arith.constant 0 : index
    %25 = vector.load %arg3[%c4, %c0_16, %c0_17] : memref<9x8x3xbf16, #tpu.memory_space<vmem>>, vector<1x8x3xbf16>
    %26 = vector.shape_cast %25 : vector<1x8x3xbf16> to vector<8x3xbf16>
    %cst_18 = arith.constant dense<0.000000e+00> : vector<8x768xf32>
    %27 = tpu.matmul %26, %24, %cst_18 {dimension_numbers = #tpu.dot_dimension_numbers<[1], [0], [0], [1], [0, 0, 1, 1], [], []>} : vector<8x3xbf16>, vector<3x768xbf16>, vector<8x768xf32> -> vector<8x768xf32>
    %28 = arith.addf %23, %27 : vector<8x768xf32>
    %29 = vector.extract_strided_slice %3 {offsets = [0, 20], sizes = [3, 768], strides = [1, 1]} : vector<3x896xbf16> to vector<3x768xbf16>
    %c5 = arith.constant 5 : index
    %c0_19 = arith.constant 0 : index
    %c0_20 = arith.constant 0 : index
    %30 = vector.load %arg3[%c5, %c0_19, %c0_20] : memref<9x8x3xbf16, #tpu.memory_space<vmem>>, vector<1x8x3xbf16>
    %31 = vector.shape_cast %30 : vector<1x8x3xbf16> to vector<8x3xbf16>
    %cst_21 = arith.constant dense<0.000000e+00> : vector<8x768xf32>
    %32 = tpu.matmul %31, %29, %cst_21 {dimension_numbers = #tpu.dot_dimension_numbers<[1], [0], [0], [1], [0, 0, 1, 1], [], []>} : vector<8x3xbf16>, vector<3x768xbf16>, vector<8x768xf32> -> vector<8x768xf32>
    %33 = arith.addf %28, %32 : vector<8x768xf32>
    %34 = vector.extract_strided_slice %3 {offsets = [0, 36], sizes = [3, 768], strides = [1, 1]} : vector<3x896xbf16> to vector<3x768xbf16>
    %c6 = arith.constant 6 : index
    %c0_22 = arith.constant 0 : index
    %c0_23 = arith.constant 0 : index
    %35 = vector.load %arg3[%c6, %c0_22, %c0_23] : memref<9x8x3xbf16, #tpu.memory_space<vmem>>, vector<1x8x3xbf16>
    %36 = vector.shape_cast %35 : vector<1x8x3xbf16> to vector<8x3xbf16>
    %cst_24 = arith.constant dense<0.000000e+00> : vector<8x768xf32>
    %37 = tpu.matmul %36, %34, %cst_24 {dimension_numbers = #tpu.dot_dimension_numbers<[1], [0], [0], [1], [0, 0, 1, 1], [], []>} : vector<8x3xbf16>, vector<3x768xbf16>, vector<8x768xf32> -> vector<8x768xf32>
    %38 = arith.addf %33, %37 : vector<8x768xf32>
    %39 = vector.extract_strided_slice %3 {offsets = [0, 37], sizes = [3, 768], strides = [1, 1]} : vector<3x896xbf16> to vector<3x768xbf16>
    %c7 = arith.constant 7 : index
    %c0_25 = arith.constant 0 : index
    %c0_26 = arith.constant 0 : index
    %40 = vector.load %arg3[%c7, %c0_25, %c0_26] : memref<9x8x3xbf16, #tpu.memory_space<vmem>>, vector<1x8x3xbf16>
    %41 = vector.shape_cast %40 : vector<1x8x3xbf16> to vector<8x3xbf16>
    %cst_27 = arith.constant dense<0.000000e+00> : vector<8x768xf32>
    %42 = tpu.matmul %41, %39, %cst_27 {dimension_numbers = #tpu.dot_dimension_numbers<[1], [0], [0], [1], [0, 0, 1, 1], [], []>} : vector<8x3xbf16>, vector<3x768xbf16>, vector<8x768xf32> -> vector<8x768xf32>
    %43 = arith.addf %38, %42 : vector<8x768xf32>
    %44 = vector.extract_strided_slice %3 {offsets = [0, 38], sizes = [3, 768], strides = [1, 1]} : vector<3x896xbf16> to vector<3x768xbf16>
    %c8 = arith.constant 8 : index
    %c0_28 = arith.constant 0 : index
    %c0_29 = arith.constant 0 : index
    %45 = vector.load %arg3[%c8, %c0_28, %c0_29] : memref<9x8x3xbf16, #tpu.memory_space<vmem>>, vector<1x8x3xbf16>
    %46 = vector.shape_cast %45 : vector<1x8x3xbf16> to vector<8x3xbf16>
    %cst_30 = arith.constant dense<0.000000e+00> : vector<8x768xf32>
    %47 = tpu.matmul %46, %44, %cst_30 {dimension_numbers = #tpu.dot_dimension_numbers<[1], [0], [0], [1], [0, 0, 1, 1], [], []>} : vector<8x3xbf16>, vector<3x768xbf16>, vector<8x768xf32> -> vector<8x768xf32>
    %48 = arith.addf %43, %47 : vector<8x768xf32>
    %c0_31 = arith.constant 0 : index
    %c0_32 = arith.constant 0 : index
    %49 = vector.load %arg4[%c0_31, %c0_32] : memref<8x1xf32, #tpu.memory_space<vmem>>, vector<8x1xf32>
    %50 = vector.broadcast %49 : vector<8x1xf32> to vector<8x768xf32>
    %51 = arith.addf %48, %50 : vector<8x768xf32>
    %cst_33 = arith.constant 0.000000e+00 : f32
    %52 = vector.broadcast %cst_33 : f32 to vector<8x768xf32>
    %53 = arith.maximumf %51, %52 : vector<8x768xf32>
    %54 = arith.truncf %53 : vector<8x768xf32> to vector<8x768xbf16>
    %c0_34 = arith.constant 0 : index
    %c0_35 = arith.constant 0 : index
    %55 = vector.load %arg5[%c0_34, %c0_35] : memref<8x768xbf16, #tpu.memory_space<vmem>>, vector<8x768xbf16>
    tpu.vector_store %arg5[%c0_34, %c0_35], %54 {strides = array<i32>} : memref<8x768xbf16, #tpu.memory_space<vmem>>, vector<8x768xbf16>,
    return
  }
  func.func @transform_0(%arg0: i32) -> (i32, i32) {
    %c0_i32 = arith.constant 0 : i32
    %c0_i32_0 = arith.constant 0 : i32
    return %c0_i32, %arg0 : i32, i32
  }
  func.func @transform_1(%arg0: i32) -> (i32, i32) {
    %c1_i32 = arith.constant 1 : i32
    %0 = arith.addi %arg0, %c1_i32 : i32
    %c6_i32 = arith.constant 6 : i32
    %1 = arith.muli %0, %c6_i32 : i32
    %c0_i32 = arith.constant 0 : i32
    %c0_i32_0 = arith.constant 0 : i32
    return %c0_i32, %1 : i32, i32
  }
  func.func @transform_2(%arg0: i32) -> (i32, i32, i32) {
    %c0_i32 = arith.constant 0 : i32
    %c0_i32_0 = arith.constant 0 : i32
    %c0_i32_1 = arith.constant 0 : i32
    %c0_i32_2 = arith.constant 0 : i32
    return %c0_i32, %c0_i32_0, %c0_i32_1 : i32, i32, i32
  }
  func.func @transform_3(%arg0: i32) -> (i32, i32) {
    %c0_i32 = arith.constant 0 : i32
    %c0_i32_0 = arith.constant 0 : i32
    %c0_i32_1 = arith.constant 0 : i32
    return %c0_i32, %c0_i32_0 : i32, i32
  }
  func.func @transform_4(%arg0: i32) -> (i32, i32) {
    %c0_i32 = arith.constant 0 : i32
    %c0_i32_0 = arith.constant 0 : i32
    return %c0_i32, %arg0 : i32, i32
  }
}

module attributes {stable_mosaic.version = 11 : i64} {
  func.func @_conv3x3_kernel(%arg0: i32, %arg1: memref<8x768xbf16, #tpu.memory_space<vmem>>, %arg2: memref<8x128xbf16, #tpu.memory_space<vmem>>, %arg3: memref<9x8x8xbf16, #tpu.memory_space<vmem>>, %arg4: memref<8x1xf32, #tpu.memory_space<vmem>>, %arg5: memref<8x768xbf16, #tpu.memory_space<vmem>>) attributes {dimension_semantics = [#tpu.dimension_semantics<parallel>], iteration_bounds = array<i64: 1>, scalar_prefetch = 0 : i64, scratch_operands = 0 : i64, tpu.core_type = #tpu.core_type<tc>, window_params = [{transform_indices = @transform_0, window_bounds = array<i64: 8, 768>}, {transform_indices = @transform_1, window_bounds = array<i64: 8, 128>}, {pipeline_mode = #tpu.pipeline_mode<synchronous>, transform_indices = @transform_2, window_bounds = array<i64: 9, 8, 8>}, {pipeline_mode = #tpu.pipeline_mode<synchronous>, transform_indices = @transform_3, window_bounds = array<i64: 8, 1>}, {transform_indices = @transform_4, window_bounds = array<i64: 8, 768>}]} {
    %cst = arith.constant 0.000000e+00 : f32
    %0 = vector.broadcast %cst : f32 to vector<8x768xf32>
    %c0 = arith.constant 0 : index
    %c0_0 = arith.constant 0 : index
    %1 = vector.load %arg1[%c0, %c0_0] : memref<8x768xbf16, #tpu.memory_space<vmem>>, vector<8x768xbf16>
    %c0_1 = arith.constant 0 : index
    %c0_2 = arith.constant 0 : index
    %2 = vector.load %arg2[%c0_1, %c0_2] : memref<8x128xbf16, #tpu.memory_space<vmem>>, vector<8x128xbf16>
    %3 = tpu.concatenate %1, %2 in 1 : vector<8x768xbf16>, vector<8x128xbf16> -> vector<8x896xbf16>
    %4 = vector.extract_strided_slice %3 {offsets = [0, 0], sizes = [8, 768], strides = [1, 1]} : vector<8x896xbf16> to vector<8x768xbf16>
    %c0_3 = arith.constant 0 : index
    %c0_4 = arith.constant 0 : index
    %c0_5 = arith.constant 0 : index
    %5 = vector.load %arg3[%c0_3, %c0_4, %c0_5] : memref<9x8x8xbf16, #tpu.memory_space<vmem>>, vector<1x8x8xbf16>
    %6 = vector.shape_cast %5 : vector<1x8x8xbf16> to vector<8x8xbf16>
    %cst_6 = arith.constant dense<0.000000e+00> : vector<8x768xf32>
    %7 = tpu.matmul %6, %4, %cst_6 {dimension_numbers = #tpu.dot_dimension_numbers<[1], [0], [0], [1], [0, 0, 1, 1], [], []>} : vector<8x8xbf16>, vector<8x768xbf16>, vector<8x768xf32> -> vector<8x768xf32>
    %8 = arith.addf %0, %7 : vector<8x768xf32>
    %9 = vector.extract_strided_slice %3 {offsets = [0, 1], sizes = [8, 768], strides = [1, 1]} : vector<8x896xbf16> to vector<8x768xbf16>
    %c1 = arith.constant 1 : index
    %c0_7 = arith.constant 0 : index
    %c0_8 = arith.constant 0 : index
    %10 = vector.load %arg3[%c1, %c0_7, %c0_8] : memref<9x8x8xbf16, #tpu.memory_space<vmem>>, vector<1x8x8xbf16>
    %11 = vector.shape_cast %10 : vector<1x8x8xbf16> to vector<8x8xbf16>
    %cst_9 = arith.constant dense<0.000000e+00> : vector<8x768xf32>
    %12 = tpu.matmul %11, %9, %cst_9 {dimension_numbers = #tpu.dot_dimension_numbers<[1], [0], [0], [1], [0, 0, 1, 1], [], []>} : vector<8x8xbf16>, vector<8x768xbf16>, vector<8x768xf32> -> vector<8x768xf32>
    %13 = arith.addf %8, %12 : vector<8x768xf32>
    %14 = vector.extract_strided_slice %3 {offsets = [0, 2], sizes = [8, 768], strides = [1, 1]} : vector<8x896xbf16> to vector<8x768xbf16>
    %c2 = arith.constant 2 : index
    %c0_10 = arith.constant 0 : index
    %c0_11 = arith.constant 0 : index
    %15 = vector.load %arg3[%c2, %c0_10, %c0_11] : memref<9x8x8xbf16, #tpu.memory_space<vmem>>, vector<1x8x8xbf16>
    %16 = vector.shape_cast %15 : vector<1x8x8xbf16> to vector<8x8xbf16>
    %cst_12 = arith.constant dense<0.000000e+00> : vector<8x768xf32>
    %17 = tpu.matmul %16, %14, %cst_12 {dimension_numbers = #tpu.dot_dimension_numbers<[1], [0], [0], [1], [0, 0, 1, 1], [], []>} : vector<8x8xbf16>, vector<8x768xbf16>, vector<8x768xf32> -> vector<8x768xf32>
    %18 = arith.addf %13, %17 : vector<8x768xf32>
    %19 = vector.extract_strided_slice %3 {offsets = [0, 18], sizes = [8, 768], strides = [1, 1]} : vector<8x896xbf16> to vector<8x768xbf16>
    %c3 = arith.constant 3 : index
    %c0_13 = arith.constant 0 : index
    %c0_14 = arith.constant 0 : index
    %20 = vector.load %arg3[%c3, %c0_13, %c0_14] : memref<9x8x8xbf16, #tpu.memory_space<vmem>>, vector<1x8x8xbf16>
    %21 = vector.shape_cast %20 : vector<1x8x8xbf16> to vector<8x8xbf16>
    %cst_15 = arith.constant dense<0.000000e+00> : vector<8x768xf32>
    %22 = tpu.matmul %21, %19, %cst_15 {dimension_numbers = #tpu.dot_dimension_numbers<[1], [0], [0], [1], [0, 0, 1, 1], [], []>} : vector<8x8xbf16>, vector<8x768xbf16>, vector<8x768xf32> -> vector<8x768xf32>
    %23 = arith.addf %18, %22 : vector<8x768xf32>
    %24 = vector.extract_strided_slice %3 {offsets = [0, 19], sizes = [8, 768], strides = [1, 1]} : vector<8x896xbf16> to vector<8x768xbf16>
    %c4 = arith.constant 4 : index
    %c0_16 = arith.constant 0 : index
    %c0_17 = arith.constant 0 : index
    %25 = vector.load %arg3[%c4, %c0_16, %c0_17] : memref<9x8x8xbf16, #tpu.memory_space<vmem>>, vector<1x8x8xbf16>
    %26 = vector.shape_cast %25 : vector<1x8x8xbf16> to vector<8x8xbf16>
    %cst_18 = arith.constant dense<0.000000e+00> : vector<8x768xf32>
    %27 = tpu.matmul %26, %24, %cst_18 {dimension_numbers = #tpu.dot_dimension_numbers<[1], [0], [0], [1], [0, 0, 1, 1], [], []>} : vector<8x8xbf16>, vector<8x768xbf16>, vector<8x768xf32> -> vector<8x768xf32>
    %28 = arith.addf %23, %27 : vector<8x768xf32>
    %29 = vector.extract_strided_slice %3 {offsets = [0, 20], sizes = [8, 768], strides = [1, 1]} : vector<8x896xbf16> to vector<8x768xbf16>
    %c5 = arith.constant 5 : index
    %c0_19 = arith.constant 0 : index
    %c0_20 = arith.constant 0 : index
    %30 = vector.load %arg3[%c5, %c0_19, %c0_20] : memref<9x8x8xbf16, #tpu.memory_space<vmem>>, vector<1x8x8xbf16>
    %31 = vector.shape_cast %30 : vector<1x8x8xbf16> to vector<8x8xbf16>
    %cst_21 = arith.constant dense<0.000000e+00> : vector<8x768xf32>
    %32 = tpu.matmul %31, %29, %cst_21 {dimension_numbers = #tpu.dot_dimension_numbers<[1], [0], [0], [1], [0, 0, 1, 1], [], []>} : vector<8x8xbf16>, vector<8x768xbf16>, vector<8x768xf32> -> vector<8x768xf32>
    %33 = arith.addf %28, %32 : vector<8x768xf32>
    %34 = vector.extract_strided_slice %3 {offsets = [0, 36], sizes = [8, 768], strides = [1, 1]} : vector<8x896xbf16> to vector<8x768xbf16>
    %c6 = arith.constant 6 : index
    %c0_22 = arith.constant 0 : index
    %c0_23 = arith.constant 0 : index
    %35 = vector.load %arg3[%c6, %c0_22, %c0_23] : memref<9x8x8xbf16, #tpu.memory_space<vmem>>, vector<1x8x8xbf16>
    %36 = vector.shape_cast %35 : vector<1x8x8xbf16> to vector<8x8xbf16>
    %cst_24 = arith.constant dense<0.000000e+00> : vector<8x768xf32>
    %37 = tpu.matmul %36, %34, %cst_24 {dimension_numbers = #tpu.dot_dimension_numbers<[1], [0], [0], [1], [0, 0, 1, 1], [], []>} : vector<8x8xbf16>, vector<8x768xbf16>, vector<8x768xf32> -> vector<8x768xf32>
    %38 = arith.addf %33, %37 : vector<8x768xf32>
    %39 = vector.extract_strided_slice %3 {offsets = [0, 37], sizes = [8, 768], strides = [1, 1]} : vector<8x896xbf16> to vector<8x768xbf16>
    %c7 = arith.constant 7 : index
    %c0_25 = arith.constant 0 : index
    %c0_26 = arith.constant 0 : index
    %40 = vector.load %arg3[%c7, %c0_25, %c0_26] : memref<9x8x8xbf16, #tpu.memory_space<vmem>>, vector<1x8x8xbf16>
    %41 = vector.shape_cast %40 : vector<1x8x8xbf16> to vector<8x8xbf16>
    %cst_27 = arith.constant dense<0.000000e+00> : vector<8x768xf32>
    %42 = tpu.matmul %41, %39, %cst_27 {dimension_numbers = #tpu.dot_dimension_numbers<[1], [0], [0], [1], [0, 0, 1, 1], [], []>} : vector<8x8xbf16>, vector<8x768xbf16>, vector<8x768xf32> -> vector<8x768xf32>
    %43 = arith.addf %38, %42 : vector<8x768xf32>
    %44 = vector.extract_strided_slice %3 {offsets = [0, 38], sizes = [8, 768], strides = [1, 1]} : vector<8x896xbf16> to vector<8x768xbf16>
    %c8 = arith.constant 8 : index
    %c0_28 = arith.constant 0 : index
    %c0_29 = arith.constant 0 : index
    %45 = vector.load %arg3[%c8, %c0_28, %c0_29] : memref<9x8x8xbf16, #tpu.memory_space<vmem>>, vector<1x8x8xbf16>
    %46 = vector.shape_cast %45 : vector<1x8x8xbf16> to vector<8x8xbf16>
    %cst_30 = arith.constant dense<0.000000e+00> : vector<8x768xf32>
    %47 = tpu.matmul %46, %44, %cst_30 {dimension_numbers = #tpu.dot_dimension_numbers<[1], [0], [0], [1], [0, 0, 1, 1], [], []>} : vector<8x8xbf16>, vector<8x768xbf16>, vector<8x768xf32> -> vector<8x768xf32>
    %48 = arith.addf %43, %47 : vector<8x768xf32>
    %c0_31 = arith.constant 0 : index
    %c0_32 = arith.constant 0 : index
    %49 = vector.load %arg4[%c0_31, %c0_32] : memref<8x1xf32, #tpu.memory_space<vmem>>, vector<8x1xf32>
    %50 = vector.broadcast %49 : vector<8x1xf32> to vector<8x768xf32>
    %51 = arith.addf %48, %50 : vector<8x768xf32>
    %cst_33 = arith.constant 0.000000e+00 : f32
    %52 = vector.broadcast %cst_33 : f32 to vector<8x768xf32>
    %53 = arith.maximumf %51, %52 : vector<8x768xf32>
    %54 = arith.truncf %53 : vector<8x768xf32> to vector<8x768xbf16>
    %c0_34 = arith.constant 0 : index
    %c0_35 = arith.constant 0 : index
    %55 = vector.load %arg5[%c0_34, %c0_35] : memref<8x768xbf16, #tpu.memory_space<vmem>>, vector<8x768xbf16>
    tpu.vector_store %arg5[%c0_34, %c0_35], %54 {strides = array<i32>} : memref<8x768xbf16, #tpu.memory_space<vmem>>, vector<8x768xbf16>,
    return
  }
  func.func @transform_0(%arg0: i32) -> (i32, i32) {
    %c0_i32 = arith.constant 0 : i32
    %c0_i32_0 = arith.constant 0 : i32
    return %c0_i32, %arg0 : i32, i32
  }
  func.func @transform_1(%arg0: i32) -> (i32, i32) {
    %c1_i32 = arith.constant 1 : i32
    %0 = arith.addi %arg0, %c1_i32 : i32
    %c6_i32 = arith.constant 6 : i32
    %1 = arith.muli %0, %c6_i32 : i32
    %c0_i32 = arith.constant 0 : i32
    %c0_i32_0 = arith.constant 0 : i32
    return %c0_i32, %1 : i32, i32
  }
  func.func @transform_2(%arg0: i32) -> (i32, i32, i32) {
    %c0_i32 = arith.constant 0 : i32
    %c0_i32_0 = arith.constant 0 : i32
    %c0_i32_1 = arith.constant 0 : i32
    %c0_i32_2 = arith.constant 0 : i32
    return %c0_i32, %c0_i32_0, %c0_i32_1 : i32, i32, i32
  }
  func.func @transform_3(%arg0: i32) -> (i32, i32) {
    %c0_i32 = arith.constant 0 : i32
    %c0_i32_0 = arith.constant 0 : i32
    %c0_i32_1 = arith.constant 0 : i32
    return %c0_i32, %c0_i32_0 : i32, i32
  }
  func.func @transform_4(%arg0: i32) -> (i32, i32) {
    %c0_i32 = arith.constant 0 : i32
    %c0_i32_0 = arith.constant 0 : i32
    return %c0_i32, %arg0 : i32, i32
  }
}

module attributes {stable_mosaic.version = 11 : i64} {
  func.func @_max4_kernel(%arg0: i32, %arg1: memref<8x128xbf16, #tpu.memory_space<vmem>>, %arg2: memref<8x128xbf16, #tpu.memory_space<vmem>>, %arg3: memref<8x128xbf16, #tpu.memory_space<vmem>>, %arg4: memref<8x128xbf16, #tpu.memory_space<vmem>>, %arg5: memref<8x128xbf16, #tpu.memory_space<vmem>>) attributes {dimension_semantics = [#tpu.dimension_semantics<parallel>], iteration_bounds = array<i64: 1>, scalar_prefetch = 0 : i64, scratch_operands = 0 : i64, tpu.core_type = #tpu.core_type<tc>, window_params = [{transform_indices = @transform_0, window_bounds = array<i64: 8, 128>}, {transform_indices = @transform_1, window_bounds = array<i64: 8, 128>}, {transform_indices = @transform_2, window_bounds = array<i64: 8, 128>}, {transform_indices = @transform_3, window_bounds = array<i64: 8, 128>}, {transform_indices = @transform_4, window_bounds = array<i64: 8, 128>}]} {
    %c0 = arith.constant 0 : index
    %c0_0 = arith.constant 0 : index
    %0 = vector.load %arg1[%c0, %c0_0] : memref<8x128xbf16, #tpu.memory_space<vmem>>, vector<8x128xbf16>
    %c0_1 = arith.constant 0 : index
    %c0_2 = arith.constant 0 : index
    %1 = vector.load %arg2[%c0_1, %c0_2] : memref<8x128xbf16, #tpu.memory_space<vmem>>, vector<8x128xbf16>
    %2 = arith.maximumf %0, %1 : vector<8x128xbf16>
    %c0_3 = arith.constant 0 : index
    %c0_4 = arith.constant 0 : index
    %3 = vector.load %arg3[%c0_3, %c0_4] : memref<8x128xbf16, #tpu.memory_space<vmem>>, vector<8x128xbf16>
    %c0_5 = arith.constant 0 : index
    %c0_6 = arith.constant 0 : index
    %4 = vector.load %arg4[%c0_5, %c0_6] : memref<8x128xbf16, #tpu.memory_space<vmem>>, vector<8x128xbf16>
    %5 = arith.maximumf %3, %4 : vector<8x128xbf16>
    %6 = arith.maximumf %2, %5 : vector<8x128xbf16>
    %c0_7 = arith.constant 0 : index
    %c0_8 = arith.constant 0 : index
    %7 = vector.load %arg5[%c0_7, %c0_8] : memref<8x128xbf16, #tpu.memory_space<vmem>>, vector<8x128xbf16>
    tpu.vector_store %arg5[%c0_7, %c0_8], %6 {strides = array<i32>} : memref<8x128xbf16, #tpu.memory_space<vmem>>, vector<8x128xbf16>,
    return
  }
  func.func @transform_0(%arg0: i32) -> (i32, i32) {
    %c0_i32 = arith.constant 0 : i32
    %c0_i32_0 = arith.constant 0 : i32
    return %c0_i32, %arg0 : i32, i32
  }
  func.func @transform_1(%arg0: i32) -> (i32, i32) {
    %c0_i32 = arith.constant 0 : i32
    %c0_i32_0 = arith.constant 0 : i32
    return %c0_i32, %arg0 : i32, i32
  }
  func.func @transform_2(%arg0: i32) -> (i32, i32) {
    %c0_i32 = arith.constant 0 : i32
    %c0_i32_0 = arith.constant 0 : i32
    return %c0_i32, %arg0 : i32, i32
  }
  func.func @transform_3(%arg0: i32) -> (i32, i32) {
    %c0_i32 = arith.constant 0 : i32
    %c0_i32_0 = arith.constant 0 : i32
    return %c0_i32, %arg0 : i32, i32
  }
  func.func @transform_4(%arg0: i32) -> (i32, i32) {
    %c0_i32 = arith.constant 0 : i32
    %c0_i32_0 = arith.constant 0 : i32
    return %c0_i32, %arg0 : i32, i32
  }
}

module attributes {stable_mosaic.version = 11 : i64} {
  func.func @_conv3x3_kernel(%arg0: i32, %arg1: memref<8x256xbf16, #tpu.memory_space<vmem>>, %arg2: memref<8x128xbf16, #tpu.memory_space<vmem>>, %arg3: memref<9x16x8xbf16, #tpu.memory_space<vmem>>, %arg4: memref<16x1xf32, #tpu.memory_space<vmem>>, %arg5: memref<16x256xbf16, #tpu.memory_space<vmem>>) attributes {dimension_semantics = [#tpu.dimension_semantics<parallel>], iteration_bounds = array<i64: 1>, scalar_prefetch = 0 : i64, scratch_operands = 0 : i64, tpu.core_type = #tpu.core_type<tc>, window_params = [{transform_indices = @transform_0, window_bounds = array<i64: 8, 256>}, {transform_indices = @transform_1, window_bounds = array<i64: 8, 128>}, {pipeline_mode = #tpu.pipeline_mode<synchronous>, transform_indices = @transform_2, window_bounds = array<i64: 9, 16, 8>}, {pipeline_mode = #tpu.pipeline_mode<synchronous>, transform_indices = @transform_3, window_bounds = array<i64: 16, 1>}, {transform_indices = @transform_4, window_bounds = array<i64: 16, 256>}]} {
    %cst = arith.constant 0.000000e+00 : f32
    %0 = vector.broadcast %cst : f32 to vector<16x256xf32>
    %c0 = arith.constant 0 : index
    %c0_0 = arith.constant 0 : index
    %1 = vector.load %arg1[%c0, %c0_0] : memref<8x256xbf16, #tpu.memory_space<vmem>>, vector<8x256xbf16>
    %c0_1 = arith.constant 0 : index
    %c0_2 = arith.constant 0 : index
    %2 = vector.load %arg2[%c0_1, %c0_2] : memref<8x128xbf16, #tpu.memory_space<vmem>>, vector<8x128xbf16>
    %3 = tpu.concatenate %1, %2 in 1 : vector<8x256xbf16>, vector<8x128xbf16> -> vector<8x384xbf16>
    %4 = vector.extract_strided_slice %3 {offsets = [0, 0], sizes = [8, 256], strides = [1, 1]} : vector<8x384xbf16> to vector<8x256xbf16>
    %c0_3 = arith.constant 0 : index
    %c0_4 = arith.constant 0 : index
    %c0_5 = arith.constant 0 : index
    %5 = vector.load %arg3[%c0_3, %c0_4, %c0_5] : memref<9x16x8xbf16, #tpu.memory_space<vmem>>, vector<1x16x8xbf16>
    %6 = vector.shape_cast %5 : vector<1x16x8xbf16> to vector<16x8xbf16>
    %cst_6 = arith.constant dense<0.000000e+00> : vector<16x256xf32>
    %7 = tpu.matmul %6, %4, %cst_6 {dimension_numbers = #tpu.dot_dimension_numbers<[1], [0], [0], [1], [0, 0, 1, 1], [], []>} : vector<16x8xbf16>, vector<8x256xbf16>, vector<16x256xf32> -> vector<16x256xf32>
    %8 = arith.addf %0, %7 : vector<16x256xf32>
    %9 = vector.extract_strided_slice %3 {offsets = [0, 1], sizes = [8, 256], strides = [1, 1]} : vector<8x384xbf16> to vector<8x256xbf16>
    %c1 = arith.constant 1 : index
    %c0_7 = arith.constant 0 : index
    %c0_8 = arith.constant 0 : index
    %10 = vector.load %arg3[%c1, %c0_7, %c0_8] : memref<9x16x8xbf16, #tpu.memory_space<vmem>>, vector<1x16x8xbf16>
    %11 = vector.shape_cast %10 : vector<1x16x8xbf16> to vector<16x8xbf16>
    %cst_9 = arith.constant dense<0.000000e+00> : vector<16x256xf32>
    %12 = tpu.matmul %11, %9, %cst_9 {dimension_numbers = #tpu.dot_dimension_numbers<[1], [0], [0], [1], [0, 0, 1, 1], [], []>} : vector<16x8xbf16>, vector<8x256xbf16>, vector<16x256xf32> -> vector<16x256xf32>
    %13 = arith.addf %8, %12 : vector<16x256xf32>
    %14 = vector.extract_strided_slice %3 {offsets = [0, 2], sizes = [8, 256], strides = [1, 1]} : vector<8x384xbf16> to vector<8x256xbf16>
    %c2 = arith.constant 2 : index
    %c0_10 = arith.constant 0 : index
    %c0_11 = arith.constant 0 : index
    %15 = vector.load %arg3[%c2, %c0_10, %c0_11] : memref<9x16x8xbf16, #tpu.memory_space<vmem>>, vector<1x16x8xbf16>
    %16 = vector.shape_cast %15 : vector<1x16x8xbf16> to vector<16x8xbf16>
    %cst_12 = arith.constant dense<0.000000e+00> : vector<16x256xf32>
    %17 = tpu.matmul %16, %14, %cst_12 {dimension_numbers = #tpu.dot_dimension_numbers<[1], [0], [0], [1], [0, 0, 1, 1], [], []>} : vector<16x8xbf16>, vector<8x256xbf16>, vector<16x256xf32> -> vector<16x256xf32>
    %18 = arith.addf %13, %17 : vector<16x256xf32>
    %19 = vector.extract_strided_slice %3 {offsets = [0, 10], sizes = [8, 256], strides = [1, 1]} : vector<8x384xbf16> to vector<8x256xbf16>
    %c3 = arith.constant 3 : index
    %c0_13 = arith.constant 0 : index
    %c0_14 = arith.constant 0 : index
    %20 = vector.load %arg3[%c3, %c0_13, %c0_14] : memref<9x16x8xbf16, #tpu.memory_space<vmem>>, vector<1x16x8xbf16>
    %21 = vector.shape_cast %20 : vector<1x16x8xbf16> to vector<16x8xbf16>
    %cst_15 = arith.constant dense<0.000000e+00> : vector<16x256xf32>
    %22 = tpu.matmul %21, %19, %cst_15 {dimension_numbers = #tpu.dot_dimension_numbers<[1], [0], [0], [1], [0, 0, 1, 1], [], []>} : vector<16x8xbf16>, vector<8x256xbf16>, vector<16x256xf32> -> vector<16x256xf32>
    %23 = arith.addf %18, %22 : vector<16x256xf32>
    %24 = vector.extract_strided_slice %3 {offsets = [0, 11], sizes = [8, 256], strides = [1, 1]} : vector<8x384xbf16> to vector<8x256xbf16>
    %c4 = arith.constant 4 : index
    %c0_16 = arith.constant 0 : index
    %c0_17 = arith.constant 0 : index
    %25 = vector.load %arg3[%c4, %c0_16, %c0_17] : memref<9x16x8xbf16, #tpu.memory_space<vmem>>, vector<1x16x8xbf16>
    %26 = vector.shape_cast %25 : vector<1x16x8xbf16> to vector<16x8xbf16>
    %cst_18 = arith.constant dense<0.000000e+00> : vector<16x256xf32>
    %27 = tpu.matmul %26, %24, %cst_18 {dimension_numbers = #tpu.dot_dimension_numbers<[1], [0], [0], [1], [0, 0, 1, 1], [], []>} : vector<16x8xbf16>, vector<8x256xbf16>, vector<16x256xf32> -> vector<16x256xf32>
    %28 = arith.addf %23, %27 : vector<16x256xf32>
    %29 = vector.extract_strided_slice %3 {offsets = [0, 12], sizes = [8, 256], strides = [1, 1]} : vector<8x384xbf16> to vector<8x256xbf16>
    %c5 = arith.constant 5 : index
    %c0_19 = arith.constant 0 : index
    %c0_20 = arith.constant 0 : index
    %30 = vector.load %arg3[%c5, %c0_19, %c0_20] : memref<9x16x8xbf16, #tpu.memory_space<vmem>>, vector<1x16x8xbf16>
    %31 = vector.shape_cast %30 : vector<1x16x8xbf16> to vector<16x8xbf16>
    %cst_21 = arith.constant dense<0.000000e+00> : vector<16x256xf32>
    %32 = tpu.matmul %31, %29, %cst_21 {dimension_numbers = #tpu.dot_dimension_numbers<[1], [0], [0], [1], [0, 0, 1, 1], [], []>} : vector<16x8xbf16>, vector<8x256xbf16>, vector<16x256xf32> -> vector<16x256xf32>
    %33 = arith.addf %28, %32 : vector<16x256xf32>
    %34 = vector.extract_strided_slice %3 {offsets = [0, 20], sizes = [8, 256], strides = [1, 1]} : vector<8x384xbf16> to vector<8x256xbf16>
    %c6 = arith.constant 6 : index
    %c0_22 = arith.constant 0 : index
    %c0_23 = arith.constant 0 : index
    %35 = vector.load %arg3[%c6, %c0_22, %c0_23] : memref<9x16x8xbf16, #tpu.memory_space<vmem>>, vector<1x16x8xbf16>
    %36 = vector.shape_cast %35 : vector<1x16x8xbf16> to vector<16x8xbf16>
    %cst_24 = arith.constant dense<0.000000e+00> : vector<16x256xf32>
    %37 = tpu.matmul %36, %34, %cst_24 {dimension_numbers = #tpu.dot_dimension_numbers<[1], [0], [0], [1], [0, 0, 1, 1], [], []>} : vector<16x8xbf16>, vector<8x256xbf16>, vector<16x256xf32> -> vector<16x256xf32>
    %38 = arith.addf %33, %37 : vector<16x256xf32>
    %39 = vector.extract_strided_slice %3 {offsets = [0, 21], sizes = [8, 256], strides = [1, 1]} : vector<8x384xbf16> to vector<8x256xbf16>
    %c7 = arith.constant 7 : index
    %c0_25 = arith.constant 0 : index
    %c0_26 = arith.constant 0 : index
    %40 = vector.load %arg3[%c7, %c0_25, %c0_26] : memref<9x16x8xbf16, #tpu.memory_space<vmem>>, vector<1x16x8xbf16>
    %41 = vector.shape_cast %40 : vector<1x16x8xbf16> to vector<16x8xbf16>
    %cst_27 = arith.constant dense<0.000000e+00> : vector<16x256xf32>
    %42 = tpu.matmul %41, %39, %cst_27 {dimension_numbers = #tpu.dot_dimension_numbers<[1], [0], [0], [1], [0, 0, 1, 1], [], []>} : vector<16x8xbf16>, vector<8x256xbf16>, vector<16x256xf32> -> vector<16x256xf32>
    %43 = arith.addf %38, %42 : vector<16x256xf32>
    %44 = vector.extract_strided_slice %3 {offsets = [0, 22], sizes = [8, 256], strides = [1, 1]} : vector<8x384xbf16> to vector<8x256xbf16>
    %c8 = arith.constant 8 : index
    %c0_28 = arith.constant 0 : index
    %c0_29 = arith.constant 0 : index
    %45 = vector.load %arg3[%c8, %c0_28, %c0_29] : memref<9x16x8xbf16, #tpu.memory_space<vmem>>, vector<1x16x8xbf16>
    %46 = vector.shape_cast %45 : vector<1x16x8xbf16> to vector<16x8xbf16>
    %cst_30 = arith.constant dense<0.000000e+00> : vector<16x256xf32>
    %47 = tpu.matmul %46, %44, %cst_30 {dimension_numbers = #tpu.dot_dimension_numbers<[1], [0], [0], [1], [0, 0, 1, 1], [], []>} : vector<16x8xbf16>, vector<8x256xbf16>, vector<16x256xf32> -> vector<16x256xf32>
    %48 = arith.addf %43, %47 : vector<16x256xf32>
    %c0_31 = arith.constant 0 : index
    %c0_32 = arith.constant 0 : index
    %49 = vector.load %arg4[%c0_31, %c0_32] : memref<16x1xf32, #tpu.memory_space<vmem>>, vector<16x1xf32>
    %50 = vector.broadcast %49 : vector<16x1xf32> to vector<16x256xf32>
    %51 = arith.addf %48, %50 : vector<16x256xf32>
    %cst_33 = arith.constant 0.000000e+00 : f32
    %52 = vector.broadcast %cst_33 : f32 to vector<16x256xf32>
    %53 = arith.maximumf %51, %52 : vector<16x256xf32>
    %54 = arith.truncf %53 : vector<16x256xf32> to vector<16x256xbf16>
    %c0_34 = arith.constant 0 : index
    %c0_35 = arith.constant 0 : index
    %55 = vector.load %arg5[%c0_34, %c0_35] : memref<16x256xbf16, #tpu.memory_space<vmem>>, vector<16x256xbf16>
    tpu.vector_store %arg5[%c0_34, %c0_35], %54 {strides = array<i32>} : memref<16x256xbf16, #tpu.memory_space<vmem>>, vector<16x256xbf16>,
    return
  }
  func.func @transform_0(%arg0: i32) -> (i32, i32) {
    %c0_i32 = arith.constant 0 : i32
    %c0_i32_0 = arith.constant 0 : i32
    return %c0_i32, %arg0 : i32, i32
  }
  func.func @transform_1(%arg0: i32) -> (i32, i32) {
    %c1_i32 = arith.constant 1 : i32
    %0 = arith.addi %arg0, %c1_i32 : i32
    %c2_i32 = arith.constant 2 : i32
    %1 = arith.muli %0, %c2_i32 : i32
    %c0_i32 = arith.constant 0 : i32
    %c0_i32_0 = arith.constant 0 : i32
    return %c0_i32, %1 : i32, i32
  }
  func.func @transform_2(%arg0: i32) -> (i32, i32, i32) {
    %c0_i32 = arith.constant 0 : i32
    %c0_i32_0 = arith.constant 0 : i32
    %c0_i32_1 = arith.constant 0 : i32
    %c0_i32_2 = arith.constant 0 : i32
    return %c0_i32, %c0_i32_0, %c0_i32_1 : i32, i32, i32
  }
  func.func @transform_3(%arg0: i32) -> (i32, i32) {
    %c0_i32 = arith.constant 0 : i32
    %c0_i32_0 = arith.constant 0 : i32
    %c0_i32_1 = arith.constant 0 : i32
    return %c0_i32, %c0_i32_0 : i32, i32
  }
  func.func @transform_4(%arg0: i32) -> (i32, i32) {
    %c0_i32 = arith.constant 0 : i32
    %c0_i32_0 = arith.constant 0 : i32
    return %c0_i32, %arg0 : i32, i32
  }
}

module attributes {stable_mosaic.version = 11 : i64} {
  func.func @_conv3x3_kernel(%arg0: i32, %arg1: memref<16x256xbf16, #tpu.memory_space<vmem>>, %arg2: memref<16x128xbf16, #tpu.memory_space<vmem>>, %arg3: memref<9x16x16xbf16, #tpu.memory_space<vmem>>, %arg4: memref<16x1xf32, #tpu.memory_space<vmem>>, %arg5: memref<16x256xbf16, #tpu.memory_space<vmem>>) attributes {dimension_semantics = [#tpu.dimension_semantics<parallel>], iteration_bounds = array<i64: 1>, scalar_prefetch = 0 : i64, scratch_operands = 0 : i64, tpu.core_type = #tpu.core_type<tc>, window_params = [{transform_indices = @transform_0, window_bounds = array<i64: 16, 256>}, {transform_indices = @transform_1, window_bounds = array<i64: 16, 128>}, {pipeline_mode = #tpu.pipeline_mode<synchronous>, transform_indices = @transform_2, window_bounds = array<i64: 9, 16, 16>}, {pipeline_mode = #tpu.pipeline_mode<synchronous>, transform_indices = @transform_3, window_bounds = array<i64: 16, 1>}, {transform_indices = @transform_4, window_bounds = array<i64: 16, 256>}]} {
    %cst = arith.constant 0.000000e+00 : f32
    %0 = vector.broadcast %cst : f32 to vector<16x256xf32>
    %c0 = arith.constant 0 : index
    %c0_0 = arith.constant 0 : index
    %1 = vector.load %arg1[%c0, %c0_0] : memref<16x256xbf16, #tpu.memory_space<vmem>>, vector<16x256xbf16>
    %c0_1 = arith.constant 0 : index
    %c0_2 = arith.constant 0 : index
    %2 = vector.load %arg2[%c0_1, %c0_2] : memref<16x128xbf16, #tpu.memory_space<vmem>>, vector<16x128xbf16>
    %3 = tpu.concatenate %1, %2 in 1 : vector<16x256xbf16>, vector<16x128xbf16> -> vector<16x384xbf16>
    %4 = vector.extract_strided_slice %3 {offsets = [0, 0], sizes = [16, 256], strides = [1, 1]} : vector<16x384xbf16> to vector<16x256xbf16>
    %c0_3 = arith.constant 0 : index
    %c0_4 = arith.constant 0 : index
    %c0_5 = arith.constant 0 : index
    %5 = vector.load %arg3[%c0_3, %c0_4, %c0_5] : memref<9x16x16xbf16, #tpu.memory_space<vmem>>, vector<1x16x16xbf16>
    %6 = vector.shape_cast %5 : vector<1x16x16xbf16> to vector<16x16xbf16>
    %cst_6 = arith.constant dense<0.000000e+00> : vector<16x256xf32>
    %7 = tpu.matmul %6, %4, %cst_6 {dimension_numbers = #tpu.dot_dimension_numbers<[1], [0], [0], [1], [0, 0, 1, 1], [], []>} : vector<16x16xbf16>, vector<16x256xbf16>, vector<16x256xf32> -> vector<16x256xf32>
    %8 = arith.addf %0, %7 : vector<16x256xf32>
    %9 = vector.extract_strided_slice %3 {offsets = [0, 1], sizes = [16, 256], strides = [1, 1]} : vector<16x384xbf16> to vector<16x256xbf16>
    %c1 = arith.constant 1 : index
    %c0_7 = arith.constant 0 : index
    %c0_8 = arith.constant 0 : index
    %10 = vector.load %arg3[%c1, %c0_7, %c0_8] : memref<9x16x16xbf16, #tpu.memory_space<vmem>>, vector<1x16x16xbf16>
    %11 = vector.shape_cast %10 : vector<1x16x16xbf16> to vector<16x16xbf16>
    %cst_9 = arith.constant dense<0.000000e+00> : vector<16x256xf32>
    %12 = tpu.matmul %11, %9, %cst_9 {dimension_numbers = #tpu.dot_dimension_numbers<[1], [0], [0], [1], [0, 0, 1, 1], [], []>} : vector<16x16xbf16>, vector<16x256xbf16>, vector<16x256xf32> -> vector<16x256xf32>
    %13 = arith.addf %8, %12 : vector<16x256xf32>
    %14 = vector.extract_strided_slice %3 {offsets = [0, 2], sizes = [16, 256], strides = [1, 1]} : vector<16x384xbf16> to vector<16x256xbf16>
    %c2 = arith.constant 2 : index
    %c0_10 = arith.constant 0 : index
    %c0_11 = arith.constant 0 : index
    %15 = vector.load %arg3[%c2, %c0_10, %c0_11] : memref<9x16x16xbf16, #tpu.memory_space<vmem>>, vector<1x16x16xbf16>
    %16 = vector.shape_cast %15 : vector<1x16x16xbf16> to vector<16x16xbf16>
    %cst_12 = arith.constant dense<0.000000e+00> : vector<16x256xf32>
    %17 = tpu.matmul %16, %14, %cst_12 {dimension_numbers = #tpu.dot_dimension_numbers<[1], [0], [0], [1], [0, 0, 1, 1], [], []>} : vector<16x16xbf16>, vector<16x256xbf16>, vector<16x256xf32> -> vector<16x256xf32>
    %18 = arith.addf %13, %17 : vector<16x256xf32>
    %19 = vector.extract_strided_slice %3 {offsets = [0, 10], sizes = [16, 256], strides = [1, 1]} : vector<16x384xbf16> to vector<16x256xbf16>
    %c3 = arith.constant 3 : index
    %c0_13 = arith.constant 0 : index
    %c0_14 = arith.constant 0 : index
    %20 = vector.load %arg3[%c3, %c0_13, %c0_14] : memref<9x16x16xbf16, #tpu.memory_space<vmem>>, vector<1x16x16xbf16>
    %21 = vector.shape_cast %20 : vector<1x16x16xbf16> to vector<16x16xbf16>
    %cst_15 = arith.constant dense<0.000000e+00> : vector<16x256xf32>
    %22 = tpu.matmul %21, %19, %cst_15 {dimension_numbers = #tpu.dot_dimension_numbers<[1], [0], [0], [1], [0, 0, 1, 1], [], []>} : vector<16x16xbf16>, vector<16x256xbf16>, vector<16x256xf32> -> vector<16x256xf32>
    %23 = arith.addf %18, %22 : vector<16x256xf32>
    %24 = vector.extract_strided_slice %3 {offsets = [0, 11], sizes = [16, 256], strides = [1, 1]} : vector<16x384xbf16> to vector<16x256xbf16>
    %c4 = arith.constant 4 : index
    %c0_16 = arith.constant 0 : index
    %c0_17 = arith.constant 0 : index
    %25 = vector.load %arg3[%c4, %c0_16, %c0_17] : memref<9x16x16xbf16, #tpu.memory_space<vmem>>, vector<1x16x16xbf16>
    %26 = vector.shape_cast %25 : vector<1x16x16xbf16> to vector<16x16xbf16>
    %cst_18 = arith.constant dense<0.000000e+00> : vector<16x256xf32>
    %27 = tpu.matmul %26, %24, %cst_18 {dimension_numbers = #tpu.dot_dimension_numbers<[1], [0], [0], [1], [0, 0, 1, 1], [], []>} : vector<16x16xbf16>, vector<16x256xbf16>, vector<16x256xf32> -> vector<16x256xf32>
    %28 = arith.addf %23, %27 : vector<16x256xf32>
    %29 = vector.extract_strided_slice %3 {offsets = [0, 12], sizes = [16, 256], strides = [1, 1]} : vector<16x384xbf16> to vector<16x256xbf16>
    %c5 = arith.constant 5 : index
    %c0_19 = arith.constant 0 : index
    %c0_20 = arith.constant 0 : index
    %30 = vector.load %arg3[%c5, %c0_19, %c0_20] : memref<9x16x16xbf16, #tpu.memory_space<vmem>>, vector<1x16x16xbf16>
    %31 = vector.shape_cast %30 : vector<1x16x16xbf16> to vector<16x16xbf16>
    %cst_21 = arith.constant dense<0.000000e+00> : vector<16x256xf32>
    %32 = tpu.matmul %31, %29, %cst_21 {dimension_numbers = #tpu.dot_dimension_numbers<[1], [0], [0], [1], [0, 0, 1, 1], [], []>} : vector<16x16xbf16>, vector<16x256xbf16>, vector<16x256xf32> -> vector<16x256xf32>
    %33 = arith.addf %28, %32 : vector<16x256xf32>
    %34 = vector.extract_strided_slice %3 {offsets = [0, 20], sizes = [16, 256], strides = [1, 1]} : vector<16x384xbf16> to vector<16x256xbf16>
    %c6 = arith.constant 6 : index
    %c0_22 = arith.constant 0 : index
    %c0_23 = arith.constant 0 : index
    %35 = vector.load %arg3[%c6, %c0_22, %c0_23] : memref<9x16x16xbf16, #tpu.memory_space<vmem>>, vector<1x16x16xbf16>
    %36 = vector.shape_cast %35 : vector<1x16x16xbf16> to vector<16x16xbf16>
    %cst_24 = arith.constant dense<0.000000e+00> : vector<16x256xf32>
    %37 = tpu.matmul %36, %34, %cst_24 {dimension_numbers = #tpu.dot_dimension_numbers<[1], [0], [0], [1], [0, 0, 1, 1], [], []>} : vector<16x16xbf16>, vector<16x256xbf16>, vector<16x256xf32> -> vector<16x256xf32>
    %38 = arith.addf %33, %37 : vector<16x256xf32>
    %39 = vector.extract_strided_slice %3 {offsets = [0, 21], sizes = [16, 256], strides = [1, 1]} : vector<16x384xbf16> to vector<16x256xbf16>
    %c7 = arith.constant 7 : index
    %c0_25 = arith.constant 0 : index
    %c0_26 = arith.constant 0 : index
    %40 = vector.load %arg3[%c7, %c0_25, %c0_26] : memref<9x16x16xbf16, #tpu.memory_space<vmem>>, vector<1x16x16xbf16>
    %41 = vector.shape_cast %40 : vector<1x16x16xbf16> to vector<16x16xbf16>
    %cst_27 = arith.constant dense<0.000000e+00> : vector<16x256xf32>
    %42 = tpu.matmul %41, %39, %cst_27 {dimension_numbers = #tpu.dot_dimension_numbers<[1], [0], [0], [1], [0, 0, 1, 1], [], []>} : vector<16x16xbf16>, vector<16x256xbf16>, vector<16x256xf32> -> vector<16x256xf32>
    %43 = arith.addf %38, %42 : vector<16x256xf32>
    %44 = vector.extract_strided_slice %3 {offsets = [0, 22], sizes = [16, 256], strides = [1, 1]} : vector<16x384xbf16> to vector<16x256xbf16>
    %c8 = arith.constant 8 : index
    %c0_28 = arith.constant 0 : index
    %c0_29 = arith.constant 0 : index
    %45 = vector.load %arg3[%c8, %c0_28, %c0_29] : memref<9x16x16xbf16, #tpu.memory_space<vmem>>, vector<1x16x16xbf16>
    %46 = vector.shape_cast %45 : vector<1x16x16xbf16> to vector<16x16xbf16>
    %cst_30 = arith.constant dense<0.000000e+00> : vector<16x256xf32>
    %47 = tpu.matmul %46, %44, %cst_30 {dimension_numbers = #tpu.dot_dimension_numbers<[1], [0], [0], [1], [0, 0, 1, 1], [], []>} : vector<16x16xbf16>, vector<16x256xbf16>, vector<16x256xf32> -> vector<16x256xf32>
    %48 = arith.addf %43, %47 : vector<16x256xf32>
    %c0_31 = arith.constant 0 : index
    %c0_32 = arith.constant 0 : index
    %49 = vector.load %arg4[%c0_31, %c0_32] : memref<16x1xf32, #tpu.memory_space<vmem>>, vector<16x1xf32>
    %50 = vector.broadcast %49 : vector<16x1xf32> to vector<16x256xf32>
    %51 = arith.addf %48, %50 : vector<16x256xf32>
    %cst_33 = arith.constant 0.000000e+00 : f32
    %52 = vector.broadcast %cst_33 : f32 to vector<16x256xf32>
    %53 = arith.maximumf %51, %52 : vector<16x256xf32>
    %54 = arith.truncf %53 : vector<16x256xf32> to vector<16x256xbf16>
    %c0_34 = arith.constant 0 : index
    %c0_35 = arith.constant 0 : index
    %55 = vector.load %arg5[%c0_34, %c0_35] : memref<16x256xbf16, #tpu.memory_space<vmem>>, vector<16x256xbf16>
    tpu.vector_store %arg5[%c0_34, %c0_35], %54 {strides = array<i32>} : memref<16x256xbf16, #tpu.memory_space<vmem>>, vector<16x256xbf16>,
    return
  }
  func.func @transform_0(%arg0: i32) -> (i32, i32) {
    %c0_i32 = arith.constant 0 : i32
    %c0_i32_0 = arith.constant 0 : i32
    return %c0_i32, %arg0 : i32, i32
  }
  func.func @transform_1(%arg0: i32) -> (i32, i32) {
    %c1_i32 = arith.constant 1 : i32
    %0 = arith.addi %arg0, %c1_i32 : i32
    %c2_i32 = arith.constant 2 : i32
    %1 = arith.muli %0, %c2_i32 : i32
    %c0_i32 = arith.constant 0 : i32
    %c0_i32_0 = arith.constant 0 : i32
    return %c0_i32, %1 : i32, i32
  }
  func.func @transform_2(%arg0: i32) -> (i32, i32, i32) {
    %c0_i32 = arith.constant 0 : i32
    %c0_i32_0 = arith.constant 0 : i32
    %c0_i32_1 = arith.constant 0 : i32
    %c0_i32_2 = arith.constant 0 : i32
    return %c0_i32, %c0_i32_0, %c0_i32_1 : i32, i32, i32
  }
  func.func @transform_3(%arg0: i32) -> (i32, i32) {
    %c0_i32 = arith.constant 0 : i32
    %c0_i32_0 = arith.constant 0 : i32
    %c0_i32_1 = arith.constant 0 : i32
    return %c0_i32, %c0_i32_0 : i32, i32
  }
  func.func @transform_4(%arg0: i32) -> (i32, i32) {
    %c0_i32 = arith.constant 0 : i32
    %c0_i32_0 = arith.constant 0 : i32
    return %c0_i32, %arg0 : i32, i32
  }
}

module attributes {stable_mosaic.version = 11 : i64} {
  func.func @_max4_kernel(%arg0: i32, %arg1: memref<16x128xbf16, #tpu.memory_space<vmem>>, %arg2: memref<16x128xbf16, #tpu.memory_space<vmem>>, %arg3: memref<16x128xbf16, #tpu.memory_space<vmem>>, %arg4: memref<16x128xbf16, #tpu.memory_space<vmem>>, %arg5: memref<16x128xbf16, #tpu.memory_space<vmem>>) attributes {dimension_semantics = [#tpu.dimension_semantics<parallel>], iteration_bounds = array<i64: 1>, scalar_prefetch = 0 : i64, scratch_operands = 0 : i64, tpu.core_type = #tpu.core_type<tc>, window_params = [{transform_indices = @transform_0, window_bounds = array<i64: 16, 128>}, {transform_indices = @transform_1, window_bounds = array<i64: 16, 128>}, {transform_indices = @transform_2, window_bounds = array<i64: 16, 128>}, {transform_indices = @transform_3, window_bounds = array<i64: 16, 128>}, {transform_indices = @transform_4, window_bounds = array<i64: 16, 128>}]} {
    %c0 = arith.constant 0 : index
    %c0_0 = arith.constant 0 : index
    %0 = vector.load %arg1[%c0, %c0_0] : memref<16x128xbf16, #tpu.memory_space<vmem>>, vector<16x128xbf16>
    %c0_1 = arith.constant 0 : index
    %c0_2 = arith.constant 0 : index
    %1 = vector.load %arg2[%c0_1, %c0_2] : memref<16x128xbf16, #tpu.memory_space<vmem>>, vector<16x128xbf16>
    %2 = arith.maximumf %0, %1 : vector<16x128xbf16>
    %c0_3 = arith.constant 0 : index
    %c0_4 = arith.constant 0 : index
    %3 = vector.load %arg3[%c0_3, %c0_4] : memref<16x128xbf16, #tpu.memory_space<vmem>>, vector<16x128xbf16>
    %c0_5 = arith.constant 0 : index
    %c0_6 = arith.constant 0 : index
    %4 = vector.load %arg4[%c0_5, %c0_6] : memref<16x128xbf16, #tpu.memory_space<vmem>>, vector<16x128xbf16>
    %5 = arith.maximumf %3, %4 : vector<16x128xbf16>
    %6 = arith.maximumf %2, %5 : vector<16x128xbf16>
    %c0_7 = arith.constant 0 : index
    %c0_8 = arith.constant 0 : index
    %7 = vector.load %arg5[%c0_7, %c0_8] : memref<16x128xbf16, #tpu.memory_space<vmem>>, vector<16x128xbf16>
    tpu.vector_store %arg5[%c0_7, %c0_8], %6 {strides = array<i32>} : memref<16x128xbf16, #tpu.memory_space<vmem>>, vector<16x128xbf16>,
    return
  }
  func.func @transform_0(%arg0: i32) -> (i32, i32) {
    %c0_i32 = arith.constant 0 : i32
    %c0_i32_0 = arith.constant 0 : i32
    return %c0_i32, %arg0 : i32, i32
  }
  func.func @transform_1(%arg0: i32) -> (i32, i32) {
    %c0_i32 = arith.constant 0 : i32
    %c0_i32_0 = arith.constant 0 : i32
    return %c0_i32, %arg0 : i32, i32
  }
  func.func @transform_2(%arg0: i32) -> (i32, i32) {
    %c0_i32 = arith.constant 0 : i32
    %c0_i32_0 = arith.constant 0 : i32
    return %c0_i32, %arg0 : i32, i32
  }
  func.func @transform_3(%arg0: i32) -> (i32, i32) {
    %c0_i32 = arith.constant 0 : i32
    %c0_i32_0 = arith.constant 0 : i32
    return %c0_i32, %arg0 : i32, i32
  }
  func.func @transform_4(%arg0: i32) -> (i32, i32) {
    %c0_i32 = arith.constant 0 : i32
    %c0_i32_0 = arith.constant 0 : i32
    return %c0_i32, %arg0 : i32, i32
  }
}

module attributes {stable_mosaic.version = 11 : i64} {
  func.func @_conv3x3_kernel(%arg0: i32, %arg1: memref<16x128xbf16, #tpu.memory_space<vmem>>, %arg2: memref<16x128xbf16, #tpu.memory_space<vmem>>, %arg3: memref<9x32x16xbf16, #tpu.memory_space<vmem>>, %arg4: memref<32x1xf32, #tpu.memory_space<vmem>>, %arg5: memref<32x128xbf16, #tpu.memory_space<vmem>>) attributes {dimension_semantics = [#tpu.dimension_semantics<parallel>], iteration_bounds = array<i64: 1>, scalar_prefetch = 0 : i64, scratch_operands = 0 : i64, tpu.core_type = #tpu.core_type<tc>, window_params = [{transform_indices = @transform_0, window_bounds = array<i64: 16, 128>}, {transform_indices = @transform_1, window_bounds = array<i64: 16, 128>}, {pipeline_mode = #tpu.pipeline_mode<synchronous>, transform_indices = @transform_2, window_bounds = array<i64: 9, 32, 16>}, {pipeline_mode = #tpu.pipeline_mode<synchronous>, transform_indices = @transform_3, window_bounds = array<i64: 32, 1>}, {transform_indices = @transform_4, window_bounds = array<i64: 32, 128>}]} {
    %cst = arith.constant 0.000000e+00 : f32
    %0 = vector.broadcast %cst : f32 to vector<32x128xf32>
    %c0 = arith.constant 0 : index
    %c0_0 = arith.constant 0 : index
    %1 = vector.load %arg1[%c0, %c0_0] : memref<16x128xbf16, #tpu.memory_space<vmem>>, vector<16x128xbf16>
    %c0_1 = arith.constant 0 : index
    %c0_2 = arith.constant 0 : index
    %2 = vector.load %arg2[%c0_1, %c0_2] : memref<16x128xbf16, #tpu.memory_space<vmem>>, vector<16x128xbf16>
    %3 = tpu.concatenate %1, %2 in 1 : vector<16x128xbf16>, vector<16x128xbf16> -> vector<16x256xbf16>
    %4 = vector.extract_strided_slice %3 {offsets = [0, 0], sizes = [16, 128], strides = [1, 1]} : vector<16x256xbf16> to vector<16x128xbf16>
    %c0_3 = arith.constant 0 : index
    %c0_4 = arith.constant 0 : index
    %c0_5 = arith.constant 0 : index
    %5 = vector.load %arg3[%c0_3, %c0_4, %c0_5] : memref<9x32x16xbf16, #tpu.memory_space<vmem>>, vector<1x32x16xbf16>
    %6 = vector.shape_cast %5 : vector<1x32x16xbf16> to vector<32x16xbf16>
    %cst_6 = arith.constant dense<0.000000e+00> : vector<32x128xf32>
    %7 = tpu.matmul %6, %4, %cst_6 {dimension_numbers = #tpu.dot_dimension_numbers<[1], [0], [0], [1], [0, 0, 1, 1], [], []>} : vector<32x16xbf16>, vector<16x128xbf16>, vector<32x128xf32> -> vector<32x128xf32>
    %8 = arith.addf %0, %7 : vector<32x128xf32>
    %9 = vector.extract_strided_slice %3 {offsets = [0, 1], sizes = [16, 128], strides = [1, 1]} : vector<16x256xbf16> to vector<16x128xbf16>
    %c1 = arith.constant 1 : index
    %c0_7 = arith.constant 0 : index
    %c0_8 = arith.constant 0 : index
    %10 = vector.load %arg3[%c1, %c0_7, %c0_8] : memref<9x32x16xbf16, #tpu.memory_space<vmem>>, vector<1x32x16xbf16>
    %11 = vector.shape_cast %10 : vector<1x32x16xbf16> to vector<32x16xbf16>
    %cst_9 = arith.constant dense<0.000000e+00> : vector<32x128xf32>
    %12 = tpu.matmul %11, %9, %cst_9 {dimension_numbers = #tpu.dot_dimension_numbers<[1], [0], [0], [1], [0, 0, 1, 1], [], []>} : vector<32x16xbf16>, vector<16x128xbf16>, vector<32x128xf32> -> vector<32x128xf32>
    %13 = arith.addf %8, %12 : vector<32x128xf32>
    %14 = vector.extract_strided_slice %3 {offsets = [0, 2], sizes = [16, 128], strides = [1, 1]} : vector<16x256xbf16> to vector<16x128xbf16>
    %c2 = arith.constant 2 : index
    %c0_10 = arith.constant 0 : index
    %c0_11 = arith.constant 0 : index
    %15 = vector.load %arg3[%c2, %c0_10, %c0_11] : memref<9x32x16xbf16, #tpu.memory_space<vmem>>, vector<1x32x16xbf16>
    %16 = vector.shape_cast %15 : vector<1x32x16xbf16> to vector<32x16xbf16>
    %cst_12 = arith.constant dense<0.000000e+00> : vector<32x128xf32>
    %17 = tpu.matmul %16, %14, %cst_12 {dimension_numbers = #tpu.dot_dimension_numbers<[1], [0], [0], [1], [0, 0, 1, 1], [], []>} : vector<32x16xbf16>, vector<16x128xbf16>, vector<32x128xf32> -> vector<32x128xf32>
    %18 = arith.addf %13, %17 : vector<32x128xf32>
    %19 = vector.extract_strided_slice %3 {offsets = [0, 6], sizes = [16, 128], strides = [1, 1]} : vector<16x256xbf16> to vector<16x128xbf16>
    %c3 = arith.constant 3 : index
    %c0_13 = arith.constant 0 : index
    %c0_14 = arith.constant 0 : index
    %20 = vector.load %arg3[%c3, %c0_13, %c0_14] : memref<9x32x16xbf16, #tpu.memory_space<vmem>>, vector<1x32x16xbf16>
    %21 = vector.shape_cast %20 : vector<1x32x16xbf16> to vector<32x16xbf16>
    %cst_15 = arith.constant dense<0.000000e+00> : vector<32x128xf32>
    %22 = tpu.matmul %21, %19, %cst_15 {dimension_numbers = #tpu.dot_dimension_numbers<[1], [0], [0], [1], [0, 0, 1, 1], [], []>} : vector<32x16xbf16>, vector<16x128xbf16>, vector<32x128xf32> -> vector<32x128xf32>
    %23 = arith.addf %18, %22 : vector<32x128xf32>
    %24 = vector.extract_strided_slice %3 {offsets = [0, 7], sizes = [16, 128], strides = [1, 1]} : vector<16x256xbf16> to vector<16x128xbf16>
    %c4 = arith.constant 4 : index
    %c0_16 = arith.constant 0 : index
    %c0_17 = arith.constant 0 : index
    %25 = vector.load %arg3[%c4, %c0_16, %c0_17] : memref<9x32x16xbf16, #tpu.memory_space<vmem>>, vector<1x32x16xbf16>
    %26 = vector.shape_cast %25 : vector<1x32x16xbf16> to vector<32x16xbf16>
    %cst_18 = arith.constant dense<0.000000e+00> : vector<32x128xf32>
    %27 = tpu.matmul %26, %24, %cst_18 {dimension_numbers = #tpu.dot_dimension_numbers<[1], [0], [0], [1], [0, 0, 1, 1], [], []>} : vector<32x16xbf16>, vector<16x128xbf16>, vector<32x128xf32> -> vector<32x128xf32>
    %28 = arith.addf %23, %27 : vector<32x128xf32>
    %29 = vector.extract_strided_slice %3 {offsets = [0, 8], sizes = [16, 128], strides = [1, 1]} : vector<16x256xbf16> to vector<16x128xbf16>
    %c5 = arith.constant 5 : index
    %c0_19 = arith.constant 0 : index
    %c0_20 = arith.constant 0 : index
    %30 = vector.load %arg3[%c5, %c0_19, %c0_20] : memref<9x32x16xbf16, #tpu.memory_space<vmem>>, vector<1x32x16xbf16>
    %31 = vector.shape_cast %30 : vector<1x32x16xbf16> to vector<32x16xbf16>
    %cst_21 = arith.constant dense<0.000000e+00> : vector<32x128xf32>
    %32 = tpu.matmul %31, %29, %cst_21 {dimension_numbers = #tpu.dot_dimension_numbers<[1], [0], [0], [1], [0, 0, 1, 1], [], []>} : vector<32x16xbf16>, vector<16x128xbf16>, vector<32x128xf32> -> vector<32x128xf32>
    %33 = arith.addf %28, %32 : vector<32x128xf32>
    %34 = vector.extract_strided_slice %3 {offsets = [0, 12], sizes = [16, 128], strides = [1, 1]} : vector<16x256xbf16> to vector<16x128xbf16>
    %c6 = arith.constant 6 : index
    %c0_22 = arith.constant 0 : index
    %c0_23 = arith.constant 0 : index
    %35 = vector.load %arg3[%c6, %c0_22, %c0_23] : memref<9x32x16xbf16, #tpu.memory_space<vmem>>, vector<1x32x16xbf16>
    %36 = vector.shape_cast %35 : vector<1x32x16xbf16> to vector<32x16xbf16>
    %cst_24 = arith.constant dense<0.000000e+00> : vector<32x128xf32>
    %37 = tpu.matmul %36, %34, %cst_24 {dimension_numbers = #tpu.dot_dimension_numbers<[1], [0], [0], [1], [0, 0, 1, 1], [], []>} : vector<32x16xbf16>, vector<16x128xbf16>, vector<32x128xf32> -> vector<32x128xf32>
    %38 = arith.addf %33, %37 : vector<32x128xf32>
    %39 = vector.extract_strided_slice %3 {offsets = [0, 13], sizes = [16, 128], strides = [1, 1]} : vector<16x256xbf16> to vector<16x128xbf16>
    %c7 = arith.constant 7 : index
    %c0_25 = arith.constant 0 : index
    %c0_26 = arith.constant 0 : index
    %40 = vector.load %arg3[%c7, %c0_25, %c0_26] : memref<9x32x16xbf16, #tpu.memory_space<vmem>>, vector<1x32x16xbf16>
    %41 = vector.shape_cast %40 : vector<1x32x16xbf16> to vector<32x16xbf16>
    %cst_27 = arith.constant dense<0.000000e+00> : vector<32x128xf32>
    %42 = tpu.matmul %41, %39, %cst_27 {dimension_numbers = #tpu.dot_dimension_numbers<[1], [0], [0], [1], [0, 0, 1, 1], [], []>} : vector<32x16xbf16>, vector<16x128xbf16>, vector<32x128xf32> -> vector<32x128xf32>
    %43 = arith.addf %38, %42 : vector<32x128xf32>
    %44 = vector.extract_strided_slice %3 {offsets = [0, 14], sizes = [16, 128], strides = [1, 1]} : vector<16x256xbf16> to vector<16x128xbf16>
    %c8 = arith.constant 8 : index
    %c0_28 = arith.constant 0 : index
    %c0_29 = arith.constant 0 : index
    %45 = vector.load %arg3[%c8, %c0_28, %c0_29] : memref<9x32x16xbf16, #tpu.memory_space<vmem>>, vector<1x32x16xbf16>
    %46 = vector.shape_cast %45 : vector<1x32x16xbf16> to vector<32x16xbf16>
    %cst_30 = arith.constant dense<0.000000e+00> : vector<32x128xf32>
    %47 = tpu.matmul %46, %44, %cst_30 {dimension_numbers = #tpu.dot_dimension_numbers<[1], [0], [0], [1], [0, 0, 1, 1], [], []>} : vector<32x16xbf16>, vector<16x128xbf16>, vector<32x128xf32> -> vector<32x128xf32>
    %48 = arith.addf %43, %47 : vector<32x128xf32>
    %c0_31 = arith.constant 0 : index
    %c0_32 = arith.constant 0 : index
    %49 = vector.load %arg4[%c0_31, %c0_32] : memref<32x1xf32, #tpu.memory_space<vmem>>, vector<32x1xf32>
    %50 = vector.broadcast %49 : vector<32x1xf32> to vector<32x128xf32>
    %51 = arith.addf %48, %50 : vector<32x128xf32>
    %cst_33 = arith.constant 0.000000e+00 : f32
    %52 = vector.broadcast %cst_33 : f32 to vector<32x128xf32>
    %53 = arith.maximumf %51, %52 : vector<32x128xf32>
    %54 = arith.truncf %53 : vector<32x128xf32> to vector<32x128xbf16>
    %c0_34 = arith.constant 0 : index
    %c0_35 = arith.constant 0 : index
    %55 = vector.load %arg5[%c0_34, %c0_35] : memref<32x128xbf16, #tpu.memory_space<vmem>>, vector<32x128xbf16>
    tpu.vector_store %arg5[%c0_34, %c0_35], %54 {strides = array<i32>} : memref<32x128xbf16, #tpu.memory_space<vmem>>, vector<32x128xbf16>,
    return
  }
  func.func @transform_0(%arg0: i32) -> (i32, i32) {
    %c0_i32 = arith.constant 0 : i32
    %c0_i32_0 = arith.constant 0 : i32
    return %c0_i32, %arg0 : i32, i32
  }
  func.func @transform_1(%arg0: i32) -> (i32, i32) {
    %c1_i32 = arith.constant 1 : i32
    %0 = arith.addi %arg0, %c1_i32 : i32
    %c1_i32_0 = arith.constant 1 : i32
    %1 = arith.muli %0, %c1_i32_0 : i32
    %c0_i32 = arith.constant 0 : i32
    %c0_i32_1 = arith.constant 0 : i32
    return %c0_i32, %1 : i32, i32
  }
  func.func @transform_2(%arg0: i32) -> (i32, i32, i32) {
    %c0_i32 = arith.constant 0 : i32
    %c0_i32_0 = arith.constant 0 : i32
    %c0_i32_1 = arith.constant 0 : i32
    %c0_i32_2 = arith.constant 0 : i32
    return %c0_i32, %c0_i32_0, %c0_i32_1 : i32, i32, i32
  }
  func.func @transform_3(%arg0: i32) -> (i32, i32) {
    %c0_i32 = arith.constant 0 : i32
    %c0_i32_0 = arith.constant 0 : i32
    %c0_i32_1 = arith.constant 0 : i32
    return %c0_i32, %c0_i32_0 : i32, i32
  }
  func.func @transform_4(%arg0: i32) -> (i32, i32) {
    %c0_i32 = arith.constant 0 : i32
    %c0_i32_0 = arith.constant 0 : i32
    return %c0_i32, %arg0 : i32, i32
  }
}

module attributes {stable_mosaic.version = 11 : i64} {
  func.func @_conv3x3_kernel(%arg0: i32, %arg1: memref<32x128xbf16, #tpu.memory_space<vmem>>, %arg2: memref<32x128xbf16, #tpu.memory_space<vmem>>, %arg3: memref<9x32x32xbf16, #tpu.memory_space<vmem>>, %arg4: memref<32x1xf32, #tpu.memory_space<vmem>>, %arg5: memref<32x128xbf16, #tpu.memory_space<vmem>>) attributes {dimension_semantics = [#tpu.dimension_semantics<parallel>], iteration_bounds = array<i64: 1>, scalar_prefetch = 0 : i64, scratch_operands = 0 : i64, tpu.core_type = #tpu.core_type<tc>, window_params = [{transform_indices = @transform_0, window_bounds = array<i64: 32, 128>}, {transform_indices = @transform_1, window_bounds = array<i64: 32, 128>}, {pipeline_mode = #tpu.pipeline_mode<synchronous>, transform_indices = @transform_2, window_bounds = array<i64: 9, 32, 32>}, {pipeline_mode = #tpu.pipeline_mode<synchronous>, transform_indices = @transform_3, window_bounds = array<i64: 32, 1>}, {transform_indices = @transform_4, window_bounds = array<i64: 32, 128>}]} {
    %cst = arith.constant 0.000000e+00 : f32
    %0 = vector.broadcast %cst : f32 to vector<32x128xf32>
    %c0 = arith.constant 0 : index
    %c0_0 = arith.constant 0 : index
    %1 = vector.load %arg1[%c0, %c0_0] : memref<32x128xbf16, #tpu.memory_space<vmem>>, vector<32x128xbf16>
    %c0_1 = arith.constant 0 : index
    %c0_2 = arith.constant 0 : index
    %2 = vector.load %arg2[%c0_1, %c0_2] : memref<32x128xbf16, #tpu.memory_space<vmem>>, vector<32x128xbf16>
    %3 = tpu.concatenate %1, %2 in 1 : vector<32x128xbf16>, vector<32x128xbf16> -> vector<32x256xbf16>
    %4 = vector.extract_strided_slice %3 {offsets = [0, 0], sizes = [32, 128], strides = [1, 1]} : vector<32x256xbf16> to vector<32x128xbf16>
    %c0_3 = arith.constant 0 : index
    %c0_4 = arith.constant 0 : index
    %c0_5 = arith.constant 0 : index
    %5 = vector.load %arg3[%c0_3, %c0_4, %c0_5] : memref<9x32x32xbf16, #tpu.memory_space<vmem>>, vector<1x32x32xbf16>
    %6 = vector.shape_cast %5 : vector<1x32x32xbf16> to vector<32x32xbf16>
    %cst_6 = arith.constant dense<0.000000e+00> : vector<32x128xf32>
    %7 = tpu.matmul %6, %4, %cst_6 {dimension_numbers = #tpu.dot_dimension_numbers<[1], [0], [0], [1], [0, 0, 1, 1], [], []>} : vector<32x32xbf16>, vector<32x128xbf16>, vector<32x128xf32> -> vector<32x128xf32>
    %8 = arith.addf %0, %7 : vector<32x128xf32>
    %9 = vector.extract_strided_slice %3 {offsets = [0, 1], sizes = [32, 128], strides = [1, 1]} : vector<32x256xbf16> to vector<32x128xbf16>
    %c1 = arith.constant 1 : index
    %c0_7 = arith.constant 0 : index
    %c0_8 = arith.constant 0 : index
    %10 = vector.load %arg3[%c1, %c0_7, %c0_8] : memref<9x32x32xbf16, #tpu.memory_space<vmem>>, vector<1x32x32xbf16>
    %11 = vector.shape_cast %10 : vector<1x32x32xbf16> to vector<32x32xbf16>
    %cst_9 = arith.constant dense<0.000000e+00> : vector<32x128xf32>
    %12 = tpu.matmul %11, %9, %cst_9 {dimension_numbers = #tpu.dot_dimension_numbers<[1], [0], [0], [1], [0, 0, 1, 1], [], []>} : vector<32x32xbf16>, vector<32x128xbf16>, vector<32x128xf32> -> vector<32x128xf32>
    %13 = arith.addf %8, %12 : vector<32x128xf32>
    %14 = vector.extract_strided_slice %3 {offsets = [0, 2], sizes = [32, 128], strides = [1, 1]} : vector<32x256xbf16> to vector<32x128xbf16>
    %c2 = arith.constant 2 : index
    %c0_10 = arith.constant 0 : index
    %c0_11 = arith.constant 0 : index
    %15 = vector.load %arg3[%c2, %c0_10, %c0_11] : memref<9x32x32xbf16, #tpu.memory_space<vmem>>, vector<1x32x32xbf16>
    %16 = vector.shape_cast %15 : vector<1x32x32xbf16> to vector<32x32xbf16>
    %cst_12 = arith.constant dense<0.000000e+00> : vector<32x128xf32>
    %17 = tpu.matmul %16, %14, %cst_12 {dimension_numbers = #tpu.dot_dimension_numbers<[1], [0], [0], [1], [0, 0, 1, 1], [], []>} : vector<32x32xbf16>, vector<32x128xbf16>, vector<32x128xf32> -> vector<32x128xf32>
    %18 = arith.addf %13, %17 : vector<32x128xf32>
    %19 = vector.extract_strided_slice %3 {offsets = [0, 6], sizes = [32, 128], strides = [1, 1]} : vector<32x256xbf16> to vector<32x128xbf16>
    %c3 = arith.constant 3 : index
    %c0_13 = arith.constant 0 : index
    %c0_14 = arith.constant 0 : index
    %20 = vector.load %arg3[%c3, %c0_13, %c0_14] : memref<9x32x32xbf16, #tpu.memory_space<vmem>>, vector<1x32x32xbf16>
    %21 = vector.shape_cast %20 : vector<1x32x32xbf16> to vector<32x32xbf16>
    %cst_15 = arith.constant dense<0.000000e+00> : vector<32x128xf32>
    %22 = tpu.matmul %21, %19, %cst_15 {dimension_numbers = #tpu.dot_dimension_numbers<[1], [0], [0], [1], [0, 0, 1, 1], [], []>} : vector<32x32xbf16>, vector<32x128xbf16>, vector<32x128xf32> -> vector<32x128xf32>
    %23 = arith.addf %18, %22 : vector<32x128xf32>
    %24 = vector.extract_strided_slice %3 {offsets = [0, 7], sizes = [32, 128], strides = [1, 1]} : vector<32x256xbf16> to vector<32x128xbf16>
    %c4 = arith.constant 4 : index
    %c0_16 = arith.constant 0 : index
    %c0_17 = arith.constant 0 : index
    %25 = vector.load %arg3[%c4, %c0_16, %c0_17] : memref<9x32x32xbf16, #tpu.memory_space<vmem>>, vector<1x32x32xbf16>
    %26 = vector.shape_cast %25 : vector<1x32x32xbf16> to vector<32x32xbf16>
    %cst_18 = arith.constant dense<0.000000e+00> : vector<32x128xf32>
    %27 = tpu.matmul %26, %24, %cst_18 {dimension_numbers = #tpu.dot_dimension_numbers<[1], [0], [0], [1], [0, 0, 1, 1], [], []>} : vector<32x32xbf16>, vector<32x128xbf16>, vector<32x128xf32> -> vector<32x128xf32>
    %28 = arith.addf %23, %27 : vector<32x128xf32>
    %29 = vector.extract_strided_slice %3 {offsets = [0, 8], sizes = [32, 128], strides = [1, 1]} : vector<32x256xbf16> to vector<32x128xbf16>
    %c5 = arith.constant 5 : index
    %c0_19 = arith.constant 0 : index
    %c0_20 = arith.constant 0 : index
    %30 = vector.load %arg3[%c5, %c0_19, %c0_20] : memref<9x32x32xbf16, #tpu.memory_space<vmem>>, vector<1x32x32xbf16>
    %31 = vector.shape_cast %30 : vector<1x32x32xbf16> to vector<32x32xbf16>
    %cst_21 = arith.constant dense<0.000000e+00> : vector<32x128xf32>
    %32 = tpu.matmul %31, %29, %cst_21 {dimension_numbers = #tpu.dot_dimension_numbers<[1], [0], [0], [1], [0, 0, 1, 1], [], []>} : vector<32x32xbf16>, vector<32x128xbf16>, vector<32x128xf32> -> vector<32x128xf32>
    %33 = arith.addf %28, %32 : vector<32x128xf32>
    %34 = vector.extract_strided_slice %3 {offsets = [0, 12], sizes = [32, 128], strides = [1, 1]} : vector<32x256xbf16> to vector<32x128xbf16>
    %c6 = arith.constant 6 : index
    %c0_22 = arith.constant 0 : index
    %c0_23 = arith.constant 0 : index
    %35 = vector.load %arg3[%c6, %c0_22, %c0_23] : memref<9x32x32xbf16, #tpu.memory_space<vmem>>, vector<1x32x32xbf16>
    %36 = vector.shape_cast %35 : vector<1x32x32xbf16> to vector<32x32xbf16>
    %cst_24 = arith.constant dense<0.000000e+00> : vector<32x128xf32>
    %37 = tpu.matmul %36, %34, %cst_24 {dimension_numbers = #tpu.dot_dimension_numbers<[1], [0], [0], [1], [0, 0, 1, 1], [], []>} : vector<32x32xbf16>, vector<32x128xbf16>, vector<32x128xf32> -> vector<32x128xf32>
    %38 = arith.addf %33, %37 : vector<32x128xf32>
    %39 = vector.extract_strided_slice %3 {offsets = [0, 13], sizes = [32, 128], strides = [1, 1]} : vector<32x256xbf16> to vector<32x128xbf16>
    %c7 = arith.constant 7 : index
    %c0_25 = arith.constant 0 : index
    %c0_26 = arith.constant 0 : index
    %40 = vector.load %arg3[%c7, %c0_25, %c0_26] : memref<9x32x32xbf16, #tpu.memory_space<vmem>>, vector<1x32x32xbf16>
    %41 = vector.shape_cast %40 : vector<1x32x32xbf16> to vector<32x32xbf16>
    %cst_27 = arith.constant dense<0.000000e+00> : vector<32x128xf32>
    %42 = tpu.matmul %41, %39, %cst_27 {dimension_numbers = #tpu.dot_dimension_numbers<[1], [0], [0], [1], [0, 0, 1, 1], [], []>} : vector<32x32xbf16>, vector<32x128xbf16>, vector<32x128xf32> -> vector<32x128xf32>
    %43 = arith.addf %38, %42 : vector<32x128xf32>
    %44 = vector.extract_strided_slice %3 {offsets = [0, 14], sizes = [32, 128], strides = [1, 1]} : vector<32x256xbf16> to vector<32x128xbf16>
    %c8 = arith.constant 8 : index
    %c0_28 = arith.constant 0 : index
    %c0_29 = arith.constant 0 : index
    %45 = vector.load %arg3[%c8, %c0_28, %c0_29] : memref<9x32x32xbf16, #tpu.memory_space<vmem>>, vector<1x32x32xbf16>
    %46 = vector.shape_cast %45 : vector<1x32x32xbf16> to vector<32x32xbf16>
    %cst_30 = arith.constant dense<0.000000e+00> : vector<32x128xf32>
    %47 = tpu.matmul %46, %44, %cst_30 {dimension_numbers = #tpu.dot_dimension_numbers<[1], [0], [0], [1], [0, 0, 1, 1], [], []>} : vector<32x32xbf16>, vector<32x128xbf16>, vector<32x128xf32> -> vector<32x128xf32>
    %48 = arith.addf %43, %47 : vector<32x128xf32>
    %c0_31 = arith.constant 0 : index
    %c0_32 = arith.constant 0 : index
    %49 = vector.load %arg4[%c0_31, %c0_32] : memref<32x1xf32, #tpu.memory_space<vmem>>, vector<32x1xf32>
    %50 = vector.broadcast %49 : vector<32x1xf32> to vector<32x128xf32>
    %51 = arith.addf %48, %50 : vector<32x128xf32>
    %cst_33 = arith.constant 0.000000e+00 : f32
    %52 = vector.broadcast %cst_33 : f32 to vector<32x128xf32>
    %53 = arith.maximumf %51, %52 : vector<32x128xf32>
    %54 = arith.truncf %53 : vector<32x128xf32> to vector<32x128xbf16>
    %c0_34 = arith.constant 0 : index
    %c0_35 = arith.constant 0 : index
    %55 = vector.load %arg5[%c0_34, %c0_35] : memref<32x128xbf16, #tpu.memory_space<vmem>>, vector<32x128xbf16>
    tpu.vector_store %arg5[%c0_34, %c0_35], %54 {strides = array<i32>} : memref<32x128xbf16, #tpu.memory_space<vmem>>, vector<32x128xbf16>,
    return
  }
  func.func @transform_0(%arg0: i32) -> (i32, i32) {
    %c0_i32 = arith.constant 0 : i32
    %c0_i32_0 = arith.constant 0 : i32
    return %c0_i32, %arg0 : i32, i32
  }
  func.func @transform_1(%arg0: i32) -> (i32, i32) {
    %c1_i32 = arith.constant 1 : i32
    %0 = arith.addi %arg0, %c1_i32 : i32
    %c1_i32_0 = arith.constant 1 : i32
    %1 = arith.muli %0, %c1_i32_0 : i32
    %c0_i32 = arith.constant 0 : i32
    %c0_i32_1 = arith.constant 0 : i32
    return %c0_i32, %1 : i32, i32
  }
  func.func @transform_2(%arg0: i32) -> (i32, i32, i32) {
    %c0_i32 = arith.constant 0 : i32
    %c0_i32_0 = arith.constant 0 : i32
    %c0_i32_1 = arith.constant 0 : i32
    %c0_i32_2 = arith.constant 0 : i32
    return %c0_i32, %c0_i32_0, %c0_i32_1 : i32, i32, i32
  }
  func.func @transform_3(%arg0: i32) -> (i32, i32) {
    %c0_i32 = arith.constant 0 : i32
    %c0_i32_0 = arith.constant 0 : i32
    %c0_i32_1 = arith.constant 0 : i32
    return %c0_i32, %c0_i32_0 : i32, i32
  }
  func.func @transform_4(%arg0: i32) -> (i32, i32) {
    %c0_i32 = arith.constant 0 : i32
    %c0_i32_0 = arith.constant 0 : i32
    return %c0_i32, %arg0 : i32, i32
  }
}

module attributes {stable_mosaic.version = 11 : i64} {
  func.func @_matmul_cf_kernel(%arg0: i32, %arg1: memref<32x128xbf16, #tpu.memory_space<vmem>>, %arg2: memref<16x32xbf16, #tpu.memory_space<vmem>>, %arg3: memref<16x32xbf16, #tpu.memory_space<vmem>>, %arg4: memref<16x32xbf16, #tpu.memory_space<vmem>>, %arg5: memref<16x32xbf16, #tpu.memory_space<vmem>>, %arg6: memref<16x1xf32, #tpu.memory_space<vmem>>, %arg7: memref<16x128xbf16, #tpu.memory_space<vmem>>, %arg8: memref<16x128xbf16, #tpu.memory_space<vmem>>, %arg9: memref<16x128xbf16, #tpu.memory_space<vmem>>, %arg10: memref<16x128xbf16, #tpu.memory_space<vmem>>) attributes {dimension_semantics = [#tpu.dimension_semantics<parallel>], iteration_bounds = array<i64: 1>, scalar_prefetch = 0 : i64, scratch_operands = 0 : i64, tpu.core_type = #tpu.core_type<tc>, window_params = [{transform_indices = @transform_0, window_bounds = array<i64: 32, 128>}, {pipeline_mode = #tpu.pipeline_mode<synchronous>, transform_indices = @transform_1, window_bounds = array<i64: 16, 32>}, {pipeline_mode = #tpu.pipeline_mode<synchronous>, transform_indices = @transform_2, window_bounds = array<i64: 16, 32>}, {pipeline_mode = #tpu.pipeline_mode<synchronous>, transform_indices = @transform_3, window_bounds = array<i64: 16, 32>}, {pipeline_mode = #tpu.pipeline_mode<synchronous>, transform_indices = @transform_4, window_bounds = array<i64: 16, 32>}, {pipeline_mode = #tpu.pipeline_mode<synchronous>, transform_indices = @transform_5, window_bounds = array<i64: 16, 1>}, {transform_indices = @transform_6, window_bounds = array<i64: 16, 128>}, {transform_indices = @transform_7, window_bounds = array<i64: 16, 128>}, {transform_indices = @transform_8, window_bounds = array<i64: 16, 128>}, {transform_indices = @transform_9, window_bounds = array<i64: 16, 128>}]} {
    %c0 = arith.constant 0 : index
    %c0_0 = arith.constant 0 : index
    %0 = vector.load %arg1[%c0, %c0_0] : memref<32x128xbf16, #tpu.memory_space<vmem>>, vector<32x128xbf16>
    %c0_1 = arith.constant 0 : index
    %c0_2 = arith.constant 0 : index
    %1 = vector.load %arg6[%c0_1, %c0_2] : memref<16x1xf32, #tpu.memory_space<vmem>>, vector<16x1xf32>
    %c0_3 = arith.constant 0 : index
    %c0_4 = arith.constant 0 : index
    %2 = vector.load %arg2[%c0_3, %c0_4] : memref<16x32xbf16, #tpu.memory_space<vmem>>, vector<16x32xbf16>
    %cst = arith.constant dense<0.000000e+00> : vector<16x128xf32>
    %3 = tpu.matmul %2, %0, %cst {dimension_numbers = #tpu.dot_dimension_numbers<[1], [0], [0], [1], [0, 0, 1, 1], [], []>} : vector<16x32xbf16>, vector<32x128xbf16>, vector<16x128xf32> -> vector<16x128xf32>
    %4 = vector.broadcast %1 : vector<16x1xf32> to vector<16x128xf32>
    %5 = arith.addf %3, %4 : vector<16x128xf32>
    %6 = arith.truncf %5 : vector<16x128xf32> to vector<16x128xbf16>
    %c0_5 = arith.constant 0 : index
    %c0_6 = arith.constant 0 : index
    %7 = vector.load %arg7[%c0_5, %c0_6] : memref<16x128xbf16, #tpu.memory_space<vmem>>, vector<16x128xbf16>
    tpu.vector_store %arg7[%c0_5, %c0_6], %6 {strides = array<i32>} : memref<16x128xbf16, #tpu.memory_space<vmem>>, vector<16x128xbf16>,
    %c0_7 = arith.constant 0 : index
    %c0_8 = arith.constant 0 : index
    %8 = vector.load %arg3[%c0_7, %c0_8] : memref<16x32xbf16, #tpu.memory_space<vmem>>, vector<16x32xbf16>
    %cst_9 = arith.constant dense<0.000000e+00> : vector<16x128xf32>
    %9 = tpu.matmul %8, %0, %cst_9 {dimension_numbers = #tpu.dot_dimension_numbers<[1], [0], [0], [1], [0, 0, 1, 1], [], []>} : vector<16x32xbf16>, vector<32x128xbf16>, vector<16x128xf32> -> vector<16x128xf32>
    %10 = vector.broadcast %1 : vector<16x1xf32> to vector<16x128xf32>
    %11 = arith.addf %9, %10 : vector<16x128xf32>
    %12 = arith.truncf %11 : vector<16x128xf32> to vector<16x128xbf16>
    %c0_10 = arith.constant 0 : index
    %c0_11 = arith.constant 0 : index
    %13 = vector.load %arg8[%c0_10, %c0_11] : memref<16x128xbf16, #tpu.memory_space<vmem>>, vector<16x128xbf16>
    tpu.vector_store %arg8[%c0_10, %c0_11], %12 {strides = array<i32>} : memref<16x128xbf16, #tpu.memory_space<vmem>>, vector<16x128xbf16>,
    %c0_12 = arith.constant 0 : index
    %c0_13 = arith.constant 0 : index
    %14 = vector.load %arg4[%c0_12, %c0_13] : memref<16x32xbf16, #tpu.memory_space<vmem>>, vector<16x32xbf16>
    %cst_14 = arith.constant dense<0.000000e+00> : vector<16x128xf32>
    %15 = tpu.matmul %14, %0, %cst_14 {dimension_numbers = #tpu.dot_dimension_numbers<[1], [0], [0], [1], [0, 0, 1, 1], [], []>} : vector<16x32xbf16>, vector<32x128xbf16>, vector<16x128xf32> -> vector<16x128xf32>
    %16 = vector.broadcast %1 : vector<16x1xf32> to vector<16x128xf32>
    %17 = arith.addf %15, %16 : vector<16x128xf32>
    %18 = arith.truncf %17 : vector<16x128xf32> to vector<16x128xbf16>
    %c0_15 = arith.constant 0 : index
    %c0_16 = arith.constant 0 : index
    %19 = vector.load %arg9[%c0_15, %c0_16] : memref<16x128xbf16, #tpu.memory_space<vmem>>, vector<16x128xbf16>
    tpu.vector_store %arg9[%c0_15, %c0_16], %18 {strides = array<i32>} : memref<16x128xbf16, #tpu.memory_space<vmem>>, vector<16x128xbf16>,
    %c0_17 = arith.constant 0 : index
    %c0_18 = arith.constant 0 : index
    %20 = vector.load %arg5[%c0_17, %c0_18] : memref<16x32xbf16, #tpu.memory_space<vmem>>, vector<16x32xbf16>
    %cst_19 = arith.constant dense<0.000000e+00> : vector<16x128xf32>
    %21 = tpu.matmul %20, %0, %cst_19 {dimension_numbers = #tpu.dot_dimension_numbers<[1], [0], [0], [1], [0, 0, 1, 1], [], []>} : vector<16x32xbf16>, vector<32x128xbf16>, vector<16x128xf32> -> vector<16x128xf32>
    %22 = vector.broadcast %1 : vector<16x1xf32> to vector<16x128xf32>
    %23 = arith.addf %21, %22 : vector<16x128xf32>
    %24 = arith.truncf %23 : vector<16x128xf32> to vector<16x128xbf16>
    %c0_20 = arith.constant 0 : index
    %c0_21 = arith.constant 0 : index
    %25 = vector.load %arg10[%c0_20, %c0_21] : memref<16x128xbf16, #tpu.memory_space<vmem>>, vector<16x128xbf16>
    tpu.vector_store %arg10[%c0_20, %c0_21], %24 {strides = array<i32>} : memref<16x128xbf16, #tpu.memory_space<vmem>>, vector<16x128xbf16>,
    return
  }
  func.func @transform_0(%arg0: i32) -> (i32, i32) {
    %c0_i32 = arith.constant 0 : i32
    %c0_i32_0 = arith.constant 0 : i32
    return %c0_i32, %arg0 : i32, i32
  }
  func.func @transform_1(%arg0: i32) -> (i32, i32) {
    %c0_i32 = arith.constant 0 : i32
    %c0_i32_0 = arith.constant 0 : i32
    %c0_i32_1 = arith.constant 0 : i32
    return %c0_i32, %c0_i32_0 : i32, i32
  }
  func.func @transform_2(%arg0: i32) -> (i32, i32) {
    %c0_i32 = arith.constant 0 : i32
    %c0_i32_0 = arith.constant 0 : i32
    %c0_i32_1 = arith.constant 0 : i32
    return %c0_i32, %c0_i32_0 : i32, i32
  }
  func.func @transform_3(%arg0: i32) -> (i32, i32) {
    %c0_i32 = arith.constant 0 : i32
    %c0_i32_0 = arith.constant 0 : i32
    %c0_i32_1 = arith.constant 0 : i32
    return %c0_i32, %c0_i32_0 : i32, i32
  }
  func.func @transform_4(%arg0: i32) -> (i32, i32) {
    %c0_i32 = arith.constant 0 : i32
    %c0_i32_0 = arith.constant 0 : i32
    %c0_i32_1 = arith.constant 0 : i32
    return %c0_i32, %c0_i32_0 : i32, i32
  }
  func.func @transform_5(%arg0: i32) -> (i32, i32) {
    %c0_i32 = arith.constant 0 : i32
    %c0_i32_0 = arith.constant 0 : i32
    %c0_i32_1 = arith.constant 0 : i32
    return %c0_i32, %c0_i32_0 : i32, i32
  }
  func.func @transform_6(%arg0: i32) -> (i32, i32) {
    %c0_i32 = arith.constant 0 : i32
    %c0_i32_0 = arith.constant 0 : i32
    return %c0_i32, %arg0 : i32, i32
  }
  func.func @transform_7(%arg0: i32) -> (i32, i32) {
    %c0_i32 = arith.constant 0 : i32
    %c0_i32_0 = arith.constant 0 : i32
    return %c0_i32, %arg0 : i32, i32
  }
  func.func @transform_8(%arg0: i32) -> (i32, i32) {
    %c0_i32 = arith.constant 0 : i32
    %c0_i32_0 = arith.constant 0 : i32
    return %c0_i32, %arg0 : i32, i32
  }
  func.func @transform_9(%arg0: i32) -> (i32, i32) {
    %c0_i32 = arith.constant 0 : i32
    %c0_i32_0 = arith.constant 0 : i32
    return %c0_i32, %arg0 : i32, i32
  }
}

module attributes {stable_mosaic.version = 11 : i64} {
  func.func @_conv3x3_kernel(%arg0: i32, %arg1: memref<16x256xbf16, #tpu.memory_space<vmem>>, %arg2: memref<16x128xbf16, #tpu.memory_space<vmem>>, %arg3: memref<16x256xbf16, #tpu.memory_space<vmem>>, %arg4: memref<16x128xbf16, #tpu.memory_space<vmem>>, %arg5: memref<9x16x16xbf16, #tpu.memory_space<vmem>>, %arg6: memref<9x16x16xbf16, #tpu.memory_space<vmem>>, %arg7: memref<16x1xf32, #tpu.memory_space<vmem>>, %arg8: memref<16x256xbf16, #tpu.memory_space<vmem>>) attributes {dimension_semantics = [#tpu.dimension_semantics<parallel>], iteration_bounds = array<i64: 1>, scalar_prefetch = 0 : i64, scratch_operands = 0 : i64, tpu.core_type = #tpu.core_type<tc>, window_params = [{transform_indices = @transform_0, window_bounds = array<i64: 16, 256>}, {transform_indices = @transform_1, window_bounds = array<i64: 16, 128>}, {transform_indices = @transform_2, window_bounds = array<i64: 16, 256>}, {transform_indices = @transform_3, window_bounds = array<i64: 16, 128>}, {pipeline_mode = #tpu.pipeline_mode<synchronous>, transform_indices = @transform_4, window_bounds = array<i64: 9, 16, 16>}, {pipeline_mode = #tpu.pipeline_mode<synchronous>, transform_indices = @transform_5, window_bounds = array<i64: 9, 16, 16>}, {pipeline_mode = #tpu.pipeline_mode<synchronous>, transform_indices = @transform_6, window_bounds = array<i64: 16, 1>}, {transform_indices = @transform_7, window_bounds = array<i64: 16, 256>}]} {
    %cst = arith.constant 0.000000e+00 : f32
    %0 = vector.broadcast %cst : f32 to vector<16x256xf32>
    %c0 = arith.constant 0 : index
    %c0_0 = arith.constant 0 : index
    %1 = vector.load %arg1[%c0, %c0_0] : memref<16x256xbf16, #tpu.memory_space<vmem>>, vector<16x256xbf16>
    %c0_1 = arith.constant 0 : index
    %c0_2 = arith.constant 0 : index
    %2 = vector.load %arg2[%c0_1, %c0_2] : memref<16x128xbf16, #tpu.memory_space<vmem>>, vector<16x128xbf16>
    %3 = tpu.concatenate %1, %2 in 1 : vector<16x256xbf16>, vector<16x128xbf16> -> vector<16x384xbf16>
    %4 = vector.extract_strided_slice %3 {offsets = [0, 0], sizes = [16, 256], strides = [1, 1]} : vector<16x384xbf16> to vector<16x256xbf16>
    %c0_3 = arith.constant 0 : index
    %c0_4 = arith.constant 0 : index
    %c0_5 = arith.constant 0 : index
    %5 = vector.load %arg5[%c0_3, %c0_4, %c0_5] : memref<9x16x16xbf16, #tpu.memory_space<vmem>>, vector<1x16x16xbf16>
    %6 = vector.shape_cast %5 : vector<1x16x16xbf16> to vector<16x16xbf16>
    %cst_6 = arith.constant dense<0.000000e+00> : vector<16x256xf32>
    %7 = tpu.matmul %6, %4, %cst_6 {dimension_numbers = #tpu.dot_dimension_numbers<[1], [0], [0], [1], [0, 0, 1, 1], [], []>} : vector<16x16xbf16>, vector<16x256xbf16>, vector<16x256xf32> -> vector<16x256xf32>
    %8 = arith.addf %0, %7 : vector<16x256xf32>
    %9 = vector.extract_strided_slice %3 {offsets = [0, 1], sizes = [16, 256], strides = [1, 1]} : vector<16x384xbf16> to vector<16x256xbf16>
    %c1 = arith.constant 1 : index
    %c0_7 = arith.constant 0 : index
    %c0_8 = arith.constant 0 : index
    %10 = vector.load %arg5[%c1, %c0_7, %c0_8] : memref<9x16x16xbf16, #tpu.memory_space<vmem>>, vector<1x16x16xbf16>
    %11 = vector.shape_cast %10 : vector<1x16x16xbf16> to vector<16x16xbf16>
    %cst_9 = arith.constant dense<0.000000e+00> : vector<16x256xf32>
    %12 = tpu.matmul %11, %9, %cst_9 {dimension_numbers = #tpu.dot_dimension_numbers<[1], [0], [0], [1], [0, 0, 1, 1], [], []>} : vector<16x16xbf16>, vector<16x256xbf16>, vector<16x256xf32> -> vector<16x256xf32>
    %13 = arith.addf %8, %12 : vector<16x256xf32>
    %14 = vector.extract_strided_slice %3 {offsets = [0, 2], sizes = [16, 256], strides = [1, 1]} : vector<16x384xbf16> to vector<16x256xbf16>
    %c2 = arith.constant 2 : index
    %c0_10 = arith.constant 0 : index
    %c0_11 = arith.constant 0 : index
    %15 = vector.load %arg5[%c2, %c0_10, %c0_11] : memref<9x16x16xbf16, #tpu.memory_space<vmem>>, vector<1x16x16xbf16>
    %16 = vector.shape_cast %15 : vector<1x16x16xbf16> to vector<16x16xbf16>
    %cst_12 = arith.constant dense<0.000000e+00> : vector<16x256xf32>
    %17 = tpu.matmul %16, %14, %cst_12 {dimension_numbers = #tpu.dot_dimension_numbers<[1], [0], [0], [1], [0, 0, 1, 1], [], []>} : vector<16x16xbf16>, vector<16x256xbf16>, vector<16x256xf32> -> vector<16x256xf32>
    %18 = arith.addf %13, %17 : vector<16x256xf32>
    %19 = vector.extract_strided_slice %3 {offsets = [0, 10], sizes = [16, 256], strides = [1, 1]} : vector<16x384xbf16> to vector<16x256xbf16>
    %c3 = arith.constant 3 : index
    %c0_13 = arith.constant 0 : index
    %c0_14 = arith.constant 0 : index
    %20 = vector.load %arg5[%c3, %c0_13, %c0_14] : memref<9x16x16xbf16, #tpu.memory_space<vmem>>, vector<1x16x16xbf16>
    %21 = vector.shape_cast %20 : vector<1x16x16xbf16> to vector<16x16xbf16>
    %cst_15 = arith.constant dense<0.000000e+00> : vector<16x256xf32>
    %22 = tpu.matmul %21, %19, %cst_15 {dimension_numbers = #tpu.dot_dimension_numbers<[1], [0], [0], [1], [0, 0, 1, 1], [], []>} : vector<16x16xbf16>, vector<16x256xbf16>, vector<16x256xf32> -> vector<16x256xf32>
    %23 = arith.addf %18, %22 : vector<16x256xf32>
    %24 = vector.extract_strided_slice %3 {offsets = [0, 11], sizes = [16, 256], strides = [1, 1]} : vector<16x384xbf16> to vector<16x256xbf16>
    %c4 = arith.constant 4 : index
    %c0_16 = arith.constant 0 : index
    %c0_17 = arith.constant 0 : index
    %25 = vector.load %arg5[%c4, %c0_16, %c0_17] : memref<9x16x16xbf16, #tpu.memory_space<vmem>>, vector<1x16x16xbf16>
    %26 = vector.shape_cast %25 : vector<1x16x16xbf16> to vector<16x16xbf16>
    %cst_18 = arith.constant dense<0.000000e+00> : vector<16x256xf32>
    %27 = tpu.matmul %26, %24, %cst_18 {dimension_numbers = #tpu.dot_dimension_numbers<[1], [0], [0], [1], [0, 0, 1, 1], [], []>} : vector<16x16xbf16>, vector<16x256xbf16>, vector<16x256xf32> -> vector<16x256xf32>
    %28 = arith.addf %23, %27 : vector<16x256xf32>
    %29 = vector.extract_strided_slice %3 {offsets = [0, 12], sizes = [16, 256], strides = [1, 1]} : vector<16x384xbf16> to vector<16x256xbf16>
    %c5 = arith.constant 5 : index
    %c0_19 = arith.constant 0 : index
    %c0_20 = arith.constant 0 : index
    %30 = vector.load %arg5[%c5, %c0_19, %c0_20] : memref<9x16x16xbf16, #tpu.memory_space<vmem>>, vector<1x16x16xbf16>
    %31 = vector.shape_cast %30 : vector<1x16x16xbf16> to vector<16x16xbf16>
    %cst_21 = arith.constant dense<0.000000e+00> : vector<16x256xf32>
    %32 = tpu.matmul %31, %29, %cst_21 {dimension_numbers = #tpu.dot_dimension_numbers<[1], [0], [0], [1], [0, 0, 1, 1], [], []>} : vector<16x16xbf16>, vector<16x256xbf16>, vector<16x256xf32> -> vector<16x256xf32>
    %33 = arith.addf %28, %32 : vector<16x256xf32>
    %34 = vector.extract_strided_slice %3 {offsets = [0, 20], sizes = [16, 256], strides = [1, 1]} : vector<16x384xbf16> to vector<16x256xbf16>
    %c6 = arith.constant 6 : index
    %c0_22 = arith.constant 0 : index
    %c0_23 = arith.constant 0 : index
    %35 = vector.load %arg5[%c6, %c0_22, %c0_23] : memref<9x16x16xbf16, #tpu.memory_space<vmem>>, vector<1x16x16xbf16>
    %36 = vector.shape_cast %35 : vector<1x16x16xbf16> to vector<16x16xbf16>
    %cst_24 = arith.constant dense<0.000000e+00> : vector<16x256xf32>
    %37 = tpu.matmul %36, %34, %cst_24 {dimension_numbers = #tpu.dot_dimension_numbers<[1], [0], [0], [1], [0, 0, 1, 1], [], []>} : vector<16x16xbf16>, vector<16x256xbf16>, vector<16x256xf32> -> vector<16x256xf32>
    %38 = arith.addf %33, %37 : vector<16x256xf32>
    %39 = vector.extract_strided_slice %3 {offsets = [0, 21], sizes = [16, 256], strides = [1, 1]} : vector<16x384xbf16> to vector<16x256xbf16>
    %c7 = arith.constant 7 : index
    %c0_25 = arith.constant 0 : index
    %c0_26 = arith.constant 0 : index
    %40 = vector.load %arg5[%c7, %c0_25, %c0_26] : memref<9x16x16xbf16, #tpu.memory_space<vmem>>, vector<1x16x16xbf16>
    %41 = vector.shape_cast %40 : vector<1x16x16xbf16> to vector<16x16xbf16>
    %cst_27 = arith.constant dense<0.000000e+00> : vector<16x256xf32>
    %42 = tpu.matmul %41, %39, %cst_27 {dimension_numbers = #tpu.dot_dimension_numbers<[1], [0], [0], [1], [0, 0, 1, 1], [], []>} : vector<16x16xbf16>, vector<16x256xbf16>, vector<16x256xf32> -> vector<16x256xf32>
    %43 = arith.addf %38, %42 : vector<16x256xf32>
    %44 = vector.extract_strided_slice %3 {offsets = [0, 22], sizes = [16, 256], strides = [1, 1]} : vector<16x384xbf16> to vector<16x256xbf16>
    %c8 = arith.constant 8 : index
    %c0_28 = arith.constant 0 : index
    %c0_29 = arith.constant 0 : index
    %45 = vector.load %arg5[%c8, %c0_28, %c0_29] : memref<9x16x16xbf16, #tpu.memory_space<vmem>>, vector<1x16x16xbf16>
    %46 = vector.shape_cast %45 : vector<1x16x16xbf16> to vector<16x16xbf16>
    %cst_30 = arith.constant dense<0.000000e+00> : vector<16x256xf32>
    %47 = tpu.matmul %46, %44, %cst_30 {dimension_numbers = #tpu.dot_dimension_numbers<[1], [0], [0], [1], [0, 0, 1, 1], [], []>} : vector<16x16xbf16>, vector<16x256xbf16>, vector<16x256xf32> -> vector<16x256xf32>
    %48 = arith.addf %43, %47 : vector<16x256xf32>
    %c0_31 = arith.constant 0 : index
    %c0_32 = arith.constant 0 : index
    %49 = vector.load %arg3[%c0_31, %c0_32] : memref<16x256xbf16, #tpu.memory_space<vmem>>, vector<16x256xbf16>
    %c0_33 = arith.constant 0 : index
    %c0_34 = arith.constant 0 : index
    %50 = vector.load %arg4[%c0_33, %c0_34] : memref<16x128xbf16, #tpu.memory_space<vmem>>, vector<16x128xbf16>
    %51 = tpu.concatenate %49, %50 in 1 : vector<16x256xbf16>, vector<16x128xbf16> -> vector<16x384xbf16>
    %52 = vector.extract_strided_slice %51 {offsets = [0, 0], sizes = [16, 256], strides = [1, 1]} : vector<16x384xbf16> to vector<16x256xbf16>
    %c0_35 = arith.constant 0 : index
    %c0_36 = arith.constant 0 : index
    %c0_37 = arith.constant 0 : index
    %53 = vector.load %arg6[%c0_35, %c0_36, %c0_37] : memref<9x16x16xbf16, #tpu.memory_space<vmem>>, vector<1x16x16xbf16>
    %54 = vector.shape_cast %53 : vector<1x16x16xbf16> to vector<16x16xbf16>
    %cst_38 = arith.constant dense<0.000000e+00> : vector<16x256xf32>
    %55 = tpu.matmul %54, %52, %cst_38 {dimension_numbers = #tpu.dot_dimension_numbers<[1], [0], [0], [1], [0, 0, 1, 1], [], []>} : vector<16x16xbf16>, vector<16x256xbf16>, vector<16x256xf32> -> vector<16x256xf32>
    %56 = arith.addf %48, %55 : vector<16x256xf32>
    %57 = vector.extract_strided_slice %51 {offsets = [0, 1], sizes = [16, 256], strides = [1, 1]} : vector<16x384xbf16> to vector<16x256xbf16>
    %c1_39 = arith.constant 1 : index
    %c0_40 = arith.constant 0 : index
    %c0_41 = arith.constant 0 : index
    %58 = vector.load %arg6[%c1_39, %c0_40, %c0_41] : memref<9x16x16xbf16, #tpu.memory_space<vmem>>, vector<1x16x16xbf16>
    %59 = vector.shape_cast %58 : vector<1x16x16xbf16> to vector<16x16xbf16>
    %cst_42 = arith.constant dense<0.000000e+00> : vector<16x256xf32>
    %60 = tpu.matmul %59, %57, %cst_42 {dimension_numbers = #tpu.dot_dimension_numbers<[1], [0], [0], [1], [0, 0, 1, 1], [], []>} : vector<16x16xbf16>, vector<16x256xbf16>, vector<16x256xf32> -> vector<16x256xf32>
    %61 = arith.addf %56, %60 : vector<16x256xf32>
    %62 = vector.extract_strided_slice %51 {offsets = [0, 2], sizes = [16, 256], strides = [1, 1]} : vector<16x384xbf16> to vector<16x256xbf16>
    %c2_43 = arith.constant 2 : index
    %c0_44 = arith.constant 0 : index
    %c0_45 = arith.constant 0 : index
    %63 = vector.load %arg6[%c2_43, %c0_44, %c0_45] : memref<9x16x16xbf16, #tpu.memory_space<vmem>>, vector<1x16x16xbf16>
    %64 = vector.shape_cast %63 : vector<1x16x16xbf16> to vector<16x16xbf16>
    %cst_46 = arith.constant dense<0.000000e+00> : vector<16x256xf32>
    %65 = tpu.matmul %64, %62, %cst_46 {dimension_numbers = #tpu.dot_dimension_numbers<[1], [0], [0], [1], [0, 0, 1, 1], [], []>} : vector<16x16xbf16>, vector<16x256xbf16>, vector<16x256xf32> -> vector<16x256xf32>
    %66 = arith.addf %61, %65 : vector<16x256xf32>
    %67 = vector.extract_strided_slice %51 {offsets = [0, 10], sizes = [16, 256], strides = [1, 1]} : vector<16x384xbf16> to vector<16x256xbf16>
    %c3_47 = arith.constant 3 : index
    %c0_48 = arith.constant 0 : index
    %c0_49 = arith.constant 0 : index
    %68 = vector.load %arg6[%c3_47, %c0_48, %c0_49] : memref<9x16x16xbf16, #tpu.memory_space<vmem>>, vector<1x16x16xbf16>
    %69 = vector.shape_cast %68 : vector<1x16x16xbf16> to vector<16x16xbf16>
    %cst_50 = arith.constant dense<0.000000e+00> : vector<16x256xf32>
    %70 = tpu.matmul %69, %67, %cst_50 {dimension_numbers = #tpu.dot_dimension_numbers<[1], [0], [0], [1], [0, 0, 1, 1], [], []>} : vector<16x16xbf16>, vector<16x256xbf16>, vector<16x256xf32> -> vector<16x256xf32>
    %71 = arith.addf %66, %70 : vector<16x256xf32>
    %72 = vector.extract_strided_slice %51 {offsets = [0, 11], sizes = [16, 256], strides = [1, 1]} : vector<16x384xbf16> to vector<16x256xbf16>
    %c4_51 = arith.constant 4 : index
    %c0_52 = arith.constant 0 : index
    %c0_53 = arith.constant 0 : index
    %73 = vector.load %arg6[%c4_51, %c0_52, %c0_53] : memref<9x16x16xbf16, #tpu.memory_space<vmem>>, vector<1x16x16xbf16>
    %74 = vector.shape_cast %73 : vector<1x16x16xbf16> to vector<16x16xbf16>
    %cst_54 = arith.constant dense<0.000000e+00> : vector<16x256xf32>
    %75 = tpu.matmul %74, %72, %cst_54 {dimension_numbers = #tpu.dot_dimension_numbers<[1], [0], [0], [1], [0, 0, 1, 1], [], []>} : vector<16x16xbf16>, vector<16x256xbf16>, vector<16x256xf32> -> vector<16x256xf32>
    %76 = arith.addf %71, %75 : vector<16x256xf32>
    %77 = vector.extract_strided_slice %51 {offsets = [0, 12], sizes = [16, 256], strides = [1, 1]} : vector<16x384xbf16> to vector<16x256xbf16>
    %c5_55 = arith.constant 5 : index
    %c0_56 = arith.constant 0 : index
    %c0_57 = arith.constant 0 : index
    %78 = vector.load %arg6[%c5_55, %c0_56, %c0_57] : memref<9x16x16xbf16, #tpu.memory_space<vmem>>, vector<1x16x16xbf16>
    %79 = vector.shape_cast %78 : vector<1x16x16xbf16> to vector<16x16xbf16>
    %cst_58 = arith.constant dense<0.000000e+00> : vector<16x256xf32>
    %80 = tpu.matmul %79, %77, %cst_58 {dimension_numbers = #tpu.dot_dimension_numbers<[1], [0], [0], [1], [0, 0, 1, 1], [], []>} : vector<16x16xbf16>, vector<16x256xbf16>, vector<16x256xf32> -> vector<16x256xf32>
    %81 = arith.addf %76, %80 : vector<16x256xf32>
    %82 = vector.extract_strided_slice %51 {offsets = [0, 20], sizes = [16, 256], strides = [1, 1]} : vector<16x384xbf16> to vector<16x256xbf16>
    %c6_59 = arith.constant 6 : index
    %c0_60 = arith.constant 0 : index
    %c0_61 = arith.constant 0 : index
    %83 = vector.load %arg6[%c6_59, %c0_60, %c0_61] : memref<9x16x16xbf16, #tpu.memory_space<vmem>>, vector<1x16x16xbf16>
    %84 = vector.shape_cast %83 : vector<1x16x16xbf16> to vector<16x16xbf16>
    %cst_62 = arith.constant dense<0.000000e+00> : vector<16x256xf32>
    %85 = tpu.matmul %84, %82, %cst_62 {dimension_numbers = #tpu.dot_dimension_numbers<[1], [0], [0], [1], [0, 0, 1, 1], [], []>} : vector<16x16xbf16>, vector<16x256xbf16>, vector<16x256xf32> -> vector<16x256xf32>
    %86 = arith.addf %81, %85 : vector<16x256xf32>
    %87 = vector.extract_strided_slice %51 {offsets = [0, 21], sizes = [16, 256], strides = [1, 1]} : vector<16x384xbf16> to vector<16x256xbf16>
    %c7_63 = arith.constant 7 : index
    %c0_64 = arith.constant 0 : index
    %c0_65 = arith.constant 0 : index
    %88 = vector.load %arg6[%c7_63, %c0_64, %c0_65] : memref<9x16x16xbf16, #tpu.memory_space<vmem>>, vector<1x16x16xbf16>
    %89 = vector.shape_cast %88 : vector<1x16x16xbf16> to vector<16x16xbf16>
    %cst_66 = arith.constant dense<0.000000e+00> : vector<16x256xf32>
    %90 = tpu.matmul %89, %87, %cst_66 {dimension_numbers = #tpu.dot_dimension_numbers<[1], [0], [0], [1], [0, 0, 1, 1], [], []>} : vector<16x16xbf16>, vector<16x256xbf16>, vector<16x256xf32> -> vector<16x256xf32>
    %91 = arith.addf %86, %90 : vector<16x256xf32>
    %92 = vector.extract_strided_slice %51 {offsets = [0, 22], sizes = [16, 256], strides = [1, 1]} : vector<16x384xbf16> to vector<16x256xbf16>
    %c8_67 = arith.constant 8 : index
    %c0_68 = arith.constant 0 : index
    %c0_69 = arith.constant 0 : index
    %93 = vector.load %arg6[%c8_67, %c0_68, %c0_69] : memref<9x16x16xbf16, #tpu.memory_space<vmem>>, vector<1x16x16xbf16>
    %94 = vector.shape_cast %93 : vector<1x16x16xbf16> to vector<16x16xbf16>
    %cst_70 = arith.constant dense<0.000000e+00> : vector<16x256xf32>
    %95 = tpu.matmul %94, %92, %cst_70 {dimension_numbers = #tpu.dot_dimension_numbers<[1], [0], [0], [1], [0, 0, 1, 1], [], []>} : vector<16x16xbf16>, vector<16x256xbf16>, vector<16x256xf32> -> vector<16x256xf32>
    %96 = arith.addf %91, %95 : vector<16x256xf32>
    %c0_71 = arith.constant 0 : index
    %c0_72 = arith.constant 0 : index
    %97 = vector.load %arg7[%c0_71, %c0_72] : memref<16x1xf32, #tpu.memory_space<vmem>>, vector<16x1xf32>
    %98 = vector.broadcast %97 : vector<16x1xf32> to vector<16x256xf32>
    %99 = arith.addf %96, %98 : vector<16x256xf32>
    %cst_73 = arith.constant 0.000000e+00 : f32
    %100 = vector.broadcast %cst_73 : f32 to vector<16x256xf32>
    %101 = arith.maximumf %99, %100 : vector<16x256xf32>
    %102 = arith.truncf %101 : vector<16x256xf32> to vector<16x256xbf16>
    %c0_74 = arith.constant 0 : index
    %c0_75 = arith.constant 0 : index
    %103 = vector.load %arg8[%c0_74, %c0_75] : memref<16x256xbf16, #tpu.memory_space<vmem>>, vector<16x256xbf16>
    tpu.vector_store %arg8[%c0_74, %c0_75], %102 {strides = array<i32>} : memref<16x256xbf16, #tpu.memory_space<vmem>>, vector<16x256xbf16>,
    return
  }
  func.func @transform_0(%arg0: i32) -> (i32, i32) {
    %c0_i32 = arith.constant 0 : i32
    %c0_i32_0 = arith.constant 0 : i32
    return %c0_i32, %arg0 : i32, i32
  }
  func.func @transform_1(%arg0: i32) -> (i32, i32) {
    %c1_i32 = arith.constant 1 : i32
    %0 = arith.addi %arg0, %c1_i32 : i32
    %c2_i32 = arith.constant 2 : i32
    %1 = arith.muli %0, %c2_i32 : i32
    %c0_i32 = arith.constant 0 : i32
    %c0_i32_0 = arith.constant 0 : i32
    return %c0_i32, %1 : i32, i32
  }
  func.func @transform_2(%arg0: i32) -> (i32, i32) {
    %c0_i32 = arith.constant 0 : i32
    %c0_i32_0 = arith.constant 0 : i32
    return %c0_i32, %arg0 : i32, i32
  }
  func.func @transform_3(%arg0: i32) -> (i32, i32) {
    %c1_i32 = arith.constant 1 : i32
    %0 = arith.addi %arg0, %c1_i32 : i32
    %c2_i32 = arith.constant 2 : i32
    %1 = arith.muli %0, %c2_i32 : i32
    %c0_i32 = arith.constant 0 : i32
    %c0_i32_0 = arith.constant 0 : i32
    return %c0_i32, %1 : i32, i32
  }
  func.func @transform_4(%arg0: i32) -> (i32, i32, i32) {
    %c0_i32 = arith.constant 0 : i32
    %c0_i32_0 = arith.constant 0 : i32
    %c0_i32_1 = arith.constant 0 : i32
    %c0_i32_2 = arith.constant 0 : i32
    return %c0_i32, %c0_i32_0, %c0_i32_1 : i32, i32, i32
  }
  func.func @transform_5(%arg0: i32) -> (i32, i32, i32) {
    %c0_i32 = arith.constant 0 : i32
    %c0_i32_0 = arith.constant 0 : i32
    %c0_i32_1 = arith.constant 0 : i32
    %c0_i32_2 = arith.constant 0 : i32
    return %c0_i32, %c0_i32_0, %c0_i32_1 : i32, i32, i32
  }
  func.func @transform_6(%arg0: i32) -> (i32, i32) {
    %c0_i32 = arith.constant 0 : i32
    %c0_i32_0 = arith.constant 0 : i32
    %c0_i32_1 = arith.constant 0 : i32
    return %c0_i32, %c0_i32_0 : i32, i32
  }
  func.func @transform_7(%arg0: i32) -> (i32, i32) {
    %c0_i32 = arith.constant 0 : i32
    %c0_i32_0 = arith.constant 0 : i32
    return %c0_i32, %arg0 : i32, i32
  }
}

module attributes {stable_mosaic.version = 11 : i64} {
  func.func @_matmul_cf_kernel(%arg0: i32, %arg1: memref<16x128xbf16, #tpu.memory_space<vmem>>, %arg2: memref<8x16xbf16, #tpu.memory_space<vmem>>, %arg3: memref<8x16xbf16, #tpu.memory_space<vmem>>, %arg4: memref<8x16xbf16, #tpu.memory_space<vmem>>, %arg5: memref<8x16xbf16, #tpu.memory_space<vmem>>, %arg6: memref<8x1xf32, #tpu.memory_space<vmem>>, %arg7: memref<8x128xbf16, #tpu.memory_space<vmem>>, %arg8: memref<8x128xbf16, #tpu.memory_space<vmem>>, %arg9: memref<8x128xbf16, #tpu.memory_space<vmem>>, %arg10: memref<8x128xbf16, #tpu.memory_space<vmem>>) attributes {dimension_semantics = [#tpu.dimension_semantics<parallel>], iteration_bounds = array<i64: 1>, scalar_prefetch = 0 : i64, scratch_operands = 0 : i64, tpu.core_type = #tpu.core_type<tc>, window_params = [{transform_indices = @transform_0, window_bounds = array<i64: 16, 128>}, {pipeline_mode = #tpu.pipeline_mode<synchronous>, transform_indices = @transform_1, window_bounds = array<i64: 8, 16>}, {pipeline_mode = #tpu.pipeline_mode<synchronous>, transform_indices = @transform_2, window_bounds = array<i64: 8, 16>}, {pipeline_mode = #tpu.pipeline_mode<synchronous>, transform_indices = @transform_3, window_bounds = array<i64: 8, 16>}, {pipeline_mode = #tpu.pipeline_mode<synchronous>, transform_indices = @transform_4, window_bounds = array<i64: 8, 16>}, {pipeline_mode = #tpu.pipeline_mode<synchronous>, transform_indices = @transform_5, window_bounds = array<i64: 8, 1>}, {transform_indices = @transform_6, window_bounds = array<i64: 8, 128>}, {transform_indices = @transform_7, window_bounds = array<i64: 8, 128>}, {transform_indices = @transform_8, window_bounds = array<i64: 8, 128>}, {transform_indices = @transform_9, window_bounds = array<i64: 8, 128>}]} {
    %c0 = arith.constant 0 : index
    %c0_0 = arith.constant 0 : index
    %0 = vector.load %arg1[%c0, %c0_0] : memref<16x128xbf16, #tpu.memory_space<vmem>>, vector<16x128xbf16>
    %c0_1 = arith.constant 0 : index
    %c0_2 = arith.constant 0 : index
    %1 = vector.load %arg6[%c0_1, %c0_2] : memref<8x1xf32, #tpu.memory_space<vmem>>, vector<8x1xf32>
    %c0_3 = arith.constant 0 : index
    %c0_4 = arith.constant 0 : index
    %2 = vector.load %arg2[%c0_3, %c0_4] : memref<8x16xbf16, #tpu.memory_space<vmem>>, vector<8x16xbf16>
    %cst = arith.constant dense<0.000000e+00> : vector<8x128xf32>
    %3 = tpu.matmul %2, %0, %cst {dimension_numbers = #tpu.dot_dimension_numbers<[1], [0], [0], [1], [0, 0, 1, 1], [], []>} : vector<8x16xbf16>, vector<16x128xbf16>, vector<8x128xf32> -> vector<8x128xf32>
    %4 = vector.broadcast %1 : vector<8x1xf32> to vector<8x128xf32>
    %5 = arith.addf %3, %4 : vector<8x128xf32>
    %6 = arith.truncf %5 : vector<8x128xf32> to vector<8x128xbf16>
    %c0_5 = arith.constant 0 : index
    %c0_6 = arith.constant 0 : index
    %7 = vector.load %arg7[%c0_5, %c0_6] : memref<8x128xbf16, #tpu.memory_space<vmem>>, vector<8x128xbf16>
    tpu.vector_store %arg7[%c0_5, %c0_6], %6 {strides = array<i32>} : memref<8x128xbf16, #tpu.memory_space<vmem>>, vector<8x128xbf16>,
    %c0_7 = arith.constant 0 : index
    %c0_8 = arith.constant 0 : index
    %8 = vector.load %arg3[%c0_7, %c0_8] : memref<8x16xbf16, #tpu.memory_space<vmem>>, vector<8x16xbf16>
    %cst_9 = arith.constant dense<0.000000e+00> : vector<8x128xf32>
    %9 = tpu.matmul %8, %0, %cst_9 {dimension_numbers = #tpu.dot_dimension_numbers<[1], [0], [0], [1], [0, 0, 1, 1], [], []>} : vector<8x16xbf16>, vector<16x128xbf16>, vector<8x128xf32> -> vector<8x128xf32>
    %10 = vector.broadcast %1 : vector<8x1xf32> to vector<8x128xf32>
    %11 = arith.addf %9, %10 : vector<8x128xf32>
    %12 = arith.truncf %11 : vector<8x128xf32> to vector<8x128xbf16>
    %c0_10 = arith.constant 0 : index
    %c0_11 = arith.constant 0 : index
    %13 = vector.load %arg8[%c0_10, %c0_11] : memref<8x128xbf16, #tpu.memory_space<vmem>>, vector<8x128xbf16>
    tpu.vector_store %arg8[%c0_10, %c0_11], %12 {strides = array<i32>} : memref<8x128xbf16, #tpu.memory_space<vmem>>, vector<8x128xbf16>,
    %c0_12 = arith.constant 0 : index
    %c0_13 = arith.constant 0 : index
    %14 = vector.load %arg4[%c0_12, %c0_13] : memref<8x16xbf16, #tpu.memory_space<vmem>>, vector<8x16xbf16>
    %cst_14 = arith.constant dense<0.000000e+00> : vector<8x128xf32>
    %15 = tpu.matmul %14, %0, %cst_14 {dimension_numbers = #tpu.dot_dimension_numbers<[1], [0], [0], [1], [0, 0, 1, 1], [], []>} : vector<8x16xbf16>, vector<16x128xbf16>, vector<8x128xf32> -> vector<8x128xf32>
    %16 = vector.broadcast %1 : vector<8x1xf32> to vector<8x128xf32>
    %17 = arith.addf %15, %16 : vector<8x128xf32>
    %18 = arith.truncf %17 : vector<8x128xf32> to vector<8x128xbf16>
    %c0_15 = arith.constant 0 : index
    %c0_16 = arith.constant 0 : index
    %19 = vector.load %arg9[%c0_15, %c0_16] : memref<8x128xbf16, #tpu.memory_space<vmem>>, vector<8x128xbf16>
    tpu.vector_store %arg9[%c0_15, %c0_16], %18 {strides = array<i32>} : memref<8x128xbf16, #tpu.memory_space<vmem>>, vector<8x128xbf16>,
    %c0_17 = arith.constant 0 : index
    %c0_18 = arith.constant 0 : index
    %20 = vector.load %arg5[%c0_17, %c0_18] : memref<8x16xbf16, #tpu.memory_space<vmem>>, vector<8x16xbf16>
    %cst_19 = arith.constant dense<0.000000e+00> : vector<8x128xf32>
    %21 = tpu.matmul %20, %0, %cst_19 {dimension_numbers = #tpu.dot_dimension_numbers<[1], [0], [0], [1], [0, 0, 1, 1], [], []>} : vector<8x16xbf16>, vector<16x128xbf16>, vector<8x128xf32> -> vector<8x128xf32>
    %22 = vector.broadcast %1 : vector<8x1xf32> to vector<8x128xf32>
    %23 = arith.addf %21, %22 : vector<8x128xf32>
    %24 = arith.truncf %23 : vector<8x128xf32> to vector<8x128xbf16>
    %c0_20 = arith.constant 0 : index
    %c0_21 = arith.constant 0 : index
    %25 = vector.load %arg10[%c0_20, %c0_21] : memref<8x128xbf16, #tpu.memory_space<vmem>>, vector<8x128xbf16>
    tpu.vector_store %arg10[%c0_20, %c0_21], %24 {strides = array<i32>} : memref<8x128xbf16, #tpu.memory_space<vmem>>, vector<8x128xbf16>,
    return
  }
  func.func @transform_0(%arg0: i32) -> (i32, i32) {
    %c0_i32 = arith.constant 0 : i32
    %c0_i32_0 = arith.constant 0 : i32
    return %c0_i32, %arg0 : i32, i32
  }
  func.func @transform_1(%arg0: i32) -> (i32, i32) {
    %c0_i32 = arith.constant 0 : i32
    %c0_i32_0 = arith.constant 0 : i32
    %c0_i32_1 = arith.constant 0 : i32
    return %c0_i32, %c0_i32_0 : i32, i32
  }
  func.func @transform_2(%arg0: i32) -> (i32, i32) {
    %c0_i32 = arith.constant 0 : i32
    %c0_i32_0 = arith.constant 0 : i32
    %c0_i32_1 = arith.constant 0 : i32
    return %c0_i32, %c0_i32_0 : i32, i32
  }
  func.func @transform_3(%arg0: i32) -> (i32, i32) {
    %c0_i32 = arith.constant 0 : i32
    %c0_i32_0 = arith.constant 0 : i32
    %c0_i32_1 = arith.constant 0 : i32
    return %c0_i32, %c0_i32_0 : i32, i32
  }
  func.func @transform_4(%arg0: i32) -> (i32, i32) {
    %c0_i32 = arith.constant 0 : i32
    %c0_i32_0 = arith.constant 0 : i32
    %c0_i32_1 = arith.constant 0 : i32
    return %c0_i32, %c0_i32_0 : i32, i32
  }
  func.func @transform_5(%arg0: i32) -> (i32, i32) {
    %c0_i32 = arith.constant 0 : i32
    %c0_i32_0 = arith.constant 0 : i32
    %c0_i32_1 = arith.constant 0 : i32
    return %c0_i32, %c0_i32_0 : i32, i32
  }
  func.func @transform_6(%arg0: i32) -> (i32, i32) {
    %c0_i32 = arith.constant 0 : i32
    %c0_i32_0 = arith.constant 0 : i32
    return %c0_i32, %arg0 : i32, i32
  }
  func.func @transform_7(%arg0: i32) -> (i32, i32) {
    %c0_i32 = arith.constant 0 : i32
    %c0_i32_0 = arith.constant 0 : i32
    return %c0_i32, %arg0 : i32, i32
  }
  func.func @transform_8(%arg0: i32) -> (i32, i32) {
    %c0_i32 = arith.constant 0 : i32
    %c0_i32_0 = arith.constant 0 : i32
    return %c0_i32, %arg0 : i32, i32
  }
  func.func @transform_9(%arg0: i32) -> (i32, i32) {
    %c0_i32 = arith.constant 0 : i32
    %c0_i32_0 = arith.constant 0 : i32
    return %c0_i32, %arg0 : i32, i32
  }
}

module attributes {stable_mosaic.version = 11 : i64} {
  func.func @_conv3x3_kernel(%arg0: i32, %arg1: memref<8x768xbf16, #tpu.memory_space<vmem>>, %arg2: memref<8x128xbf16, #tpu.memory_space<vmem>>, %arg3: memref<8x768xbf16, #tpu.memory_space<vmem>>, %arg4: memref<8x128xbf16, #tpu.memory_space<vmem>>, %arg5: memref<9x8x8xbf16, #tpu.memory_space<vmem>>, %arg6: memref<9x8x8xbf16, #tpu.memory_space<vmem>>, %arg7: memref<8x1xf32, #tpu.memory_space<vmem>>, %arg8: memref<8x768xbf16, #tpu.memory_space<vmem>>) attributes {dimension_semantics = [#tpu.dimension_semantics<parallel>], iteration_bounds = array<i64: 1>, scalar_prefetch = 0 : i64, scratch_operands = 0 : i64, tpu.core_type = #tpu.core_type<tc>, window_params = [{transform_indices = @transform_0, window_bounds = array<i64: 8, 768>}, {transform_indices = @transform_1, window_bounds = array<i64: 8, 128>}, {transform_indices = @transform_2, window_bounds = array<i64: 8, 768>}, {transform_indices = @transform_3, window_bounds = array<i64: 8, 128>}, {pipeline_mode = #tpu.pipeline_mode<synchronous>, transform_indices = @transform_4, window_bounds = array<i64: 9, 8, 8>}, {pipeline_mode = #tpu.pipeline_mode<synchronous>, transform_indices = @transform_5, window_bounds = array<i64: 9, 8, 8>}, {pipeline_mode = #tpu.pipeline_mode<synchronous>, transform_indices = @transform_6, window_bounds = array<i64: 8, 1>}, {transform_indices = @transform_7, window_bounds = array<i64: 8, 768>}]} {
    %cst = arith.constant 0.000000e+00 : f32
    %0 = vector.broadcast %cst : f32 to vector<8x768xf32>
    %c0 = arith.constant 0 : index
    %c0_0 = arith.constant 0 : index
    %1 = vector.load %arg1[%c0, %c0_0] : memref<8x768xbf16, #tpu.memory_space<vmem>>, vector<8x768xbf16>
    %c0_1 = arith.constant 0 : index
    %c0_2 = arith.constant 0 : index
    %2 = vector.load %arg2[%c0_1, %c0_2] : memref<8x128xbf16, #tpu.memory_space<vmem>>, vector<8x128xbf16>
    %3 = tpu.concatenate %1, %2 in 1 : vector<8x768xbf16>, vector<8x128xbf16> -> vector<8x896xbf16>
    %4 = vector.extract_strided_slice %3 {offsets = [0, 0], sizes = [8, 768], strides = [1, 1]} : vector<8x896xbf16> to vector<8x768xbf16>
    %c0_3 = arith.constant 0 : index
    %c0_4 = arith.constant 0 : index
    %c0_5 = arith.constant 0 : index
    %5 = vector.load %arg5[%c0_3, %c0_4, %c0_5] : memref<9x8x8xbf16, #tpu.memory_space<vmem>>, vector<1x8x8xbf16>
    %6 = vector.shape_cast %5 : vector<1x8x8xbf16> to vector<8x8xbf16>
    %cst_6 = arith.constant dense<0.000000e+00> : vector<8x768xf32>
    %7 = tpu.matmul %6, %4, %cst_6 {dimension_numbers = #tpu.dot_dimension_numbers<[1], [0], [0], [1], [0, 0, 1, 1], [], []>} : vector<8x8xbf16>, vector<8x768xbf16>, vector<8x768xf32> -> vector<8x768xf32>
    %8 = arith.addf %0, %7 : vector<8x768xf32>
    %9 = vector.extract_strided_slice %3 {offsets = [0, 1], sizes = [8, 768], strides = [1, 1]} : vector<8x896xbf16> to vector<8x768xbf16>
    %c1 = arith.constant 1 : index
    %c0_7 = arith.constant 0 : index
    %c0_8 = arith.constant 0 : index
    %10 = vector.load %arg5[%c1, %c0_7, %c0_8] : memref<9x8x8xbf16, #tpu.memory_space<vmem>>, vector<1x8x8xbf16>
    %11 = vector.shape_cast %10 : vector<1x8x8xbf16> to vector<8x8xbf16>
    %cst_9 = arith.constant dense<0.000000e+00> : vector<8x768xf32>
    %12 = tpu.matmul %11, %9, %cst_9 {dimension_numbers = #tpu.dot_dimension_numbers<[1], [0], [0], [1], [0, 0, 1, 1], [], []>} : vector<8x8xbf16>, vector<8x768xbf16>, vector<8x768xf32> -> vector<8x768xf32>
    %13 = arith.addf %8, %12 : vector<8x768xf32>
    %14 = vector.extract_strided_slice %3 {offsets = [0, 2], sizes = [8, 768], strides = [1, 1]} : vector<8x896xbf16> to vector<8x768xbf16>
    %c2 = arith.constant 2 : index
    %c0_10 = arith.constant 0 : index
    %c0_11 = arith.constant 0 : index
    %15 = vector.load %arg5[%c2, %c0_10, %c0_11] : memref<9x8x8xbf16, #tpu.memory_space<vmem>>, vector<1x8x8xbf16>
    %16 = vector.shape_cast %15 : vector<1x8x8xbf16> to vector<8x8xbf16>
    %cst_12 = arith.constant dense<0.000000e+00> : vector<8x768xf32>
    %17 = tpu.matmul %16, %14, %cst_12 {dimension_numbers = #tpu.dot_dimension_numbers<[1], [0], [0], [1], [0, 0, 1, 1], [], []>} : vector<8x8xbf16>, vector<8x768xbf16>, vector<8x768xf32> -> vector<8x768xf32>
    %18 = arith.addf %13, %17 : vector<8x768xf32>
    %19 = vector.extract_strided_slice %3 {offsets = [0, 18], sizes = [8, 768], strides = [1, 1]} : vector<8x896xbf16> to vector<8x768xbf16>
    %c3 = arith.constant 3 : index
    %c0_13 = arith.constant 0 : index
    %c0_14 = arith.constant 0 : index
    %20 = vector.load %arg5[%c3, %c0_13, %c0_14] : memref<9x8x8xbf16, #tpu.memory_space<vmem>>, vector<1x8x8xbf16>
    %21 = vector.shape_cast %20 : vector<1x8x8xbf16> to vector<8x8xbf16>
    %cst_15 = arith.constant dense<0.000000e+00> : vector<8x768xf32>
    %22 = tpu.matmul %21, %19, %cst_15 {dimension_numbers = #tpu.dot_dimension_numbers<[1], [0], [0], [1], [0, 0, 1, 1], [], []>} : vector<8x8xbf16>, vector<8x768xbf16>, vector<8x768xf32> -> vector<8x768xf32>
    %23 = arith.addf %18, %22 : vector<8x768xf32>
    %24 = vector.extract_strided_slice %3 {offsets = [0, 19], sizes = [8, 768], strides = [1, 1]} : vector<8x896xbf16> to vector<8x768xbf16>
    %c4 = arith.constant 4 : index
    %c0_16 = arith.constant 0 : index
    %c0_17 = arith.constant 0 : index
    %25 = vector.load %arg5[%c4, %c0_16, %c0_17] : memref<9x8x8xbf16, #tpu.memory_space<vmem>>, vector<1x8x8xbf16>
    %26 = vector.shape_cast %25 : vector<1x8x8xbf16> to vector<8x8xbf16>
    %cst_18 = arith.constant dense<0.000000e+00> : vector<8x768xf32>
    %27 = tpu.matmul %26, %24, %cst_18 {dimension_numbers = #tpu.dot_dimension_numbers<[1], [0], [0], [1], [0, 0, 1, 1], [], []>} : vector<8x8xbf16>, vector<8x768xbf16>, vector<8x768xf32> -> vector<8x768xf32>
    %28 = arith.addf %23, %27 : vector<8x768xf32>
    %29 = vector.extract_strided_slice %3 {offsets = [0, 20], sizes = [8, 768], strides = [1, 1]} : vector<8x896xbf16> to vector<8x768xbf16>
    %c5 = arith.constant 5 : index
    %c0_19 = arith.constant 0 : index
    %c0_20 = arith.constant 0 : index
    %30 = vector.load %arg5[%c5, %c0_19, %c0_20] : memref<9x8x8xbf16, #tpu.memory_space<vmem>>, vector<1x8x8xbf16>
    %31 = vector.shape_cast %30 : vector<1x8x8xbf16> to vector<8x8xbf16>
    %cst_21 = arith.constant dense<0.000000e+00> : vector<8x768xf32>
    %32 = tpu.matmul %31, %29, %cst_21 {dimension_numbers = #tpu.dot_dimension_numbers<[1], [0], [0], [1], [0, 0, 1, 1], [], []>} : vector<8x8xbf16>, vector<8x768xbf16>, vector<8x768xf32> -> vector<8x768xf32>
    %33 = arith.addf %28, %32 : vector<8x768xf32>
    %34 = vector.extract_strided_slice %3 {offsets = [0, 36], sizes = [8, 768], strides = [1, 1]} : vector<8x896xbf16> to vector<8x768xbf16>
    %c6 = arith.constant 6 : index
    %c0_22 = arith.constant 0 : index
    %c0_23 = arith.constant 0 : index
    %35 = vector.load %arg5[%c6, %c0_22, %c0_23] : memref<9x8x8xbf16, #tpu.memory_space<vmem>>, vector<1x8x8xbf16>
    %36 = vector.shape_cast %35 : vector<1x8x8xbf16> to vector<8x8xbf16>
    %cst_24 = arith.constant dense<0.000000e+00> : vector<8x768xf32>
    %37 = tpu.matmul %36, %34, %cst_24 {dimension_numbers = #tpu.dot_dimension_numbers<[1], [0], [0], [1], [0, 0, 1, 1], [], []>} : vector<8x8xbf16>, vector<8x768xbf16>, vector<8x768xf32> -> vector<8x768xf32>
    %38 = arith.addf %33, %37 : vector<8x768xf32>
    %39 = vector.extract_strided_slice %3 {offsets = [0, 37], sizes = [8, 768], strides = [1, 1]} : vector<8x896xbf16> to vector<8x768xbf16>
    %c7 = arith.constant 7 : index
    %c0_25 = arith.constant 0 : index
    %c0_26 = arith.constant 0 : index
    %40 = vector.load %arg5[%c7, %c0_25, %c0_26] : memref<9x8x8xbf16, #tpu.memory_space<vmem>>, vector<1x8x8xbf16>
    %41 = vector.shape_cast %40 : vector<1x8x8xbf16> to vector<8x8xbf16>
    %cst_27 = arith.constant dense<0.000000e+00> : vector<8x768xf32>
    %42 = tpu.matmul %41, %39, %cst_27 {dimension_numbers = #tpu.dot_dimension_numbers<[1], [0], [0], [1], [0, 0, 1, 1], [], []>} : vector<8x8xbf16>, vector<8x768xbf16>, vector<8x768xf32> -> vector<8x768xf32>
    %43 = arith.addf %38, %42 : vector<8x768xf32>
    %44 = vector.extract_strided_slice %3 {offsets = [0, 38], sizes = [8, 768], strides = [1, 1]} : vector<8x896xbf16> to vector<8x768xbf16>
    %c8 = arith.constant 8 : index
    %c0_28 = arith.constant 0 : index
    %c0_29 = arith.constant 0 : index
    %45 = vector.load %arg5[%c8, %c0_28, %c0_29] : memref<9x8x8xbf16, #tpu.memory_space<vmem>>, vector<1x8x8xbf16>
    %46 = vector.shape_cast %45 : vector<1x8x8xbf16> to vector<8x8xbf16>
    %cst_30 = arith.constant dense<0.000000e+00> : vector<8x768xf32>
    %47 = tpu.matmul %46, %44, %cst_30 {dimension_numbers = #tpu.dot_dimension_numbers<[1], [0], [0], [1], [0, 0, 1, 1], [], []>} : vector<8x8xbf16>, vector<8x768xbf16>, vector<8x768xf32> -> vector<8x768xf32>
    %48 = arith.addf %43, %47 : vector<8x768xf32>
    %c0_31 = arith.constant 0 : index
    %c0_32 = arith.constant 0 : index
    %49 = vector.load %arg3[%c0_31, %c0_32] : memref<8x768xbf16, #tpu.memory_space<vmem>>, vector<8x768xbf16>
    %c0_33 = arith.constant 0 : index
    %c0_34 = arith.constant 0 : index
    %50 = vector.load %arg4[%c0_33, %c0_34] : memref<8x128xbf16, #tpu.memory_space<vmem>>, vector<8x128xbf16>
    %51 = tpu.concatenate %49, %50 in 1 : vector<8x768xbf16>, vector<8x128xbf16> -> vector<8x896xbf16>
    %52 = vector.extract_strided_slice %51 {offsets = [0, 0], sizes = [8, 768], strides = [1, 1]} : vector<8x896xbf16> to vector<8x768xbf16>
    %c0_35 = arith.constant 0 : index
    %c0_36 = arith.constant 0 : index
    %c0_37 = arith.constant 0 : index
    %53 = vector.load %arg6[%c0_35, %c0_36, %c0_37] : memref<9x8x8xbf16, #tpu.memory_space<vmem>>, vector<1x8x8xbf16>
    %54 = vector.shape_cast %53 : vector<1x8x8xbf16> to vector<8x8xbf16>
    %cst_38 = arith.constant dense<0.000000e+00> : vector<8x768xf32>
    %55 = tpu.matmul %54, %52, %cst_38 {dimension_numbers = #tpu.dot_dimension_numbers<[1], [0], [0], [1], [0, 0, 1, 1], [], []>} : vector<8x8xbf16>, vector<8x768xbf16>, vector<8x768xf32> -> vector<8x768xf32>
    %56 = arith.addf %48, %55 : vector<8x768xf32>
    %57 = vector.extract_strided_slice %51 {offsets = [0, 1], sizes = [8, 768], strides = [1, 1]} : vector<8x896xbf16> to vector<8x768xbf16>
    %c1_39 = arith.constant 1 : index
    %c0_40 = arith.constant 0 : index
    %c0_41 = arith.constant 0 : index
    %58 = vector.load %arg6[%c1_39, %c0_40, %c0_41] : memref<9x8x8xbf16, #tpu.memory_space<vmem>>, vector<1x8x8xbf16>
    %59 = vector.shape_cast %58 : vector<1x8x8xbf16> to vector<8x8xbf16>
    %cst_42 = arith.constant dense<0.000000e+00> : vector<8x768xf32>
    %60 = tpu.matmul %59, %57, %cst_42 {dimension_numbers = #tpu.dot_dimension_numbers<[1], [0], [0], [1], [0, 0, 1, 1], [], []>} : vector<8x8xbf16>, vector<8x768xbf16>, vector<8x768xf32> -> vector<8x768xf32>
    %61 = arith.addf %56, %60 : vector<8x768xf32>
    %62 = vector.extract_strided_slice %51 {offsets = [0, 2], sizes = [8, 768], strides = [1, 1]} : vector<8x896xbf16> to vector<8x768xbf16>
    %c2_43 = arith.constant 2 : index
    %c0_44 = arith.constant 0 : index
    %c0_45 = arith.constant 0 : index
    %63 = vector.load %arg6[%c2_43, %c0_44, %c0_45] : memref<9x8x8xbf16, #tpu.memory_space<vmem>>, vector<1x8x8xbf16>
    %64 = vector.shape_cast %63 : vector<1x8x8xbf16> to vector<8x8xbf16>
    %cst_46 = arith.constant dense<0.000000e+00> : vector<8x768xf32>
    %65 = tpu.matmul %64, %62, %cst_46 {dimension_numbers = #tpu.dot_dimension_numbers<[1], [0], [0], [1], [0, 0, 1, 1], [], []>} : vector<8x8xbf16>, vector<8x768xbf16>, vector<8x768xf32> -> vector<8x768xf32>
    %66 = arith.addf %61, %65 : vector<8x768xf32>
    %67 = vector.extract_strided_slice %51 {offsets = [0, 18], sizes = [8, 768], strides = [1, 1]} : vector<8x896xbf16> to vector<8x768xbf16>
    %c3_47 = arith.constant 3 : index
    %c0_48 = arith.constant 0 : index
    %c0_49 = arith.constant 0 : index
    %68 = vector.load %arg6[%c3_47, %c0_48, %c0_49] : memref<9x8x8xbf16, #tpu.memory_space<vmem>>, vector<1x8x8xbf16>
    %69 = vector.shape_cast %68 : vector<1x8x8xbf16> to vector<8x8xbf16>
    %cst_50 = arith.constant dense<0.000000e+00> : vector<8x768xf32>
    %70 = tpu.matmul %69, %67, %cst_50 {dimension_numbers = #tpu.dot_dimension_numbers<[1], [0], [0], [1], [0, 0, 1, 1], [], []>} : vector<8x8xbf16>, vector<8x768xbf16>, vector<8x768xf32> -> vector<8x768xf32>
    %71 = arith.addf %66, %70 : vector<8x768xf32>
    %72 = vector.extract_strided_slice %51 {offsets = [0, 19], sizes = [8, 768], strides = [1, 1]} : vector<8x896xbf16> to vector<8x768xbf16>
    %c4_51 = arith.constant 4 : index
    %c0_52 = arith.constant 0 : index
    %c0_53 = arith.constant 0 : index
    %73 = vector.load %arg6[%c4_51, %c0_52, %c0_53] : memref<9x8x8xbf16, #tpu.memory_space<vmem>>, vector<1x8x8xbf16>
    %74 = vector.shape_cast %73 : vector<1x8x8xbf16> to vector<8x8xbf16>
    %cst_54 = arith.constant dense<0.000000e+00> : vector<8x768xf32>
    %75 = tpu.matmul %74, %72, %cst_54 {dimension_numbers = #tpu.dot_dimension_numbers<[1], [0], [0], [1], [0, 0, 1, 1], [], []>} : vector<8x8xbf16>, vector<8x768xbf16>, vector<8x768xf32> -> vector<8x768xf32>
    %76 = arith.addf %71, %75 : vector<8x768xf32>
    %77 = vector.extract_strided_slice %51 {offsets = [0, 20], sizes = [8, 768], strides = [1, 1]} : vector<8x896xbf16> to vector<8x768xbf16>
    %c5_55 = arith.constant 5 : index
    %c0_56 = arith.constant 0 : index
    %c0_57 = arith.constant 0 : index
    %78 = vector.load %arg6[%c5_55, %c0_56, %c0_57] : memref<9x8x8xbf16, #tpu.memory_space<vmem>>, vector<1x8x8xbf16>
    %79 = vector.shape_cast %78 : vector<1x8x8xbf16> to vector<8x8xbf16>
    %cst_58 = arith.constant dense<0.000000e+00> : vector<8x768xf32>
    %80 = tpu.matmul %79, %77, %cst_58 {dimension_numbers = #tpu.dot_dimension_numbers<[1], [0], [0], [1], [0, 0, 1, 1], [], []>} : vector<8x8xbf16>, vector<8x768xbf16>, vector<8x768xf32> -> vector<8x768xf32>
    %81 = arith.addf %76, %80 : vector<8x768xf32>
    %82 = vector.extract_strided_slice %51 {offsets = [0, 36], sizes = [8, 768], strides = [1, 1]} : vector<8x896xbf16> to vector<8x768xbf16>
    %c6_59 = arith.constant 6 : index
    %c0_60 = arith.constant 0 : index
    %c0_61 = arith.constant 0 : index
    %83 = vector.load %arg6[%c6_59, %c0_60, %c0_61] : memref<9x8x8xbf16, #tpu.memory_space<vmem>>, vector<1x8x8xbf16>
    %84 = vector.shape_cast %83 : vector<1x8x8xbf16> to vector<8x8xbf16>
    %cst_62 = arith.constant dense<0.000000e+00> : vector<8x768xf32>
    %85 = tpu.matmul %84, %82, %cst_62 {dimension_numbers = #tpu.dot_dimension_numbers<[1], [0], [0], [1], [0, 0, 1, 1], [], []>} : vector<8x8xbf16>, vector<8x768xbf16>, vector<8x768xf32> -> vector<8x768xf32>
    %86 = arith.addf %81, %85 : vector<8x768xf32>
    %87 = vector.extract_strided_slice %51 {offsets = [0, 37], sizes = [8, 768], strides = [1, 1]} : vector<8x896xbf16> to vector<8x768xbf16>
    %c7_63 = arith.constant 7 : index
    %c0_64 = arith.constant 0 : index
    %c0_65 = arith.constant 0 : index
    %88 = vector.load %arg6[%c7_63, %c0_64, %c0_65] : memref<9x8x8xbf16, #tpu.memory_space<vmem>>, vector<1x8x8xbf16>
    %89 = vector.shape_cast %88 : vector<1x8x8xbf16> to vector<8x8xbf16>
    %cst_66 = arith.constant dense<0.000000e+00> : vector<8x768xf32>
    %90 = tpu.matmul %89, %87, %cst_66 {dimension_numbers = #tpu.dot_dimension_numbers<[1], [0], [0], [1], [0, 0, 1, 1], [], []>} : vector<8x8xbf16>, vector<8x768xbf16>, vector<8x768xf32> -> vector<8x768xf32>
    %91 = arith.addf %86, %90 : vector<8x768xf32>
    %92 = vector.extract_strided_slice %51 {offsets = [0, 38], sizes = [8, 768], strides = [1, 1]} : vector<8x896xbf16> to vector<8x768xbf16>
    %c8_67 = arith.constant 8 : index
    %c0_68 = arith.constant 0 : index
    %c0_69 = arith.constant 0 : index
    %93 = vector.load %arg6[%c8_67, %c0_68, %c0_69] : memref<9x8x8xbf16, #tpu.memory_space<vmem>>, vector<1x8x8xbf16>
    %94 = vector.shape_cast %93 : vector<1x8x8xbf16> to vector<8x8xbf16>
    %cst_70 = arith.constant dense<0.000000e+00> : vector<8x768xf32>
    %95 = tpu.matmul %94, %92, %cst_70 {dimension_numbers = #tpu.dot_dimension_numbers<[1], [0], [0], [1], [0, 0, 1, 1], [], []>} : vector<8x8xbf16>, vector<8x768xbf16>, vector<8x768xf32> -> vector<8x768xf32>
    %96 = arith.addf %91, %95 : vector<8x768xf32>
    %c0_71 = arith.constant 0 : index
    %c0_72 = arith.constant 0 : index
    %97 = vector.load %arg7[%c0_71, %c0_72] : memref<8x1xf32, #tpu.memory_space<vmem>>, vector<8x1xf32>
    %98 = vector.broadcast %97 : vector<8x1xf32> to vector<8x768xf32>
    %99 = arith.addf %96, %98 : vector<8x768xf32>
    %cst_73 = arith.constant 0.000000e+00 : f32
    %100 = vector.broadcast %cst_73 : f32 to vector<8x768xf32>
    %101 = arith.maximumf %99, %100 : vector<8x768xf32>
    %102 = arith.truncf %101 : vector<8x768xf32> to vector<8x768xbf16>
    %c0_74 = arith.constant 0 : index
    %c0_75 = arith.constant 0 : index
    %103 = vector.load %arg8[%c0_74, %c0_75] : memref<8x768xbf16, #tpu.memory_space<vmem>>, vector<8x768xbf16>
    tpu.vector_store %arg8[%c0_74, %c0_75], %102 {strides = array<i32>} : memref<8x768xbf16, #tpu.memory_space<vmem>>, vector<8x768xbf16>,
    return
  }
  func.func @transform_0(%arg0: i32) -> (i32, i32) {
    %c0_i32 = arith.constant 0 : i32
    %c0_i32_0 = arith.constant 0 : i32
    return %c0_i32, %arg0 : i32, i32
  }
  func.func @transform_1(%arg0: i32) -> (i32, i32) {
    %c1_i32 = arith.constant 1 : i32
    %0 = arith.addi %arg0, %c1_i32 : i32
    %c6_i32 = arith.constant 6 : i32
    %1 = arith.muli %0, %c6_i32 : i32
    %c0_i32 = arith.constant 0 : i32
    %c0_i32_0 = arith.constant 0 : i32
    return %c0_i32, %1 : i32, i32
  }
  func.func @transform_2(%arg0: i32) -> (i32, i32) {
    %c0_i32 = arith.constant 0 : i32
    %c0_i32_0 = arith.constant 0 : i32
    return %c0_i32, %arg0 : i32, i32
  }
  func.func @transform_3(%arg0: i32) -> (i32, i32) {
    %c1_i32 = arith.constant 1 : i32
    %0 = arith.addi %arg0, %c1_i32 : i32
    %c6_i32 = arith.constant 6 : i32
    %1 = arith.muli %0, %c6_i32 : i32
    %c0_i32 = arith.constant 0 : i32
    %c0_i32_0 = arith.constant 0 : i32
    return %c0_i32, %1 : i32, i32
  }
  func.func @transform_4(%arg0: i32) -> (i32, i32, i32) {
    %c0_i32 = arith.constant 0 : i32
    %c0_i32_0 = arith.constant 0 : i32
    %c0_i32_1 = arith.constant 0 : i32
    %c0_i32_2 = arith.constant 0 : i32
    return %c0_i32, %c0_i32_0, %c0_i32_1 : i32, i32, i32
  }
  func.func @transform_5(%arg0: i32) -> (i32, i32, i32) {
    %c0_i32 = arith.constant 0 : i32
    %c0_i32_0 = arith.constant 0 : i32
    %c0_i32_1 = arith.constant 0 : i32
    %c0_i32_2 = arith.constant 0 : i32
    return %c0_i32, %c0_i32_0, %c0_i32_1 : i32, i32, i32
  }
  func.func @transform_6(%arg0: i32) -> (i32, i32) {
    %c0_i32 = arith.constant 0 : i32
    %c0_i32_0 = arith.constant 0 : i32
    %c0_i32_1 = arith.constant 0 : i32
    return %c0_i32, %c0_i32_0 : i32, i32
  }
  func.func @transform_7(%arg0: i32) -> (i32, i32) {
    %c0_i32 = arith.constant 0 : i32
    %c0_i32_0 = arith.constant 0 : i32
    return %c0_i32, %arg0 : i32, i32
  }
}

module attributes {stable_mosaic.version = 11 : i64} {
  func.func @_matmul_cf_kernel(%arg0: i32, %arg1: memref<8x512xbf16, #tpu.memory_space<vmem>>, %arg2: memref<5x8xbf16, #tpu.memory_space<vmem>>, %arg3: memref<5x1xf32, #tpu.memory_space<vmem>>, %arg4: memref<5x512xf32, #tpu.memory_space<vmem>>) attributes {dimension_semantics = [#tpu.dimension_semantics<parallel>], iteration_bounds = array<i64: 1>, scalar_prefetch = 0 : i64, scratch_operands = 0 : i64, tpu.core_type = #tpu.core_type<tc>, window_params = [{transform_indices = @transform_0, window_bounds = array<i64: 8, 512>}, {pipeline_mode = #tpu.pipeline_mode<synchronous>, transform_indices = @transform_1, window_bounds = array<i64: 5, 8>}, {pipeline_mode = #tpu.pipeline_mode<synchronous>, transform_indices = @transform_2, window_bounds = array<i64: 5, 1>}, {transform_indices = @transform_3, window_bounds = array<i64: 5, 512>}]} {
    %c0 = arith.constant 0 : index
    %c0_0 = arith.constant 0 : index
    %0 = vector.load %arg1[%c0, %c0_0] : memref<8x512xbf16, #tpu.memory_space<vmem>>, vector<8x512xbf16>
    %c0_1 = arith.constant 0 : index
    %c0_2 = arith.constant 0 : index
    %1 = vector.load %arg3[%c0_1, %c0_2] : memref<5x1xf32, #tpu.memory_space<vmem>>, vector<5x1xf32>
    %c0_3 = arith.constant 0 : index
    %c0_4 = arith.constant 0 : index
    %2 = vector.load %arg2[%c0_3, %c0_4] : memref<5x8xbf16, #tpu.memory_space<vmem>>, vector<5x8xbf16>
    %cst = arith.constant dense<0.000000e+00> : vector<5x512xf32>
    %3 = tpu.matmul %2, %0, %cst {dimension_numbers = #tpu.dot_dimension_numbers<[1], [0], [0], [1], [0, 0, 1, 1], [], []>} : vector<5x8xbf16>, vector<8x512xbf16>, vector<5x512xf32> -> vector<5x512xf32>
    %4 = vector.broadcast %1 : vector<5x1xf32> to vector<5x512xf32>
    %5 = arith.addf %3, %4 : vector<5x512xf32>
    %c0_5 = arith.constant 0 : index
    %c0_6 = arith.constant 0 : index
    %6 = vector.load %arg4[%c0_5, %c0_6] : memref<5x512xf32, #tpu.memory_space<vmem>>, vector<5x512xf32>
    tpu.vector_store %arg4[%c0_5, %c0_6], %5 {strides = array<i32>} : memref<5x512xf32, #tpu.memory_space<vmem>>, vector<5x512xf32>,
    return
  }
  func.func @transform_0(%arg0: i32) -> (i32, i32) {
    %c0_i32 = arith.constant 0 : i32
    %c0_i32_0 = arith.constant 0 : i32
    return %c0_i32, %arg0 : i32, i32
  }
  func.func @transform_1(%arg0: i32) -> (i32, i32) {
    %c0_i32 = arith.constant 0 : i32
    %c0_i32_0 = arith.constant 0 : i32
    %c0_i32_1 = arith.constant 0 : i32
    return %c0_i32, %c0_i32_0 : i32, i32
  }
  func.func @transform_2(%arg0: i32) -> (i32, i32) {
    %c0_i32 = arith.constant 0 : i32
    %c0_i32_0 = arith.constant 0 : i32
    %c0_i32_1 = arith.constant 0 : i32
    return %c0_i32, %c0_i32_0 : i32, i32
  }
  func.func @transform_3(%arg0: i32) -> (i32, i32) {
    %c0_i32 = arith.constant 0 : i32
    %c0_i32_0 = arith.constant 0 : i32
    return %c0_i32, %arg0 : i32, i32
  }
}

</mosaic_0001>

<bundles_post_ra>
// kernel: _lambda_.15
= control target key start
LH: loop header
LB: loop body
LE: loop exit
PB: predicated region body
PF: predicated region fallthrough
CT: control target
= control target key end

     0   :  { %s1287_s19 = smov 127   ;;  %s1288_s21 = smov 126   ;;  %vm89_vm0 = vcmask 1040384   ;;  %vm78_vm1 = vcmask 1039360   ;;  %vm90_vm2 = vcmask 1041408   ;;  %v1294_v13 = vmov 65535   ;;  %s1618_s0 = inlined_call_operand.vmem [shape: bf16[3,896], index: 0, kind: input, shape index: {}, may-alias: {0,1}]   ;;  %s1619_s1 = inlined_call_operand.vmem [shape: bf16[3,896], index: 1, kind: input, shape index: {}, may-alias: {0,1}]   ;;  %s1620_s2 = inlined_call_operand.vmem [shape: bf16[9,8,3], index: 2, kind: input, shape index: {}]   ;;  %s1621_s3 = inlined_call_operand.vmem [shape: f32[8,1], index: 3, kind: input, shape index: {}]   ;;  %s1622_s4 = inlined_call_operand.vmem [shape: bf16[8,768], index: 4, kind: output, shape index: {}]  }
   0x1   :  { %v40_v0 = vld [vmem:[%s1618_s0] sm:$0xff]  ;;  %v41_v1 = vld [vmem:[%s1618_s0 + $0x8] sm:$0xf]  ;;  %v1349_v8 = vld [vmem:[%s1619_s1 + $0xc] sm:$0x3]  ;;  %s1289_s22 = smov 110  }
   0x2   :  { %44 = vst [vmem:[#allocation1] ss:$4 sm:$0xff] %v40_v0  ;;  %s1290_s1 = smov 109   ;;  %s1291_s23 = smov 108   ;;  %v91_v14 = vsel %vm89_vm0, 4294967295, %v1294_v13  ;;  %vm85_vm3 = vcmask 23552  }
   0x3   :  { %47 = vst [vmem:[#allocation1 + $0x20] ss:$4 sm:$0xff] %v41_v1  ;;  %s1292_s24 = smov 92   ;;  %s1293_s25 = smov 91   ;;  %v1398_v16 = vsel %vm90_vm2, %v91_v14, 0  ;;  %vm298_vm4 = vcmask 1031168  }
   0x4   :  { %v1213_v29 = vld [vmem:[%s1620_s2 + $0x4] sm:$0xf]  ;;  %s1295_s28 = smov 90   ;;  %v60_v47 = vld [vmem:[%s1620_s2] sm:$0xf]  ;;  %vm426_vm5 = vcmask 900096  }
   0x5   :  { %vm554_vm6 = vcmask 891904   ;;  %vm682_vm7 = vcmask 883712   ;;  %vm810_vm8 = vcmask 752640   ;;  %vm938_vm9 = vcmask 744448  }
   0x6   :  { %vm1066_vm10 = vcmask 736256  }
   0x9   :  { %v1328_v2 = vld.sshfl [vmem:[#allocation1 + $0x10] sm:$0xff pattern:$0x73625140]  ;;  %v1330_v3 = vld.sshfl [vmem:[#allocation1] sm:$0xff pattern:$0x73625140] }
   0xa   :  { %68 = vrot.lane.b32.xlu1 %v1328_v2, %s1287_s19  ;;  %64 = vrot.lane.b32.xlu0 %v1330_v3, %s1287_s19  ;;  %v1334_v4 = vld.sshfl [vmem:[#allocation1 + $0x20] sm:$0xff pattern:$0x73625140]  ;;  %v1337_v5 = vld.sshfl [vmem:[#allocation1 + $0x18] sm:$0xff pattern:$0x73625140]  ;;  %v192_v20 = vand.u32 %v1398_v16, %v1330_v3  ;;  %v196_v31 = vand.u32 %v1398_v16, %v1328_v2 }
   0xb   :  { %72 = vrot.lane.b32.xlu2 %v1334_v4, %s1287_s19  ;;  %v1339_v6 = vld.sshfl [vmem:[#allocation1 + $0x8] sm:$0xff pattern:$0x73625140]  ;;  %v200_v32 = vand.u32 %v1398_v16, %v1334_v4  ;;  %v198_v37 = vand.u32 %v1398_v16, %v1337_v5 }
   0xc   :  { %v1341_v7 = vld.sshfl [vmem:[#allocation1 + $0x28] sm:$0xff pattern:$0x73625140]  ;;  %v194_v30 = vand.u32 %v1398_v16, %v1339_v6 }
   0xd   :  { %v202_v33 = vand.u32 %v1398_v16, %v1341_v7 }
  0x12   :  { %70 = vrot.lane.b32.xlu1 %v1337_v5, %s1287_s19  ;;  %66 = vrot.lane.b32.xlu0 %v1339_v6, %s1287_s19 }
  0x13   :  { %74 = vrot.lane.b32.xlu2 %v1341_v7, %s1287_s19 }
  0x1a   :  { %76 = vrot.lane.b32.xlu0 %v1349_v8, %s1287_s19  ;;  %284 = vrot.lane.b32.xlu1 %v1330_v3, %s1288_s21 }
  0x1b   :  { %286 = vrot.lane.b32.xlu2 %v1339_v6, %s1288_s21 }
  0x22   :  { %290 = vrot.lane.b32.xlu1 %v1337_v5, %s1288_s21  ;;  %288 = vrot.lane.b32.xlu0 %v1328_v2, %s1288_s21 }
  0x23   :  { %292 = vrot.lane.b32.xlu2 %v1334_v4, %s1288_s21 }
  0x2a   :  { %294 = vrot.lane.b32.xlu0 %v1341_v7, %s1288_s21  ;;  %296 = vrot.lane.b32.xlu1 %v1349_v8, %s1288_s21 }
  0x2b   :  { %412 = vrot.lane.b32.xlu2 %v1330_v3, %s1289_s22 }
  0x32   :  { %416 = vrot.lane.b32.xlu1 %v1328_v2, %s1289_s22  ;;  %414 = vrot.lane.b32.xlu0 %v1339_v6, %s1289_s22 }
  0x33   :  { %418 = vrot.lane.b32.xlu2 %v1337_v5, %s1289_s22 }
  0x3a   :  { %422 = vrot.lane.b32.xlu1 %v1341_v7, %s1289_s22  ;;  %420 = vrot.lane.b32.xlu0 %v1334_v4, %s1289_s22 }
  0x3b   :  { %424 = vrot.lane.b32.xlu2 %v1349_v8, %s1289_s22 }
  0x42   :  { %540 = vrot.lane.b32.xlu0 %v1330_v3, %s1290_s1  ;;  %542 = vrot.lane.b32.xlu1 %v1339_v6, %s1290_s1 }
  0x43   :  { %544 = vrot.lane.b32.xlu2 %v1328_v2, %s1290_s1 }
  0x4a   :  { %546 = vrot.lane.b32.xlu0 %v1337_v5, %s1290_s1  ;;  %548 = vrot.lane.b32.xlu1 %v1334_v4, %s1290_s1 }
  0x4b   :  { %550 = vrot.lane.b32.xlu2 %v1341_v7, %s1290_s1 }
  0x52   :  { %552 = vrot.lane.b32.xlu0 %v1349_v8, %s1290_s1  ;;  %668 = vrot.lane.b32.xlu1 %v1330_v3, %s1291_s23 }
  0x53   :  { %670 = vrot.lane.b32.xlu2 %v1339_v6, %s1291_s23 }
  0x5a   :  { %672 = vrot.lane.b32.xlu0 %v1328_v2, %s1291_s23  ;;  %674 = vrot.lane.b32.xlu1 %v1337_v5, %s1291_s23 }
  0x5b   :  { %676 = vrot.lane.b32.xlu2 %v1334_v4, %s1291_s23 }
  0x62   :  { %678 = vrot.lane.b32.xlu0 %v1341_v7, %s1291_s23  ;;  %680 = vrot.lane.b32.xlu1 %v1349_v8, %s1291_s23 }
  0x63   :  { %796 = vrot.lane.b32.xlu2 %v1330_v3, %s1292_s24 }
  0x65   :  { %v73_v9 = vpop.permute.xlu2 %72 }
  0x6a   :  { %800 = vrot.lane.b32.xlu1 %v1328_v2, %s1292_s24  ;;  %798 = vrot.lane.b32.xlu0 %v1339_v6, %s1292_s24 }
  0x6b   :  { %802 = vrot.lane.b32.xlu2 %v1337_v5, %s1292_s24 }
  0x6d   :  { %v75_v12 = vpop.permute.xlu2 %74 }
  0x6e   :  { %v83_v15 = vsel %vm78_vm1, %v73_v9, %v75_v12 }
  0x6f   :  { %v106_v19 = vand.u32 %v1398_v16, %v83_v15 }
  0x72   :  { %804 = vrot.lane.b32.xlu0 %v1334_v4, %s1292_s24  ;;  %806 = vrot.lane.b32.xlu1 %v1341_v7, %s1292_s24 }
  0x73   :  { %808 = vrot.lane.b32.xlu2 %v1349_v8, %s1292_s24 }
  0x75   :  { %v287_v38 = vpop.permute.xlu2 %286 }
  0x7a   :  { %924 = vrot.lane.b32.xlu0 %v1330_v3, %s1293_s25  ;;  %926 = vrot.lane.b32.xlu1 %v1339_v6, %s1293_s25 }
  0x7b   :  { %928 = vrot.lane.b32.xlu2 %v1328_v2, %s1293_s25 }
  0x7c   :  { %v69_v10 = vpop.permute.xlu1 %68  ;;  %v65_v11 = vpop.permute.xlu0 %64 }
  0x7d   :  { %v293_v42 = vpop.permute.xlu2 %292 }
  0x82   :  { %930 = vrot.lane.b32.xlu0 %v1337_v5, %s1293_s25  ;;  %932 = vrot.lane.b32.xlu1 %v1334_v4, %s1293_s25 }
  0x83   :  { %934 = vrot.lane.b32.xlu2 %v1341_v7, %s1293_s25 }
  0x84   :  { %v71_v17 = vpop.permute.xlu1 %70  ;;  %v67_v18 = vpop.permute.xlu0 %66 }
  0x85   :  { %v79_v21 = vsel %vm78_vm1, %v65_v11, %v67_v18  ;;  %v80_v22 = vsel %vm78_vm1, %v67_v18, %v69_v10  ;;  %v81_v23 = vsel %vm78_vm1, %v69_v10, %v71_v17  ;;  %v82_v24 = vsel %vm78_vm1, %v71_v17, %v73_v9  ;;  %v413_v54 = vpop.permute.xlu2 %412  ;;  %v1226_v9 = vld [vmem:[%s1620_s2 + $0x8] sm:$0xf] }
  0x86   :  { %v94_v25 = vand.u32 %v1398_v16, %v79_v21  ;;  %v97_v26 = vand.u32 %v1398_v16, %v80_v22  ;;  %v100_v27 = vand.u32 %v1398_v16, %v81_v23  ;;  %v103_v28 = vand.u32 %v1398_v16, %v82_v24  ;;  %v1233_v24 = vld [vmem:[%s1620_s2 + $0xc] sm:$0xf] }
  0x88   :  { %118 = vmatpush.bf16.msra.mxu0 %v94_v25  ;;  %131 = vmatpush.bf16.msra.mxu1 %v97_v26 }
  0x89   :  { %144 = vmatpush.bf16.msra.mxu2 %v100_v27  ;;  %157 = vmatpush.bf16.msra.mxu3 %v103_v28 }
  0x8a   :  { %1052 = vrot.lane.b32.xlu1 %v1330_v3, %s1295_s28  ;;  %936 = vrot.lane.b32.xlu0 %v1349_v8, %s1293_s25 }
  0x8b   :  { %1214 = vmatmul.msk.bf16.vlgmr.msra.gmra.mxu0 %vm85_vm3, %v1213_v29  ;;  %1215 = vmatmul.msk.bf16.vlgmr.msra.gmra.mxu1 %vm85_vm3, %v1213_v29 }
  0x8c   :  { %170 = vmatpush.bf16.msrb.mxu0 %v106_v19  ;;  %1216 = vmatmul.msk.bf16.vlgmr.msra.gmra.mxu2 %vm85_vm3, %v1213_v29  ;;  %v77_v34 = vpop.permute.xlu0 %76  ;;  %v285_v35 = vpop.permute.xlu1 %284 }
  0x8d   :  { %211 = vmatpush.bf16.msrb.mxu2 %v192_v20  ;;  %1217 = vmatmul.msk.bf16.vlgmr.msra.gmra.mxu3 %vm85_vm3, %v1213_v29  ;;  %v84_v36 = vsel %vm78_vm1, %v75_v12, %v77_v34  ;;  %v299_v43 = vsel %vm298_vm4, %v285_v35, %v287_v38  ;;  %v419_v1 = vpop.permute.xlu2 %418 }
  0x8e   :  { %224 = vmatpush.bf16.msrb.mxu3 %v194_v30  ;;  %v109_v39 = vand.u32 %v1398_v16, %v84_v36  ;;  %1054 = vrot.lane.b32.xlu2 %v1339_v6, %s1295_s28  ;;  %v309_v48 = vand.u32 %v299_v43, %v1398_v16 }
  0x90   :  { %237 = vmatpush.bf16.msra.mxu0 %v196_v31  ;;  %183 = vmatpush.bf16.msrb.mxu1 %v109_v39 }
  0x91   :  { %263 = vmatpush.bf16.msra.mxu2 %v200_v32 }
  0x92   :  { %276 = vmatpush.bf16.msra.mxu3 %v202_v33  ;;  %1058 = vrot.lane.b32.xlu1 %v1337_v5, %s1295_s28 }
  0x93   :  { %1056 = vrot.lane.b32.xlu0 %v1328_v2, %s1295_s28 }
  0x94   :  { %250 = vmatpush.bf16.msra.mxu1 %v198_v37  ;;  %v291_v40 = vpop.permute.xlu1 %290  ;;  %v289_v41 = vpop.permute.xlu0 %288 }
  0x95   :  { %v300_v44 = vsel %vm298_vm4, %v287_v38, %v289_v41  ;;  %v301_v45 = vsel %vm298_vm4, %v289_v41, %v291_v40  ;;  %v302_v46 = vsel %vm298_vm4, %v291_v40, %v293_v42 }
  0x96   :  { %1060 = vrot.lane.b32.xlu2 %v1334_v4, %s1295_s28  ;;  %v312_v49 = vand.u32 %v300_v44, %v1398_v16  ;;  %v315_v50 = vand.u32 %v301_v45, %v1398_v16  ;;  %v318_v51 = vand.u32 %v302_v46, %v1398_v16  ;;  %v425_v4 = vpop.permute.xlu2 %424 }
  0x9a   :  { %1064 = vrot.lane.b32.xlu1 %v1349_v8, %s1295_s28 }
  0x9b   :  { %1218 = vmatmul.msk.bf16.vlgmr.msrb.gmra.mxu0 %vm85_vm3, %v1213_v29  ;;  %1219 = vmatmul.msk.bf16.vlgmr.msrb.gmra.mxu1 %vm85_vm3, %v1213_v29 }
  0x9c   :  { %1220 = vmatmul.msk.bf16.vlgmr.msrb.gmra.mxu2 %vm85_vm3, %v60_v47  ;;  %v295_v52 = vpop.permute.xlu0 %294  ;;  %v297_v53 = vpop.permute.xlu1 %296  ;;  %333 = vmatpush.bf16.msrb.mxu0 %v309_v48 }
  0x9d   :  { %1221 = vmatmul.msk.bf16.vlgmr.msrb.gmra.mxu3 %vm85_vm3, %v60_v47  ;;  %346 = vmatpush.bf16.msrb.mxu1 %v312_v49  ;;  %v303_v57 = vsel %vm298_vm4, %v293_v42, %v295_v52  ;;  %v304_v58 = vsel %vm298_vm4, %v295_v52, %v297_v53 }
  0x9e   :  { %359 = vmatpush.bf16.msrb.mxu2 %v315_v50  ;;  %372 = vmatpush.bf16.msrb.mxu3 %v318_v51  ;;  %v321_v61 = vand.u32 %v303_v57, %v1398_v16  ;;  %v324_v62 = vand.u32 %v304_v58, %v1398_v16  ;;  %v545_v17 = vpop.permute.xlu2 %544  ;;  %v1240_v50 = vld [vmem:[%s1620_s2 + $0x10] sm:$0xf] }
  0x9f   :  { %1062 = vrot.lane.b32.xlu0 %v1341_v7, %s1295_s28 }
  0xa4   :  { %v417_v55 = vpop.permute.xlu1 %416  ;;  %v415_v56 = vpop.permute.xlu0 %414 }
  0xa5   :  { %v427_v59 = vsel %vm426_vm5, %v413_v54, %v415_v56  ;;  %v428_v60 = vsel %vm426_vm5, %v415_v56, %v417_v55  ;;  %v429_v5 = vsel %vm426_vm5, %v417_v55, %v419_v1 }
  0xa6   :  { %v437_v63 = vand.u32 %v427_v59, %v1398_v16  ;;  %v440_v0 = vand.u32 %v428_v60, %v1398_v16  ;;  %v443_v11 = vand.u32 %v429_v5, %v1398_v16  ;;  %v551_v29 = vpop.permute.xlu2 %550 }
  0xab   :  { %1222 = vmatmul.msk.bf16.vlgmr.msra.gmra.mxu0 %vm85_vm3, %v60_v47  ;;  %1223 = vmatmul.msk.bf16.vlgmr.msra.gmra.mxu1 %vm85_vm3, %v60_v47 }
  0xac   :  { %1224 = vmatmul.msk.bf16.vlgmr.msra.gmra.mxu2 %vm85_vm3, %v60_v47  ;;  %385 = vmatpush.bf16.msra.mxu0 %v321_v61  ;;  %v421_v2 = vpop.permute.xlu0 %420  ;;  %v423_v3 = vpop.permute.xlu1 %422 }
  0xad   :  { %1225 = vmatmul.msk.bf16.vlgmr.msra.gmra.mxu3 %vm85_vm3, %v60_v47  ;;  %398 = vmatpush.bf16.msra.mxu1 %v324_v62  ;;  %v430_v6 = vsel %vm426_vm5, %v419_v1, %v421_v2  ;;  %v431_v7 = vsel %vm426_vm5, %v421_v2, %v423_v3  ;;  %v432_v8 = vsel %vm426_vm5, %v423_v3, %v425_v4 }
  0xae   :  { %461 = vmatpush.bf16.msra.mxu2 %v437_v63  ;;  %474 = vmatpush.bf16.msra.mxu3 %v440_v0  ;;  %v446_v12 = vand.u32 %v430_v6, %v1398_v16  ;;  %v449_v13 = vand.u32 %v431_v7, %v1398_v16  ;;  %v452_v14 = vand.u32 %v432_v8, %v1398_v16  ;;  %v671_v32 = vpop.permute.xlu2 %670  ;;  %v1247_v0 = vld [vmem:[%s1620_s2 + $0x14] sm:$0xf] }
  0xb4   :  { %v541_v10 = vpop.permute.xlu0 %540  ;;  %v543_v15 = vpop.permute.xlu1 %542 }
  0xb5   :  { %v555_v20 = vsel %vm554_vm6, %v541_v10, %v543_v15  ;;  %v556_v21 = vsel %vm554_vm6, %v543_v15, %v545_v17 }
  0xb6   :  { %v565_v25 = vand.u32 %v555_v20, %v1398_v16  ;;  %v568_v26 = vand.u32 %v556_v21, %v1398_v16  ;;  %v677_v43 = vpop.permute.xlu2 %676 }
  0xbb   :  { %1227 = vmatmul.msk.bf16.vlgmr.msrb.gmra.mxu0 %vm85_vm3, %v1226_v9  ;;  %1228 = vmatmul.msk.bf16.vlgmr.msrb.gmra.mxu1 %vm85_vm3, %v1226_v9 }
  0xbc   :  { %1229 = vmatmul.msk.bf16.vlgmr.msrb.gmra.mxu2 %vm85_vm3, %v1226_v9  ;;  %487 = vmatpush.bf16.msrb.mxu0 %v443_v11  ;;  %v547_v18 = vpop.permute.xlu0 %546  ;;  %v549_v19 = vpop.permute.xlu1 %548 }
  0xbd   :  { %1230 = vmatmul.msk.bf16.vlgmr.msrb.gmra.mxu3 %vm85_vm3, %v1226_v9  ;;  %500 = vmatpush.bf16.msrb.mxu1 %v446_v12  ;;  %v557_v22 = vsel %vm554_vm6, %v545_v17, %v547_v18  ;;  %v558_v23 = vsel %vm554_vm6, %v547_v18, %v549_v19  ;;  %v559_v34 = vsel %vm554_vm6, %v549_v19, %v551_v29 }
  0xbe   :  { %513 = vmatpush.bf16.msrb.mxu2 %v449_v13  ;;  %526 = vmatpush.bf16.msrb.mxu3 %v452_v14  ;;  %v571_v27 = vand.u32 %v557_v22, %v1398_v16  ;;  %v574_v28 = vand.u32 %v558_v23, %v1398_v16  ;;  %v577_v38 = vand.u32 %v559_v34, %v1398_v16  ;;  %v797_v51 = vpop.permute.xlu2 %796 }
  0xc4   :  { %v553_v30 = vpop.permute.xlu0 %552  ;;  %v669_v31 = vpop.permute.xlu1 %668 }
  0xc5   :  { %v560_v35 = vsel %vm554_vm6, %v551_v29, %v553_v30  ;;  %v683_v36 = vsel %vm682_vm7, %v669_v31, %v671_v32 }
  0xc6   :  { %v580_v39 = vand.u32 %v560_v35, %v1398_v16  ;;  %v693_v40 = vand.u32 %v683_v36, %v1398_v16  ;;  %v803_v58 = vpop.permute.xlu2 %802 }
  0xcb   :  { %1231 = vmatmul.msk.bf16.vlgmr.msra.gmra.mxu0 %vm85_vm3, %v1226_v9  ;;  %1232 = vmatmul.msk.bf16.vlgmr.msra.gmra.mxu1 %vm85_vm3, %v1226_v9 }
  0xcc   :  { %1234 = vmatmul.msk.bf16.vlgmr.msra.gmra.mxu2 %vm85_vm3, %v1233_v24  ;;  %589 = vmatpush.bf16.msra.mxu0 %v565_v25  ;;  %v673_v33 = vpop.permute.xlu0 %672  ;;  %v675_v42 = vpop.permute.xlu1 %674 }
  0xcd   :  { %1235 = vmatmul.msk.bf16.vlgmr.msra.gmra.mxu3 %vm85_vm3, %v1233_v24  ;;  %602 = vmatpush.bf16.msra.mxu1 %v568_v26  ;;  %v684_v37 = vsel %vm682_vm7, %v671_v32, %v673_v33  ;;  %v685_v46 = vsel %vm682_vm7, %v673_v33, %v675_v42  ;;  %v686_v47 = vsel %vm682_vm7, %v675_v42, %v677_v43 }
  0xce   :  { %615 = vmatpush.bf16.msra.mxu2 %v571_v27  ;;  %628 = vmatpush.bf16.msra.mxu3 %v574_v28  ;;  %v696_v41 = vand.u32 %v684_v37, %v1398_v16  ;;  %v699_v52 = vand.u32 %v685_v46, %v1398_v16  ;;  %v702_v53 = vand.u32 %v686_v47, %v1398_v16  ;;  %v809_v6 = vpop.permute.xlu2 %808  ;;  %v1254_v37 = vld [vmem:[%s1620_s2 + $0x18] sm:$0xf] }
  0xd4   :  { %v679_v44 = vpop.permute.xlu0 %678  ;;  %v681_v45 = vpop.permute.xlu1 %680 }
  0xd5   :  { %v687_v48 = vsel %vm682_vm7, %v677_v43, %v679_v44  ;;  %v688_v49 = vsel %vm682_vm7, %v679_v44, %v681_v45 }
  0xd6   :  { %v705_v54 = vand.u32 %v687_v48, %v1398_v16  ;;  %v708_v55 = vand.u32 %v688_v49, %v1398_v16  ;;  %v929_v8 = vpop.permute.xlu2 %928 }
  0xdb   :  { %1236 = vmatmul.msk.bf16.vlgmr.msrb.gmra.mxu0 %vm85_vm3, %v1233_v24  ;;  %1237 = vmatmul.msk.bf16.vlgmr.msrb.gmra.mxu1 %vm85_vm3, %v1233_v24 }
  0xdc   :  { %1238 = vmatmul.msk.bf16.vlgmr.msrb.gmra.mxu2 %vm85_vm3, %v1233_v24  ;;  %641 = vmatpush.bf16.msrb.mxu0 %v577_v38  ;;  %v799_v56 = vpop.permute.xlu0 %798  ;;  %v801_v57 = vpop.permute.xlu1 %800 }
  0xdd   :  { %1239 = vmatmul.msk.bf16.vlgmr.msrb.gmra.mxu3 %vm85_vm3, %v1233_v24  ;;  %654 = vmatpush.bf16.msrb.mxu1 %v580_v39  ;;  %v811_v60 = vsel %vm810_vm8, %v797_v51, %v799_v56  ;;  %v812_v61 = vsel %vm810_vm8, %v799_v56, %v801_v57  ;;  %v813_v62 = vsel %vm810_vm8, %v801_v57, %v803_v58 }
  0xde   :  { %717 = vmatpush.bf16.msrb.mxu2 %v693_v40  ;;  %730 = vmatpush.bf16.msrb.mxu3 %v696_v41  ;;  %v821_v1 = vand.u32 %v811_v60, %v1398_v16  ;;  %v824_v2 = vand.u32 %v812_v61, %v1398_v16  ;;  %v827_v3 = vand.u32 %v813_v62, %v1398_v16  ;;  %v935_v27 = vpop.permute.xlu2 %934 }
  0xe4   :  { %v805_v59 = vpop.permute.xlu0 %804  ;;  %v807_v5 = vpop.permute.xlu1 %806 }
  0xe5   :  { %v814_v63 = vsel %vm810_vm8, %v803_v58, %v805_v59  ;;  %v815_v10 = vsel %vm810_vm8, %v805_v59, %v807_v5  ;;  %v816_v11 = vsel %vm810_vm8, %v807_v5, %v809_v6 }
  0xe6   :  { %v830_v4 = vand.u32 %v814_v63, %v1398_v16  ;;  %v833_v17 = vand.u32 %v815_v10, %v1398_v16  ;;  %v836_v18 = vand.u32 %v816_v11, %v1398_v16  ;;  %v1261_v63 = vld [vmem:[%s1620_s2 + $0x1c] sm:$0xf] }
  0xe8   :  { %v1055_v43 = vpop.permute.xlu2 %1054 }
  0xeb   :  { %1241 = vmatmul.msk.bf16.vlgmr.msra.gmra.mxu0 %vm85_vm3, %v1240_v50  ;;  %1242 = vmatmul.msk.bf16.vlgmr.msra.gmra.mxu1 %vm85_vm3, %v1240_v50 }
  0xec   :  { %1243 = vmatmul.msk.bf16.vlgmr.msra.gmra.mxu2 %vm85_vm3, %v1240_v50  ;;  %743 = vmatpush.bf16.msra.mxu0 %v699_v52  ;;  %v925_v7 = vpop.permute.xlu0 %924  ;;  %v927_v9 = vpop.permute.xlu1 %926 }
  0xed   :  { %1244 = vmatmul.msk.bf16.vlgmr.msra.gmra.mxu3 %vm85_vm3, %v1240_v50  ;;  %756 = vmatpush.bf16.msra.mxu1 %v702_v53  ;;  %v939_v12 = vsel %vm938_vm9, %v925_v7, %v927_v9  ;;  %v940_v13 = vsel %vm938_vm9, %v927_v9, %v929_v8 }
  0xee   :  { %769 = vmatpush.bf16.msra.mxu2 %v705_v54  ;;  %782 = vmatpush.bf16.msra.mxu3 %v708_v55  ;;  %v949_v19 = vand.u32 %v939_v12, %v1398_v16  ;;  %v952_v20 = vand.u32 %v940_v13, %v1398_v16 }
  0xf0   :  { %v1061_v52 = vpop.permute.xlu2 %1060 }
  0xf4   :  { %v931_v21 = vpop.permute.xlu0 %930  ;;  %v933_v22 = vpop.permute.xlu1 %932 }
  0xf5   :  { %v941_v29 = vsel %vm938_vm9, %v929_v8, %v931_v21  ;;  %v942_v30 = vsel %vm938_vm9, %v931_v21, %v933_v22  ;;  %v943_v33 = vsel %vm938_vm9, %v933_v22, %v935_v27 }
  0xf6   :  { %v955_v38 = vand.u32 %v941_v29, %v1398_v16  ;;  %v958_v39 = vand.u32 %v942_v30, %v1398_v16  ;;  %v961_v40 = vand.u32 %v943_v33, %v1398_v16 }
  0xfb   :  { %1245 = vmatmul.msk.bf16.vlgmr.msrb.gmra.mxu0 %vm85_vm3, %v1240_v50  ;;  %1246 = vmatmul.msk.bf16.vlgmr.msrb.gmra.mxu1 %vm85_vm3, %v1240_v50 }
  0xfc   :  { %1248 = vmatmul.msk.bf16.vlgmr.msrb.gmra.mxu2 %vm85_vm3, %v1247_v0  ;;  %845 = vmatpush.bf16.msrb.mxu0 %v821_v1  ;;  %v937_v28 = vpop.permute.xlu0 %936  ;;  %v1053_v41 = vpop.permute.xlu1 %1052 }
  0xfd   :  { %1249 = vmatmul.msk.bf16.vlgmr.msrb.gmra.mxu3 %vm85_vm3, %v1247_v0  ;;  %858 = vmatpush.bf16.msrb.mxu1 %v824_v2  ;;  %v944_v34 = vsel %vm938_vm9, %v935_v27, %v937_v28  ;;  %v1067_v53 = vsel %vm1066_vm10, %v1053_v41, %v1055_v43  ;;  %v1296_v41 = vmov 0  }
  0xfe   :  { %871 = vmatpush.bf16.msrb.mxu2 %v827_v3  ;;  %884 = vmatpush.bf16.msrb.mxu3 %v830_v4  ;;  %v964_v42 = vand.u32 %v944_v34, %v1398_v16 }
  0xff   :  { %1285 = vset.pattern.permute.xlu2 %v1296_v41  ;;  %1286 = vset.pattern.permute.xlu0 %v1296_v41 }
 0x104   :  { %v1059_v51 = vpop.permute.xlu1 %1058 }
 0x105   :  { %v1057_v50 = vpop.permute.xlu0 %1056  ;;  %v1070_v58 = vsel %vm1066_vm10, %v1059_v51, %v1061_v52 }
 0x106   :  { %v1068_v54 = vsel %vm1066_vm10, %v1055_v43, %v1057_v50  ;;  %v1069_v57 = vsel %vm1066_vm10, %v1057_v50, %v1059_v51  ;;  %v1086_v3 = vand.u32 %v1070_v58, %v1398_v16 }
 0x107   :  { %v1080_v1 = vand.u32 %v1068_v54, %v1398_v16  ;;  %v1083_v2 = vand.u32 %v1069_v57, %v1398_v16 }
 0x108   :  { %v120_v14 = vpop.f32.mrf.mxu0  ;;  %v133_v15 = vpop.f32.mrf.mxu1 }
 0x10b   :  { %1250 = vmatmul.msk.bf16.vlgmr.msra.gmra.mxu0 %vm85_vm3, %v1247_v0  ;;  %1251 = vmatmul.msk.bf16.vlgmr.msra.gmra.mxu1 %vm85_vm3, %v1247_v0 }
 0x10c   :  { %1252 = vmatmul.msk.bf16.vlgmr.msra.gmra.mxu2 %vm85_vm3, %v1247_v0  ;;  %897 = vmatpush.bf16.msra.mxu0 %v833_v17  ;;  %v1065_v11 = vpop.permute.xlu1 %1064 }
 0x10d   :  { %1253 = vmatmul.msk.bf16.vlgmr.msra.gmra.mxu3 %vm85_vm3, %v1247_v0  ;;  %910 = vmatpush.bf16.msra.mxu1 %v836_v18  ;;  %v1077_v0 = vand.u32 %v1067_v53, %v1398_v16 }
 0x10e   :  { %973 = vmatpush.bf16.msra.mxu2 %v949_v19  ;;  %986 = vmatpush.bf16.msra.mxu3 %v952_v20 }
 0x10f   :  { %v146_v23 = vpop.f32.mrf.mxu2 }
 0x110   :  { %v159_v24 = vpop.f32.mrf.mxu3  ;;  %v122_v25 = vpop.f32.mrf.mxu0 }
 0x111   :  { %v135_v26 = vpop.f32.mrf.mxu1  ;;  %v1063_v10 = vpop.permute.xlu0 %1062 }
 0x112   :  { %v1071_v12 = vsel %vm1066_vm10, %v1061_v52, %v1063_v10  ;;  %v1072_v13 = vsel %vm1066_vm10, %v1063_v10, %v1065_v11 }
 0x113   :  { %v1089_v21 = vand.u32 %v1071_v12, %v1398_v16  ;;  %v1092_v22 = vand.u32 %v1072_v13, %v1398_v16 }
 0x117   :  { %v148_v31 = vpop.f32.mrf.mxu2 }
 0x118   :  { %v161_v32 = vpop.f32.mrf.mxu3  ;;  %v172_v35 = vpop.f32.mrf.mxu0 }
 0x119   :  { %v185_v36 = vpop.f32.mrf.mxu1  ;;  %v1268_v32 = vld [vmem:[%s1620_s2 + $0x20] sm:$0xf] }
 0x11b   :  { %1255 = vmatmul.msk.bf16.vlgmr.msrb.gmra.mxu0 %vm85_vm3, %v1254_v37  ;;  %1256 = vmatmul.msk.bf16.vlgmr.msrb.gmra.mxu1 %vm85_vm3, %v1254_v37 }
 0x11c   :  { %1257 = vmatmul.msk.bf16.vlgmr.msrb.gmra.mxu2 %vm85_vm3, %v1254_v37  ;;  %999 = vmatpush.bf16.msrb.mxu0 %v955_v38 }
 0x11d   :  { %1258 = vmatmul.msk.bf16.vlgmr.msrb.gmra.mxu3 %vm85_vm3, %v1254_v37  ;;  %1012 = vmatpush.bf16.msrb.mxu1 %v958_v39 }
 0x11e   :  { %1025 = vmatpush.bf16.msrb.mxu2 %v961_v40  ;;  %1038 = vmatpush.bf16.msrb.mxu3 %v964_v42  ;;  %v1178_v42 = vld [vmem:[%s1621_s3] sm:$0xff] }
 0x11f   :  { %v213_v45 = vpop.f32.mrf.mxu2  ;;  %1181 = vperm.xlu2 %1285, %v1178_v42  }
 0x120   :  { %v226_v44 = vpop.f32.mrf.mxu3  ;;  %v214_v47 = vadd.f32 %v213_v45, %v120_v14  ;;  %v174_v48 = vpop.f32.mrf.mxu0 }
 0x121   :  { %v227_v46 = vadd.f32 %v226_v44, %v133_v15  ;;  %v187_v49 = vpop.f32.mrf.mxu1 }
 0x127   :  { %v215_v56 = vpop.f32.mrf.mxu2 }
 0x128   :  { %v228_v55 = vpop.f32.mrf.mxu3  ;;  %v239_v59 = vpop.f32.mrf.mxu0 }
 0x129   :  { %v252_v60 = vpop.f32.mrf.mxu1  ;;  %v240_v61 = vadd.f32 %v239_v59, %v146_v23 }
 0x12a   :  { %v253_v62 = vadd.f32 %v252_v60, %v159_v24 }
 0x12b   :  { %1259 = vmatmul.msk.bf16.vlgmr.msra.gmra.mxu0 %vm85_vm3, %v1254_v37  ;;  %1260 = vmatmul.msk.bf16.vlgmr.msra.gmra.mxu1 %vm85_vm3, %v1254_v37 }
 0x12c   :  { %1262 = vmatmul.msk.bf16.vlgmr.msra.gmra.mxu2 %vm85_vm3, %v1261_v63  ;;  %1101 = vmatpush.bf16.msra.mxu0 %v1077_v0 }
 0x12d   :  { %1263 = vmatmul.msk.bf16.vlgmr.msra.gmra.mxu3 %vm85_vm3, %v1261_v63  ;;  %1114 = vmatpush.bf16.msra.mxu1 %v1080_v1 }
 0x12e   :  { %1127 = vmatpush.bf16.msra.mxu2 %v1083_v2  ;;  %1140 = vmatpush.bf16.msra.mxu3 %v1086_v3 }
 0x12f   :  { %v265_v4 = vpop.f32.mrf.mxu2 }
 0x130   :  { %v278_v5 = vpop.f32.mrf.mxu3  ;;  %v266_v6 = vadd.f32 %v265_v4, %v172_v35  ;;  %v241_v8 = vpop.f32.mrf.mxu0 }
 0x131   :  { %v279_v7 = vadd.f32 %v278_v5, %v185_v36  ;;  %v254_v9 = vpop.f32.mrf.mxu1 }
 0x137   :  { %v267_v14 = vpop.f32.mrf.mxu2 }
 0x138   :  { %v280_v15 = vpop.f32.mrf.mxu3  ;;  %v335_v17 = vpop.f32.mrf.mxu0 }
 0x139   :  { %v348_v18 = vpop.f32.mrf.mxu1  ;;  %v404_v19 = vadd.f32 %v335_v17, %v214_v47 }
 0x13a   :  { %v405_v20 = vadd.f32 %v348_v18, %v227_v46 }
 0x13b   :  { %1264 = vmatmul.msk.bf16.vlgmr.msrb.gmra.mxu0 %vm85_vm3, %v1261_v63  ;;  %1265 = vmatmul.msk.bf16.vlgmr.msrb.gmra.mxu1 %vm85_vm3, %v1261_v63 }
 0x13c   :  { %1266 = vmatmul.msk.bf16.vlgmr.msrb.gmra.mxu2 %vm85_vm3, %v1261_v63  ;;  %1153 = vmatpush.bf16.msrb.mxu0 %v1089_v21 }
 0x13d   :  { %1267 = vmatmul.msk.bf16.vlgmr.msrb.gmra.mxu3 %vm85_vm3, %v1261_v63  ;;  %1166 = vmatpush.bf16.msrb.mxu1 %v1092_v22 }
 0x13f   :  { %v361_v23 = vpop.f32.mrf.mxu2 }
 0x140   :  { %v374_v24 = vpop.f32.mrf.mxu3  ;;  %v406_v25 = vadd.f32 %v361_v23, %v240_v61  ;;  %v337_v27 = vpop.f32.mrf.mxu0 }
 0x141   :  { %v407_v26 = vadd.f32 %v374_v24, %v253_v62  ;;  %v350_v28 = vpop.f32.mrf.mxu1 }
 0x147   :  { %v363_v30 = vpop.f32.mrf.mxu2 }
 0x148   :  { %v376_v29 = vpop.f32.mrf.mxu3  ;;  %v387_v31 = vpop.f32.mrf.mxu0 }
 0x149   :  { %v400_v16 = vpop.f32.mrf.mxu1  ;;  %v408_v33 = vadd.f32 %v387_v31, %v266_v6 }
 0x14a   :  { %v409_v34 = vadd.f32 %v400_v16, %v279_v7 }
 0x14b   :  { %1269 = vmatmul.msk.bf16.vlgmr.msra.gmra.mxu0 %vm85_vm3, %v1268_v32  ;;  %1270 = vmatmul.msk.bf16.vlgmr.msra.gmra.mxu1 %vm85_vm3, %v1268_v32 }
 0x14c   :  { %1271 = vmatmul.msk.bf16.vlgmr.msra.gmra.mxu2 %vm85_vm3, %v1268_v32 }
 0x14d   :  { %1272 = vmatmul.msk.bf16.vlgmr.msra.gmra.mxu3 %vm85_vm3, %v1268_v32 }
 0x14f   :  { %v463_v35 = vpop.f32.mrf.mxu2 }
 0x150   :  { %v476_v36 = vpop.f32.mrf.mxu3  ;;  %v532_v37 = vadd.f32 %v463_v35, %v404_v19  ;;  %v389_v39 = vpop.f32.mrf.mxu0 }
 0x151   :  { %v533_v38 = vadd.f32 %v476_v36, %v405_v20  ;;  %v402_v40 = vpop.f32.mrf.mxu1 }
 0x157   :  { %v465_v43 = vpop.f32.mrf.mxu2 }
 0x158   :  { %v478_v44 = vpop.f32.mrf.mxu3  ;;  %v489_v45 = vpop.f32.mrf.mxu0 }
 0x159   :  { %v502_v46 = vpop.f32.mrf.mxu1  ;;  %v534_v47 = vadd.f32 %v489_v45, %v406_v25 }
 0x15a   :  { %v535_v48 = vadd.f32 %v502_v46, %v407_v26 }
 0x15b   :  { %1273 = vmatmul.msk.bf16.vlgmr.msrb.gmra.mxu0 %vm85_vm3, %v1268_v32  ;;  %1274 = vmatmul.msk.bf16.vlgmr.msrb.gmra.mxu1 %vm85_vm3, %v1268_v32 }
 0x15f   :  { %v515_v49 = vpop.f32.mrf.mxu2 }
 0x160   :  { %v528_v50 = vpop.f32.mrf.mxu3  ;;  %v536_v51 = vadd.f32 %v515_v49, %v408_v33  ;;  %v491_v53 = vpop.f32.mrf.mxu0 }
 0x161   :  { %v537_v52 = vadd.f32 %v528_v50, %v409_v34  ;;  %v504_v54 = vpop.f32.mrf.mxu1 }
 0x167   :  { %v517_v55 = vpop.f32.mrf.mxu2 }
 0x168   :  { %v530_v56 = vpop.f32.mrf.mxu3  ;;  %v591_v57 = vpop.f32.mrf.mxu0 }
 0x169   :  { %v604_v58 = vpop.f32.mrf.mxu1  ;;  %v660_v59 = vadd.f32 %v591_v57, %v532_v37 }
 0x16a   :  { %v661_v60 = vadd.f32 %v604_v58, %v533_v38 }
 0x16f   :  { %v617_v61 = vpop.f32.mrf.mxu2 }
 0x170   :  { %v630_v62 = vpop.f32.mrf.mxu3  ;;  %v662_v63 = vadd.f32 %v617_v61, %v534_v47  ;;  %v593_v1 = vpop.f32.mrf.mxu0 }
 0x171   :  { %v663_v0 = vadd.f32 %v630_v62, %v535_v48  ;;  %v606_v2 = vpop.f32.mrf.mxu1 }
 0x177   :  { %v619_v3 = vpop.f32.mrf.mxu2 }
 0x178   :  { %v632_v4 = vpop.f32.mrf.mxu3  ;;  %v643_v5 = vpop.f32.mrf.mxu0 }
 0x179   :  { %v656_v6 = vpop.f32.mrf.mxu1  ;;  %v664_v7 = vadd.f32 %v643_v5, %v536_v51  ;;  %v1182_v53 = vpop.permute.xlu2 %1181 }
 0x17a   :  { %v665_v8 = vadd.f32 %v656_v6, %v537_v52 }
 0x17f   :  { %v719_v9 = vpop.f32.mrf.mxu2 }
 0x180   :  { %v732_v10 = vpop.f32.mrf.mxu3  ;;  %v788_v11 = vadd.f32 %v719_v9, %v660_v59  ;;  %v645_v13 = vpop.f32.mrf.mxu0 }
 0x181   :  { %v789_v12 = vadd.f32 %v732_v10, %v661_v60  ;;  %v658_v14 = vpop.f32.mrf.mxu1 }
 0x187   :  { %v721_v15 = vpop.f32.mrf.mxu2 }
 0x188   :  { %v734_v17 = vpop.f32.mrf.mxu3  ;;  %v745_v18 = vpop.f32.mrf.mxu0 }
 0x189   :  { %v758_v19 = vpop.f32.mrf.mxu1  ;;  %v790_v20 = vadd.f32 %v745_v18, %v662_v63 }
 0x18a   :  { %v791_v21 = vadd.f32 %v758_v19, %v663_v0 }
 0x18f   :  { %v771_v22 = vpop.f32.mrf.mxu2 }
 0x190   :  { %v784_v23 = vpop.f32.mrf.mxu3  ;;  %v792_v24 = vadd.f32 %v771_v22, %v664_v7  ;;  %v747_v26 = vpop.f32.mrf.mxu0 }
 0x191   :  { %v793_v25 = vadd.f32 %v784_v23, %v665_v8  ;;  %v760_v27 = vpop.f32.mrf.mxu1 }
 0x197   :  { %v773_v28 = vpop.f32.mrf.mxu2 }
 0x198   :  { %v786_v29 = vpop.f32.mrf.mxu3  ;;  %v847_v30 = vpop.f32.mrf.mxu0 }
 0x199   :  { %v860_v31 = vpop.f32.mrf.mxu1  ;;  %v916_v51 = vadd.f32 %v847_v30, %v788_v11 }
 0x19a   :  { %v917_v52 = vadd.f32 %v860_v31, %v789_v12 }
 0x19f   :  { %v873_v16 = vpop.f32.mrf.mxu2 }
 0x1a0   :  { %v886_v32 = vpop.f32.mrf.mxu3  ;;  %v849_v33 = vpop.f32.mrf.mxu0  ;;  %v918_v0 = vadd.f32 %v873_v16, %v790_v20 }
 0x1a1   :  { %v862_v34 = vpop.f32.mrf.mxu1  ;;  %v919_v1 = vadd.f32 %v886_v32, %v791_v21 }
 0x1a7   :  { %v875_v35 = vpop.f32.mrf.mxu2 }
 0x1a8   :  { %v888_v36 = vpop.f32.mrf.mxu3  ;;  %v899_v37 = vpop.f32.mrf.mxu0 }
 0x1a9   :  { %v912_v38 = vpop.f32.mrf.mxu1  ;;  %v920_v18 = vadd.f32 %v899_v37, %v792_v24 }
 0x1aa   :  { %v921_v19 = vadd.f32 %v912_v38, %v793_v25 }
 0x1af   :  { %v975_v39 = vpop.f32.mrf.mxu2 }
 0x1b0   :  { %v988_v40 = vpop.f32.mrf.mxu3  ;;  %v901_v41 = vpop.f32.mrf.mxu0  ;;  %v1044_v54 = vadd.f32 %v975_v39, %v916_v51 }
 0x1b1   :  { %v914_v42 = vpop.f32.mrf.mxu1  ;;  %v1045_v55 = vadd.f32 %v988_v40, %v917_v52 }
 0x1b7   :  { %v977_v43 = vpop.f32.mrf.mxu2 }
 0x1b8   :  { %v990_v44 = vpop.f32.mrf.mxu3  ;;  %v1001_v45 = vpop.f32.mrf.mxu0 }
 0x1b9   :  { %v1014_v46 = vpop.f32.mrf.mxu1  ;;  %v1046_v4 = vadd.f32 %v1001_v45, %v918_v0 }
 0x1ba   :  { %v1047_v5 = vadd.f32 %v1014_v46, %v919_v1 }
 0x1bf   :  { %v1027_v47 = vpop.f32.mrf.mxu2 }
 0x1c0   :  { %v1040_v48 = vpop.f32.mrf.mxu3  ;;  %v1003_v49 = vpop.f32.mrf.mxu0  ;;  %v1048_v21 = vadd.f32 %v1027_v47, %v920_v18 }
 0x1c1   :  { %v1016_v50 = vpop.f32.mrf.mxu1  ;;  %v1049_v22 = vadd.f32 %v1040_v48, %v921_v19 }
 0x1c7   :  { %v1029_v56 = vpop.f32.mrf.mxu2 }
 0x1c8   :  { %v1042_v57 = vpop.f32.mrf.mxu3  ;;  %v1103_v58 = vpop.f32.mrf.mxu0 }
 0x1c9   :  { %v1116_v59 = vpop.f32.mrf.mxu1  ;;  %v1172_v60 = vadd.f32 %v1103_v58, %v1044_v54 }
 0x1ca   :  { %v1173_v61 = vadd.f32 %v1116_v59, %v1045_v55 }
 0x1cb   :  { %v1184_v62 = vadd.f32 %v1182_v53, %v1172_v60 }
 0x1cc   :  { %v1185_v63 = vadd.f32 %v1182_v53, %v1173_v61 }
 0x1cd   :  { %v1190_v2 = vmax.f32 %v1184_v62, 0.0 }
 0x1ce   :  { %v1191_v3 = vmax.f32 %v1185_v63, 0.0 }
 0x1cf   :  { %v1129_v7 = vpop.f32.mrf.mxu2 }
 0x1d0   :  { %v1196_v6 = vpack.c.bf16 %v1191_v3, %v1190_v2  ;;  %v1142_v8 = vpop.f32.mrf.mxu3  ;;  %v1174_v9 = vadd.f32 %v1129_v7, %v1046_v4  ;;  %v1105_v11 = vpop.f32.mrf.mxu0 }
 0x1d1   :  { %v1175_v10 = vadd.f32 %v1142_v8, %v1047_v5  ;;  %v1118_v12 = vpop.f32.mrf.mxu1 }
 0x1d2   :  { %1199 = vst [vmem:[%s1622_s4] sm:$0xff] %v1196_v6  ;;  %v1186_v13 = vadd.f32 %v1182_v53, %v1174_v9 }
 0x1d3   :  { %v1187_v14 = vadd.f32 %v1182_v53, %v1175_v10 }
 0x1d4   :  { %v1192_v15 = vmax.f32 %v1186_v13, 0.0 }
 0x1d5   :  { %v1193_v17 = vmax.f32 %v1187_v14, 0.0 }
 0x1d7   :  { %v1197_v20 = vpack.c.bf16 %v1193_v17, %v1192_v15  ;;  %v1131_v23 = vpop.f32.mrf.mxu2 }
 0x1d8   :  { %v1144_v26 = vpop.f32.mrf.mxu3  ;;  %v1155_v27 = vpop.f32.mrf.mxu0 }
 0x1d9   :  { %1200 = vst [vmem:[%s1622_s4 + $0x8] sm:$0xff] %v1197_v20  ;;  %v1168_v28 = vpop.f32.mrf.mxu1  ;;  %v1176_v29 = vadd.f32 %v1155_v27, %v1048_v21 }
 0x1da   :  { %v1177_v30 = vadd.f32 %v1168_v28, %v1049_v22 }
 0x1db   :  { %v1188_v31 = vadd.f32 %v1182_v53, %v1176_v29 }
 0x1dc   :  { %v1189_v16 = vadd.f32 %v1182_v53, %v1177_v30 }
 0x1dd   :  { %v1194_v32 = vmax.f32 %v1188_v31, 0.0 }
 0x1de   :  { %v1195_v33 = vmax.f32 %v1189_v16, 0.0 }
 0x1e0   :  { %v1198_v34 = vpack.c.bf16 %v1195_v33, %v1194_v32  ;;  %v1157_v24 = vpop.f32.mrf.mxu0 }
 0x1e1   :  { %v1170_v25 = vpop.f32.mrf.mxu1 }
 0x1e2   :  { %1201 = vst [vmem:[%s1622_s4 + $0x10] sm:$0xff] %v1198_v34 }

// kernel: _lambda_.16
= control target key start
LH: loop header
LB: loop body
LE: loop exit
PB: predicated region body
PF: predicated region fallthrough
CT: control target
= control target key end

     0   :  { %s1288_s21 = smov 127   ;;  %s1289_s23 = smov 126   ;;  %vm77_vm0 = vcmask 1039360   ;;  %vm88_vm1 = vcmask 1043456   ;;  %vm84_vm2 = vcmask 64512   ;;  %vm300_vm3 = vcmask 1031168   ;;  %s1619_s0 = inlined_call_operand.vmem [shape: bf16[8,896], index: 0, kind: input, shape index: {}, may-alias: {0,1}]   ;;  %s1620_s1 = inlined_call_operand.vmem [shape: bf16[8,896], index: 1, kind: input, shape index: {}, may-alias: {0,1}]   ;;  %s1621_s2 = inlined_call_operand.vmem [shape: bf16[9,8,8], index: 2, kind: input, shape index: {}]   ;;  %s1622_s3 = inlined_call_operand.vmem [shape: f32[8,1], index: 3, kind: input, shape index: {}]   ;;  %s1623_s4 = inlined_call_operand.vmem [shape: bf16[8,768], index: 4, kind: output, shape index: {}]  }
   0x1   :  { %v41_v0 = vld [vmem:[%s1619_s0 + $0x8] sm:$0xff]  ;;  %v40_v1 = vld [vmem:[%s1619_s0] sm:$0xff]  ;;  %v42_v4 = vld [vmem:[%s1619_s0 + $0x10] sm:$0xff]  ;;  %s1290_s24 = smov 110   ;;  %s1292_s25 = smov 108   ;;  %vm428_vm4 = vcmask 900096  }
   0x2   :  { %v49_v2 = vunpack.c.l.b16 %v41_v0  ;;  %v47_v3 = vunpack.c.l.b16 %v40_v1  ;;  %v51_v5 = vunpack.c.l.b16 %v42_v4  ;;  %v50_v9 = vunpack.c.h.b16 %v41_v0  ;;  %v1352_v15 = vld [vmem:[%s1620_s1 + $0x18] sm:$0xf]  ;;  %s1291_s1 = smov 109   ;;  %s1293_s26 = smov 92   ;;  %v1215_v33 = vld [vmem:[%s1621_s2 + $0x4] sm:$0xf] }
   0x3   :  { %v48_v10 = vunpack.c.h.b16 %v40_v1  ;;  %v52_v11 = vunpack.c.h.b16 %v42_v4  ;;  %s1294_s27 = smov 91   ;;  %s1295_s30 = smov 90   ;;  %v59_v51 = vld [vmem:[%s1621_s2] sm:$0xf]  ;;  %vm556_vm5 = vcmask 891904   ;;  %vm684_vm6 = vcmask 883712  }
   0x4   :  { %v1331_v6 = vpack.c.b16 %v49_v2, %v49_v2  ;;  %v1333_v7 = vpack.c.b16 %v47_v3, %v47_v3  ;;  %v1335_v8 = vpack.c.b16 %v51_v5, %v51_v5  ;;  %v1340_v12 = vpack.c.b16 %v50_v9, %v50_v9 }
   0x5   :  { %v1342_v13 = vpack.c.b16 %v48_v10, %v48_v10  ;;  %v1344_v14 = vpack.c.b16 %v52_v11, %v52_v11  ;;  %v1228_v11 = vld [vmem:[%s1621_s2 + $0x8] sm:$0xf]  ;;  %vm812_vm7 = vcmask 752640   ;;  %vm940_vm8 = vcmask 744448  }
   0x6   :  { %67 = vrot.lane.b32.xlu1 %v1331_v6, %s1288_s21  ;;  %63 = vrot.lane.b32.xlu0 %v1333_v7, %s1288_s21  ;;  %v189_v24 = vsel %vm88_vm1, %v1333_v7, 0  ;;  %v195_v35 = vsel %vm88_vm1, %v1331_v6, 0  ;;  %v201_v36 = vsel %vm88_vm1, %v1335_v8, 0  ;;  %v198_v42 = vsel %vm88_vm1, %v1340_v12, 0 }
   0x7   :  { %71 = vrot.lane.b32.xlu2 %v1335_v8, %s1288_s21  ;;  %v192_v34 = vsel %vm88_vm1, %v1342_v13, 0  ;;  %v204_v37 = vsel %vm88_vm1, %v1344_v14, 0  ;;  %vm1068_vm9 = vcmask 736256  }
   0xe   :  { %69 = vrot.lane.b32.xlu1 %v1340_v12, %s1288_s21  ;;  %65 = vrot.lane.b32.xlu0 %v1342_v13, %s1288_s21 }
   0xf   :  { %73 = vrot.lane.b32.xlu2 %v1344_v14, %s1288_s21 }
  0x16   :  { %75 = vrot.lane.b32.xlu0 %v1352_v15, %s1288_s21  ;;  %286 = vrot.lane.b32.xlu1 %v1333_v7, %s1289_s23 }
  0x17   :  { %288 = vrot.lane.b32.xlu2 %v1342_v13, %s1289_s23 }
  0x1e   :  { %292 = vrot.lane.b32.xlu1 %v1340_v12, %s1289_s23  ;;  %290 = vrot.lane.b32.xlu0 %v1331_v6, %s1289_s23 }
  0x1f   :  { %294 = vrot.lane.b32.xlu2 %v1335_v8, %s1289_s23 }
  0x26   :  { %296 = vrot.lane.b32.xlu0 %v1344_v14, %s1289_s23  ;;  %298 = vrot.lane.b32.xlu1 %v1352_v15, %s1289_s23 }
  0x27   :  { %414 = vrot.lane.b32.xlu2 %v1333_v7, %s1290_s24 }
  0x2e   :  { %418 = vrot.lane.b32.xlu1 %v1331_v6, %s1290_s24  ;;  %416 = vrot.lane.b32.xlu0 %v1342_v13, %s1290_s24 }
  0x2f   :  { %420 = vrot.lane.b32.xlu2 %v1340_v12, %s1290_s24 }
  0x36   :  { %424 = vrot.lane.b32.xlu1 %v1344_v14, %s1290_s24  ;;  %422 = vrot.lane.b32.xlu0 %v1335_v8, %s1290_s24 }
  0x37   :  { %426 = vrot.lane.b32.xlu2 %v1352_v15, %s1290_s24 }
  0x3e   :  { %542 = vrot.lane.b32.xlu0 %v1333_v7, %s1291_s1  ;;  %544 = vrot.lane.b32.xlu1 %v1342_v13, %s1291_s1 }
  0x3f   :  { %546 = vrot.lane.b32.xlu2 %v1331_v6, %s1291_s1 }
  0x46   :  { %548 = vrot.lane.b32.xlu0 %v1340_v12, %s1291_s1  ;;  %550 = vrot.lane.b32.xlu1 %v1335_v8, %s1291_s1 }
  0x47   :  { %552 = vrot.lane.b32.xlu2 %v1344_v14, %s1291_s1 }
  0x4e   :  { %554 = vrot.lane.b32.xlu0 %v1352_v15, %s1291_s1  ;;  %670 = vrot.lane.b32.xlu1 %v1333_v7, %s1292_s25 }
  0x4f   :  { %672 = vrot.lane.b32.xlu2 %v1342_v13, %s1292_s25 }
  0x56   :  { %674 = vrot.lane.b32.xlu0 %v1331_v6, %s1292_s25  ;;  %676 = vrot.lane.b32.xlu1 %v1340_v12, %s1292_s25 }
  0x57   :  { %678 = vrot.lane.b32.xlu2 %v1335_v8, %s1292_s25 }
  0x5e   :  { %680 = vrot.lane.b32.xlu0 %v1344_v14, %s1292_s25  ;;  %682 = vrot.lane.b32.xlu1 %v1352_v15, %s1292_s25 }
  0x5f   :  { %798 = vrot.lane.b32.xlu2 %v1333_v7, %s1293_s26 }
  0x61   :  { %v72_v16 = vpop.permute.xlu2 %71 }
  0x66   :  { %802 = vrot.lane.b32.xlu1 %v1331_v6, %s1293_s26  ;;  %800 = vrot.lane.b32.xlu0 %v1342_v13, %s1293_s26 }
  0x67   :  { %804 = vrot.lane.b32.xlu2 %v1340_v12, %s1293_s26 }
  0x69   :  { %v74_v19 = vpop.permute.xlu2 %73 }
  0x6a   :  { %v82_v20 = vsel %vm77_vm0, %v72_v16, %v74_v19 }
  0x6b   :  { %v102_v23 = vsel %vm88_vm1, %v82_v20, 0 }
  0x6e   :  { %806 = vrot.lane.b32.xlu0 %v1335_v8, %s1293_s26  ;;  %808 = vrot.lane.b32.xlu1 %v1344_v14, %s1293_s26 }
  0x6f   :  { %810 = vrot.lane.b32.xlu2 %v1352_v15, %s1293_s26 }
  0x71   :  { %v289_v38 = vpop.permute.xlu2 %288 }
  0x76   :  { %926 = vrot.lane.b32.xlu0 %v1333_v7, %s1294_s27  ;;  %928 = vrot.lane.b32.xlu1 %v1342_v13, %s1294_s27 }
  0x77   :  { %930 = vrot.lane.b32.xlu2 %v1331_v6, %s1294_s27 }
  0x78   :  { %v68_v17 = vpop.permute.xlu1 %67  ;;  %v64_v18 = vpop.permute.xlu0 %63 }
  0x79   :  { %v295_v44 = vpop.permute.xlu2 %294 }
  0x7e   :  { %932 = vrot.lane.b32.xlu0 %v1340_v12, %s1294_s27  ;;  %934 = vrot.lane.b32.xlu1 %v1335_v8, %s1294_s27 }
  0x7f   :  { %936 = vrot.lane.b32.xlu2 %v1344_v14, %s1294_s27 }
  0x80   :  { %v70_v21 = vpop.permute.xlu1 %69  ;;  %v66_v22 = vpop.permute.xlu0 %65 }
  0x81   :  { %v78_v25 = vsel %vm77_vm0, %v64_v18, %v66_v22  ;;  %v79_v26 = vsel %vm77_vm0, %v66_v22, %v68_v17  ;;  %v80_v27 = vsel %vm77_vm0, %v68_v17, %v70_v21  ;;  %v81_v28 = vsel %vm77_vm0, %v70_v21, %v72_v16  ;;  %v415_v58 = vpop.permute.xlu2 %414 }
  0x82   :  { %v90_v29 = vsel %vm88_vm1, %v78_v25, 0  ;;  %v93_v30 = vsel %vm88_vm1, %v79_v26, 0  ;;  %v96_v31 = vsel %vm88_vm1, %v80_v27, 0  ;;  %v99_v32 = vsel %vm88_vm1, %v81_v28, 0  ;;  %v1235_v27 = vld [vmem:[%s1621_s2 + $0xc] sm:$0xf] }
  0x83   :  { %114 = vmatpush.bf16.msra.mxu0 %v90_v29  ;;  %127 = vmatpush.bf16.msra.mxu1 %v93_v30 }
  0x84   :  { %140 = vmatpush.bf16.msra.mxu2 %v96_v31  ;;  %153 = vmatpush.bf16.msra.mxu3 %v99_v32 }
  0x86   :  { %1216 = vmatmul.msk.bf16.vlgmr.msra.gmra.mxu0 %vm84_vm2, %v1215_v33  ;;  %1217 = vmatmul.msk.bf16.vlgmr.msra.gmra.mxu1 %vm84_vm2, %v1215_v33 }
  0x87   :  { %166 = vmatpush.bf16.msrb.mxu0 %v102_v23  ;;  %1218 = vmatmul.msk.bf16.vlgmr.msra.gmra.mxu2 %vm84_vm2, %v1215_v33 }
  0x88   :  { %213 = vmatpush.bf16.msrb.mxu2 %v189_v24  ;;  %1219 = vmatmul.msk.bf16.vlgmr.msra.gmra.mxu3 %vm84_vm2, %v1215_v33  ;;  %v76_v39 = vpop.permute.xlu0 %75  ;;  %v287_v40 = vpop.permute.xlu1 %286 }
  0x89   :  { %226 = vmatpush.bf16.msrb.mxu3 %v192_v34  ;;  %v83_v41 = vsel %vm77_vm0, %v74_v19, %v76_v39  ;;  %1054 = vrot.lane.b32.xlu1 %v1333_v7, %s1295_s30  ;;  %v301_v47 = vsel %vm300_vm3, %v287_v40, %v289_v38  ;;  %v421_v5 = vpop.permute.xlu2 %420 }
  0x8a   :  { %v105_v43 = vsel %vm88_vm1, %v83_v41, 0  ;;  %938 = vrot.lane.b32.xlu0 %v1352_v15, %s1294_s27  ;;  %1056 = vrot.lane.b32.xlu2 %v1342_v13, %s1295_s30  ;;  %v311_v52 = vsel %vm88_vm1, %v301_v47, 0 }
  0x8b   :  { %239 = vmatpush.bf16.msra.mxu0 %v195_v35  ;;  %179 = vmatpush.bf16.msrb.mxu1 %v105_v43 }
  0x8c   :  { %265 = vmatpush.bf16.msra.mxu2 %v201_v36 }
  0x8d   :  { %278 = vmatpush.bf16.msra.mxu3 %v204_v37 }
  0x8f   :  { %252 = vmatpush.bf16.msra.mxu1 %v198_v42 }
  0x90   :  { %v293_v45 = vpop.permute.xlu1 %292  ;;  %v291_v46 = vpop.permute.xlu0 %290 }
  0x91   :  { %v302_v48 = vsel %vm300_vm3, %v289_v38, %v291_v46  ;;  %1060 = vrot.lane.b32.xlu1 %v1340_v12, %s1295_s30  ;;  %v303_v49 = vsel %vm300_vm3, %v291_v46, %v293_v45  ;;  %v304_v50 = vsel %vm300_vm3, %v293_v45, %v295_v44 }
  0x92   :  { %1058 = vrot.lane.b32.xlu0 %v1331_v6, %s1295_s30  ;;  %1062 = vrot.lane.b32.xlu2 %v1335_v8, %s1295_s30  ;;  %v314_v53 = vsel %vm88_vm1, %v302_v48, 0  ;;  %v317_v54 = vsel %vm88_vm1, %v303_v49, 0  ;;  %v320_v55 = vsel %vm88_vm1, %v304_v50, 0  ;;  %v427_v8 = vpop.permute.xlu2 %426 }
  0x96   :  { %1220 = vmatmul.msk.bf16.vlgmr.msrb.gmra.mxu0 %vm84_vm2, %v1215_v33  ;;  %1221 = vmatmul.msk.bf16.vlgmr.msrb.gmra.mxu1 %vm84_vm2, %v1215_v33 }
  0x97   :  { %1222 = vmatmul.msk.bf16.vlgmr.msrb.gmra.mxu2 %vm84_vm2, %v59_v51  ;;  %335 = vmatpush.bf16.msrb.mxu0 %v311_v52 }
  0x98   :  { %1223 = vmatmul.msk.bf16.vlgmr.msrb.gmra.mxu3 %vm84_vm2, %v59_v51  ;;  %348 = vmatpush.bf16.msrb.mxu1 %v314_v53  ;;  %v297_v56 = vpop.permute.xlu0 %296  ;;  %v299_v57 = vpop.permute.xlu1 %298 }
  0x99   :  { %361 = vmatpush.bf16.msrb.mxu2 %v317_v54  ;;  %374 = vmatpush.bf16.msrb.mxu3 %v320_v55  ;;  %v305_v61 = vsel %vm300_vm3, %v295_v44, %v297_v56  ;;  %v306_v62 = vsel %vm300_vm3, %v297_v56, %v299_v57 }
  0x9a   :  { %1064 = vrot.lane.b32.xlu0 %v1344_v14, %s1295_s30  ;;  %1066 = vrot.lane.b32.xlu1 %v1352_v15, %s1295_s30  ;;  %v323_v1 = vsel %vm88_vm1, %v305_v61, 0  ;;  %v326_v2 = vsel %vm88_vm1, %v306_v62, 0  ;;  %v547_v20 = vpop.permute.xlu2 %546 }
  0xa0   :  { %v419_v59 = vpop.permute.xlu1 %418  ;;  %v417_v60 = vpop.permute.xlu0 %416 }
  0xa1   :  { %v429_v63 = vsel %vm428_vm4, %v415_v58, %v417_v60  ;;  %v430_v0 = vsel %vm428_vm4, %v417_v60, %v419_v59  ;;  %v431_v9 = vsel %vm428_vm4, %v419_v59, %v421_v5 }
  0xa2   :  { %v439_v3 = vsel %vm88_vm1, %v429_v63, 0  ;;  %v442_v4 = vsel %vm88_vm1, %v430_v0, 0  ;;  %v445_v15 = vsel %vm88_vm1, %v431_v9, 0  ;;  %v553_v32 = vpop.permute.xlu2 %552 }
  0xa6   :  { %1224 = vmatmul.msk.bf16.vlgmr.msra.gmra.mxu0 %vm84_vm2, %v59_v51  ;;  %1225 = vmatmul.msk.bf16.vlgmr.msra.gmra.mxu1 %vm84_vm2, %v59_v51 }
  0xa7   :  { %1226 = vmatmul.msk.bf16.vlgmr.msra.gmra.mxu2 %vm84_vm2, %v59_v51  ;;  %387 = vmatpush.bf16.msra.mxu0 %v323_v1 }
  0xa8   :  { %1227 = vmatmul.msk.bf16.vlgmr.msra.gmra.mxu3 %vm84_vm2, %v59_v51  ;;  %400 = vmatpush.bf16.msra.mxu1 %v326_v2  ;;  %v423_v6 = vpop.permute.xlu0 %422  ;;  %v425_v7 = vpop.permute.xlu1 %424  ;;  %v1242_v51 = vld [vmem:[%s1621_s2 + $0x10] sm:$0xf] }
  0xa9   :  { %463 = vmatpush.bf16.msra.mxu2 %v439_v3  ;;  %476 = vmatpush.bf16.msra.mxu3 %v442_v4  ;;  %v432_v10 = vsel %vm428_vm4, %v421_v5, %v423_v6  ;;  %v433_v12 = vsel %vm428_vm4, %v423_v6, %v425_v7  ;;  %v434_v13 = vsel %vm428_vm4, %v425_v7, %v427_v8  ;;  %v1249_v3 = vld [vmem:[%s1621_s2 + $0x14] sm:$0xf] }
  0xaa   :  { %v448_v16 = vsel %vm88_vm1, %v432_v10, 0  ;;  %v451_v17 = vsel %vm88_vm1, %v433_v12, 0  ;;  %v454_v18 = vsel %vm88_vm1, %v434_v13, 0  ;;  %v673_v35 = vpop.permute.xlu2 %672 }
  0xb0   :  { %v543_v14 = vpop.permute.xlu0 %542  ;;  %v545_v19 = vpop.permute.xlu1 %544 }
  0xb1   :  { %v557_v23 = vsel %vm556_vm5, %v543_v14, %v545_v19  ;;  %v558_v24 = vsel %vm556_vm5, %v545_v19, %v547_v20 }
  0xb2   :  { %v567_v28 = vsel %vm88_vm1, %v557_v23, 0  ;;  %v570_v29 = vsel %vm88_vm1, %v558_v24, 0  ;;  %v679_v46 = vpop.permute.xlu2 %678 }
  0xb6   :  { %1229 = vmatmul.msk.bf16.vlgmr.msrb.gmra.mxu0 %vm84_vm2, %v1228_v11  ;;  %1230 = vmatmul.msk.bf16.vlgmr.msrb.gmra.mxu1 %vm84_vm2, %v1228_v11 }
  0xb7   :  { %1231 = vmatmul.msk.bf16.vlgmr.msrb.gmra.mxu2 %vm84_vm2, %v1228_v11  ;;  %489 = vmatpush.bf16.msrb.mxu0 %v445_v15 }
  0xb8   :  { %1232 = vmatmul.msk.bf16.vlgmr.msrb.gmra.mxu3 %vm84_vm2, %v1228_v11  ;;  %502 = vmatpush.bf16.msrb.mxu1 %v448_v16  ;;  %v549_v21 = vpop.permute.xlu0 %548  ;;  %v551_v22 = vpop.permute.xlu1 %550 }
  0xb9   :  { %515 = vmatpush.bf16.msrb.mxu2 %v451_v17  ;;  %528 = vmatpush.bf16.msrb.mxu3 %v454_v18  ;;  %v559_v25 = vsel %vm556_vm5, %v547_v20, %v549_v21  ;;  %v560_v26 = vsel %vm556_vm5, %v549_v21, %v551_v22  ;;  %v561_v37 = vsel %vm556_vm5, %v551_v22, %v553_v32 }
  0xba   :  { %v573_v30 = vsel %vm88_vm1, %v559_v25, 0  ;;  %v576_v31 = vsel %vm88_vm1, %v560_v26, 0  ;;  %v579_v41 = vsel %vm88_vm1, %v561_v37, 0  ;;  %v799_v53 = vpop.permute.xlu2 %798  ;;  %v1256_v37 = vld [vmem:[%s1621_s2 + $0x18] sm:$0xf] }
  0xc0   :  { %v555_v33 = vpop.permute.xlu0 %554  ;;  %v671_v34 = vpop.permute.xlu1 %670 }
  0xc1   :  { %v562_v38 = vsel %vm556_vm5, %v553_v32, %v555_v33  ;;  %v685_v39 = vsel %vm684_vm6, %v671_v34, %v673_v35 }
  0xc2   :  { %v582_v42 = vsel %vm88_vm1, %v562_v38, 0  ;;  %v695_v43 = vsel %vm88_vm1, %v685_v39, 0  ;;  %v805_v61 = vpop.permute.xlu2 %804 }
  0xc6   :  { %1233 = vmatmul.msk.bf16.vlgmr.msra.gmra.mxu0 %vm84_vm2, %v1228_v11  ;;  %1234 = vmatmul.msk.bf16.vlgmr.msra.gmra.mxu1 %vm84_vm2, %v1228_v11 }
  0xc7   :  { %1236 = vmatmul.msk.bf16.vlgmr.msra.gmra.mxu2 %vm84_vm2, %v1235_v27  ;;  %591 = vmatpush.bf16.msra.mxu0 %v567_v28 }
  0xc8   :  { %1237 = vmatmul.msk.bf16.vlgmr.msra.gmra.mxu3 %vm84_vm2, %v1235_v27  ;;  %604 = vmatpush.bf16.msra.mxu1 %v570_v29  ;;  %v675_v36 = vpop.permute.xlu0 %674  ;;  %v677_v45 = vpop.permute.xlu1 %676 }
  0xc9   :  { %617 = vmatpush.bf16.msra.mxu2 %v573_v30  ;;  %630 = vmatpush.bf16.msra.mxu3 %v576_v31  ;;  %v686_v40 = vsel %vm684_vm6, %v673_v35, %v675_v36  ;;  %v687_v49 = vsel %vm684_vm6, %v675_v36, %v677_v45  ;;  %v688_v50 = vsel %vm684_vm6, %v677_v45, %v679_v46 }
  0xca   :  { %v698_v44 = vsel %vm88_vm1, %v686_v40, 0  ;;  %v701_v55 = vsel %vm88_vm1, %v687_v49, 0  ;;  %v704_v56 = vsel %vm88_vm1, %v688_v50, 0  ;;  %v811_v9 = vpop.permute.xlu2 %810 }
  0xd0   :  { %v681_v47 = vpop.permute.xlu0 %680  ;;  %v683_v48 = vpop.permute.xlu1 %682 }
  0xd1   :  { %v689_v52 = vsel %vm684_vm6, %v679_v46, %v681_v47  ;;  %v690_v54 = vsel %vm684_vm6, %v681_v47, %v683_v48 }
  0xd2   :  { %v707_v57 = vsel %vm88_vm1, %v689_v52, 0  ;;  %v710_v58 = vsel %vm88_vm1, %v690_v54, 0  ;;  %v931_v11 = vpop.permute.xlu2 %930 }
  0xd6   :  { %1238 = vmatmul.msk.bf16.vlgmr.msrb.gmra.mxu0 %vm84_vm2, %v1235_v27  ;;  %1239 = vmatmul.msk.bf16.vlgmr.msrb.gmra.mxu1 %vm84_vm2, %v1235_v27 }
  0xd7   :  { %1240 = vmatmul.msk.bf16.vlgmr.msrb.gmra.mxu2 %vm84_vm2, %v1235_v27  ;;  %643 = vmatpush.bf16.msrb.mxu0 %v579_v41 }
  0xd8   :  { %1241 = vmatmul.msk.bf16.vlgmr.msrb.gmra.mxu3 %vm84_vm2, %v1235_v27  ;;  %656 = vmatpush.bf16.msrb.mxu1 %v582_v42  ;;  %v801_v59 = vpop.permute.xlu0 %800  ;;  %v803_v60 = vpop.permute.xlu1 %802 }
  0xd9   :  { %719 = vmatpush.bf16.msrb.mxu2 %v695_v43  ;;  %732 = vmatpush.bf16.msrb.mxu3 %v698_v44  ;;  %v813_v63 = vsel %vm812_vm7, %v799_v53, %v801_v59  ;;  %v814_v0 = vsel %vm812_vm7, %v801_v59, %v803_v60  ;;  %v815_v1 = vsel %vm812_vm7, %v803_v60, %v805_v61 }
  0xda   :  { %v823_v4 = vsel %vm88_vm1, %v813_v63, 0  ;;  %v826_v5 = vsel %vm88_vm1, %v814_v0, 0  ;;  %v829_v6 = vsel %vm88_vm1, %v815_v1, 0  ;;  %v937_v29 = vpop.permute.xlu2 %936  ;;  %v1263_v1 = vld [vmem:[%s1621_s2 + $0x1c] sm:$0xf] }
  0xe0   :  { %v807_v62 = vpop.permute.xlu0 %806  ;;  %v809_v8 = vpop.permute.xlu1 %808 }
  0xe1   :  { %v816_v2 = vsel %vm812_vm7, %v805_v61, %v807_v62  ;;  %v817_v13 = vsel %vm812_vm7, %v807_v62, %v809_v8  ;;  %v818_v14 = vsel %vm812_vm7, %v809_v8, %v811_v9 }
  0xe2   :  { %v832_v7 = vsel %vm88_vm1, %v816_v2, 0  ;;  %v835_v19 = vsel %vm88_vm1, %v817_v13, 0  ;;  %v838_v20 = vsel %vm88_vm1, %v818_v14, 0 }
  0xe4   :  { %v1057_v45 = vpop.permute.xlu2 %1056 }
  0xe6   :  { %1243 = vmatmul.msk.bf16.vlgmr.msra.gmra.mxu0 %vm84_vm2, %v1242_v51  ;;  %1244 = vmatmul.msk.bf16.vlgmr.msra.gmra.mxu1 %vm84_vm2, %v1242_v51 }
  0xe7   :  { %1245 = vmatmul.msk.bf16.vlgmr.msra.gmra.mxu2 %vm84_vm2, %v1242_v51  ;;  %745 = vmatpush.bf16.msra.mxu0 %v701_v55 }
  0xe8   :  { %1246 = vmatmul.msk.bf16.vlgmr.msra.gmra.mxu3 %vm84_vm2, %v1242_v51  ;;  %758 = vmatpush.bf16.msra.mxu1 %v704_v56  ;;  %v927_v10 = vpop.permute.xlu0 %926  ;;  %v929_v12 = vpop.permute.xlu1 %928 }
  0xe9   :  { %771 = vmatpush.bf16.msra.mxu2 %v707_v57  ;;  %784 = vmatpush.bf16.msra.mxu3 %v710_v58  ;;  %v941_v17 = vsel %vm940_vm8, %v927_v10, %v929_v12  ;;  %v942_v18 = vsel %vm940_vm8, %v929_v12, %v931_v11 }
  0xea   :  { %v951_v21 = vsel %vm88_vm1, %v941_v17, 0  ;;  %v954_v22 = vsel %vm88_vm1, %v942_v18, 0 }
  0xec   :  { %v1063_v54 = vpop.permute.xlu2 %1062 }
  0xf0   :  { %v933_v23 = vpop.permute.xlu0 %932  ;;  %v935_v28 = vpop.permute.xlu1 %934 }
  0xf1   :  { %v943_v33 = vsel %vm940_vm8, %v931_v11, %v933_v23  ;;  %v944_v34 = vsel %vm940_vm8, %v933_v23, %v935_v28  ;;  %v945_v38 = vsel %vm940_vm8, %v935_v28, %v937_v29 }
  0xf2   :  { %v957_v40 = vsel %vm88_vm1, %v943_v33, 0  ;;  %v960_v41 = vsel %vm88_vm1, %v944_v34, 0  ;;  %v963_v42 = vsel %vm88_vm1, %v945_v38, 0  ;;  %v1270_v34 = vld [vmem:[%s1621_s2 + $0x20] sm:$0xf] }
  0xf6   :  { %1247 = vmatmul.msk.bf16.vlgmr.msrb.gmra.mxu0 %vm84_vm2, %v1242_v51  ;;  %1248 = vmatmul.msk.bf16.vlgmr.msrb.gmra.mxu1 %vm84_vm2, %v1242_v51 }
  0xf7   :  { %1250 = vmatmul.msk.bf16.vlgmr.msrb.gmra.mxu2 %vm84_vm2, %v1249_v3  ;;  %847 = vmatpush.bf16.msrb.mxu0 %v823_v4 }
  0xf8   :  { %1251 = vmatmul.msk.bf16.vlgmr.msrb.gmra.mxu3 %vm84_vm2, %v1249_v3  ;;  %860 = vmatpush.bf16.msrb.mxu1 %v826_v5 }
  0xf9   :  { %873 = vmatpush.bf16.msrb.mxu2 %v829_v6  ;;  %886 = vmatpush.bf16.msrb.mxu3 %v832_v7 }
  0xfb   :  { %v1055_v43 = vpop.permute.xlu1 %1054 }
  0xfc   :  { %v939_v30 = vpop.permute.xlu0 %938  ;;  %v1069_v57 = vsel %vm1068_vm9, %v1055_v43, %v1057_v45  ;;  %v1296_v43 = vmov 0  }
  0xfd   :  { %v946_v39 = vsel %vm940_vm8, %v937_v29, %v939_v30  ;;  %v1079_v2 = vsel %vm88_vm1, %v1069_v57, 0  ;;  %1286 = vset.pattern.permute.xlu2 %v1296_v43  ;;  %1287 = vset.pattern.permute.xlu0 %v1296_v43 }
  0xfe   :  { %v966_v44 = vsel %vm88_vm1, %v946_v39, 0 }
 0x103   :  { %v116_v15 = vpop.f32.mrf.mxu0  ;;  %v129_v16 = vpop.f32.mrf.mxu1 }
 0x104   :  { %v1059_v52 = vpop.permute.xlu0 %1058  ;;  %v1061_v53 = vpop.permute.xlu1 %1060 }
 0x105   :  { %v1070_v58 = vsel %vm1068_vm9, %v1057_v45, %v1059_v52  ;;  %v1071_v61 = vsel %vm1068_vm9, %v1059_v52, %v1061_v53  ;;  %v1072_v62 = vsel %vm1068_vm9, %v1061_v53, %v1063_v54 }
 0x106   :  { %1252 = vmatmul.msk.bf16.vlgmr.msra.gmra.mxu0 %vm84_vm2, %v1249_v3  ;;  %1253 = vmatmul.msk.bf16.vlgmr.msra.gmra.mxu1 %vm84_vm2, %v1249_v3  ;;  %v1085_v4 = vsel %vm88_vm1, %v1071_v61, 0  ;;  %v1088_v5 = vsel %vm88_vm1, %v1072_v62, 0 }
 0x107   :  { %1254 = vmatmul.msk.bf16.vlgmr.msra.gmra.mxu2 %vm84_vm2, %v1249_v3  ;;  %899 = vmatpush.bf16.msra.mxu0 %v835_v19 }
 0x108   :  { %1255 = vmatmul.msk.bf16.vlgmr.msra.gmra.mxu3 %vm84_vm2, %v1249_v3  ;;  %912 = vmatpush.bf16.msra.mxu1 %v838_v20  ;;  %v1082_v3 = vsel %vm88_vm1, %v1070_v58, 0 }
 0x109   :  { %975 = vmatpush.bf16.msra.mxu2 %v951_v21  ;;  %988 = vmatpush.bf16.msra.mxu3 %v954_v22 }
 0x10a   :  { %v142_v24 = vpop.f32.mrf.mxu2 }
 0x10b   :  { %v155_v25 = vpop.f32.mrf.mxu3  ;;  %v118_v26 = vpop.f32.mrf.mxu0 }
 0x10c   :  { %v131_v27 = vpop.f32.mrf.mxu1  ;;  %v1065_v12 = vpop.permute.xlu0 %1064 }
 0x10d   :  { %v1067_v13 = vpop.permute.xlu1 %1066 }
 0x10e   :  { %v1074_v17 = vsel %vm1068_vm9, %v1065_v12, %v1067_v13 }
 0x10f   :  { %v1094_v23 = vsel %vm88_vm1, %v1074_v17, 0 }
 0x112   :  { %v144_v31 = vpop.f32.mrf.mxu2 }
 0x113   :  { %v157_v32 = vpop.f32.mrf.mxu3  ;;  %v168_v35 = vpop.f32.mrf.mxu0 }
 0x114   :  { %v181_v36 = vpop.f32.mrf.mxu1 }
 0x116   :  { %1257 = vmatmul.msk.bf16.vlgmr.msrb.gmra.mxu0 %vm84_vm2, %v1256_v37  ;;  %1258 = vmatmul.msk.bf16.vlgmr.msrb.gmra.mxu1 %vm84_vm2, %v1256_v37 }
 0x117   :  { %1259 = vmatmul.msk.bf16.vlgmr.msrb.gmra.mxu2 %vm84_vm2, %v1256_v37  ;;  %1001 = vmatpush.bf16.msrb.mxu0 %v957_v40 }
 0x118   :  { %1260 = vmatmul.msk.bf16.vlgmr.msrb.gmra.mxu3 %vm84_vm2, %v1256_v37  ;;  %1014 = vmatpush.bf16.msrb.mxu1 %v960_v41 }
 0x119   :  { %1027 = vmatpush.bf16.msrb.mxu2 %v963_v42  ;;  %1040 = vmatpush.bf16.msrb.mxu3 %v966_v44  ;;  %v1180_v44 = vld [vmem:[%s1622_s3] sm:$0xff] }
 0x11a   :  { %v215_v46 = vpop.f32.mrf.mxu2  ;;  %1183 = vperm.xlu2 %1286, %v1180_v44  }
 0x11b   :  { %v228_v47 = vpop.f32.mrf.mxu3  ;;  %v216_v48 = vadd.f32 %v215_v46, %v116_v15  ;;  %v170_v50 = vpop.f32.mrf.mxu0 }
 0x11c   :  { %v229_v49 = vadd.f32 %v228_v47, %v129_v16  ;;  %v183_v51 = vpop.f32.mrf.mxu1  ;;  %v1073_v16 = vsel %vm1068_vm9, %v1063_v54, %v1065_v12 }
 0x11d   :  { %v1091_v22 = vsel %vm88_vm1, %v1073_v16, 0 }
 0x122   :  { %v217_v55 = vpop.f32.mrf.mxu2 }
 0x123   :  { %v230_v56 = vpop.f32.mrf.mxu3  ;;  %v241_v59 = vpop.f32.mrf.mxu0 }
 0x124   :  { %v254_v60 = vpop.f32.mrf.mxu1  ;;  %v242_v63 = vadd.f32 %v241_v59, %v142_v24 }
 0x125   :  { %v255_v0 = vadd.f32 %v254_v60, %v155_v25 }
 0x126   :  { %1261 = vmatmul.msk.bf16.vlgmr.msra.gmra.mxu0 %vm84_vm2, %v1256_v37  ;;  %1262 = vmatmul.msk.bf16.vlgmr.msra.gmra.mxu1 %vm84_vm2, %v1256_v37 }
 0x127   :  { %1264 = vmatmul.msk.bf16.vlgmr.msra.gmra.mxu2 %vm84_vm2, %v1263_v1  ;;  %1103 = vmatpush.bf16.msra.mxu0 %v1079_v2 }
 0x128   :  { %1265 = vmatmul.msk.bf16.vlgmr.msra.gmra.mxu3 %vm84_vm2, %v1263_v1  ;;  %1116 = vmatpush.bf16.msra.mxu1 %v1082_v3 }
 0x129   :  { %1129 = vmatpush.bf16.msra.mxu2 %v1085_v4  ;;  %1142 = vmatpush.bf16.msra.mxu3 %v1088_v5 }
 0x12a   :  { %v267_v6 = vpop.f32.mrf.mxu2 }
 0x12b   :  { %v280_v7 = vpop.f32.mrf.mxu3  ;;  %v268_v8 = vadd.f32 %v267_v6, %v168_v35  ;;  %v243_v10 = vpop.f32.mrf.mxu0 }
 0x12c   :  { %v281_v9 = vadd.f32 %v280_v7, %v181_v36  ;;  %v256_v11 = vpop.f32.mrf.mxu1 }
 0x132   :  { %v269_v14 = vpop.f32.mrf.mxu2 }
 0x133   :  { %v282_v15 = vpop.f32.mrf.mxu3  ;;  %v337_v18 = vpop.f32.mrf.mxu0 }
 0x134   :  { %v350_v19 = vpop.f32.mrf.mxu1  ;;  %v406_v20 = vadd.f32 %v337_v18, %v216_v48 }
 0x135   :  { %v407_v21 = vadd.f32 %v350_v19, %v229_v49 }
 0x136   :  { %1266 = vmatmul.msk.bf16.vlgmr.msrb.gmra.mxu0 %vm84_vm2, %v1263_v1  ;;  %1267 = vmatmul.msk.bf16.vlgmr.msrb.gmra.mxu1 %vm84_vm2, %v1263_v1 }
 0x137   :  { %1268 = vmatmul.msk.bf16.vlgmr.msrb.gmra.mxu2 %vm84_vm2, %v1263_v1  ;;  %1155 = vmatpush.bf16.msrb.mxu0 %v1091_v22 }
 0x138   :  { %1269 = vmatmul.msk.bf16.vlgmr.msrb.gmra.mxu3 %vm84_vm2, %v1263_v1  ;;  %1168 = vmatpush.bf16.msrb.mxu1 %v1094_v23 }
 0x13a   :  { %v363_v24 = vpop.f32.mrf.mxu2 }
 0x13b   :  { %v376_v25 = vpop.f32.mrf.mxu3  ;;  %v408_v26 = vadd.f32 %v363_v24, %v242_v63  ;;  %v339_v28 = vpop.f32.mrf.mxu0 }
 0x13c   :  { %v409_v27 = vadd.f32 %v376_v25, %v255_v0  ;;  %v352_v29 = vpop.f32.mrf.mxu1 }
 0x142   :  { %v365_v30 = vpop.f32.mrf.mxu2 }
 0x143   :  { %v378_v31 = vpop.f32.mrf.mxu3  ;;  %v389_v32 = vpop.f32.mrf.mxu0 }
 0x144   :  { %v402_v33 = vpop.f32.mrf.mxu1  ;;  %v410_v35 = vadd.f32 %v389_v32, %v268_v8 }
 0x145   :  { %v411_v36 = vadd.f32 %v402_v33, %v281_v9 }
 0x146   :  { %1271 = vmatmul.msk.bf16.vlgmr.msra.gmra.mxu0 %vm84_vm2, %v1270_v34  ;;  %1272 = vmatmul.msk.bf16.vlgmr.msra.gmra.mxu1 %vm84_vm2, %v1270_v34 }
 0x147   :  { %1273 = vmatmul.msk.bf16.vlgmr.msra.gmra.mxu2 %vm84_vm2, %v1270_v34 }
 0x148   :  { %1274 = vmatmul.msk.bf16.vlgmr.msra.gmra.mxu3 %vm84_vm2, %v1270_v34 }
 0x14a   :  { %v465_v37 = vpop.f32.mrf.mxu2 }
 0x14b   :  { %v478_v38 = vpop.f32.mrf.mxu3  ;;  %v534_v39 = vadd.f32 %v465_v37, %v406_v20  ;;  %v391_v41 = vpop.f32.mrf.mxu0 }
 0x14c   :  { %v535_v40 = vadd.f32 %v478_v38, %v407_v21  ;;  %v404_v42 = vpop.f32.mrf.mxu1 }
 0x152   :  { %v467_v45 = vpop.f32.mrf.mxu2 }
 0x153   :  { %v480_v46 = vpop.f32.mrf.mxu3  ;;  %v491_v47 = vpop.f32.mrf.mxu0 }
 0x154   :  { %v504_v48 = vpop.f32.mrf.mxu1  ;;  %v536_v49 = vadd.f32 %v491_v47, %v408_v26 }
 0x155   :  { %v537_v50 = vadd.f32 %v504_v48, %v409_v27 }
 0x156   :  { %1275 = vmatmul.msk.bf16.vlgmr.msrb.gmra.mxu0 %vm84_vm2, %v1270_v34  ;;  %1276 = vmatmul.msk.bf16.vlgmr.msrb.gmra.mxu1 %vm84_vm2, %v1270_v34 }
 0x15a   :  { %v517_v51 = vpop.f32.mrf.mxu2 }
 0x15b   :  { %v530_v52 = vpop.f32.mrf.mxu3  ;;  %v538_v53 = vadd.f32 %v517_v51, %v410_v35  ;;  %v493_v55 = vpop.f32.mrf.mxu0 }
 0x15c   :  { %v539_v54 = vadd.f32 %v530_v52, %v411_v36  ;;  %v506_v56 = vpop.f32.mrf.mxu1 }
 0x162   :  { %v519_v57 = vpop.f32.mrf.mxu2 }
 0x163   :  { %v532_v58 = vpop.f32.mrf.mxu3  ;;  %v593_v59 = vpop.f32.mrf.mxu0 }
 0x164   :  { %v606_v60 = vpop.f32.mrf.mxu1  ;;  %v662_v61 = vadd.f32 %v593_v59, %v534_v39 }
 0x165   :  { %v663_v62 = vadd.f32 %v606_v60, %v535_v40 }
 0x16a   :  { %v619_v63 = vpop.f32.mrf.mxu2 }
 0x16b   :  { %v632_v0 = vpop.f32.mrf.mxu3  ;;  %v664_v1 = vadd.f32 %v619_v63, %v536_v49  ;;  %v595_v3 = vpop.f32.mrf.mxu0 }
 0x16c   :  { %v665_v2 = vadd.f32 %v632_v0, %v537_v50  ;;  %v608_v4 = vpop.f32.mrf.mxu1 }
 0x172   :  { %v621_v5 = vpop.f32.mrf.mxu2 }
 0x173   :  { %v634_v6 = vpop.f32.mrf.mxu3  ;;  %v645_v7 = vpop.f32.mrf.mxu0 }
 0x174   :  { %v658_v8 = vpop.f32.mrf.mxu1  ;;  %v666_v9 = vadd.f32 %v645_v7, %v538_v53  ;;  %v1184_v55 = vpop.permute.xlu2 %1183 }
 0x175   :  { %v667_v10 = vadd.f32 %v658_v8, %v539_v54 }
 0x17a   :  { %v721_v11 = vpop.f32.mrf.mxu2 }
 0x17b   :  { %v734_v12 = vpop.f32.mrf.mxu3  ;;  %v790_v13 = vadd.f32 %v721_v11, %v662_v61  ;;  %v647_v15 = vpop.f32.mrf.mxu0 }
 0x17c   :  { %v791_v14 = vadd.f32 %v734_v12, %v663_v62  ;;  %v660_v16 = vpop.f32.mrf.mxu1 }
 0x182   :  { %v723_v17 = vpop.f32.mrf.mxu2 }
 0x183   :  { %v736_v18 = vpop.f32.mrf.mxu3  ;;  %v747_v19 = vpop.f32.mrf.mxu0 }
 0x184   :  { %v760_v20 = vpop.f32.mrf.mxu1  ;;  %v792_v21 = vadd.f32 %v747_v19, %v664_v1 }
 0x185   :  { %v793_v22 = vadd.f32 %v760_v20, %v665_v2 }
 0x18a   :  { %v773_v23 = vpop.f32.mrf.mxu2 }
 0x18b   :  { %v786_v24 = vpop.f32.mrf.mxu3  ;;  %v794_v25 = vadd.f32 %v773_v23, %v666_v9  ;;  %v749_v27 = vpop.f32.mrf.mxu0 }
 0x18c   :  { %v795_v26 = vadd.f32 %v786_v24, %v667_v10  ;;  %v762_v28 = vpop.f32.mrf.mxu1 }
 0x192   :  { %v775_v29 = vpop.f32.mrf.mxu2 }
 0x193   :  { %v788_v30 = vpop.f32.mrf.mxu3  ;;  %v849_v31 = vpop.f32.mrf.mxu0 }
 0x194   :  { %v862_v32 = vpop.f32.mrf.mxu1  ;;  %v918_v53 = vadd.f32 %v849_v31, %v790_v13 }
 0x195   :  { %v919_v54 = vadd.f32 %v862_v32, %v791_v14 }
 0x19a   :  { %v875_v33 = vpop.f32.mrf.mxu2 }
 0x19b   :  { %v888_v34 = vpop.f32.mrf.mxu3  ;;  %v851_v35 = vpop.f32.mrf.mxu0  ;;  %v920_v2 = vadd.f32 %v875_v33, %v792_v21 }
 0x19c   :  { %v864_v36 = vpop.f32.mrf.mxu1  ;;  %v921_v3 = vadd.f32 %v888_v34, %v793_v22 }
 0x1a2   :  { %v877_v37 = vpop.f32.mrf.mxu2 }
 0x1a3   :  { %v890_v38 = vpop.f32.mrf.mxu3  ;;  %v901_v39 = vpop.f32.mrf.mxu0 }
 0x1a4   :  { %v914_v40 = vpop.f32.mrf.mxu1  ;;  %v922_v19 = vadd.f32 %v901_v39, %v794_v25 }
 0x1a5   :  { %v923_v20 = vadd.f32 %v914_v40, %v795_v26 }
 0x1aa   :  { %v977_v41 = vpop.f32.mrf.mxu2 }
 0x1ab   :  { %v990_v42 = vpop.f32.mrf.mxu3  ;;  %v903_v43 = vpop.f32.mrf.mxu0  ;;  %v1046_v56 = vadd.f32 %v977_v41, %v918_v53 }
 0x1ac   :  { %v916_v44 = vpop.f32.mrf.mxu1  ;;  %v1047_v57 = vadd.f32 %v990_v42, %v919_v54 }
 0x1b2   :  { %v979_v45 = vpop.f32.mrf.mxu2 }
 0x1b3   :  { %v992_v46 = vpop.f32.mrf.mxu3  ;;  %v1003_v47 = vpop.f32.mrf.mxu0 }
 0x1b4   :  { %v1016_v48 = vpop.f32.mrf.mxu1  ;;  %v1048_v6 = vadd.f32 %v1003_v47, %v920_v2 }
 0x1b5   :  { %v1049_v7 = vadd.f32 %v1016_v48, %v921_v3 }
 0x1ba   :  { %v1029_v49 = vpop.f32.mrf.mxu2 }
 0x1bb   :  { %v1042_v50 = vpop.f32.mrf.mxu3  ;;  %v1005_v51 = vpop.f32.mrf.mxu0  ;;  %v1050_v22 = vadd.f32 %v1029_v49, %v922_v19 }
 0x1bc   :  { %v1018_v52 = vpop.f32.mrf.mxu1  ;;  %v1051_v23 = vadd.f32 %v1042_v50, %v923_v20 }
 0x1c2   :  { %v1031_v58 = vpop.f32.mrf.mxu2 }
 0x1c3   :  { %v1044_v59 = vpop.f32.mrf.mxu3  ;;  %v1105_v60 = vpop.f32.mrf.mxu0 }
 0x1c4   :  { %v1118_v61 = vpop.f32.mrf.mxu1  ;;  %v1174_v62 = vadd.f32 %v1105_v60, %v1046_v56 }
 0x1c5   :  { %v1175_v63 = vadd.f32 %v1118_v61, %v1047_v57 }
 0x1c6   :  { %v1186_v0 = vadd.f32 %v1184_v55, %v1174_v62 }
 0x1c7   :  { %v1187_v1 = vadd.f32 %v1184_v55, %v1175_v63 }
 0x1c8   :  { %v1192_v4 = vmax.f32 %v1186_v0, 0.0 }
 0x1c9   :  { %v1193_v5 = vmax.f32 %v1187_v1, 0.0 }
 0x1ca   :  { %v1131_v9 = vpop.f32.mrf.mxu2 }
 0x1cb   :  { %v1198_v8 = vpack.c.bf16 %v1193_v5, %v1192_v4  ;;  %v1144_v10 = vpop.f32.mrf.mxu3  ;;  %v1176_v11 = vadd.f32 %v1131_v9, %v1048_v6  ;;  %v1107_v13 = vpop.f32.mrf.mxu0 }
 0x1cc   :  { %v1177_v12 = vadd.f32 %v1144_v10, %v1049_v7  ;;  %v1120_v14 = vpop.f32.mrf.mxu1 }
 0x1cd   :  { %1201 = vst [vmem:[%s1623_s4] sm:$0xff] %v1198_v8  ;;  %v1188_v15 = vadd.f32 %v1184_v55, %v1176_v11 }
 0x1ce   :  { %v1189_v16 = vadd.f32 %v1184_v55, %v1177_v12 }
 0x1cf   :  { %v1194_v17 = vmax.f32 %v1188_v15, 0.0 }
 0x1d0   :  { %v1195_v18 = vmax.f32 %v1189_v16, 0.0 }
 0x1d2   :  { %v1199_v21 = vpack.c.bf16 %v1195_v18, %v1194_v17  ;;  %v1133_v24 = vpop.f32.mrf.mxu2 }
 0x1d3   :  { %v1146_v27 = vpop.f32.mrf.mxu3  ;;  %v1157_v28 = vpop.f32.mrf.mxu0 }
 0x1d4   :  { %1202 = vst [vmem:[%s1623_s4 + $0x8] sm:$0xff] %v1199_v21  ;;  %v1170_v29 = vpop.f32.mrf.mxu1  ;;  %v1178_v30 = vadd.f32 %v1157_v28, %v1050_v22 }
 0x1d5   :  { %v1179_v31 = vadd.f32 %v1170_v29, %v1051_v23 }
 0x1d6   :  { %v1190_v32 = vadd.f32 %v1184_v55, %v1178_v30 }
 0x1d7   :  { %v1191_v33 = vadd.f32 %v1184_v55, %v1179_v31 }
 0x1d8   :  { %v1196_v34 = vmax.f32 %v1190_v32, 0.0 }
 0x1d9   :  { %v1197_v35 = vmax.f32 %v1191_v33, 0.0 }
 0x1db   :  { %v1200_v36 = vpack.c.bf16 %v1197_v35, %v1196_v34  ;;  %v1159_v25 = vpop.f32.mrf.mxu0 }
 0x1dc   :  { %v1172_v26 = vpop.f32.mrf.mxu1 }
 0x1dd   :  { %1203 = vst [vmem:[%s1623_s4 + $0x10] sm:$0xff] %v1200_v36 }

// kernel: _lambda_.17
= control target key start
LH: loop header
LB: loop body
LE: loop exit
PB: predicated region body
PF: predicated region fallthrough
CT: control target
= control target key end

     0   :  { %s78_s0 = inlined_call_operand.vmem [shape: bf16[8,128], index: 0, kind: input, shape index: {}]   ;;  %s79_s1 = inlined_call_operand.vmem [shape: bf16[8,128], index: 1, kind: input, shape index: {}]   ;;  %s80_s2 = inlined_call_operand.vmem [shape: bf16[8,128], index: 2, kind: input, shape index: {}]   ;;  %s81_s3 = inlined_call_operand.vmem [shape: bf16[8,128], index: 3, kind: input, shape index: {}]   ;;  %s82_s4 = inlined_call_operand.vmem [shape: bf16[8,128], index: 4, kind: output, shape index: {}]  }
   0x1   :  { %v17_v0 = vld [vmem:[%s78_s0] sm:$0xf] }
   0x2   :  { %v18_v1 = vld [vmem:[%s79_s1] sm:$0xf]  ;;  %v19_v3 = vunpack.c.l.bf16 %v17_v0 }
   0x3   :  { %v23_v2 = vld [vmem:[%s80_s2] sm:$0xf]  ;;  %v20_v4 = vunpack.c.l.bf16 %v18_v1 }
   0x4   :  { %v24_v5 = vld [vmem:[%s81_s3] sm:$0xf]  ;;  %v25_v6 = vunpack.c.l.bf16 %v23_v2 }
   0x5   :  { %v26_v7 = vunpack.c.l.bf16 %v24_v5  ;;  %v21_v8 = vmax.f32 %v19_v3, %v20_v4 }
   0x7   :  { %v27_v9 = vmax.f32 %v25_v6, %v26_v7 }
   0x9   :  { %v31_v10 = vmax.f32 %v21_v8, %v27_v9 }
   0xb   :  { %v32_v11 = vpack.c.bf16 %v31_v10, %v31_v10 }
   0xd   :  { %33 = vst [vmem:[%s82_s4] sm:$0xf] %v32_v11 }

// kernel: _lambda_.20
= control target key start
LH: loop header
LB: loop body
LE: loop exit
PB: predicated region body
PF: predicated region fallthrough
CT: control target
= control target key end

     0   :  { %s116_s0 = inlined_call_operand.vmem [shape: bf16[16,128], index: 0, kind: input, shape index: {}]   ;;  %s117_s1 = inlined_call_operand.vmem [shape: bf16[16,128], index: 1, kind: input, shape index: {}]   ;;  %s118_s2 = inlined_call_operand.vmem [shape: bf16[16,128], index: 2, kind: input, shape index: {}]   ;;  %s119_s3 = inlined_call_operand.vmem [shape: bf16[16,128], index: 3, kind: input, shape index: {}]   ;;  %s120_s4 = inlined_call_operand.vmem [shape: bf16[16,128], index: 4, kind: output, shape index: {}]  }
   0x1   :  { %v56_v0 = vld [vmem:[%s116_s0] sm:$0xff]  }
   0x2   :  { %v60_v1 = vld [vmem:[%s117_s1] sm:$0xff]   ;;  %v57_v3 = vunpack.c.l.bf16 %v56_v0  ;;  %v58_v4 = vunpack.c.h.bf16 %v56_v0 }
   0x3   :  { %v64_v2 = vld [vmem:[%s118_s2] sm:$0xff]   ;;  %v61_v5 = vunpack.c.l.bf16 %v60_v1  ;;  %v62_v6 = vunpack.c.h.bf16 %v60_v1 }
   0x4   :  { %v68_v7 = vld [vmem:[%s119_s3] sm:$0xff]   ;;  %v65_v8 = vunpack.c.l.bf16 %v64_v2  ;;  %v66_v9 = vunpack.c.h.bf16 %v64_v2 }
   0x5   :  { %v69_v10 = vunpack.c.l.bf16 %v68_v7  ;;  %v70_v11 = vunpack.c.h.bf16 %v68_v7  ;;  %v25_v12 = vmax.f32 %v57_v3, %v61_v5  ;;  %v26_v13 = vmax.f32 %v58_v4, %v62_v6 }
   0x7   :  { %v37_v14 = vmax.f32 %v65_v8, %v69_v10  ;;  %v38_v15 = vmax.f32 %v66_v9, %v70_v11 }
   0x9   :  { %v45_v16 = vmax.f32 %v25_v12, %v37_v14  ;;  %v46_v17 = vmax.f32 %v26_v13, %v38_v15 }
   0xb   :  { %v74_v18 = vpack.c.bf16 %v46_v17, %v45_v16 }
   0xd   :  { %75 = vst [vmem:[%s120_s4] sm:$0xff] %v74_v18  }

// kernel: _lambda_.18
= control target key start
LH: loop header
LB: loop body
LE: loop exit
PB: predicated region body
PF: predicated region fallthrough
CT: control target
= control target key end

     0   :  { %s679_s19 = smov 127   ;;  %s680_s20 = smov 126   ;;  %vm71_vm0 = vcmask 1043456   ;;  %vm67_vm1 = vcmask 64512   ;;  %vm162_vm2 = vcmask 1031168   ;;  %vm64_vm3 = vcmask 1039360   ;;  %s796_s1 = inlined_call_operand.vmem [shape: bf16[8,384], index: 1, kind: input, shape index: {}, may-alias: {0,1}]   ;;  %s797_s0 = inlined_call_operand.vmem [shape: bf16[8,384], index: 0, kind: input, shape index: {}, may-alias: {0,1}]   ;;  %s798_s2 = inlined_call_operand.vmem [shape: bf16[9,16,8], index: 2, kind: input, shape index: {}]   ;;  %s799_s3 = inlined_call_operand.vmem [shape: f32[16,1], index: 3, kind: input, shape index: {}]   ;;  %s800_s4 = inlined_call_operand.vmem [shape: bf16[16,256], index: 4, kind: output, shape index: {}]  }
   0x1   :  { %v588_v0 = vld [vmem:[%s796_s1 + $0x8] sm:$0xf]  ;;  %v40_v1 = vld [vmem:[%s797_s0] sm:$0xff]  ;;  %s681_s21 = smov 118   ;;  %s682_s1 = smov 117   ;;  %vm220_vm4 = vcmask 965632  }
   0x2   :  { %62 = vrot.lane.b32.xlu1 %v588_v0, %s679_s19  ;;  %v43_v2 = vunpack.c.l.b16 %v40_v1  ;;  %v44_v3 = vunpack.c.h.b16 %v40_v1  ;;  %s683_s0 = smov 116   ;;  %s684_s22 = smov 108   ;;  %v659_v8 = vld [vmem:[%s798_s2] sm:$0xff]  ;;  %v660_v24 = vld [vmem:[%s798_s2 + $0x8] sm:$0xff]  ;;  %v662_v29 = vld [vmem:[%s798_s2 + $0x18] sm:$0xff]  ;;  %vm278_vm5 = vcmask 957440  }
   0x3   :  { %s685_s23 = smov 107   ;;  %s686_s24 = smov 106   ;;  %v661_v40 = vld [vmem:[%s798_s2 + $0x10] sm:$0xff]  ;;  %vm336_vm6 = vcmask 949248   ;;  %v664_v44 = vld [vmem:[%s798_s2 + $0x28] sm:$0xff]  ;;  %vm394_vm7 = vcmask 883712  }
   0x4   :  { %v45_v4 = vpack.c.b16 %v43_v2, %v43_v2  ;;  %v46_v5 = vpack.c.b16 %v44_v3, %v44_v3  ;;  %v663_v55 = vld [vmem:[%s798_s2 + $0x20] sm:$0xff]  ;;  %vm452_vm8 = vcmask 875520   ;;  %v666_v60 = vld [vmem:[%s798_s2 + $0x38] sm:$0xff]  ;;  %v555_v62 = vld [vmem:[%s799_s3 + $0x8] sm:$0xff]  ;;  %v687_v63 = vmov 0  }
   0x5   :  { %v554_v61 = vld [vmem:[%s799_s3] sm:$0xff]  ;;  %677 = vset.pattern.permute.xlu0 %v687_v63  ;;  %678 = vset.pattern.permute.xlu1 %v687_v63  ;;  %vm510_vm9 = vcmask 867328  }
   0x6   :  { %58 = vrot.lane.b32.xlu0 %v45_v4, %s679_s19  ;;  %158 = vrot.lane.b32.xlu2 %v46_v5, %s680_s20  ;;  %v115_v6 = vsel %vm71_vm0, %v45_v4, 0  ;;  %v118_v7 = vsel %vm71_vm0, %v46_v5, 0 }
   0x7   :  { %127 = vmatpush.bf16.msra.mxu2 %v115_v6  ;;  %141 = vmatpush.bf16.msra.mxu3 %v118_v7 }
   0xa   :  { %156 = vrot.lane.b32.xlu1 %v45_v4, %s680_s20  ;;  %602 = vmatmul.msk.bf16.vlgmr.msra.gmra.mxu3 %vm67_vm1, %v659_v8 }
   0xb   :  { %601 = vmatmul.msk.bf16.vlgmr.msra.gmra.mxu2 %vm67_vm1, %v659_v8 }
   0xe   :  { %60 = vrot.lane.b32.xlu0 %v46_v5, %s679_s19  ;;  %160 = vrot.lane.b32.xlu2 %v588_v0, %s680_s20 }
  0x12   :  { %216 = vrot.lane.b32.xlu1 %v46_v5, %s681_s21 }
  0x16   :  { %214 = vrot.lane.b32.xlu0 %v45_v4, %s681_s21  ;;  %218 = vrot.lane.b32.xlu2 %v588_v0, %s681_s21 }
  0x1a   :  { %274 = vrot.lane.b32.xlu1 %v46_v5, %s682_s1 }
  0x1e   :  { %272 = vrot.lane.b32.xlu0 %v45_v4, %s682_s1  ;;  %276 = vrot.lane.b32.xlu2 %v588_v0, %s682_s1 }
  0x22   :  { %332 = vrot.lane.b32.xlu1 %v46_v5, %s683_s0 }
  0x26   :  { %330 = vrot.lane.b32.xlu0 %v45_v4, %s683_s0  ;;  %334 = vrot.lane.b32.xlu2 %v588_v0, %s683_s0 }
  0x2a   :  { %390 = vrot.lane.b32.xlu1 %v46_v5, %s684_s22 }
  0x2e   :  { %388 = vrot.lane.b32.xlu0 %v45_v4, %s684_s22  ;;  %392 = vrot.lane.b32.xlu2 %v588_v0, %s684_s22 }
  0x32   :  { %448 = vrot.lane.b32.xlu1 %v46_v5, %s685_s23 }
  0x36   :  { %446 = vrot.lane.b32.xlu0 %v45_v4, %s685_s23  ;;  %450 = vrot.lane.b32.xlu2 %v588_v0, %s685_s23 }
  0x3a   :  { %506 = vrot.lane.b32.xlu1 %v46_v5, %s686_s24 }
  0x3e   :  { %504 = vrot.lane.b32.xlu0 %v45_v4, %s686_s24  ;;  %508 = vrot.lane.b32.xlu2 %v588_v0, %s686_s24 }
  0x42   :  { %563 = vperm.xlu1 %678, %v555_v62  }
  0x46   :  { %558 = vperm.xlu0 %677, %v554_v61  }
  0x60   :  { %v159_v9 = vpop.permute.xlu2 %158 }
  0x68   :  { %v161_v10 = vpop.permute.xlu2 %160 }
  0x69   :  { %v164_v16 = vsel %vm162_vm2, %v159_v9, %v161_v10  ;;  %v665_v10 = vld [vmem:[%s798_s2 + $0x30] sm:$0xff] }
  0x6a   :  { %v172_v21 = vsel %vm71_vm0, %v164_v16, 0 }
  0x70   :  { %v219_v13 = vpop.permute.xlu2 %218 }
  0x74   :  { %v63_v11 = vpop.permute.xlu1 %62 }
  0x78   :  { %v59_v12 = vpop.permute.xlu0 %58  ;;  %v277_v26 = vpop.permute.xlu2 %276 }
  0x7c   :  { %v157_v14 = vpop.permute.xlu1 %156 }
  0x7d   :  { %v163_v15 = vsel %vm162_vm2, %v157_v14, %v159_v9 }
  0x7e   :  { %v169_v20 = vsel %vm71_vm0, %v163_v15, 0 }
  0x80   :  { %v61_v17 = vpop.permute.xlu0 %60  ;;  %v335_v36 = vpop.permute.xlu2 %334 }
  0x81   :  { %v65_v18 = vsel %vm64_vm3, %v59_v12, %v61_v17  ;;  %v66_v19 = vsel %vm64_vm3, %v61_v17, %v63_v11  ;;  %v667_v11 = vld [vmem:[%s798_s2 + $0x40] sm:$0xff] }
  0x82   :  { %v73_v22 = vsel %vm71_vm0, %v65_v18, 0  ;;  %v76_v23 = vsel %vm71_vm0, %v66_v19, 0 }
  0x83   :  { %85 = vmatpush.bf16.msra.mxu0 %v73_v22  ;;  %99 = vmatpush.bf16.msra.mxu1 %v76_v23 }
  0x84   :  { %v217_v25 = vpop.permute.xlu1 %216 }
  0x85   :  { %v222_v27 = vsel %vm220_vm4, %v217_v25, %v219_v13 }
  0x86   :  { %595 = vmatmul.msk.bf16.vlgmr.msra.gmra.mxu0 %vm67_vm1, %v660_v24  ;;  %596 = vmatmul.msk.bf16.vlgmr.msra.gmra.mxu1 %vm67_vm1, %v660_v24  ;;  %v230_v28 = vsel %vm71_vm0, %v222_v27, 0 }
  0x87   :  { %181 = vmatpush.bf16.msrb.mxu0 %v169_v20  ;;  %195 = vmatpush.bf16.msrb.mxu1 %v172_v21 }
  0x88   :  { %253 = vmatpush.bf16.msrb.mxu3 %v230_v28  ;;  %v215_v30 = vpop.permute.xlu0 %214  ;;  %v393_v46 = vpop.permute.xlu2 %392 }
  0x89   :  { %v221_v31 = vsel %vm220_vm4, %v215_v30, %v217_v25 }
  0x8a   :  { %v227_v32 = vsel %vm71_vm0, %v221_v31, 0 }
  0x8b   :  { %618 = vmatmul.msk.bf16.vlgmr.msrb.gmra.mxu3 %vm67_vm1, %v662_v29  ;;  %239 = vmatpush.bf16.msrb.mxu2 %v227_v32 }
  0x8c   :  { %v275_v33 = vpop.permute.xlu1 %274 }
  0x8d   :  { %v280_v34 = vsel %vm278_vm5, %v275_v33, %v277_v26  ;;  %v143_v13 = vpop.f32.mrf.mxu3 }
  0x8e   :  { %617 = vmatmul.msk.bf16.vlgmr.msrb.gmra.mxu2 %vm67_vm1, %v662_v29  ;;  %v288_v35 = vsel %vm71_vm0, %v280_v34, 0  ;;  %v129_v12 = vpop.f32.mrf.mxu2 }
  0x8f   :  { %311 = vmatpush.bf16.msra.mxu1 %v288_v35 }
  0x90   :  { %v273_v37 = vpop.permute.xlu0 %272  ;;  %v451_v56 = vpop.permute.xlu2 %450 }
  0x91   :  { %v279_v38 = vsel %vm278_vm5, %v273_v37, %v275_v33 }
  0x92   :  { %v285_v39 = vsel %vm71_vm0, %v279_v38, 0 }
  0x93   :  { %297 = vmatpush.bf16.msra.mxu0 %v285_v39 }
  0x94   :  { %v333_v41 = vpop.permute.xlu1 %332 }
  0x95   :  { %v338_v42 = vsel %vm336_vm6, %v333_v41, %v335_v36  ;;  %v145_v19 = vpop.f32.mrf.mxu3 }
  0x96   :  { %609 = vmatmul.msk.bf16.vlgmr.msrb.gmra.mxu0 %vm67_vm1, %v661_v40  ;;  %610 = vmatmul.msk.bf16.vlgmr.msrb.gmra.mxu1 %vm67_vm1, %v661_v40  ;;  %v346_v43 = vsel %vm71_vm0, %v338_v42, 0  ;;  %v131_v18 = vpop.f32.mrf.mxu2 }
  0x97   :  { %369 = vmatpush.bf16.msra.mxu3 %v346_v43 }
  0x98   :  { %v331_v45 = vpop.permute.xlu0 %330  ;;  %v509_v3 = vpop.permute.xlu2 %508 }
  0x99   :  { %v337_v47 = vsel %vm336_vm6, %v331_v45, %v333_v41 }
  0x9a   :  { %v343_v48 = vsel %vm71_vm0, %v337_v47, 0 }
  0x9b   :  { %634 = vmatmul.msk.bf16.vlgmr.msra.gmra.mxu3 %vm67_vm1, %v664_v44  ;;  %355 = vmatpush.bf16.msra.mxu2 %v343_v48 }
  0x9c   :  { %v391_v49 = vpop.permute.xlu1 %390 }
  0x9d   :  { %v396_v50 = vsel %vm394_vm7, %v391_v49, %v393_v46 }
  0x9e   :  { %633 = vmatmul.msk.bf16.vlgmr.msra.gmra.mxu2 %vm67_vm1, %v664_v44  ;;  %v404_v51 = vsel %vm71_vm0, %v396_v50, 0 }
  0x9f   :  { %427 = vmatpush.bf16.msrb.mxu1 %v404_v51 }
  0xa0   :  { %v389_v52 = vpop.permute.xlu0 %388 }
  0xa1   :  { %v395_v53 = vsel %vm394_vm7, %v389_v52, %v391_v49 }
  0xa2   :  { %v401_v54 = vsel %vm71_vm0, %v395_v53, 0 }
  0xa3   :  { %413 = vmatpush.bf16.msrb.mxu0 %v401_v54 }
  0xa4   :  { %v449_v57 = vpop.permute.xlu1 %448 }
  0xa5   :  { %v454_v58 = vsel %vm452_vm8, %v449_v57, %v451_v56 }
  0xa6   :  { %625 = vmatmul.msk.bf16.vlgmr.msra.gmra.mxu0 %vm67_vm1, %v663_v55  ;;  %626 = vmatmul.msk.bf16.vlgmr.msra.gmra.mxu1 %vm67_vm1, %v663_v55  ;;  %v462_v59 = vsel %vm71_vm0, %v454_v58, 0 }
  0xa7   :  { %485 = vmatpush.bf16.msrb.mxu3 %v462_v59 }
  0xa8   :  { %v447_v0 = vpop.permute.xlu0 %446 }
  0xa9   :  { %v453_v1 = vsel %vm452_vm8, %v447_v0, %v449_v57 }
  0xaa   :  { %v459_v2 = vsel %vm71_vm0, %v453_v1, 0 }
  0xab   :  { %650 = vmatmul.msk.bf16.vlgmr.msrb.gmra.mxu3 %vm67_vm1, %v666_v60  ;;  %471 = vmatpush.bf16.msrb.mxu2 %v459_v2 }
  0xac   :  { %v507_v4 = vpop.permute.xlu1 %506 }
  0xad   :  { %v512_v5 = vsel %vm510_vm9, %v507_v4, %v509_v3 }
  0xae   :  { %649 = vmatmul.msk.bf16.vlgmr.msrb.gmra.mxu2 %vm67_vm1, %v666_v60  ;;  %v520_v6 = vsel %vm71_vm0, %v512_v5, 0 }
  0xaf   :  { %543 = vmatpush.bf16.msra.mxu1 %v520_v6 }
  0xb0   :  { %v505_v7 = vpop.permute.xlu0 %504 }
  0xb1   :  { %v511_v8 = vsel %vm510_vm9, %v505_v7, %v507_v4 }
  0xb2   :  { %v517_v9 = vsel %vm71_vm0, %v511_v8, 0 }
  0xb3   :  { %529 = vmatpush.bf16.msra.mxu0 %v517_v9 }
  0xb6   :  { %641 = vmatmul.msk.bf16.vlgmr.msrb.gmra.mxu0 %vm67_vm1, %v665_v10  ;;  %642 = vmatmul.msk.bf16.vlgmr.msrb.gmra.mxu1 %vm67_vm1, %v665_v10 }
  0xb8   :  { %v559_v0 = vpop.permute.xlu0 %558 }
  0xc6   :  { %657 = vmatmul.msk.bf16.vlgmr.msra.gmra.mxu0 %vm67_vm1, %v667_v11  ;;  %658 = vmatmul.msk.bf16.vlgmr.msra.gmra.mxu1 %vm67_vm1, %v667_v11 }
 0x103   :  { %v87_v14 = vpop.f32.mrf.mxu0  ;;  %v101_v15 = vpop.f32.mrf.mxu1 }
 0x104   :  { %v130_v34 = vadd.f32 %v129_v12, %v87_v14  ;;  %v144_v35 = vadd.f32 %v143_v13, %v101_v15 }
 0x10b   :  { %v89_v16 = vpop.f32.mrf.mxu0  ;;  %v103_v17 = vpop.f32.mrf.mxu1 }
 0x10c   :  { %v132_v44 = vadd.f32 %v131_v18, %v89_v16  ;;  %v146_v45 = vadd.f32 %v145_v19, %v103_v17  ;;  %v564_v18 = vpop.permute.xlu1 %563 }
 0x10e   :  { %v255_v23 = vpop.f32.mrf.mxu3 }
 0x111   :  { %v241_v22 = vpop.f32.mrf.mxu2 }
 0x113   :  { %v183_v20 = vpop.f32.mrf.mxu0  ;;  %v197_v21 = vpop.f32.mrf.mxu1 }
 0x114   :  { %v202_v36 = vadd.f32 %v183_v20, %v130_v34  ;;  %v203_v37 = vadd.f32 %v197_v21, %v144_v35 }
 0x116   :  { %v257_v27 = vpop.f32.mrf.mxu3  ;;  %v260_v42 = vadd.f32 %v241_v22, %v202_v36  ;;  %v261_v43 = vadd.f32 %v255_v23, %v203_v37 }
 0x119   :  { %v243_v26 = vpop.f32.mrf.mxu2 }
 0x11b   :  { %v185_v24 = vpop.f32.mrf.mxu0  ;;  %v199_v25 = vpop.f32.mrf.mxu1 }
 0x11c   :  { %v204_v48 = vadd.f32 %v185_v24, %v132_v44  ;;  %v205_v49 = vadd.f32 %v199_v25, %v146_v45 }
 0x11e   :  { %v371_v31 = vpop.f32.mrf.mxu3  ;;  %v262_v56 = vadd.f32 %v243_v26, %v204_v48  ;;  %v263_v57 = vadd.f32 %v257_v27, %v205_v49 }
 0x121   :  { %v357_v30 = vpop.f32.mrf.mxu2 }
 0x123   :  { %v299_v28 = vpop.f32.mrf.mxu0  ;;  %v313_v29 = vpop.f32.mrf.mxu1 }
 0x124   :  { %v318_v46 = vadd.f32 %v299_v28, %v260_v42  ;;  %v319_v47 = vadd.f32 %v313_v29, %v261_v43 }
 0x126   :  { %v373_v39 = vpop.f32.mrf.mxu3  ;;  %v376_v52 = vadd.f32 %v357_v30, %v318_v46  ;;  %v377_v53 = vadd.f32 %v371_v31, %v319_v47 }
 0x129   :  { %v359_v38 = vpop.f32.mrf.mxu2 }
 0x12b   :  { %v301_v32 = vpop.f32.mrf.mxu0  ;;  %v315_v33 = vpop.f32.mrf.mxu1 }
 0x12c   :  { %v320_v60 = vadd.f32 %v301_v32, %v262_v56  ;;  %v321_v61 = vadd.f32 %v315_v33, %v263_v57 }
 0x12e   :  { %v487_v55 = vpop.f32.mrf.mxu3  ;;  %v378_v3 = vadd.f32 %v359_v38, %v320_v60  ;;  %v379_v4 = vadd.f32 %v373_v39, %v321_v61 }
 0x131   :  { %v473_v54 = vpop.f32.mrf.mxu2 }
 0x133   :  { %v415_v40 = vpop.f32.mrf.mxu0  ;;  %v429_v41 = vpop.f32.mrf.mxu1 }
 0x134   :  { %v434_v58 = vadd.f32 %v415_v40, %v376_v52  ;;  %v435_v59 = vadd.f32 %v429_v41, %v377_v53 }
 0x136   :  { %v492_v62 = vadd.f32 %v473_v54, %v434_v58  ;;  %v493_v63 = vadd.f32 %v487_v55, %v435_v59  ;;  %v489_v12 = vpop.f32.mrf.mxu3 }
 0x139   :  { %v475_v11 = vpop.f32.mrf.mxu2 }
 0x13b   :  { %v417_v50 = vpop.f32.mrf.mxu0  ;;  %v431_v51 = vpop.f32.mrf.mxu1 }
 0x13c   :  { %v436_v7 = vadd.f32 %v417_v50, %v378_v3  ;;  %v437_v8 = vadd.f32 %v431_v51, %v379_v4 }
 0x13e   :  { %v494_v15 = vadd.f32 %v475_v11, %v436_v7  ;;  %v495_v16 = vadd.f32 %v489_v12, %v437_v8 }
 0x143   :  { %v531_v1 = vpop.f32.mrf.mxu0  ;;  %v545_v2 = vpop.f32.mrf.mxu1 }
 0x144   :  { %v550_v5 = vadd.f32 %v531_v1, %v492_v62  ;;  %v551_v6 = vadd.f32 %v545_v2, %v493_v63 }
 0x146   :  { %v566_v9 = vadd.f32 %v559_v0, %v550_v5  ;;  %v567_v10 = vadd.f32 %v559_v0, %v551_v6 }
 0x148   :  { %v570_v13 = vmax.f32 %v566_v9, 0.0  ;;  %v571_v14 = vmax.f32 %v567_v10, 0.0 }
 0x14a   :  { %v574_v17 = vpack.c.bf16 %v571_v14, %v570_v13 }
 0x14b   :  { %v533_v19 = vpop.f32.mrf.mxu0  ;;  %v547_v20 = vpop.f32.mrf.mxu1 }
 0x14c   :  { %576 = vst [vmem:[%s800_s4] sm:$0xff] %v574_v17  ;;  %v552_v21 = vadd.f32 %v533_v19, %v494_v15  ;;  %v553_v22 = vadd.f32 %v547_v20, %v495_v16 }
 0x14e   :  { %v568_v23 = vadd.f32 %v564_v18, %v552_v21  ;;  %v569_v24 = vadd.f32 %v564_v18, %v553_v22 }
 0x150   :  { %v572_v25 = vmax.f32 %v568_v23, 0.0  ;;  %v573_v26 = vmax.f32 %v569_v24, 0.0 }
 0x152   :  { %v575_v27 = vpack.c.bf16 %v573_v26, %v572_v25 }
 0x154   :  { %577 = vst [vmem:[%s800_s4 + $0x8] sm:$0xff] %v575_v27 }

// kernel: _lambda_.19
= control target key start
LH: loop header
LB: loop body
LE: loop exit
PB: predicated region body
PF: predicated region fallthrough
CT: control target
= control target key end

     0   :  { %s740_s23 = smov 127   ;;  %s743_s24 = smov 117   ;;  %vm150_vm0 = vcmask 130048   ;;  %vm232_vm1 = vcmask 1031168   ;;  %vm145_vm2 = vcmask 1039360   ;;  %vm286_vm3 = vcmask 965632   ;;  %s845_s0 = inlined_call_operand.vmem [shape: bf16[16,384], index: 0, kind: input, shape index: {}, may-alias: {0,1}]   ;;  %s846_s1 = inlined_call_operand.vmem [shape: bf16[16,384], index: 1, kind: input, shape index: {}, may-alias: {0,1}]   ;;  %s847_s2 = inlined_call_operand.vmem [shape: bf16[9,16,16], index: 2, kind: input, shape index: {}]   ;;  %s848_s3 = inlined_call_operand.vmem [shape: f32[16,1], index: 3, kind: input, shape index: {}]   ;;  %s849_s4 = inlined_call_operand.vmem [shape: bf16[16,256], index: 4, kind: output, shape index: {}]  }
   0x1   :  { %v633_v0 = vld [vmem:[%s846_s1 + $0x8] sm:$0xf]  ;;  %v634_v1 = vld [vmem:[%s846_s1 + $0x14] sm:$0xf]  ;;  %v41_v2 = vld [vmem:[%s845_s0] sm:$0xff]  ;;  %s741_s1 = smov 126  }
   0x2   :  { %71 = vst [vmem:[#allocation3] sm:$0xf] %v633_v0  ;;  %v43_v3 = vld [vmem:[%s845_s0 + $0xc] sm:$0xff]  ;;  %s742_s0 = smov 118   ;;  %s744_s25 = smov 116   ;;  %v720_v11 = vld [vmem:[%s847_s2] sm:$0xff] }
   0x3   :  { %73 = vst [vmem:[#allocation3 + $0x4] sm:$0xf] %v634_v1  ;;  %s745_s26 = smov 108   ;;  %s746_s27 = smov 107   ;;  %v721_v23 = vld [vmem:[%s847_s2 + $0x8] sm:$0xff]  ;;  %v723_v27 = vld [vmem:[%s847_s2 + $0x18] sm:$0xff] }
   0x4   :  { %42 = vst [vmem:[#allocation2] sm:$0xff] %v41_v2  ;;  %s747_s28 = smov 106   ;;  %vm340_vm4 = vcmask 957440   ;;  %v722_v35 = vld [vmem:[%s847_s2 + $0x10] sm:$0xff]  ;;  %vm394_vm5 = vcmask 949248   ;;  %v725_v38 = vld [vmem:[%s847_s2 + $0x28] sm:$0xff] }
   0x5   :  { %44 = vst [vmem:[#allocation2 + $0x8] sm:$0xff] %v43_v3  ;;  %vm448_vm6 = vcmask 883712   ;;  %v724_v46 = vld [vmem:[%s847_s2 + $0x20] sm:$0xff]  ;;  %vm502_vm7 = vcmask 875520   ;;  %v597_v50 = vld [vmem:[%s848_s3 + $0x8] sm:$0xff]  ;;  %v727_v52 = vld [vmem:[%s847_s2 + $0x38] sm:$0xff] }
   0x6   :  { %v596_v49 = vld [vmem:[%s848_s3] sm:$0xff]  ;;  %v748_v53 = vmov 0   ;;  %vm556_vm8 = vcmask 867328   ;;  %v726_v61 = vld [vmem:[%s847_s2 + $0x30] sm:$0xff] }
   0x7   :  { %738 = vset.pattern.permute.xlu0 %v748_v53  ;;  %739 = vset.pattern.permute.xlu1 %v748_v53  ;;  %v728_v62 = vld [vmem:[%s847_s2 + $0x40] sm:$0xff] }
   0xa   :  { %v719_v4 = vld [vmem:[#allocation3] sm:$0xff] }
   0xb   :  { %v637_v5 = vld [vmem:[#allocation2] sm:$0xf]  ;;  %v717_v6 = vld [vmem:[#allocation2 + $0x4] sm:$0xf]  ;;  %143 = vrot.lane.b32.xlu1 %v719_v4, %s740_s23 }
   0xc   :  { %v718_v7 = vld [vmem:[#allocation2 + $0x4] sm:$0xf0]  ;;  %v639_v8 = vld [vmem:[#allocation2 + $0x8] sm:$0xf0] }
   0xd   :  { %v638_v9 = vor.u32 %v718_v7, %v637_v5  ;;  %v642_v10 = vor.u32 %v717_v6, %v639_v8 }
   0xf   :  { %139 = vrot.lane.b32.xlu0 %v638_v9, %s740_s23  ;;  %228 = vrot.lane.b32.xlu2 %v642_v10, %s741_s1 }
  0x10   :  { %197 = vmatpush.bf16.msra.mxu2 %v638_v9  ;;  %211 = vmatpush.bf16.msra.mxu3 %v642_v10 }
  0x13   :  { %226 = vrot.lane.b32.xlu1 %v638_v9, %s741_s1  ;;  %659 = vmatmul.msk.bf16.vlgmr.msra.gmra.mxu2 %vm150_vm0, %v720_v11 }
  0x14   :  { %660 = vmatmul.msk.bf16.vlgmr.msra.gmra.mxu3 %vm150_vm0, %v720_v11 }
  0x17   :  { %141 = vrot.lane.b32.xlu0 %v642_v10, %s740_s23  ;;  %230 = vrot.lane.b32.xlu2 %v719_v4, %s741_s1 }
  0x1b   :  { %282 = vrot.lane.b32.xlu1 %v642_v10, %s742_s0 }
  0x1f   :  { %280 = vrot.lane.b32.xlu0 %v638_v9, %s742_s0  ;;  %284 = vrot.lane.b32.xlu2 %v719_v4, %s742_s0 }
  0x23   :  { %336 = vrot.lane.b32.xlu1 %v642_v10, %s743_s24 }
  0x27   :  { %334 = vrot.lane.b32.xlu0 %v638_v9, %s743_s24  ;;  %338 = vrot.lane.b32.xlu2 %v719_v4, %s743_s24 }
  0x2b   :  { %390 = vrot.lane.b32.xlu1 %v642_v10, %s744_s25 }
  0x2f   :  { %388 = vrot.lane.b32.xlu0 %v638_v9, %s744_s25  ;;  %392 = vrot.lane.b32.xlu2 %v719_v4, %s744_s25 }
  0x33   :  { %444 = vrot.lane.b32.xlu1 %v642_v10, %s745_s26 }
  0x37   :  { %442 = vrot.lane.b32.xlu0 %v638_v9, %s745_s26  ;;  %446 = vrot.lane.b32.xlu2 %v719_v4, %s745_s26 }
  0x3b   :  { %498 = vrot.lane.b32.xlu1 %v642_v10, %s746_s27 }
  0x3f   :  { %496 = vrot.lane.b32.xlu0 %v638_v9, %s746_s27  ;;  %500 = vrot.lane.b32.xlu2 %v719_v4, %s746_s27 }
  0x43   :  { %552 = vrot.lane.b32.xlu1 %v642_v10, %s747_s28 }
  0x47   :  { %550 = vrot.lane.b32.xlu0 %v638_v9, %s747_s28  ;;  %554 = vrot.lane.b32.xlu2 %v719_v4, %s747_s28 }
  0x4b   :  { %605 = vperm.xlu1 %739, %v597_v50  }
  0x4f   :  { %600 = vperm.xlu0 %738, %v596_v49  }
  0x69   :  { %v229_v12 = vpop.permute.xlu2 %228 }
  0x71   :  { %v231_v13 = vpop.permute.xlu2 %230 }
  0x72   :  { %v234_v20 = vsel %vm232_vm1, %v229_v12, %v231_v13 }
  0x79   :  { %v285_v16 = vpop.permute.xlu2 %284 }
  0x7d   :  { %v144_v14 = vpop.permute.xlu1 %143 }
  0x81   :  { %v140_v15 = vpop.permute.xlu0 %139  ;;  %v339_v25 = vpop.permute.xlu2 %338 }
  0x85   :  { %v227_v17 = vpop.permute.xlu1 %226 }
  0x86   :  { %v233_v19 = vsel %vm232_vm1, %v227_v17, %v229_v12 }
  0x89   :  { %v142_v18 = vpop.permute.xlu0 %141  ;;  %v393_v32 = vpop.permute.xlu2 %392 }
  0x8a   :  { %v146_v21 = vsel %vm145_vm2, %v140_v15, %v142_v18  ;;  %v147_v22 = vsel %vm145_vm2, %v142_v18, %v144_v14 }
  0x8b   :  { %161 = vmatpush.bf16.msra.mxu0 %v146_v21  ;;  %175 = vmatpush.bf16.msra.mxu1 %v147_v22 }
  0x8d   :  { %v283_v24 = vpop.permute.xlu1 %282 }
  0x8e   :  { %653 = vmatmul.msk.bf16.vlgmr.msra.gmra.mxu0 %vm150_vm0, %v721_v23  ;;  %654 = vmatmul.msk.bf16.vlgmr.msra.gmra.mxu1 %vm150_vm0, %v721_v23  ;;  %v288_v26 = vsel %vm286_vm3, %v283_v24, %v285_v16 }
  0x8f   :  { %247 = vmatpush.bf16.msrb.mxu0 %v233_v19  ;;  %261 = vmatpush.bf16.msrb.mxu1 %v234_v20 }
  0x90   :  { %315 = vmatpush.bf16.msrb.mxu3 %v288_v26 }
  0x91   :  { %v281_v28 = vpop.permute.xlu0 %280  ;;  %v447_v41 = vpop.permute.xlu2 %446 }
  0x92   :  { %v287_v29 = vsel %vm286_vm3, %v281_v28, %v283_v24 }
  0x93   :  { %301 = vmatpush.bf16.msrb.mxu2 %v287_v29  ;;  %676 = vmatmul.msk.bf16.vlgmr.msrb.gmra.mxu3 %vm150_vm0, %v723_v27 }
  0x95   :  { %v337_v30 = vpop.permute.xlu1 %336 }
  0x96   :  { %675 = vmatmul.msk.bf16.vlgmr.msrb.gmra.mxu2 %vm150_vm0, %v723_v27  ;;  %v342_v31 = vsel %vm340_vm4, %v337_v30, %v339_v25  ;;  %v199_v63 = vpop.f32.mrf.mxu2 }
  0x97   :  { %369 = vmatpush.bf16.msra.mxu1 %v342_v31  ;;  %v213_v0 = vpop.f32.mrf.mxu3 }
  0x99   :  { %v335_v33 = vpop.permute.xlu0 %334  ;;  %v501_v47 = vpop.permute.xlu2 %500 }
  0x9a   :  { %v341_v34 = vsel %vm340_vm4, %v335_v33, %v337_v30 }
  0x9b   :  { %355 = vmatpush.bf16.msra.mxu0 %v341_v34 }
  0x9d   :  { %v391_v36 = vpop.permute.xlu1 %390 }
  0x9e   :  { %667 = vmatmul.msk.bf16.vlgmr.msrb.gmra.mxu0 %vm150_vm0, %v722_v35  ;;  %668 = vmatmul.msk.bf16.vlgmr.msrb.gmra.mxu1 %vm150_vm0, %v722_v35  ;;  %v396_v37 = vsel %vm394_vm5, %v391_v36, %v393_v32  ;;  %v201_v5 = vpop.f32.mrf.mxu2 }
  0x9f   :  { %423 = vmatpush.bf16.msra.mxu3 %v396_v37  ;;  %v215_v6 = vpop.f32.mrf.mxu3 }
  0xa1   :  { %v389_v39 = vpop.permute.xlu0 %388  ;;  %v555_v56 = vpop.permute.xlu2 %554 }
  0xa2   :  { %v395_v40 = vsel %vm394_vm5, %v389_v39, %v391_v36 }
  0xa3   :  { %409 = vmatpush.bf16.msra.mxu2 %v395_v40  ;;  %692 = vmatmul.msk.bf16.vlgmr.msra.gmra.mxu3 %vm150_vm0, %v725_v38 }
  0xa5   :  { %v445_v42 = vpop.permute.xlu1 %444 }
  0xa6   :  { %691 = vmatmul.msk.bf16.vlgmr.msra.gmra.mxu2 %vm150_vm0, %v725_v38  ;;  %v450_v43 = vsel %vm448_vm6, %v445_v42, %v447_v41 }
  0xa7   :  { %477 = vmatpush.bf16.msrb.mxu1 %v450_v43 }
  0xa9   :  { %v443_v44 = vpop.permute.xlu0 %442 }
  0xaa   :  { %v449_v45 = vsel %vm448_vm6, %v443_v44, %v445_v42 }
  0xab   :  { %463 = vmatpush.bf16.msrb.mxu0 %v449_v45 }
  0xad   :  { %v499_v48 = vpop.permute.xlu1 %498 }
  0xae   :  { %683 = vmatmul.msk.bf16.vlgmr.msra.gmra.mxu0 %vm150_vm0, %v724_v46  ;;  %684 = vmatmul.msk.bf16.vlgmr.msra.gmra.mxu1 %vm150_vm0, %v724_v46  ;;  %v504_v51 = vsel %vm502_vm7, %v499_v48, %v501_v47 }
  0xaf   :  { %531 = vmatpush.bf16.msrb.mxu3 %v504_v51 }
  0xb1   :  { %v497_v54 = vpop.permute.xlu0 %496 }
  0xb2   :  { %v503_v55 = vsel %vm502_vm7, %v497_v54, %v499_v48 }
  0xb3   :  { %517 = vmatpush.bf16.msrb.mxu2 %v503_v55  ;;  %708 = vmatmul.msk.bf16.vlgmr.msrb.gmra.mxu3 %vm150_vm0, %v727_v52 }
  0xb5   :  { %v553_v57 = vpop.permute.xlu1 %552 }
  0xb6   :  { %707 = vmatmul.msk.bf16.vlgmr.msrb.gmra.mxu2 %vm150_vm0, %v727_v52  ;;  %v558_v58 = vsel %vm556_vm8, %v553_v57, %v555_v56 }
  0xb7   :  { %585 = vmatpush.bf16.msra.mxu1 %v558_v58 }
  0xb9   :  { %v551_v59 = vpop.permute.xlu0 %550 }
  0xba   :  { %v557_v60 = vsel %vm556_vm8, %v551_v59, %v553_v57 }
  0xbb   :  { %571 = vmatpush.bf16.msra.mxu0 %v557_v60 }
  0xbe   :  { %699 = vmatmul.msk.bf16.vlgmr.msrb.gmra.mxu0 %vm150_vm0, %v726_v61  ;;  %700 = vmatmul.msk.bf16.vlgmr.msrb.gmra.mxu1 %vm150_vm0, %v726_v61 }
  0xc1   :  { %v601_v51 = vpop.permute.xlu0 %600 }
  0xce   :  { %715 = vmatmul.msk.bf16.vlgmr.msra.gmra.mxu0 %vm150_vm0, %v728_v62  ;;  %716 = vmatmul.msk.bf16.vlgmr.msra.gmra.mxu1 %vm150_vm0, %v728_v62 }
 0x10b   :  { %v163_v1 = vpop.f32.mrf.mxu0  ;;  %v177_v2 = vpop.f32.mrf.mxu1 }
 0x10c   :  { %v200_v21 = vadd.f32 %v199_v63, %v163_v1  ;;  %v214_v22 = vadd.f32 %v213_v0, %v177_v2 }
 0x113   :  { %v165_v3 = vpop.f32.mrf.mxu0  ;;  %v179_v4 = vpop.f32.mrf.mxu1 }
 0x114   :  { %v202_v31 = vadd.f32 %v201_v5, %v165_v3  ;;  %v216_v32 = vadd.f32 %v215_v6, %v179_v4  ;;  %v606_v5 = vpop.permute.xlu1 %605 }
 0x116   :  { %v317_v10 = vpop.f32.mrf.mxu3 }
 0x119   :  { %v303_v9 = vpop.f32.mrf.mxu2 }
 0x11b   :  { %v249_v7 = vpop.f32.mrf.mxu0  ;;  %v263_v8 = vpop.f32.mrf.mxu1 }
 0x11c   :  { %v268_v23 = vadd.f32 %v249_v7, %v200_v21  ;;  %v269_v24 = vadd.f32 %v263_v8, %v214_v22 }
 0x11e   :  { %v319_v14 = vpop.f32.mrf.mxu3  ;;  %v322_v29 = vadd.f32 %v303_v9, %v268_v23  ;;  %v323_v30 = vadd.f32 %v317_v10, %v269_v24 }
 0x121   :  { %v305_v13 = vpop.f32.mrf.mxu2 }
 0x123   :  { %v251_v11 = vpop.f32.mrf.mxu0  ;;  %v265_v12 = vpop.f32.mrf.mxu1 }
 0x124   :  { %v270_v35 = vadd.f32 %v251_v11, %v202_v31  ;;  %v271_v36 = vadd.f32 %v265_v12, %v216_v32 }
 0x126   :  { %v425_v18 = vpop.f32.mrf.mxu3  ;;  %v324_v43 = vadd.f32 %v305_v13, %v270_v35  ;;  %v325_v44 = vadd.f32 %v319_v14, %v271_v36 }
 0x129   :  { %v411_v17 = vpop.f32.mrf.mxu2 }
 0x12b   :  { %v357_v15 = vpop.f32.mrf.mxu0  ;;  %v371_v16 = vpop.f32.mrf.mxu1 }
 0x12c   :  { %v376_v33 = vadd.f32 %v357_v15, %v322_v29  ;;  %v377_v34 = vadd.f32 %v371_v16, %v323_v30 }
 0x12e   :  { %v427_v26 = vpop.f32.mrf.mxu3  ;;  %v430_v39 = vadd.f32 %v411_v17, %v376_v33  ;;  %v431_v40 = vadd.f32 %v425_v18, %v377_v34 }
 0x131   :  { %v413_v25 = vpop.f32.mrf.mxu2 }
 0x133   :  { %v359_v19 = vpop.f32.mrf.mxu0  ;;  %v373_v20 = vpop.f32.mrf.mxu1 }
 0x134   :  { %v378_v47 = vadd.f32 %v359_v19, %v324_v43  ;;  %v379_v48 = vadd.f32 %v373_v20, %v325_v44 }
 0x136   :  { %v533_v42 = vpop.f32.mrf.mxu3  ;;  %v432_v54 = vadd.f32 %v413_v25, %v378_v47  ;;  %v433_v55 = vadd.f32 %v427_v26, %v379_v48 }
 0x139   :  { %v519_v41 = vpop.f32.mrf.mxu2 }
 0x13b   :  { %v465_v27 = vpop.f32.mrf.mxu0  ;;  %v479_v28 = vpop.f32.mrf.mxu1 }
 0x13c   :  { %v484_v45 = vadd.f32 %v465_v27, %v430_v39  ;;  %v485_v46 = vadd.f32 %v479_v28, %v431_v40 }
 0x13e   :  { %v538_v49 = vadd.f32 %v519_v41, %v484_v45  ;;  %v539_v50 = vadd.f32 %v533_v42, %v485_v46  ;;  %v535_v63 = vpop.f32.mrf.mxu3 }
 0x141   :  { %v521_v62 = vpop.f32.mrf.mxu2 }
 0x143   :  { %v467_v37 = vpop.f32.mrf.mxu0  ;;  %v481_v38 = vpop.f32.mrf.mxu1 }
 0x144   :  { %v486_v58 = vadd.f32 %v467_v37, %v432_v54  ;;  %v487_v59 = vadd.f32 %v481_v38, %v433_v55 }
 0x146   :  { %v540_v2 = vadd.f32 %v521_v62, %v486_v58  ;;  %v541_v3 = vadd.f32 %v535_v63, %v487_v59 }
 0x14b   :  { %v573_v52 = vpop.f32.mrf.mxu0  ;;  %v587_v53 = vpop.f32.mrf.mxu1 }
 0x14c   :  { %v592_v56 = vadd.f32 %v573_v52, %v538_v49  ;;  %v593_v57 = vadd.f32 %v587_v53, %v539_v50 }
 0x14e   :  { %v608_v60 = vadd.f32 %v601_v51, %v592_v56  ;;  %v609_v61 = vadd.f32 %v601_v51, %v593_v57 }
 0x150   :  { %v612_v0 = vmax.f32 %v608_v60, 0.0  ;;  %v613_v1 = vmax.f32 %v609_v61, 0.0 }
 0x152   :  { %v616_v4 = vpack.c.bf16 %v613_v1, %v612_v0 }
 0x153   :  { %v575_v6 = vpop.f32.mrf.mxu0  ;;  %v589_v7 = vpop.f32.mrf.mxu1 }
 0x154   :  { %618 = vst [vmem:[%s849_s4] sm:$0xff] %v616_v4  ;;  %v594_v8 = vadd.f32 %v575_v6, %v540_v2  ;;  %v595_v9 = vadd.f32 %v589_v7, %v541_v3 }
 0x156   :  { %v610_v10 = vadd.f32 %v606_v5, %v594_v8  ;;  %v611_v11 = vadd.f32 %v606_v5, %v595_v9 }
 0x158   :  { %v614_v12 = vmax.f32 %v610_v10, 0.0  ;;  %v615_v13 = vmax.f32 %v611_v11, 0.0 }
 0x15a   :  { %v617_v14 = vpack.c.bf16 %v615_v13, %v614_v12 }
 0x15c   :  { %619 = vst [vmem:[%s849_s4 + $0x8] sm:$0xff] %v617_v14 }

// kernel: _lambda_.21
= control target key start
LH: loop header
LB: loop body
LE: loop exit
PB: predicated region body
PF: predicated region fallthrough
CT: control target
= control target key end

     0   :  { %s804_s23 = smov 126   ;;  %s805_s24 = smov 127   ;;  %vm288_vm0 = vcmask 998400   ;;  %vm157_vm1 = vcmask 130048   ;;  %vm154_vm2 = vcmask 1039360   ;;  %vm237_vm3 = vcmask 1031168   ;;  %s940_s0 = inlined_call_operand.vmem [shape: bf16[16,256], index: 0, kind: input, shape index: {}, may-alias: {0,1}]   ;;  %s941_s1 = inlined_call_operand.vmem [shape: bf16[16,256], index: 1, kind: input, shape index: {}, may-alias: {0,1}]   ;;  %s942_s2 = inlined_call_operand.vmem [shape: bf16[9,32,16], index: 2, kind: input, shape index: {}]   ;;  %s943_s3 = inlined_call_operand.vmem [shape: f32[32,1], index: 3, kind: input, shape index: {}]   ;;  %s944_s4 = inlined_call_operand.vmem [shape: bf16[32,128], index: 4, kind: output, shape index: {}]  }
   0x1   :  { %v27_v0 = vld [vmem:[%s940_s0] sm:$0xf]  ;;  %v29_v1 = vld [vmem:[%s940_s0 + $0x8] sm:$0xf]  ;;  %v628_v2 = vld [vmem:[%s941_s1 + $0x4] sm:$0xf] }
   0x2   :  { %28 = vst [vmem:[#allocation2] sm:$0xf] %v27_v0  ;;  %v629_v3 = vld [vmem:[%s941_s1 + $0xc] sm:$0xf]  ;;  %s806_s25 = smov 122   ;;  %s807_s0 = smov 121  }
   0x3   :  { %30 = vst [vmem:[#allocation2 + $0x4] sm:$0xf] %v29_v1  ;;  %s808_s26 = smov 116   ;;  %s809_s1 = smov 115   ;;  %v768_v9 = vld [vmem:[%s942_s2 + $0x30] sm:$0xff]  ;;  %v769_v12 = vld [vmem:[%s942_s2 + $0x38] sm:$0xff] }
   0x4   :  { %78 = vst [vmem:[#allocation3] sm:$0xf] %v628_v2  ;;  %s810_s27 = smov 120   ;;  %s811_s28 = smov 114   ;;  %v765_v17 = vld [vmem:[%s942_s2 + $0x18] sm:$0xff]  ;;  %v764_v18 = vld [vmem:[%s942_s2 + $0x10] sm:$0xff] }
   0x5   :  { %80 = vst [vmem:[#allocation3 + $0x4] sm:$0xf] %v629_v3  ;;  %v766_v19 = vld [vmem:[%s942_s2 + $0x20] sm:$0xff]  ;;  %vm339_vm4 = vcmask 990208   ;;  %vm441_vm5 = vcmask 949248   ;;  %vm492_vm6 = vcmask 941056  }
   0x6   :  { %v762_v29 = vld [vmem:[%s942_s2] sm:$0xff]  ;;  %v767_v31 = vld [vmem:[%s942_s2 + $0x28] sm:$0xff]  ;;  %v776_v32 = vld [vmem:[%s942_s2 + $0x70] sm:$0xff]  ;;  %vm390_vm7 = vcmask 982016   ;;  %vm543_vm8 = vcmask 932864   ;;  %v812_v45 = vmov 0  }
   0x7   :  { %v770_v30 = vld [vmem:[%s942_s2 + $0x40] sm:$0xff]  ;;  %v763_v39 = vld [vmem:[%s942_s2 + $0x8] sm:$0xff]  ;;  %v777_v42 = vld [vmem:[%s942_s2 + $0x78] sm:$0xff]  ;;  %801 = vset.pattern.permute.xlu1 %v812_v45  ;;  %803 = vset.pattern.permute.xlu0 %v812_v45 }
   0x8   :  { %v771_v40 = vld [vmem:[%s942_s2 + $0x48] sm:$0xff]  ;;  %v774_v41 = vld [vmem:[%s942_s2 + $0x60] sm:$0xff]  ;;  %v577_v44 = vld [vmem:[%s943_s3 + $0x10] sm:$0xff]  ;;  %802 = vset.pattern.permute.xlu2 %v812_v45 }
   0x9   :  { %v575_v43 = vld [vmem:[%s943_s3] sm:$0xff]  ;;  %v576_v46 = vld [vmem:[%s943_s3 + $0x8] sm:$0xff]  ;;  %v578_v47 = vld [vmem:[%s943_s3 + $0x18] sm:$0xff] }
   0xa   :  { %v760_v4 = vld [vmem:[#allocation2] sm:$0xff]  ;;  %v772_v48 = vld [vmem:[%s942_s2 + $0x50] sm:$0xff]  ;;  %v778_v49 = vld [vmem:[%s942_s2 + $0x80] sm:$0xff] }
   0xb   :  { %233 = vrot.lane.b32.xlu1 %v760_v4, %s804_s23  ;;  %150 = vrot.lane.b32.xlu0 %v760_v4, %s805_s24  ;;  %v775_v50 = vld [vmem:[%s942_s2 + $0x68] sm:$0xff]  ;;  %v773_v51 = vld [vmem:[%s942_s2 + $0x58] sm:$0xff] }
   0xc   :  { %284 = vrot.lane.b32.xlu2 %v760_v4, %s806_s25  ;;  %v761_v5 = vld [vmem:[#allocation3] sm:$0xff]  ;;  %v779_v52 = vld [vmem:[%s942_s2 + $0x88] sm:$0xff] }
  0x13   :  { %235 = vrot.lane.b32.xlu1 %v761_v5, %s804_s23  ;;  %152 = vrot.lane.b32.xlu0 %v761_v5, %s805_s24 }
  0x14   :  { %286 = vrot.lane.b32.xlu2 %v761_v5, %s806_s25 }
  0x1b   :  { %337 = vrot.lane.b32.xlu1 %v761_v5, %s807_s0  ;;  %335 = vrot.lane.b32.xlu0 %v760_v4, %s807_s0 }
  0x1c   :  { %437 = vrot.lane.b32.xlu2 %v760_v4, %s808_s26 }
  0x23   :  { %488 = vrot.lane.b32.xlu1 %v760_v4, %s809_s1  ;;  %439 = vrot.lane.b32.xlu0 %v761_v5, %s808_s26 }
  0x24   :  { %490 = vrot.lane.b32.xlu2 %v761_v5, %s809_s1 }
  0x2b   :  { %388 = vrot.lane.b32.xlu1 %v761_v5, %s810_s27  ;;  %386 = vrot.lane.b32.xlu0 %v760_v4, %s810_s27 }
  0x2c   :  { %539 = vrot.lane.b32.xlu2 %v760_v4, %s811_s28 }
  0x33   :  { %541 = vrot.lane.b32.xlu0 %v761_v5, %s811_s28  ;;  %581 = vperm.xlu1 %801, %v575_v43  }
  0x34   :  { %586 = vperm.xlu2 %802, %v576_v46  }
  0x3b   :  { %591 = vperm.xlu0 %803, %v577_v44   ;;  %596 = vperm.xlu1 %801, %v578_v47  }
  0x66   :  { %v285_v6 = vpop.permute.xlu2 %284 }
  0x6e   :  { %v287_v7 = vpop.permute.xlu2 %286 }
  0x6f   :  { %v289_v8 = vsel %vm288_vm0, %v285_v6, %v287_v7 }
  0x70   :  { %304 = vmatpush.bf16.msra.mxu3 %v289_v8 }
  0x73   :  { %688 = vmatmul.msk.bf16.vlgmr.msra.gmra.mxu3 %vm157_vm1, %v768_v9 }
  0x76   :  { %v438_v20 = vpop.permute.xlu2 %437 }
  0x7d   :  { %v234_v10 = vpop.permute.xlu1 %233  ;;  %v151_v11 = vpop.permute.xlu0 %150 }
  0x7e   :  { %v491_v24 = vpop.permute.xlu2 %490 }
  0x83   :  { %689 = vmatmul.msk.bf16.gmra.mxu3 %vm157_vm1, %v769_v12 }
  0x85   :  { %v236_v13 = vpop.permute.xlu1 %235  ;;  %v153_v14 = vpop.permute.xlu0 %152 }
  0x86   :  { %v155_v15 = vsel %vm154_vm2, %v151_v11, %v153_v14  ;;  %v238_v16 = vsel %vm237_vm3, %v234_v10, %v236_v13  ;;  %v540_v36 = vpop.permute.xlu2 %539 }
  0x87   :  { %171 = vmatpush.bf16.msra.mxu0 %v155_v15  ;;  %791 = vmatpush.bf16.msra.mxu1 %v155_v15 }
  0x88   :  { %253 = vmatpush.bf16.msra.mxu2 %v238_v16 }
  0x8a   :  { %651 = vmatmul.msk.bf16.vlgmr.msra.gmra.mxu1 %vm157_vm1, %v765_v17  ;;  %650 = vmatmul.msk.bf16.vlgmr.msra.gmra.mxu0 %vm157_vm1, %v764_v18 }
  0x8b   :  { %206 = vmatpush.bf16.msrb.mxu1 %v760_v4  ;;  %674 = vmatmul.msk.bf16.vlgmr.msra.gmra.mxu2 %vm157_vm1, %v766_v19 }
  0x8d   :  { %v338_v21 = vpop.permute.xlu1 %337  ;;  %v336_v22 = vpop.permute.xlu0 %335 }
  0x8e   :  { %v340_v23 = vsel %vm339_vm4, %v336_v22, %v338_v21 }
  0x8f   :  { %355 = vmatpush.bf16.msrb.mxu0 %v340_v23 }
  0x95   :  { %v489_v25 = vpop.permute.xlu1 %488  ;;  %v440_v26 = vpop.permute.xlu0 %439 }
  0x96   :  { %v442_v27 = vsel %vm441_vm5, %v438_v20, %v440_v26  ;;  %v493_v28 = vsel %vm492_vm6, %v489_v25, %v491_v24 }
  0x97   :  { %457 = vmatpush.bf16.msrb.mxu2 %v442_v27  ;;  %508 = vmatpush.bf16.msrb.mxu3 %v493_v28 }
  0x9a   :  { %660 = vmatmul.msk.bf16.vlgmr.msrb.gmra.mxu1 %vm157_vm1, %v762_v29  ;;  %702 = vmatmul.msk.bf16.vlgmr.msrb.gmra.mxu0 %vm157_vm1, %v770_v30 }
  0x9b   :  { %675 = vmatmul.msk.bf16.gmra.mxu2 %vm157_vm1, %v767_v31  ;;  %744 = vmatmul.msk.bf16.vlgmr.msrb.gmra.mxu3 %vm157_vm1, %v776_v32 }
  0x9d   :  { %v389_v33 = vpop.permute.xlu1 %388  ;;  %v387_v34 = vpop.permute.xlu0 %386 }
  0x9e   :  { %v391_v35 = vsel %vm390_vm7, %v387_v34, %v389_v33 }
  0x9f   :  { %406 = vmatpush.bf16.msra.mxu1 %v391_v35 }
  0xa5   :  { %v542_v37 = vpop.permute.xlu0 %541  ;;  %v582_v35 = vpop.permute.xlu1 %581 }
  0xa6   :  { %v544_v38 = vsel %vm543_vm8, %v540_v36, %v542_v37  ;;  %v587_v37 = vpop.permute.xlu2 %586 }
  0xa7   :  { %559 = vmatpush.bf16.msra.mxu0 %v544_v38 }
  0xaa   :  { %661 = vmatmul.msk.bf16.gmra.mxu1 %vm157_vm1, %v763_v39  ;;  %703 = vmatmul.msk.bf16.gmra.mxu0 %vm157_vm1, %v771_v40 }
  0xab   :  { %730 = vmatmul.msk.bf16.vlgmr.msrb.gmra.mxu2 %vm157_vm1, %v774_v41  ;;  %745 = vmatmul.msk.bf16.gmra.mxu3 %vm157_vm1, %v777_v42 }
  0xba   :  { %716 = vmatmul.msk.bf16.vlgmr.msra.gmra.mxu1 %vm157_vm1, %v772_v48  ;;  %758 = vmatmul.msk.bf16.vlgmr.msra.gmra.mxu0 %vm157_vm1, %v778_v49 }
  0xbb   :  { %731 = vmatmul.msk.bf16.gmra.mxu2 %vm157_vm1, %v775_v50 }
  0xca   :  { %717 = vmatmul.msk.bf16.gmra.mxu1 %vm157_vm1, %v773_v51  ;;  %759 = vmatmul.msk.bf16.gmra.mxu0 %vm157_vm1, %v779_v52 }
  0xf6   :  { %v306_v55 = vpop.f32.mrf.mxu3 }
  0xfe   :  { %v308_v60 = vpop.f32.mrf.mxu3 }
 0x106   :  { %v311_v2 = vpop.f32.mrf.mxu3 }
 0x107   :  { %v178_v53 = vpop.f32.mrf.mxu1  ;;  %v173_v54 = vpop.f32.mrf.mxu0 }
 0x10e   :  { %v255_v56 = vpop.f32.mrf.mxu2  ;;  %v313_v7 = vpop.f32.mrf.mxu3 }
 0x10f   :  { %v180_v57 = vpop.f32.mrf.mxu1  ;;  %v175_v58 = vpop.f32.mrf.mxu0 }
 0x116   :  { %v257_v59 = vpop.f32.mrf.mxu2 }
 0x117   :  { %v208_v61 = vpop.f32.mrf.mxu1  ;;  %v357_v62 = vpop.f32.mrf.mxu0 }
 0x118   :  { %v209_v6 = vadd.f32 %v208_v61, %v173_v54 }
 0x11a   :  { %v265_v8 = vadd.f32 %v255_v56, %v209_v6 }
 0x11c   :  { %v316_v11 = vadd.f32 %v306_v55, %v265_v8 }
 0x11e   :  { %v260_v63 = vpop.f32.mrf.mxu2  ;;  %v510_v14 = vpop.f32.mrf.mxu3  ;;  %v367_v15 = vadd.f32 %v357_v62, %v316_v11 }
 0x11f   :  { %v210_v0 = vpop.f32.mrf.mxu1  ;;  %v359_v1 = vpop.f32.mrf.mxu0 }
 0x120   :  { %v211_v12 = vadd.f32 %v210_v0, %v175_v58 }
 0x122   :  { %v266_v16 = vadd.f32 %v257_v59, %v211_v12 }
 0x124   :  { %v317_v20 = vadd.f32 %v308_v60, %v266_v16  ;;  %v592_v60 = vpop.permute.xlu0 %591 }
 0x126   :  { %v262_v5 = vpop.f32.mrf.mxu2  ;;  %v368_v24 = vadd.f32 %v359_v1, %v317_v20  ;;  %v512_v28 = vpop.f32.mrf.mxu3 }
 0x127   :  { %v213_v3 = vpop.f32.mrf.mxu1  ;;  %v362_v4 = vpop.f32.mrf.mxu0 }
 0x128   :  { %v214_v21 = vadd.f32 %v213_v3, %v178_v53 }
 0x12a   :  { %v267_v25 = vadd.f32 %v260_v63, %v214_v21 }
 0x12c   :  { %v318_v31 = vadd.f32 %v311_v2, %v267_v25  ;;  %v597_v2 = vpop.permute.xlu1 %596 }
 0x12e   :  { %v459_v13 = vpop.f32.mrf.mxu2  ;;  %v369_v38 = vadd.f32 %v362_v4, %v318_v31  ;;  %v515_v46 = vpop.f32.mrf.mxu3 }
 0x12f   :  { %v215_v9 = vpop.f32.mrf.mxu1  ;;  %v364_v10 = vpop.f32.mrf.mxu0 }
 0x130   :  { %v216_v32 = vadd.f32 %v215_v9, %v180_v57 }
 0x132   :  { %v268_v39 = vadd.f32 %v262_v5, %v216_v32 }
 0x134   :  { %v319_v47 = vadd.f32 %v313_v7, %v268_v39 }
 0x136   :  { %v461_v23 = vpop.f32.mrf.mxu2  ;;  %v370_v53 = vadd.f32 %v364_v10, %v319_v47  ;;  %v517_v61 = vpop.f32.mrf.mxu3 }
 0x137   :  { %v408_v17 = vpop.f32.mrf.mxu1  ;;  %v561_v18 = vpop.f32.mrf.mxu0 }
 0x138   :  { %v418_v19 = vadd.f32 %v408_v17, %v367_v15 }
 0x13a   :  { %v469_v22 = vadd.f32 %v459_v13, %v418_v19 }
 0x13c   :  { %v520_v26 = vadd.f32 %v510_v14, %v469_v22 }
 0x13e   :  { %v571_v33 = vadd.f32 %v561_v18, %v520_v26  ;;  %v464_v43 = vpop.f32.mrf.mxu2 }
 0x13f   :  { %v410_v27 = vpop.f32.mrf.mxu1  ;;  %v563_v30 = vpop.f32.mrf.mxu0 }
 0x140   :  { %v419_v29 = vadd.f32 %v410_v27, %v368_v24  ;;  %v599_v40 = vadd.f32 %v582_v35, %v571_v33 }
 0x142   :  { %v470_v34 = vadd.f32 %v461_v23, %v419_v29  ;;  %v603_v48 = vmax.f32 %v599_v40, 0.0 }
 0x144   :  { %v521_v36 = vadd.f32 %v512_v28, %v470_v34 }
 0x146   :  { %v572_v41 = vadd.f32 %v563_v30, %v521_v36  ;;  %v466_v57 = vpop.f32.mrf.mxu2 }
 0x147   :  { %v413_v42 = vpop.f32.mrf.mxu1  ;;  %v566_v51 = vpop.f32.mrf.mxu0 }
 0x148   :  { %v600_v44 = vadd.f32 %v587_v37, %v572_v41  ;;  %v420_v45 = vadd.f32 %v413_v42, %v369_v38 }
 0x14a   :  { %v604_v49 = vmax.f32 %v600_v44, 0.0  ;;  %v471_v50 = vadd.f32 %v464_v43, %v420_v45 }
 0x14c   :  { %v783_v52 = vpack.c.bf16 %v604_v49, %v603_v48  ;;  %v522_v54 = vadd.f32 %v515_v46, %v471_v50 }
 0x14e   :  { %784 = vst [vmem:[%s944_s4] sm:$0xff] %v783_v52   ;;  %v573_v58 = vadd.f32 %v566_v51, %v522_v54 }
 0x14f   :  { %v415_v55 = vpop.f32.mrf.mxu1  ;;  %v568_v63 = vpop.f32.mrf.mxu0 }
 0x150   :  { %v421_v56 = vadd.f32 %v415_v55, %v370_v53  ;;  %v601_v0 = vadd.f32 %v592_v60, %v573_v58 }
 0x152   :  { %v472_v59 = vadd.f32 %v466_v57, %v421_v56  ;;  %v605_v4 = vmax.f32 %v601_v0, 0.0 }
 0x154   :  { %v523_v62 = vadd.f32 %v517_v61, %v472_v59 }
 0x156   :  { %v574_v1 = vadd.f32 %v568_v63, %v523_v62 }
 0x158   :  { %v602_v3 = vadd.f32 %v597_v2, %v574_v1 }
 0x15a   :  { %v606_v5 = vmax.f32 %v602_v3, 0.0 }
 0x15c   :  { %v788_v6 = vpack.c.bf16 %v606_v5, %v605_v4 }
 0x15e   :  { %790 = vst [vmem:[%s944_s4 + $0x8] sm:$0xff] %v788_v6  }

// kernel: _lambda_.23
= control target key start
LH: loop header
LB: loop body
LE: loop exit
PB: predicated region body
PF: predicated region fallthrough
CT: control target
= control target key end

     0   :  { %v241_v1 = vmov 0   ;;  %vm63_vm0 = vcmask 261120   ;;  %s328_s0 = inlined_call_operand.vmem [shape: bf16[32,128], index: 0, kind: input, shape index: {}]   ;;  %s329_s5 = inlined_call_operand.vmem [shape: f32[16,1], index: 5, kind: input, shape index: {}]   ;;  %s330_s1 = inlined_call_operand.vmem [shape: bf16[16,32], index: 1, kind: input, shape index: {}]   ;;  %s331_s2 = inlined_call_operand.vmem [shape: bf16[16,32], index: 2, kind: input, shape index: {}]   ;;  %s332_s3 = inlined_call_operand.vmem [shape: bf16[16,32], index: 3, kind: input, shape index: {}]   ;;  %s333_s4 = inlined_call_operand.vmem [shape: bf16[16,32], index: 4, kind: input, shape index: {}]   ;;  %s334_s6 = inlined_call_operand.vmem [shape: bf16[16,128], index: 6, kind: output, shape index: {0}]   ;;  %s335_s7 = inlined_call_operand.vmem [shape: bf16[16,128], index: 7, kind: output, shape index: {1}]   ;;  %s336_s8 = inlined_call_operand.vmem [shape: bf16[16,128], index: 8, kind: output, shape index: {2}]   ;;  %s337_s9 = inlined_call_operand.vmem [shape: bf16[16,128], index: 9, kind: output, shape index: {3}]  }
   0x1   :  { %v214_v0 = vld [vmem:[%s328_s0 + $0x8] sm:$0xff]  ;;  %240 = vset.pattern.permute.xlu0 %v241_v1  ;;  %v213_v2 = vld [vmem:[%s328_s0] sm:$0xff] }
   0x2   :  { %73 = vmatpush.bf16.msra.mxu0 %v214_v0  ;;  %101 = vmatpush.bf16.msra.mxu1 %v214_v0  ;;  %v32_v3 = vld [vmem:[%s329_s5] sm:$0xff]  ;;  %v33_v8 = vld [vmem:[%s329_s5 + $0x8] sm:$0xff] }
   0x3   :  { %129 = vmatpush.bf16.msra.mxu2 %v214_v0  ;;  %157 = vmatpush.bf16.msra.mxu3 %v214_v0  ;;  %v215_v4 = vld [vmem:[%s330_s1] sm:$0xff] }
   0x4   :  { %38 = vperm.xlu0 %240, %v32_v3   ;;  %v216_v5 = vld [vmem:[%s331_s2] sm:$0xff] }
   0x5   :  { %v217_v6 = vld [vmem:[%s332_s3] sm:$0xff] }
   0x6   :  { %74 = vmatpush.bf16.msra.mxu0 %v213_v2  ;;  %102 = vmatpush.bf16.msra.mxu1 %v213_v2  ;;  %v218_v7 = vld [vmem:[%s333_s4] sm:$0xff] }
   0x7   :  { %130 = vmatpush.bf16.msra.mxu2 %v213_v2  ;;  %158 = vmatpush.bf16.msra.mxu3 %v213_v2 }
   0x9   :  { %197 = vmatmul.msk.bf16.vlgmr.msra.gmra.mxu0 %vm63_vm0, %v215_v4  ;;  %202 = vmatmul.msk.bf16.vlgmr.msra.gmra.mxu1 %vm63_vm0, %v216_v5 }
   0xa   :  { %207 = vmatmul.msk.bf16.vlgmr.msra.gmra.mxu2 %vm63_vm0, %v217_v6  ;;  %212 = vmatmul.msk.bf16.vlgmr.msra.gmra.mxu3 %vm63_vm0, %v218_v7 }
   0xc   :  { %43 = vperm.xlu0 %240, %v33_v8  }
  0x76   :  { %v39_v9 = vpop.permute.xlu0 %38 }
  0x7e   :  { %v44_v12 = vpop.permute.xlu0 %43 }
  0x86   :  { %v76_v10 = vpop.f32.mrf.mxu0  ;;  %v104_v11 = vpop.f32.mrf.mxu1 }
  0x87   :  { %v77_v17 = vadd.f32 %v76_v10, %v39_v9  ;;  %v105_v18 = vadd.f32 %v104_v11, %v39_v9 }
  0x8d   :  { %v132_v13 = vpop.f32.mrf.mxu2  ;;  %v160_v14 = vpop.f32.mrf.mxu3 }
  0x8e   :  { %v78_v15 = vpop.f32.mrf.mxu0  ;;  %v106_v16 = vpop.f32.mrf.mxu1  ;;  %v133_v25 = vadd.f32 %v132_v13, %v39_v9  ;;  %v161_v26 = vadd.f32 %v160_v14, %v39_v9 }
  0x8f   :  { %v79_v19 = vadd.f32 %v78_v15, %v44_v12  ;;  %v107_v20 = vadd.f32 %v106_v16, %v44_v12 }
  0x91   :  { %v222_v21 = vpack.c.bf16 %v79_v19, %v77_v17  ;;  %v227_v22 = vpack.c.bf16 %v107_v20, %v105_v18 }
  0x93   :  { %223 = vst [vmem:[%s334_s6] sm:$0xff] %v222_v21  }
  0x94   :  { %228 = vst [vmem:[%s335_s7] sm:$0xff] %v227_v22  }
  0x95   :  { %v134_v23 = vpop.f32.mrf.mxu2  ;;  %v162_v24 = vpop.f32.mrf.mxu3 }
  0x96   :  { %v135_v27 = vadd.f32 %v134_v23, %v44_v12  ;;  %v163_v28 = vadd.f32 %v162_v24, %v44_v12 }
  0x98   :  { %v232_v29 = vpack.c.bf16 %v135_v27, %v133_v25  ;;  %v237_v30 = vpack.c.bf16 %v163_v28, %v161_v26 }
  0x9a   :  { %233 = vst [vmem:[%s336_s8] sm:$0xff] %v232_v29  }
  0x9b   :  { %238 = vst [vmem:[%s337_s9] sm:$0xff] %v237_v30  }

// kernel: _lambda_.22
= control target key start
LH: loop header
LB: loop body
LE: loop exit
PB: predicated region body
PF: predicated region fallthrough
CT: control target
= control target key end

     0   :  { %s897_s5 = smov 126   ;;  %s899_s6 = smov 121   ;;  %vm278_vm0 = vcmask 1031168   ;;  %vm189_vm1 = vcmask 1039360   ;;  %vm194_vm2 = vcmask 261120   ;;  %vm335_vm3 = vcmask 998400   ;;  %s1076_s0 = inlined_call_operand.vmem [shape: bf16[32,256], index: 0, kind: input, shape index: {}, may-alias: {0,1}]   ;;  %s1077_s1 = inlined_call_operand.vmem [shape: bf16[32,256], index: 1, kind: input, shape index: {}, may-alias: {0,1}]   ;;  %s1078_s2 = inlined_call_operand.vmem [shape: bf16[9,32,32], index: 2, kind: input, shape index: {}]   ;;  %s1079_s3 = inlined_call_operand.vmem [shape: f32[32,1], index: 3, kind: input, shape index: {}]   ;;  %s1080_s4 = inlined_call_operand.vmem [shape: bf16[32,128], index: 4, kind: output, shape index: {}]  }
   0x1   :  { %v31_v0 = vld [vmem:[%s1076_s0 + $0x10] sm:$0xf]  ;;  %v33_v1 = vld [vmem:[%s1076_s0 + $0x18] sm:$0xf]  ;;  %v27_v2 = vld [vmem:[%s1076_s0] sm:$0xf] }
   0x2   :  { %32 = vst [vmem:[#allocation2 + $0x8] sm:$0xf] %v31_v0  ;;  %v29_v3 = vld [vmem:[%s1076_s0 + $0x8] sm:$0xf]  ;;  %v709_v4 = vld [vmem:[%s1077_s1 + $0x14] sm:$0xf] }
   0x3   :  { %34 = vst [vmem:[#allocation2 + $0xc] sm:$0xf] %v33_v1  ;;  %v710_v5 = vld [vmem:[%s1077_s1 + $0x1c] sm:$0xf]  ;;  %v707_v6 = vld [vmem:[%s1077_s1 + $0x4] sm:$0xf] }
   0x4   :  { %28 = vst [vmem:[#allocation2] sm:$0xf] %v27_v2  ;;  %v708_v7 = vld [vmem:[%s1077_s1 + $0xc] sm:$0xf]  ;;  %s896_s0 = smov 127   ;;  %s898_s1 = smov 122  }
   0x5   :  { %30 = vst [vmem:[#allocation2 + $0x4] sm:$0xf] %v29_v3  ;;  %s900_s7 = smov 116   ;;  %s901_s8 = smov 115   ;;  %v856_v23 = vld [vmem:[%s1078_s2 + $0x18] sm:$0xff]  ;;  %v855_v24 = vld [vmem:[%s1078_s2 + $0x10] sm:$0xff] }
   0x6   :  { %90 = vst [vmem:[#allocation3 + $0x8] sm:$0xf] %v709_v4  ;;  %s902_s9 = smov 120   ;;  %s903_s10 = smov 114   ;;  %v857_v31 = vld [vmem:[%s1078_s2 + $0x20] sm:$0xff]  ;;  %v859_v34 = vld [vmem:[%s1078_s2 + $0x30] sm:$0xff] }
   0x7   :  { %92 = vst [vmem:[#allocation3 + $0xc] sm:$0xf] %v710_v5  ;;  %v853_v35 = vld [vmem:[%s1078_s2] sm:$0xff]  ;;  %vm392_vm4 = vcmask 990208   ;;  %vm506_vm5 = vcmask 949248   ;;  %v858_v42 = vld [vmem:[%s1078_s2 + $0x28] sm:$0xff] }
   0x8   :  { %86 = vst [vmem:[#allocation3] sm:$0xf] %v707_v6  ;;  %v861_v43 = vld [vmem:[%s1078_s2 + $0x40] sm:$0xff]  ;;  %v860_v47 = vld [vmem:[%s1078_s2 + $0x38] sm:$0xff]  ;;  %v854_v48 = vld [vmem:[%s1078_s2 + $0x8] sm:$0xff]  ;;  %vm563_vm6 = vcmask 941056  }
   0x9   :  { %88 = vst [vmem:[#allocation3 + $0x4] sm:$0xf] %v708_v7  ;;  %vm449_vm7 = vcmask 982016   ;;  %v862_v55 = vld [vmem:[%s1078_s2 + $0x48] sm:$0xff]  ;;  %v865_v58 = vld [vmem:[%s1078_s2 + $0x60] sm:$0xff]  ;;  %v867_v63 = vld [vmem:[%s1078_s2 + $0x70] sm:$0xff] }
   0xa   :  { %v954_v8 = vld [vmem:[#allocation2 + $0x8] sm:$0xff]  ;;  %v655_v0 = vld [vmem:[%s1079_s3 + $0x8] sm:$0xff]  ;;  %vm620_vm8 = vcmask 932864   ;;  %v904_v4 = vmov 0   ;;  %v654_v5 = vld [vmem:[%s1079_s3] sm:$0xff] }
   0xb   :  { %185 = vrot.lane.b32.xlu0 %v954_v8, %s896_s0  ;;  %274 = vrot.lane.b32.xlu2 %v954_v8, %s897_s5  ;;  %v656_v1 = vld [vmem:[%s1079_s3 + $0x10] sm:$0xff] }
   0xc   :  { %v957_v9 = vld [vmem:[#allocation2] sm:$0xff]  ;;  %894 = vset.pattern.permute.xlu0 %v904_v4  ;;  %895 = vset.pattern.permute.xlu1 %v904_v4  ;;  %v863_v7 = vld [vmem:[%s1078_s2 + $0x50] sm:$0xff] }
   0xd   :  { %181 = vrot.lane.b32.xlu1 %v957_v9, %s896_s0  ;;  %893 = vset.pattern.permute.xlu2 %v904_v4 }
   0xe   :  { %v852_v10 = vld [vmem:[#allocation3 + $0x8] sm:$0xff] }
  0x10   :  { %v851_v11 = vld [vmem:[#allocation3] sm:$0xff] }
  0x13   :  { %187 = vrot.lane.b32.xlu0 %v852_v10, %s896_s0  ;;  %276 = vrot.lane.b32.xlu2 %v852_v10, %s897_s5 }
  0x15   :  { %183 = vrot.lane.b32.xlu1 %v851_v11, %s896_s0 }
  0x1b   :  { %331 = vrot.lane.b32.xlu0 %v954_v8, %s898_s1  ;;  %270 = vrot.lane.b32.xlu2 %v957_v9, %s897_s5 }
  0x1d   :  { %333 = vrot.lane.b32.xlu1 %v852_v10, %s898_s1 }
  0x23   :  { %272 = vrot.lane.b32.xlu0 %v851_v11, %s897_s5  ;;  %329 = vrot.lane.b32.xlu2 %v851_v11, %s898_s1 }
  0x25   :  { %327 = vrot.lane.b32.xlu1 %v957_v9, %s898_s1 }
  0x2b   :  { %388 = vrot.lane.b32.xlu0 %v954_v8, %s899_s6  ;;  %384 = vrot.lane.b32.xlu2 %v957_v9, %s899_s6 }
  0x2d   :  { %390 = vrot.lane.b32.xlu1 %v852_v10, %s899_s6 }
  0x33   :  { %386 = vrot.lane.b32.xlu0 %v851_v11, %s899_s6  ;;  %504 = vrot.lane.b32.xlu2 %v852_v10, %s900_s7 }
  0x35   :  { %502 = vrot.lane.b32.xlu1 %v954_v8, %s900_s7 }
  0x3b   :  { %559 = vrot.lane.b32.xlu0 %v954_v8, %s901_s8  ;;  %445 = vrot.lane.b32.xlu2 %v954_v8, %s902_s9 }
  0x3d   :  { %561 = vrot.lane.b32.xlu1 %v852_v10, %s901_s8 }
  0x43   :  { %447 = vrot.lane.b32.xlu0 %v852_v10, %s902_s9  ;;  %500 = vrot.lane.b32.xlu2 %v851_v11, %s900_s7 }
  0x45   :  { %498 = vrot.lane.b32.xlu1 %v957_v9, %s900_s7 }
  0x4b   :  { %555 = vrot.lane.b32.xlu0 %v957_v9, %s901_s8  ;;  %441 = vrot.lane.b32.xlu2 %v957_v9, %s902_s9 }
  0x4d   :  { %557 = vrot.lane.b32.xlu1 %v851_v11, %s901_s8 }
  0x53   :  { %443 = vrot.lane.b32.xlu0 %v851_v11, %s902_s9  ;;  %618 = vrot.lane.b32.xlu2 %v852_v10, %s903_s10  ;;  %v866_v10 = vld [vmem:[%s1078_s2 + $0x68] sm:$0xff] }
  0x55   :  { %616 = vrot.lane.b32.xlu1 %v954_v8, %s903_s10 }
  0x5b   :  { %612 = vrot.lane.b32.xlu0 %v957_v9, %s903_s10  ;;  %660 = vperm.xlu2 %893, %v654_v5  }
  0x5d   :  { %614 = vrot.lane.b32.xlu1 %v851_v11, %s903_s10 }
  0x63   :  { %665 = vperm.xlu0 %894, %v655_v0  }
  0x65   :  { %v275_v12 = vpop.permute.xlu2 %274  ;;  %670 = vperm.xlu1 %895, %v656_v1  }
  0x6d   :  { %v277_v13 = vpop.permute.xlu2 %276 }
  0x6e   :  { %v280_v14 = vsel %vm278_vm0, %v275_v12, %v277_v13 }
  0x6f   :  { %295 = vmatpush.bf16.msra.mxu2 %v280_v14  ;;  %v869_v14 = vld [vmem:[%s1078_s2 + $0x80] sm:$0xff] }
  0x75   :  { %v271_v17 = vpop.permute.xlu2 %270 }
  0x7d   :  { %v186_v15 = vpop.permute.xlu0 %185  ;;  %v330_v21 = vpop.permute.xlu2 %329 }
  0x7f   :  { %v182_v16 = vpop.permute.xlu1 %181 }
  0x85   :  { %v188_v18 = vpop.permute.xlu0 %187  ;;  %v385_v28 = vpop.permute.xlu2 %384 }
  0x86   :  { %v191_v19 = vsel %vm189_vm1, %v186_v15, %v188_v18  ;;  %v868_v15 = vld [vmem:[%s1078_s2 + $0x78] sm:$0xff] }
  0x87   :  { %v184_v20 = vpop.permute.xlu1 %183  ;;  %207 = vmatpush.bf16.msra.mxu0 %v191_v19  ;;  %882 = vmatpush.bf16.msra.mxu1 %v191_v19  ;;  %v657_v18 = vld [vmem:[%s1079_s3 + $0x18] sm:$0xff] }
  0x88   :  { %v190_v22 = vsel %vm189_vm1, %v182_v16, %v184_v20  ;;  %v864_v16 = vld [vmem:[%s1078_s2 + $0x58] sm:$0xff]  ;;  %675 = vperm.xlu2 %893, %v657_v18  }
  0x8b   :  { %208 = vmatpush.bf16.msra.mxu0 %v190_v22  ;;  %883 = vmatpush.bf16.msra.mxu1 %v190_v22 }
  0x8d   :  { %v332_v25 = vpop.permute.xlu0 %331  ;;  %v505_v37 = vpop.permute.xlu2 %504 }
  0x8e   :  { %740 = vmatmul.msk.bf16.vlgmr.msra.gmra.mxu1 %vm194_vm2, %v856_v23  ;;  %739 = vmatmul.msk.bf16.vlgmr.msra.gmra.mxu0 %vm194_vm2, %v855_v24 }
  0x8f   :  { %242 = vmatpush.bf16.msrb.mxu1 %v954_v8  ;;  %v334_v26 = vpop.permute.xlu1 %333 }
  0x90   :  { %v337_v27 = vsel %vm335_vm3, %v332_v25, %v334_v26 }
  0x91   :  { %352 = vmatpush.bf16.msra.mxu3 %v337_v27 }
  0x93   :  { %243 = vmatpush.bf16.msrb.mxu1 %v957_v9 }
  0x95   :  { %v273_v29 = vpop.permute.xlu0 %272  ;;  %v446_v45 = vpop.permute.xlu2 %445 }
  0x96   :  { %v279_v30 = vsel %vm278_vm0, %v271_v17, %v273_v29  ;;  %v870_v17 = vld [vmem:[%s1078_s2 + $0x88] sm:$0xff] }
  0x97   :  { %v328_v32 = vpop.permute.xlu1 %327  ;;  %296 = vmatpush.bf16.msra.mxu2 %v279_v30 }
  0x98   :  { %v336_v33 = vsel %vm335_vm3, %v328_v32, %v330_v21 }
  0x99   :  { %353 = vmatpush.bf16.msra.mxu3 %v336_v33 }
  0x9a   :  { %763 = vmatmul.msk.bf16.vlgmr.msra.gmra.mxu2 %vm194_vm2, %v857_v31 }
  0x9c   :  { %777 = vmatmul.msk.bf16.vlgmr.msra.gmra.mxu3 %vm194_vm2, %v859_v34 }
  0x9d   :  { %v389_v36 = vpop.permute.xlu0 %388  ;;  %v501_v52 = vpop.permute.xlu2 %500 }
  0x9e   :  { %749 = vmatmul.msk.bf16.vlgmr.msrb.gmra.mxu1 %vm194_vm2, %v853_v35 }
  0x9f   :  { %v391_v38 = vpop.permute.xlu1 %390 }
  0xa0   :  { %v394_v39 = vsel %vm392_vm4, %v389_v36, %v391_v38 }
  0xa1   :  { %409 = vmatpush.bf16.msrb.mxu0 %v394_v39 }
  0xa5   :  { %v387_v40 = vpop.permute.xlu0 %386  ;;  %v442_v59 = vpop.permute.xlu2 %441 }
  0xa6   :  { %v393_v41 = vsel %vm392_vm4, %v385_v28, %v387_v40 }
  0xa7   :  { %v503_v44 = vpop.permute.xlu1 %502  ;;  %410 = vmatpush.bf16.msrb.mxu0 %v393_v41 }
  0xa8   :  { %v508_v46 = vsel %vm506_vm5, %v503_v44, %v505_v37 }
  0xa9   :  { %523 = vmatpush.bf16.msrb.mxu2 %v508_v46 }
  0xaa   :  { %764 = vmatmul.msk.bf16.gmra.mxu2 %vm194_vm2, %v858_v42  ;;  %791 = vmatmul.msk.bf16.vlgmr.msrb.gmra.mxu0 %vm194_vm2, %v861_v43 }
  0xac   :  { %778 = vmatmul.msk.bf16.gmra.mxu3 %vm194_vm2, %v860_v47 }
  0xad   :  { %v560_v49 = vpop.permute.xlu0 %559  ;;  %v619_v3 = vpop.permute.xlu2 %618 }
  0xae   :  { %750 = vmatmul.msk.bf16.gmra.mxu1 %vm194_vm2, %v854_v48 }
  0xaf   :  { %v562_v50 = vpop.permute.xlu1 %561 }
  0xb0   :  { %v565_v51 = vsel %vm563_vm6, %v560_v49, %v562_v50 }
  0xb1   :  { %580 = vmatpush.bf16.msrb.mxu3 %v565_v51 }
  0xb5   :  { %v448_v53 = vpop.permute.xlu0 %447 }
  0xb6   :  { %v451_v54 = vsel %vm449_vm7, %v446_v45, %v448_v53 }
  0xb7   :  { %v499_v56 = vpop.permute.xlu1 %498  ;;  %466 = vmatpush.bf16.msra.mxu1 %v451_v54 }
  0xb8   :  { %v507_v57 = vsel %vm506_vm5, %v499_v56, %v501_v52 }
  0xb9   :  { %524 = vmatpush.bf16.msrb.mxu2 %v507_v57 }
  0xba   :  { %792 = vmatmul.msk.bf16.gmra.mxu0 %vm194_vm2, %v862_v55 }
  0xbc   :  { %819 = vmatmul.msk.bf16.vlgmr.msrb.gmra.mxu2 %vm194_vm2, %v865_v58 }
  0xbd   :  { %v556_v60 = vpop.permute.xlu0 %555 }
  0xbf   :  { %v558_v61 = vpop.permute.xlu1 %557 }
  0xc0   :  { %v564_v62 = vsel %vm563_vm6, %v556_v60, %v558_v61 }
  0xc1   :  { %581 = vmatpush.bf16.msrb.mxu3 %v564_v62 }
  0xc4   :  { %833 = vmatmul.msk.bf16.vlgmr.msrb.gmra.mxu3 %vm194_vm2, %v867_v63  ;;  %v661_v63 = vpop.permute.xlu2 %660 }
  0xc5   :  { %v444_v2 = vpop.permute.xlu0 %443 }
  0xc6   :  { %v450_v6 = vsel %vm449_vm7, %v442_v59, %v444_v2 }
  0xc7   :  { %v617_v8 = vpop.permute.xlu1 %616  ;;  %467 = vmatpush.bf16.msra.mxu1 %v450_v6 }
  0xc8   :  { %v622_v9 = vsel %vm620_vm8, %v617_v8, %v619_v3 }
  0xc9   :  { %637 = vmatpush.bf16.msra.mxu0 %v622_v9 }
  0xca   :  { %805 = vmatmul.msk.bf16.vlgmr.msra.gmra.mxu1 %vm194_vm2, %v863_v7 }
  0xcc   :  { %820 = vmatmul.msk.bf16.gmra.mxu2 %vm194_vm2, %v866_v10 }
  0xcd   :  { %v613_v11 = vpop.permute.xlu0 %612 }
  0xcf   :  { %v615_v12 = vpop.permute.xlu1 %614 }
  0xd0   :  { %v621_v13 = vsel %vm620_vm8, %v613_v11, %v615_v12 }
  0xd1   :  { %638 = vmatpush.bf16.msra.mxu0 %v621_v13 }
  0xd4   :  { %847 = vmatmul.msk.bf16.vlgmr.msra.gmra.mxu0 %vm194_vm2, %v869_v14  ;;  %834 = vmatmul.msk.bf16.gmra.mxu3 %vm194_vm2, %v868_v15 }
  0xd5   :  { %v666_v4 = vpop.permute.xlu0 %665 }
  0xda   :  { %806 = vmatmul.msk.bf16.gmra.mxu1 %vm194_vm2, %v864_v16 }
  0xe4   :  { %848 = vmatmul.msk.bf16.gmra.mxu0 %vm194_vm2, %v870_v17 }
 0x10b   :  { %v215_v19 = vpop.f32.mrf.mxu1  ;;  %v210_v21 = vpop.f32.mrf.mxu0 }
 0x113   :  { %v217_v20 = vpop.f32.mrf.mxu1  ;;  %v212_v24 = vpop.f32.mrf.mxu0 }
 0x11b   :  { %v245_v23 = vpop.f32.mrf.mxu1 }
 0x11c   :  { %v246_v37 = vadd.f32 %v245_v23, %v210_v21 }
 0x11d   :  { %v298_v22 = vpop.f32.mrf.mxu2 }
 0x11e   :  { %v308_v39 = vadd.f32 %v298_v22, %v246_v37 }
 0x11f   :  { %v355_v25 = vpop.f32.mrf.mxu3 }
 0x120   :  { %v365_v43 = vadd.f32 %v355_v25, %v308_v39 }
 0x123   :  { %v247_v27 = vpop.f32.mrf.mxu1 }
 0x124   :  { %v248_v40 = vadd.f32 %v247_v27, %v212_v24 }
 0x125   :  { %v300_v26 = vpop.f32.mrf.mxu2 }
 0x126   :  { %v309_v44 = vadd.f32 %v300_v26, %v248_v40  ;;  %v671_v26 = vpop.permute.xlu1 %670 }
 0x127   :  { %v412_v28 = vpop.f32.mrf.mxu0  ;;  %v357_v29 = vpop.f32.mrf.mxu3 }
 0x128   :  { %v422_v47 = vadd.f32 %v412_v28, %v365_v43  ;;  %v366_v48 = vadd.f32 %v357_v29, %v309_v44 }
 0x12b   :  { %v250_v31 = vpop.f32.mrf.mxu1 }
 0x12c   :  { %v251_v53 = vadd.f32 %v250_v31, %v215_v19 }
 0x12d   :  { %v303_v30 = vpop.f32.mrf.mxu2 }
 0x12e   :  { %v310_v58 = vadd.f32 %v303_v30, %v251_v53 }
 0x12f   :  { %v414_v32 = vpop.f32.mrf.mxu0  ;;  %v360_v33 = vpop.f32.mrf.mxu3 }
 0x130   :  { %v423_v50 = vadd.f32 %v414_v32, %v366_v48  ;;  %v367_v1 = vadd.f32 %v360_v33, %v310_v58  ;;  %v676_v32 = vpop.permute.xlu2 %675 }
 0x133   :  { %v252_v35 = vpop.f32.mrf.mxu1 }
 0x134   :  { %v253_v59 = vadd.f32 %v252_v35, %v217_v20 }
 0x135   :  { %v305_v34 = vpop.f32.mrf.mxu2 }
 0x136   :  { %v311_v2 = vadd.f32 %v305_v34, %v253_v59 }
 0x137   :  { %v417_v36 = vpop.f32.mrf.mxu0  ;;  %v362_v38 = vpop.f32.mrf.mxu3 }
 0x138   :  { %v424_v7 = vadd.f32 %v417_v36, %v367_v1  ;;  %v368_v10 = vadd.f32 %v362_v38, %v311_v2 }
 0x13f   :  { %v526_v41 = vpop.f32.mrf.mxu2  ;;  %v419_v45 = vpop.f32.mrf.mxu0 }
 0x140   :  { %v425_v14 = vadd.f32 %v419_v45, %v368_v10 }
 0x147   :  { %v469_v42 = vpop.f32.mrf.mxu1  ;;  %v583_v46 = vpop.f32.mrf.mxu3 }
 0x148   :  { %v479_v49 = vadd.f32 %v469_v42, %v422_v47  ;;  %v528_v52 = vpop.f32.mrf.mxu2 }
 0x14a   :  { %v536_v54 = vadd.f32 %v526_v41, %v479_v49 }
 0x14c   :  { %v593_v60 = vadd.f32 %v583_v46, %v536_v54 }
 0x14f   :  { %v471_v51 = vpop.f32.mrf.mxu1  ;;  %v585_v57 = vpop.f32.mrf.mxu3 }
 0x150   :  { %v480_v55 = vadd.f32 %v471_v51, %v423_v50  ;;  %v531_v6 = vpop.f32.mrf.mxu2 }
 0x151   :  { %v640_v56 = vpop.f32.mrf.mxu0 }
 0x152   :  { %v537_v61 = vadd.f32 %v528_v52, %v480_v55  ;;  %v650_v62 = vadd.f32 %v640_v56, %v593_v60 }
 0x154   :  { %v594_v3 = vadd.f32 %v585_v57, %v537_v61  ;;  %v678_v8 = vadd.f32 %v661_v63, %v650_v62 }
 0x156   :  { %v682_v15 = vmax.f32 %v678_v8, 0.0 }
 0x157   :  { %v474_v0 = vpop.f32.mrf.mxu1  ;;  %v588_v13 = vpop.f32.mrf.mxu3 }
 0x158   :  { %v481_v11 = vadd.f32 %v474_v0, %v424_v7  ;;  %v533_v22 = vpop.f32.mrf.mxu2 }
 0x159   :  { %v642_v5 = vpop.f32.mrf.mxu0 }
 0x15a   :  { %v651_v9 = vadd.f32 %v642_v5, %v594_v3  ;;  %v538_v19 = vadd.f32 %v531_v6, %v481_v11 }
 0x15c   :  { %v679_v12 = vadd.f32 %v666_v4, %v651_v9  ;;  %v595_v23 = vadd.f32 %v588_v13, %v538_v19 }
 0x15e   :  { %v683_v16 = vmax.f32 %v679_v12, 0.0 }
 0x15f   :  { %v476_v17 = vpop.f32.mrf.mxu1  ;;  %v590_v27 = vpop.f32.mrf.mxu3 }
 0x160   :  { %v874_v18 = vpack.c.bf16 %v683_v16, %v682_v15  ;;  %v482_v20 = vadd.f32 %v476_v17, %v425_v14 }
 0x161   :  { %v645_v21 = vpop.f32.mrf.mxu0 }
 0x162   :  { %875 = vst [vmem:[%s1080_s4] sm:$0xff] %v874_v18   ;;  %v539_v24 = vadd.f32 %v533_v22, %v482_v20  ;;  %v652_v25 = vadd.f32 %v645_v21, %v595_v23 }
 0x164   :  { %v596_v28 = vadd.f32 %v590_v27, %v539_v24  ;;  %v680_v30 = vadd.f32 %v671_v26, %v652_v25 }
 0x166   :  { %v684_v34 = vmax.f32 %v680_v30, 0.0 }
 0x169   :  { %v647_v29 = vpop.f32.mrf.mxu0 }
 0x16a   :  { %v653_v31 = vadd.f32 %v647_v29, %v596_v28 }
 0x16c   :  { %v681_v33 = vadd.f32 %v676_v32, %v653_v31 }
 0x16e   :  { %v685_v35 = vmax.f32 %v681_v33, 0.0 }
 0x170   :  { %v879_v36 = vpack.c.bf16 %v685_v35, %v684_v34 }
 0x172   :  { %881 = vst [vmem:[%s1080_s4 + $0x8] sm:$0xff] %v879_v36  }

// kernel: _lambda_.26
= control target key start
LH: loop header
LB: loop body
LE: loop exit
PB: predicated region body
PF: predicated region fallthrough
CT: control target
= control target key end

     0   :  { %v146_v1 = vmov 0   ;;  %vm43_vm0 = vcmask 130048   ;;  %s227_s0 = inlined_call_operand.vmem [shape: bf16[16,128], index: 0, kind: input, shape index: {}]   ;;  %s228_s1 = inlined_call_operand.vmem [shape: bf16[8,16], index: 1, kind: input, shape index: {}]   ;;  %s229_s2 = inlined_call_operand.vmem [shape: bf16[8,16], index: 2, kind: input, shape index: {}]   ;;  %s230_s5 = inlined_call_operand.vmem [shape: f32[8,1], index: 5, kind: input, shape index: {}]   ;;  %s231_s3 = inlined_call_operand.vmem [shape: bf16[8,16], index: 3, kind: input, shape index: {}]   ;;  %s232_s4 = inlined_call_operand.vmem [shape: bf16[8,16], index: 4, kind: input, shape index: {}]   ;;  %s233_s6 = inlined_call_operand.vmem [shape: bf16[8,128], index: 6, kind: output, shape index: {0}]   ;;  %s234_s7 = inlined_call_operand.vmem [shape: bf16[8,128], index: 7, kind: output, shape index: {1}]   ;;  %s235_s8 = inlined_call_operand.vmem [shape: bf16[8,128], index: 8, kind: output, shape index: {2}]   ;;  %s236_s9 = inlined_call_operand.vmem [shape: bf16[8,128], index: 9, kind: output, shape index: {3}]  }
   0x1   :  { %v143_v0 = vld [vmem:[%s227_s0] sm:$0xff]  ;;  %145 = vset.pattern.permute.xlu0 %v146_v1 }
   0x2   :  { %v30_v2 = vld [vmem:[%s230_s5] sm:$0xff]  ;;  %54 = vmatpush.bf16.msra.mxu0 %v143_v0  ;;  %73 = vmatpush.bf16.msra.mxu1 %v143_v0 }
   0x3   :  { %v31_v3 = vld [vmem:[%s228_s1] sm:$0xf]  ;;  %92 = vmatpush.bf16.msra.mxu2 %v143_v0  ;;  %111 = vmatpush.bf16.msra.mxu3 %v143_v0 }
   0x4   :  { %v62_v4 = vld [vmem:[%s229_s2] sm:$0xf]  ;;  %34 = vperm.xlu0 %145, %v30_v2  }
   0x5   :  { %v81_v5 = vld [vmem:[%s231_s3] sm:$0xf]  ;;  %139 = vmatmul.msk.bf16.vlgmr.msra.gmra.mxu0 %vm43_vm0, %v31_v3  ;;  %140 = vmatmul.msk.bf16.vlgmr.msra.gmra.mxu1 %vm43_vm0, %v62_v4 }
   0x6   :  { %v100_v6 = vld [vmem:[%s232_s4] sm:$0xf]  ;;  %141 = vmatmul.msk.bf16.vlgmr.msra.gmra.mxu2 %vm43_vm0, %v81_v5 }
   0x7   :  { %142 = vmatmul.msk.bf16.vlgmr.msra.gmra.mxu3 %vm43_vm0, %v100_v6 }
  0x76   :  { %v35_v7 = vpop.permute.xlu0 %34 }
  0x82   :  { %v56_v8 = vpop.f32.mrf.mxu0  ;;  %v75_v9 = vpop.f32.mrf.mxu1 }
  0x83   :  { %v57_v10 = vadd.f32 %v56_v8, %v35_v7  ;;  %v76_v11 = vadd.f32 %v75_v9, %v35_v7 }
  0x85   :  { %v60_v12 = vpack.c.bf16 %v57_v10, %v57_v10  ;;  %v79_v13 = vpack.c.bf16 %v76_v11, %v76_v11 }
  0x87   :  { %61 = vst [vmem:[%s233_s6] sm:$0xf] %v60_v12 }
  0x88   :  { %80 = vst [vmem:[%s234_s7] sm:$0xf] %v79_v13 }
  0x89   :  { %v94_v14 = vpop.f32.mrf.mxu2 }
  0x8a   :  { %v113_v15 = vpop.f32.mrf.mxu3  ;;  %v95_v16 = vadd.f32 %v94_v14, %v35_v7  ;;  %v58_v18 = vpop.f32.mrf.mxu0 }
  0x8b   :  { %v114_v17 = vadd.f32 %v113_v15, %v35_v7  ;;  %v77_v19 = vpop.f32.mrf.mxu1 }
  0x8c   :  { %v98_v20 = vpack.c.bf16 %v95_v16, %v95_v16 }
  0x8d   :  { %v117_v21 = vpack.c.bf16 %v114_v17, %v114_v17 }
  0x8e   :  { %99 = vst [vmem:[%s235_s8] sm:$0xf] %v98_v20 }
  0x8f   :  { %118 = vst [vmem:[%s236_s9] sm:$0xf] %v117_v21 }
  0x91   :  { %v96_v22 = vpop.f32.mrf.mxu2 }
  0x92   :  { %v115_v23 = vpop.f32.mrf.mxu3 }

// kernel: _lambda_.24
= control target key start
LH: loop header
LB: loop body
LE: loop exit
PB: predicated region body
PF: predicated region fallthrough
CT: control target
= control target key end

     0   :  { %s1431_s9 = smov 127   ;;  %s1434_s10 = smov 116   ;;  %vm251_vm0 = vcmask 130048   ;;  %vm387_vm1 = vcmask 965632   ;;  %vm246_vm2 = vcmask 1039360   ;;  %vm333_vm3 = vcmask 1031168   ;;  %s1708_s0 = inlined_call_operand.vmem [shape: bf16[16,384], index: 0, kind: input, shape index: {}, may-alias: {0,1}]   ;;  %s1709_s1 = inlined_call_operand.vmem [shape: bf16[16,384], index: 1, kind: input, shape index: {}, may-alias: {0,1}]   ;;  %s1710_s2 = inlined_call_operand.vmem [shape: bf16[16,384], index: 2, kind: input, shape index: {}, may-alias: {2,3}]   ;;  %s1711_s3 = inlined_call_operand.vmem [shape: bf16[16,384], index: 3, kind: input, shape index: {}, may-alias: {2,3}]   ;;  %s1712_s4 = inlined_call_operand.vmem [shape: bf16[9,16,16], index: 4, kind: input, shape index: {}]   ;;  %s1713_s5 = inlined_call_operand.vmem [shape: bf16[9,16,16], index: 5, kind: input, shape index: {}]   ;;  %s1714_s6 = inlined_call_operand.vmem [shape: f32[16,1], index: 6, kind: input, shape index: {}]   ;;  %s1715_s7 = inlined_call_operand.vmem [shape: bf16[16,256], index: 7, kind: output, shape index: {}]  }
   0x1   :  { %v1228_v0 = vld [vmem:[%s1709_s1 + $0x8] sm:$0xf]  ;;  %v1229_v1 = vld [vmem:[%s1709_s1 + $0x14] sm:$0xf]  ;;  %v44_v2 = vld [vmem:[%s1708_s0] sm:$0xff]  ;;  %s1432_s1 = smov 118  }
   0x2   :  { %74 = vst [vmem:[#allocation3] sm:$0xf] %v1228_v0  ;;  %v46_v3 = vld [vmem:[%s1708_s0 + $0xc] sm:$0xff]  ;;  %s1433_s0 = smov 126   ;;  %v134_v11 = vld [vmem:[%s1710_s2] sm:$0xff]  ;;  %s1435_s15 = smov 117  }
   0x3   :  { %76 = vst [vmem:[#allocation3 + $0x4] sm:$0xf] %v1229_v1  ;;  %v136_v12 = vld [vmem:[%s1710_s2 + $0xc] sm:$0xff]  ;;  %s1436_s16 = smov 107   ;;  %s1437_s17 = smov 108   ;;  %v1399_v22 = vld [vmem:[%s1712_s4] sm:$0xff] }
   0x4   :  { %45 = vst [vmem:[#allocation2] sm:$0xff] %v44_v2  ;;  %s1438_s2 = smov 106   ;;  %v1230_v13 = vld [vmem:[%s1711_s3 + $0x8] sm:$0xf]  ;;  %v1231_v14 = vld [vmem:[%s1711_s3 + $0x14] sm:$0xf] }
   0x5   :  { %47 = vst [vmem:[#allocation2 + $0x8] sm:$0xff] %v46_v3  ;;  %v1402_v26 = vld [vmem:[%s1712_s4 + $0x18] sm:$0xff]  ;;  %v1400_v36 = vld [vmem:[%s1712_s4 + $0x8] sm:$0xff]  ;;  %vm495_vm4 = vcmask 949248   ;;  %v1401_v48 = vld [vmem:[%s1712_s4 + $0x10] sm:$0xff]  ;;  %vm441_vm5 = vcmask 957440  }
   0x6   :  { %135 = vst [vmem:[#allocation4] sm:$0xff] %v134_v11  ;;  %v1404_v45 = vld [vmem:[%s1712_s4 + $0x28] sm:$0xff]  ;;  %vm603_vm6 = vcmask 875520   ;;  %v1406_v57 = vld [vmem:[%s1712_s4 + $0x38] sm:$0xff]  ;;  %v1403_v60 = vld [vmem:[%s1712_s4 + $0x20] sm:$0xff]  ;;  %vm549_vm7 = vcmask 883712  }
   0x7   :  { %137 = vst [vmem:[#allocation4 + $0x8] sm:$0xff] %v136_v12  ;;  %vm657_vm8 = vcmask 867328  }
   0x8   :  { %164 = vst [vmem:[#allocation5] sm:$0xf] %v1230_v13 }
   0x9   :  { %166 = vst [vmem:[#allocation5 + $0x4] sm:$0xf] %v1231_v14 }
   0xa   :  { %v1398_v4 = vld [vmem:[#allocation3] sm:$0xff] }
   0xb   :  { %v1234_v5 = vld [vmem:[#allocation2] sm:$0xf]  ;;  %v1396_v6 = vld [vmem:[#allocation2 + $0x4] sm:$0xf]  ;;  %244 = vrot.lane.b32.xlu1 %v1398_v4, %s1431_s9 }
   0xc   :  { %v1397_v7 = vld [vmem:[#allocation2 + $0x4] sm:$0xf0]  ;;  %v1236_v8 = vld [vmem:[#allocation2 + $0x8] sm:$0xf0] }
   0xd   :  { %v1235_v9 = vor.u32 %v1397_v7, %v1234_v5  ;;  %v1239_v10 = vor.u32 %v1396_v6, %v1236_v8  ;;  %v1408_v15 = vld [vmem:[#allocation4 + $0x4] sm:$0xf]  ;;  %v1316_v18 = vld [vmem:[#allocation4] sm:$0xf]  ;;  %v1405_v6 = vld [vmem:[%s1712_s4 + $0x30] sm:$0xff] }
   0xe   :  { %v1318_v16 = vld [vmem:[#allocation4 + $0x8] sm:$0xf0]  ;;  %v1409_v19 = vld [vmem:[#allocation4 + $0x4] sm:$0xf0] }
   0xf   :  { %240 = vrot.lane.b32.xlu0 %v1235_v9, %s1431_s9  ;;  %383 = vrot.lane.b32.xlu2 %v1239_v10, %s1432_s1  ;;  %v1528_v17 = vor.u32 %v1408_v15, %v1318_v16  ;;  %v1530_v20 = vor.u32 %v1409_v19, %v1316_v18  ;;  %v1413_v16 = vld [vmem:[%s1713_s5 + $0x10] sm:$0xff]  ;;  %v1407_v18 = vld [vmem:[%s1712_s4 + $0x40] sm:$0xff] }
  0x10   :  { %312 = vmatpush.bf16.msra.mxu3 %v1239_v10  ;;  %298 = vmatpush.bf16.msra.mxu2 %v1235_v9  ;;  %v1410_v21 = vld [vmem:[#allocation5] sm:$0xff] }
  0x13   :  { %381 = vrot.lane.b32.xlu1 %v1235_v9, %s1432_s1  ;;  %1256 = vmatmul.msk.bf16.vlgmr.msra.gmra.mxu2 %vm251_vm0, %v1399_v22 }
  0x14   :  { %1257 = vmatmul.msk.bf16.vlgmr.msra.gmra.mxu3 %vm251_vm0, %v1399_v22 }
  0x17   :  { %242 = vrot.lane.b32.xlu0 %v1239_v10, %s1431_s9  ;;  %385 = vrot.lane.b32.xlu2 %v1398_v4, %s1432_s1 }
  0x1b   :  { %329 = vrot.lane.b32.xlu1 %v1239_v10, %s1433_s0 }
  0x1f   :  { %327 = vrot.lane.b32.xlu0 %v1235_v9, %s1433_s0  ;;  %331 = vrot.lane.b32.xlu2 %v1398_v4, %s1433_s0 }
  0x23   :  { %491 = vrot.lane.b32.xlu1 %v1239_v10, %s1434_s10 }
  0x27   :  { %489 = vrot.lane.b32.xlu0 %v1235_v9, %s1434_s10  ;;  %493 = vrot.lane.b32.xlu2 %v1398_v4, %s1434_s10 }
  0x2b   :  { %437 = vrot.lane.b32.xlu1 %v1239_v10, %s1435_s15 }
  0x2f   :  { %435 = vrot.lane.b32.xlu0 %v1235_v9, %s1435_s15  ;;  %439 = vrot.lane.b32.xlu2 %v1398_v4, %s1435_s15 }
  0x33   :  { %599 = vrot.lane.b32.xlu1 %v1239_v10, %s1436_s16 }
  0x37   :  { %597 = vrot.lane.b32.xlu0 %v1235_v9, %s1436_s16  ;;  %601 = vrot.lane.b32.xlu2 %v1398_v4, %s1436_s16 }
  0x3b   :  { %545 = vrot.lane.b32.xlu1 %v1239_v10, %s1437_s17 }
  0x3f   :  { %543 = vrot.lane.b32.xlu0 %v1235_v9, %s1437_s17  ;;  %547 = vrot.lane.b32.xlu2 %v1398_v4, %s1437_s17 }
  0x43   :  { %653 = vrot.lane.b32.xlu1 %v1239_v10, %s1438_s2 }
  0x47   :  { %651 = vrot.lane.b32.xlu0 %v1235_v9, %s1438_s2  ;;  %655 = vrot.lane.b32.xlu2 %v1398_v4, %s1438_s2  ;;  %v1411_v4 = vld [vmem:[%s1713_s5] sm:$0xff] }
  0x4b   :  { %821 = vrot.lane.b32.xlu1 %v1528_v17, %s1433_s0 }
  0x4f   :  { %819 = vrot.lane.b32.xlu0 %v1530_v20, %s1433_s0  ;;  %823 = vrot.lane.b32.xlu2 %v1410_v21, %s1433_s0 }
  0x53   :  { %768 = vrot.lane.b32.xlu1 %v1528_v17, %s1431_s9 }
  0x57   :  { %766 = vrot.lane.b32.xlu0 %v1530_v20, %s1431_s9  ;;  %770 = vrot.lane.b32.xlu2 %v1410_v21, %s1431_s9 }
  0x5b   :  { %927 = vrot.lane.b32.xlu1 %v1528_v17, %s1435_s15 }
  0x5f   :  { %925 = vrot.lane.b32.xlu0 %v1530_v20, %s1435_s15  ;;  %929 = vrot.lane.b32.xlu2 %v1410_v21, %s1435_s15 }
  0x63   :  { %874 = vrot.lane.b32.xlu1 %v1528_v17, %s1432_s1 }
  0x67   :  { %872 = vrot.lane.b32.xlu0 %v1530_v20, %s1432_s1  ;;  %876 = vrot.lane.b32.xlu2 %v1410_v21, %s1432_s1 }
  0x69   :  { %v384_v23 = vpop.permute.xlu2 %383 }
  0x6b   :  { %1033 = vrot.lane.b32.xlu1 %v1528_v17, %s1437_s17 }
  0x6f   :  { %1031 = vrot.lane.b32.xlu0 %v1530_v20, %s1437_s17  ;;  %1035 = vrot.lane.b32.xlu2 %v1410_v21, %s1437_s17 }
  0x71   :  { %v386_v24 = vpop.permute.xlu2 %385 }
  0x72   :  { %v389_v25 = vsel %vm387_vm1, %v384_v23, %v386_v24 }
  0x73   :  { %416 = vmatpush.bf16.msrb.mxu3 %v389_v25  ;;  %980 = vrot.lane.b32.xlu1 %v1528_v17, %s1434_s10 }
  0x76   :  { %1273 = vmatmul.msk.bf16.vlgmr.msrb.gmra.mxu3 %vm251_vm0, %v1402_v26 }
  0x77   :  { %978 = vrot.lane.b32.xlu0 %v1530_v20, %s1434_s10  ;;  %982 = vrot.lane.b32.xlu2 %v1410_v21, %s1434_s10 }
  0x79   :  { %v332_v27 = vpop.permute.xlu2 %331 }
  0x7b   :  { %1139 = vrot.lane.b32.xlu1 %v1528_v17, %s1438_s2 }
  0x7d   :  { %v245_v28 = vpop.permute.xlu1 %244 }
  0x7f   :  { %1137 = vrot.lane.b32.xlu0 %v1530_v20, %s1438_s2  ;;  %1141 = vrot.lane.b32.xlu2 %v1410_v21, %s1438_s2 }
  0x81   :  { %v241_v29 = vpop.permute.xlu0 %240  ;;  %v494_v30 = vpop.permute.xlu2 %493 }
  0x83   :  { %1086 = vrot.lane.b32.xlu1 %v1528_v17, %s1436_s16 }
  0x85   :  { %v382_v31 = vpop.permute.xlu1 %381 }
  0x86   :  { %v388_v32 = vsel %vm387_vm1, %v382_v31, %v384_v23 }
  0x87   :  { %1084 = vrot.lane.b32.xlu0 %v1530_v20, %s1436_s16  ;;  %1088 = vrot.lane.b32.xlu2 %v1410_v21, %s1436_s16 }
  0x88   :  { %402 = vmatpush.bf16.msrb.mxu2 %v388_v32 }
  0x89   :  { %v243_v33 = vpop.permute.xlu0 %242  ;;  %v440_v37 = vpop.permute.xlu2 %439 }
  0x8a   :  { %v247_v34 = vsel %vm246_vm2, %v241_v29, %v243_v33  ;;  %v248_v35 = vsel %vm246_vm2, %v243_v33, %v245_v28 }
  0x8b   :  { %262 = vmatpush.bf16.msra.mxu0 %v247_v34  ;;  %276 = vmatpush.bf16.msra.mxu1 %v248_v35 }
  0x8c   :  { %1272 = vmatmul.msk.bf16.vlgmr.msrb.gmra.mxu2 %vm251_vm0, %v1402_v26 }
  0x8d   :  { %v330_v38 = vpop.permute.xlu1 %329 }
  0x8e   :  { %1250 = vmatmul.msk.bf16.vlgmr.msra.gmra.mxu0 %vm251_vm0, %v1400_v36  ;;  %1251 = vmatmul.msk.bf16.vlgmr.msra.gmra.mxu1 %vm251_vm0, %v1400_v36  ;;  %v335_v39 = vsel %vm333_vm3, %v330_v38, %v332_v27  ;;  %v1415_v27 = vld [vmem:[%s1713_s5 + $0x20] sm:$0xff] }
  0x8f   :  { %362 = vmatpush.bf16.msrb.mxu1 %v335_v39  ;;  %v1417_v39 = vld [vmem:[%s1713_s5 + $0x30] sm:$0xff] }
  0x91   :  { %v328_v40 = vpop.permute.xlu0 %327  ;;  %v602_v43 = vpop.permute.xlu2 %601 }
  0x92   :  { %v334_v41 = vsel %vm333_vm3, %v328_v40, %v330_v38 }
  0x93   :  { %348 = vmatpush.bf16.msrb.mxu0 %v334_v41  ;;  %v1414_v41 = vld [vmem:[%s1713_s5 + $0x18] sm:$0xff] }
  0x95   :  { %v492_v42 = vpop.permute.xlu1 %491 }
  0x96   :  { %v497_v44 = vsel %vm495_vm4, %v492_v42, %v494_v30  ;;  %v1412_v30 = vld [vmem:[%s1713_s5 + $0x8] sm:$0xff] }
  0x97   :  { %524 = vmatpush.bf16.msra.mxu3 %v497_v44 }
  0x99   :  { %v490_v46 = vpop.permute.xlu0 %489  ;;  %v548_v50 = vpop.permute.xlu2 %547 }
  0x9a   :  { %v496_v47 = vsel %vm495_vm4, %v490_v46, %v492_v42  ;;  %1289 = vmatmul.msk.bf16.vlgmr.msra.gmra.mxu3 %vm251_vm0, %v1404_v45 }
  0x9b   :  { %510 = vmatpush.bf16.msra.mxu2 %v496_v47 }
  0x9d   :  { %v438_v49 = vpop.permute.xlu1 %437 }
  0x9e   :  { %1264 = vmatmul.msk.bf16.vlgmr.msrb.gmra.mxu0 %vm251_vm0, %v1401_v48  ;;  %1265 = vmatmul.msk.bf16.vlgmr.msrb.gmra.mxu1 %vm251_vm0, %v1401_v48  ;;  %v443_v51 = vsel %vm441_vm5, %v438_v49, %v440_v37 }
  0x9f   :  { %1288 = vmatmul.msk.bf16.vlgmr.msra.gmra.mxu2 %vm251_vm0, %v1404_v45  ;;  %470 = vmatpush.bf16.msra.mxu1 %v443_v51 }
  0xa1   :  { %v436_v52 = vpop.permute.xlu0 %435  ;;  %v656_v55 = vpop.permute.xlu2 %655 }
  0xa2   :  { %v442_v53 = vsel %vm441_vm5, %v436_v52, %v438_v49  ;;  %v1419_v52 = vld [vmem:[%s1713_s5 + $0x40] sm:$0xff] }
  0xa3   :  { %456 = vmatpush.bf16.msra.mxu0 %v442_v53 }
  0xa5   :  { %v600_v54 = vpop.permute.xlu1 %599 }
  0xa6   :  { %v605_v56 = vsel %vm603_vm6, %v600_v54, %v602_v43 }
  0xa7   :  { %632 = vmatpush.bf16.msrb.mxu3 %v605_v56  ;;  %v300_v56 = vpop.f32.mrf.mxu2 }
  0xa9   :  { %v598_v58 = vpop.permute.xlu0 %597  ;;  %v824_v63 = vpop.permute.xlu2 %823 }
  0xaa   :  { %v604_v59 = vsel %vm603_vm6, %v598_v58, %v600_v54  ;;  %1305 = vmatmul.msk.bf16.vlgmr.msrb.gmra.mxu3 %vm251_vm0, %v1406_v57  ;;  %v1416_v54 = vld [vmem:[%s1713_s5 + $0x28] sm:$0xff]  ;;  %v1182_v58 = vld [vmem:[%s1714_s6] sm:$0xff] }
  0xab   :  { %747 = vmatpush.bf16.msra.mxu3 %v1528_v17  ;;  %618 = vmatpush.bf16.msrb.mxu2 %v604_v59 }
  0xad   :  { %v546_v61 = vpop.permute.xlu1 %545 }
  0xae   :  { %1280 = vmatmul.msk.bf16.vlgmr.msra.gmra.mxu0 %vm251_vm0, %v1403_v60  ;;  %1281 = vmatmul.msk.bf16.vlgmr.msra.gmra.mxu1 %vm251_vm0, %v1403_v60  ;;  %v551_v62 = vsel %vm549_vm7, %v546_v61, %v548_v50  ;;  %v314_v50 = vpop.f32.mrf.mxu3  ;;  %v1183_v60 = vld [vmem:[%s1714_s6 + $0x8] sm:$0xff] }
  0xaf   :  { %733 = vmatpush.bf16.msra.mxu2 %v1530_v20  ;;  %578 = vmatpush.bf16.msrb.mxu1 %v551_v62  ;;  %v1418_v62 = vld [vmem:[%s1713_s5 + $0x38] sm:$0xff] }
  0xb0   :  { %1304 = vmatmul.msk.bf16.vlgmr.msrb.gmra.mxu2 %vm251_vm0, %v1406_v57  ;;  %v1439_v57 = vmov 0  }
  0xb1   :  { %v544_v0 = vpop.permute.xlu0 %543  ;;  %v771_v8 = vpop.permute.xlu2 %770  ;;  %1429 = vset.pattern.permute.xlu0 %v1439_v57  ;;  %1430 = vset.pattern.permute.xlu1 %v1439_v57 }
  0xb2   :  { %v550_v1 = vsel %vm549_vm7, %v544_v0, %v546_v61  ;;  %1186 = vperm.xlu0 %1429, %v1182_v58   ;;  %v302_v61 = vpop.f32.mrf.mxu2  ;;  %1191 = vperm.xlu1 %1430, %v1183_v60  }
  0xb3   :  { %564 = vmatpush.bf16.msrb.mxu0 %v550_v1 }
  0xb5   :  { %v654_v2 = vpop.permute.xlu1 %653 }
  0xb6   :  { %v659_v3 = vsel %vm657_vm8, %v654_v2, %v656_v55  ;;  %v316_v59 = vpop.f32.mrf.mxu3 }
  0xb7   :  { %686 = vmatpush.bf16.msra.mxu1 %v659_v3 }
  0xb9   :  { %v652_v5 = vpop.permute.xlu0 %651  ;;  %v930_v13 = vpop.permute.xlu2 %929 }
  0xba   :  { %v658_v7 = vsel %vm657_vm8, %v652_v5, %v654_v2  ;;  %1331 = vmatmul.msk.bf16.vlgmr.msra.gmra.mxu3 %vm251_vm0, %v1411_v4 }
  0xbb   :  { %672 = vmatpush.bf16.msra.mxu0 %v658_v7 }
  0xbd   :  { %v822_v9 = vpop.permute.xlu1 %821 }
  0xbe   :  { %1296 = vmatmul.msk.bf16.vlgmr.msrb.gmra.mxu0 %vm251_vm0, %v1405_v6  ;;  %1297 = vmatmul.msk.bf16.vlgmr.msrb.gmra.mxu1 %vm251_vm0, %v1405_v6  ;;  %v826_v10 = vsel %vm333_vm3, %v822_v9, %v824_v63 }
  0xbf   :  { %853 = vmatpush.bf16.msrb.mxu3 %v826_v10 }
  0xc0   :  { %1330 = vmatmul.msk.bf16.vlgmr.msra.gmra.mxu2 %vm251_vm0, %v1411_v4 }
  0xc1   :  { %v820_v11 = vpop.permute.xlu0 %819  ;;  %v877_v21 = vpop.permute.xlu2 %876 }
  0xc2   :  { %v825_v12 = vsel %vm333_vm3, %v820_v11, %v822_v9 }
  0xc3   :  { %839 = vmatpush.bf16.msrb.mxu2 %v825_v12 }
  0xc5   :  { %v769_v14 = vpop.permute.xlu1 %768 }
  0xc6   :  { %v773_v15 = vsel %vm246_vm2, %v769_v14, %v771_v8 }
  0xc7   :  { %800 = vmatpush.bf16.msrb.mxu1 %v773_v15 }
  0xc9   :  { %v767_v17 = vpop.permute.xlu0 %766  ;;  %v1036_v28 = vpop.permute.xlu2 %1035 }
  0xca   :  { %v772_v19 = vsel %vm246_vm2, %v767_v17, %v769_v14  ;;  %1347 = vmatmul.msk.bf16.vlgmr.msrb.gmra.mxu3 %vm251_vm0, %v1413_v16 }
  0xcb   :  { %786 = vmatpush.bf16.msrb.mxu0 %v772_v19 }
  0xcd   :  { %v928_v20 = vpop.permute.xlu1 %927 }
  0xce   :  { %1312 = vmatmul.msk.bf16.vlgmr.msra.gmra.mxu0 %vm251_vm0, %v1407_v18  ;;  %1313 = vmatmul.msk.bf16.vlgmr.msra.gmra.mxu1 %vm251_vm0, %v1407_v18  ;;  %v932_v22 = vsel %vm441_vm5, %v928_v20, %v930_v13 }
  0xcf   :  { %959 = vmatpush.bf16.msra.mxu3 %v932_v22 }
  0xd0   :  { %1346 = vmatmul.msk.bf16.vlgmr.msrb.gmra.mxu2 %vm251_vm0, %v1413_v16 }
  0xd1   :  { %v926_v23 = vpop.permute.xlu0 %925  ;;  %v983_v36 = vpop.permute.xlu2 %982 }
  0xd2   :  { %v931_v24 = vsel %vm441_vm5, %v926_v23, %v928_v20 }
  0xd3   :  { %945 = vmatpush.bf16.msra.mxu2 %v931_v24 }
  0xd5   :  { %v875_v25 = vpop.permute.xlu1 %874 }
  0xd6   :  { %v879_v26 = vsel %vm387_vm1, %v875_v25, %v877_v21 }
  0xd7   :  { %906 = vmatpush.bf16.msra.mxu1 %v879_v26 }
  0xd9   :  { %v873_v29 = vpop.permute.xlu0 %872  ;;  %v1142_v43 = vpop.permute.xlu2 %1141 }
  0xda   :  { %v878_v31 = vsel %vm387_vm1, %v873_v29, %v875_v25  ;;  %1363 = vmatmul.msk.bf16.vlgmr.msra.gmra.mxu3 %vm251_vm0, %v1415_v27 }
  0xdb   :  { %892 = vmatpush.bf16.msra.mxu0 %v878_v31 }
  0xdd   :  { %v1034_v32 = vpop.permute.xlu1 %1033 }
  0xde   :  { %1338 = vmatmul.msk.bf16.vlgmr.msrb.gmra.mxu0 %vm251_vm0, %v1412_v30  ;;  %1339 = vmatmul.msk.bf16.vlgmr.msrb.gmra.mxu1 %vm251_vm0, %v1412_v30  ;;  %v1038_v33 = vsel %vm549_vm7, %v1034_v32, %v1036_v28 }
  0xdf   :  { %1065 = vmatpush.bf16.msrb.mxu3 %v1038_v33 }
  0xe0   :  { %1362 = vmatmul.msk.bf16.vlgmr.msra.gmra.mxu2 %vm251_vm0, %v1415_v27 }
  0xe1   :  { %v1032_v34 = vpop.permute.xlu0 %1031  ;;  %v1089_v48 = vpop.permute.xlu2 %1088 }
  0xe2   :  { %v1037_v35 = vsel %vm549_vm7, %v1032_v34, %v1034_v32 }
  0xe3   :  { %1051 = vmatpush.bf16.msrb.mxu2 %v1037_v35 }
  0xe5   :  { %v981_v37 = vpop.permute.xlu1 %980 }
  0xe6   :  { %v985_v38 = vsel %vm495_vm4, %v981_v37, %v983_v36 }
  0xe7   :  { %1012 = vmatpush.bf16.msrb.mxu1 %v985_v38 }
  0xe9   :  { %v979_v40 = vpop.permute.xlu0 %978 }
  0xea   :  { %v984_v42 = vsel %vm495_vm4, %v979_v40, %v981_v37  ;;  %1379 = vmatmul.msk.bf16.vlgmr.msrb.gmra.mxu3 %vm251_vm0, %v1417_v39 }
  0xeb   :  { %998 = vmatpush.bf16.msrb.mxu0 %v984_v42 }
  0xed   :  { %v1140_v44 = vpop.permute.xlu1 %1139 }
  0xee   :  { %1354 = vmatmul.msk.bf16.vlgmr.msra.gmra.mxu0 %vm251_vm0, %v1414_v41  ;;  %1355 = vmatmul.msk.bf16.vlgmr.msra.gmra.mxu1 %vm251_vm0, %v1414_v41  ;;  %v1144_v45 = vsel %vm657_vm8, %v1140_v44, %v1142_v43 }
  0xef   :  { %1171 = vmatpush.bf16.msra.mxu3 %v1144_v45 }
  0xf0   :  { %1378 = vmatmul.msk.bf16.vlgmr.msrb.gmra.mxu2 %vm251_vm0, %v1417_v39 }
  0xf1   :  { %v1138_v46 = vpop.permute.xlu0 %1137 }
  0xf2   :  { %v1143_v47 = vsel %vm657_vm8, %v1138_v46, %v1140_v44 }
  0xf3   :  { %1157 = vmatpush.bf16.msra.mxu2 %v1143_v47 }
  0xf5   :  { %v1087_v49 = vpop.permute.xlu1 %1086 }
  0xf6   :  { %v1091_v51 = vsel %vm603_vm6, %v1087_v49, %v1089_v48 }
  0xf7   :  { %1118 = vmatpush.bf16.msra.mxu1 %v1091_v51 }
  0xf9   :  { %v1085_v53 = vpop.permute.xlu0 %1084  ;;  %v418_v63 = vpop.f32.mrf.mxu3 }
  0xfa   :  { %v1090_v55 = vsel %vm603_vm6, %v1085_v53, %v1087_v49  ;;  %1395 = vmatmul.msk.bf16.vlgmr.msra.gmra.mxu3 %vm251_vm0, %v1419_v52 }
  0xfb   :  { %1104 = vmatpush.bf16.msra.mxu0 %v1090_v55 }
  0xfe   :  { %1370 = vmatmul.msk.bf16.vlgmr.msrb.gmra.mxu0 %vm251_vm0, %v1416_v54  ;;  %1371 = vmatmul.msk.bf16.vlgmr.msrb.gmra.mxu1 %vm251_vm0, %v1416_v54 }
 0x100   :  { %1394 = vmatmul.msk.bf16.vlgmr.msra.gmra.mxu2 %vm251_vm0, %v1419_v52 }
 0x101   :  { %v420_v9 = vpop.f32.mrf.mxu3 }
 0x10b   :  { %v264_v0 = vpop.f32.mrf.mxu0  ;;  %v278_v1 = vpop.f32.mrf.mxu1 }
 0x10c   :  { %v301_v2 = vadd.f32 %v300_v56, %v264_v0  ;;  %v315_v3 = vadd.f32 %v314_v50, %v278_v1 }
 0x10e   :  { %1386 = vmatmul.msk.bf16.vlgmr.msra.gmra.mxu0 %vm251_vm0, %v1418_v62  ;;  %1387 = vmatmul.msk.bf16.vlgmr.msra.gmra.mxu1 %vm251_vm0, %v1418_v62 }
 0x10f   :  { %v404_v4 = vpop.f32.mrf.mxu2 }
 0x113   :  { %v266_v5 = vpop.f32.mrf.mxu0  ;;  %v280_v6 = vpop.f32.mrf.mxu1 }
 0x114   :  { %v303_v7 = vadd.f32 %v302_v61, %v266_v5  ;;  %v317_v8 = vadd.f32 %v316_v59, %v280_v6 }
 0x117   :  { %v406_v10 = vpop.f32.mrf.mxu2 }
 0x11b   :  { %v350_v11 = vpop.f32.mrf.mxu0  ;;  %v364_v12 = vpop.f32.mrf.mxu1 }
 0x11c   :  { %v369_v13 = vadd.f32 %v350_v11, %v301_v2  ;;  %v370_v14 = vadd.f32 %v364_v12, %v315_v3 }
 0x11d   :  { %v526_v15 = vpop.f32.mrf.mxu3 }
 0x11e   :  { %v423_v16 = vadd.f32 %v404_v4, %v369_v13  ;;  %v424_v17 = vadd.f32 %v418_v63, %v370_v14 }
 0x122   :  { %v512_v18 = vpop.f32.mrf.mxu2 }
 0x123   :  { %v352_v19 = vpop.f32.mrf.mxu0  ;;  %v366_v20 = vpop.f32.mrf.mxu1 }
 0x124   :  { %v371_v21 = vadd.f32 %v352_v19, %v303_v7  ;;  %v372_v22 = vadd.f32 %v366_v20, %v317_v8 }
 0x125   :  { %v528_v23 = vpop.f32.mrf.mxu3 }
 0x126   :  { %v425_v24 = vadd.f32 %v406_v10, %v371_v21  ;;  %v426_v25 = vadd.f32 %v420_v9, %v372_v22 }
 0x12a   :  { %v514_v26 = vpop.f32.mrf.mxu2 }
 0x12b   :  { %v458_v27 = vpop.f32.mrf.mxu0  ;;  %v472_v28 = vpop.f32.mrf.mxu1 }
 0x12c   :  { %v477_v29 = vadd.f32 %v458_v27, %v423_v16  ;;  %v478_v30 = vadd.f32 %v472_v28, %v424_v17 }
 0x12d   :  { %v634_v31 = vpop.f32.mrf.mxu3 }
 0x12e   :  { %v531_v32 = vadd.f32 %v512_v18, %v477_v29  ;;  %v532_v33 = vadd.f32 %v526_v15, %v478_v30 }
 0x133   :  { %v620_v34 = vpop.f32.mrf.mxu2  ;;  %v460_v35 = vpop.f32.mrf.mxu0 }
 0x134   :  { %v474_v36 = vpop.f32.mrf.mxu1  ;;  %v479_v37 = vadd.f32 %v460_v35, %v425_v24 }
 0x135   :  { %v480_v38 = vadd.f32 %v474_v36, %v426_v25  ;;  %v636_v39 = vpop.f32.mrf.mxu3 }
 0x136   :  { %v533_v40 = vadd.f32 %v514_v26, %v479_v37 }
 0x137   :  { %v534_v41 = vadd.f32 %v528_v23, %v480_v38 }
 0x13b   :  { %v622_v42 = vpop.f32.mrf.mxu2  ;;  %v566_v43 = vpop.f32.mrf.mxu0 }
 0x13c   :  { %v580_v44 = vpop.f32.mrf.mxu1  ;;  %v585_v5 = vadd.f32 %v566_v43, %v531_v32 }
 0x13d   :  { %v749_v45 = vpop.f32.mrf.mxu3  ;;  %v586_v6 = vadd.f32 %v580_v44, %v532_v33 }
 0x13e   :  { %v639_v7 = vadd.f32 %v620_v34, %v585_v5 }
 0x13f   :  { %v640_v8 = vadd.f32 %v634_v31, %v586_v6 }
 0x143   :  { %v735_v46 = vpop.f32.mrf.mxu2  ;;  %v568_v47 = vpop.f32.mrf.mxu0 }
 0x144   :  { %v582_v48 = vpop.f32.mrf.mxu1  ;;  %v587_v13 = vadd.f32 %v568_v47, %v533_v40 }
 0x145   :  { %v751_v49 = vpop.f32.mrf.mxu3  ;;  %v588_v14 = vadd.f32 %v582_v48, %v534_v41 }
 0x146   :  { %v641_v19 = vadd.f32 %v622_v42, %v587_v13 }
 0x147   :  { %v642_v20 = vadd.f32 %v636_v39, %v588_v14 }
 0x14b   :  { %v737_v50 = vpop.f32.mrf.mxu2  ;;  %v674_v51 = vpop.f32.mrf.mxu0 }
 0x14c   :  { %v688_v52 = vpop.f32.mrf.mxu1  ;;  %v693_v11 = vadd.f32 %v674_v51, %v639_v7 }
 0x14d   :  { %v855_v53 = vpop.f32.mrf.mxu3  ;;  %v694_v12 = vadd.f32 %v688_v52, %v640_v8 }
 0x14e   :  { %v754_v17 = vadd.f32 %v735_v46, %v693_v11 }
 0x14f   :  { %v755_v18 = vadd.f32 %v749_v45, %v694_v12 }
 0x153   :  { %v841_v54 = vpop.f32.mrf.mxu2  ;;  %v676_v55 = vpop.f32.mrf.mxu0 }
 0x154   :  { %v690_v56 = vpop.f32.mrf.mxu1  ;;  %v695_v25 = vadd.f32 %v676_v55, %v641_v19 }
 0x155   :  { %v857_v57 = vpop.f32.mrf.mxu3  ;;  %v696_v26 = vadd.f32 %v690_v56, %v642_v20 }
 0x156   :  { %v756_v29 = vadd.f32 %v737_v50, %v695_v25 }
 0x157   :  { %v757_v30 = vadd.f32 %v751_v49, %v696_v26 }
 0x15b   :  { %v843_v58 = vpop.f32.mrf.mxu2  ;;  %v788_v59 = vpop.f32.mrf.mxu0 }
 0x15c   :  { %v802_v60 = vpop.f32.mrf.mxu1  ;;  %v807_v21 = vadd.f32 %v788_v59, %v754_v17  ;;  %v1187_v59 = vpop.permute.xlu0 %1186 }
 0x15d   :  { %v961_v62 = vpop.f32.mrf.mxu3  ;;  %v808_v22 = vadd.f32 %v802_v60, %v755_v18 }
 0x15e   :  { %v860_v27 = vadd.f32 %v841_v54, %v807_v21 }
 0x15f   :  { %v861_v28 = vadd.f32 %v855_v53, %v808_v22 }
 0x163   :  { %v947_v61 = vpop.f32.mrf.mxu2  ;;  %v790_v63 = vpop.f32.mrf.mxu0 }
 0x164   :  { %v804_v0 = vpop.f32.mrf.mxu1  ;;  %v809_v35 = vadd.f32 %v790_v63, %v756_v29 }
 0x165   :  { %v963_v4 = vpop.f32.mrf.mxu3  ;;  %v810_v36 = vadd.f32 %v804_v0, %v757_v30 }
 0x166   :  { %v862_v41 = vadd.f32 %v843_v58, %v809_v35 }
 0x167   :  { %v863_v42 = vadd.f32 %v857_v57, %v810_v36 }
 0x16b   :  { %v894_v1 = vpop.f32.mrf.mxu0  ;;  %v949_v3 = vpop.f32.mrf.mxu2 }
 0x16c   :  { %v908_v2 = vpop.f32.mrf.mxu1  ;;  %v913_v31 = vadd.f32 %v894_v1, %v860_v27 }
 0x16d   :  { %v1067_v16 = vpop.f32.mrf.mxu3  ;;  %v914_v32 = vadd.f32 %v908_v2, %v861_v28 }
 0x16e   :  { %v966_v40 = vadd.f32 %v947_v61, %v913_v31 }
 0x16f   :  { %v967_v39 = vadd.f32 %v961_v62, %v914_v32 }
 0x173   :  { %v896_v9 = vpop.f32.mrf.mxu0  ;;  %v1053_v15 = vpop.f32.mrf.mxu2 }
 0x174   :  { %v910_v10 = vpop.f32.mrf.mxu1  ;;  %v915_v45 = vadd.f32 %v896_v9, %v862_v41 }
 0x175   :  { %v1069_v34 = vpop.f32.mrf.mxu3  ;;  %v916_v46 = vadd.f32 %v910_v10, %v863_v42 }
 0x176   :  { %v968_v53 = vadd.f32 %v949_v3, %v915_v45  ;;  %v1192_v3 = vpop.permute.xlu1 %1191 }
 0x177   :  { %v969_v54 = vadd.f32 %v963_v4, %v916_v46 }
 0x17b   :  { %v1000_v23 = vpop.f32.mrf.mxu0  ;;  %v1055_v33 = vpop.f32.mrf.mxu2 }
 0x17c   :  { %v1014_v24 = vpop.f32.mrf.mxu1  ;;  %v1019_v43 = vadd.f32 %v1000_v23, %v966_v40 }
 0x17d   :  { %v1020_v44 = vadd.f32 %v1014_v24, %v967_v39  ;;  %v1173_v48 = vpop.f32.mrf.mxu3 }
 0x17e   :  { %v1072_v50 = vadd.f32 %v1053_v15, %v1019_v43 }
 0x17f   :  { %v1073_v49 = vadd.f32 %v1067_v16, %v1020_v44 }
 0x183   :  { %v1002_v37 = vpop.f32.mrf.mxu0  ;;  %v1159_v47 = vpop.f32.mrf.mxu2 }
 0x184   :  { %v1016_v38 = vpop.f32.mrf.mxu1  ;;  %v1021_v60 = vadd.f32 %v1002_v37, %v968_v53 }
 0x185   :  { %v1022_v61 = vadd.f32 %v1016_v38, %v969_v54  ;;  %v1175_v11 = vpop.f32.mrf.mxu3 }
 0x186   :  { %v1074_v2 = vadd.f32 %v1055_v33, %v1021_v60 }
 0x187   :  { %v1075_v5 = vadd.f32 %v1069_v34, %v1022_v61 }
 0x18b   :  { %v1106_v51 = vpop.f32.mrf.mxu0  ;;  %v1161_v4 = vpop.f32.mrf.mxu2 }
 0x18c   :  { %v1120_v52 = vpop.f32.mrf.mxu1  ;;  %v1125_v55 = vadd.f32 %v1106_v51, %v1072_v50 }
 0x18d   :  { %v1126_v56 = vadd.f32 %v1120_v52, %v1073_v49 }
 0x18e   :  { %v1178_v62 = vadd.f32 %v1159_v47, %v1125_v55 }
 0x18f   :  { %v1179_v58 = vadd.f32 %v1173_v48, %v1126_v56 }
 0x190   :  { %v1194_v57 = vadd.f32 %v1187_v59, %v1178_v62 }
 0x191   :  { %v1195_v63 = vadd.f32 %v1187_v59, %v1179_v58 }
 0x192   :  { %v1198_v0 = vmax.f32 %v1194_v57, 0.0 }
 0x193   :  { %v1199_v1 = vmax.f32 %v1195_v63, 0.0  ;;  %v1108_v6 = vpop.f32.mrf.mxu0 }
 0x194   :  { %v1122_v7 = vpop.f32.mrf.mxu1  ;;  %v1127_v9 = vadd.f32 %v1108_v6, %v1074_v2 }
 0x195   :  { %v1202_v8 = vpack.c.bf16 %v1199_v1, %v1198_v0  ;;  %v1128_v10 = vadd.f32 %v1122_v7, %v1075_v5 }
 0x196   :  { %v1180_v12 = vadd.f32 %v1161_v4, %v1127_v9 }
 0x197   :  { %1204 = vst [vmem:[%s1715_s7] sm:$0xff] %v1202_v8  ;;  %v1181_v13 = vadd.f32 %v1175_v11, %v1128_v10 }
 0x198   :  { %v1196_v14 = vadd.f32 %v1192_v3, %v1180_v12 }
 0x199   :  { %v1197_v15 = vadd.f32 %v1192_v3, %v1181_v13 }
 0x19a   :  { %v1200_v16 = vmax.f32 %v1196_v14, 0.0 }
 0x19b   :  { %v1201_v17 = vmax.f32 %v1197_v15, 0.0 }
 0x19d   :  { %v1203_v18 = vpack.c.bf16 %v1201_v17, %v1200_v16 }
 0x19f   :  { %1205 = vst [vmem:[%s1715_s7 + $0x8] sm:$0xff] %v1203_v18 }

// kernel: _lambda_.29
= control target key start
LH: loop header
LB: loop body
LE: loop exit
PB: predicated region body
PF: predicated region fallthrough
CT: control target
= control target key end

     0   :  { %v117_v2 = vmov 0   ;;  %vm38_vm0 = vcmask 1043456   ;;  %vm34_vm1 = vcmask 64512   ;;  %s162_s0 = inlined_call_operand.vmem [shape: bf16[8,512], index: 0, kind: input, shape index: {}]   ;;  %s163_s2 = inlined_call_operand.vmem [shape: f32[5,1], index: 2, kind: input, shape index: {}]   ;;  %s164_s1 = inlined_call_operand.vmem [shape: bf16[5,8], index: 1, kind: input, shape index: {}]   ;;  %s165_s3 = inlined_call_operand.vmem [shape: f32[5,512], index: 3, kind: output, shape index: {}]  }
   0x1   :  { %v15_v0 = vld [vmem:[%s162_s0] sm:$0xff]  ;;  %v16_v1 = vld [vmem:[%s162_s0 + $0x8] sm:$0xff]  ;;  %116 = vset.pattern.permute.xlu0 %v117_v2 }
   0x2   :  { %v26_v3 = vunpack.c.l.b16 %v15_v0  ;;  %v27_v4 = vunpack.c.h.b16 %v15_v0  ;;  %v28_v5 = vunpack.c.l.b16 %v16_v1  ;;  %v29_v6 = vunpack.c.h.b16 %v16_v1  ;;  %v17_v7 = vld [vmem:[%s163_s2] sm:$0x1f] }
   0x3   :  { %21 = vperm.xlu0 %116, %v17_v7   ;;  %v18_v16 = vld [vmem:[%s164_s1] sm:$0x7] }
   0x4   :  { %v30_v8 = vpack.c.b16 %v26_v3, %v26_v3  ;;  %v31_v9 = vpack.c.b16 %v27_v4, %v27_v4  ;;  %v32_v10 = vpack.c.b16 %v28_v5, %v28_v5  ;;  %v33_v11 = vpack.c.b16 %v29_v6, %v29_v6 }
   0x6   :  { %v40_v12 = vsel %vm38_vm0, %v30_v8, 0  ;;  %v43_v13 = vsel %vm38_vm0, %v31_v9, 0  ;;  %v46_v14 = vsel %vm38_vm0, %v32_v10, 0  ;;  %v49_v15 = vsel %vm38_vm0, %v33_v11, 0 }
   0x7   :  { %58 = vmatpush.bf16.msra.mxu0 %v40_v12  ;;  %71 = vmatpush.bf16.msra.mxu1 %v43_v13 }
   0x8   :  { %84 = vmatpush.bf16.msra.mxu2 %v46_v14  ;;  %97 = vmatpush.bf16.msra.mxu3 %v49_v15 }
   0xa   :  { %111 = vmatmul.msk.bf16.vlgmr.msra.gmra.mxu0 %vm34_vm1, %v18_v16  ;;  %112 = vmatmul.msk.bf16.vlgmr.msra.gmra.mxu1 %vm34_vm1, %v18_v16 }
   0xb   :  { %113 = vmatmul.msk.bf16.vlgmr.msra.gmra.mxu2 %vm34_vm1, %v18_v16  ;;  %114 = vmatmul.msk.bf16.vlgmr.msra.gmra.mxu3 %vm34_vm1, %v18_v16 }
  0x75   :  { %v22_v17 = vpop.permute.xlu0 %21 }
  0x87   :  { %v60_v18 = vpop.f32.mrf.mxu0  ;;  %v73_v19 = vpop.f32.mrf.mxu1 }
  0x88   :  { %v61_v20 = vadd.f32 %v60_v18, %v22_v17  ;;  %v74_v21 = vadd.f32 %v73_v19, %v22_v17 }
  0x8a   :  { %103 = vst [vmem:[%s165_s3] sm:$0x1f] %v61_v20 }
  0x8b   :  { %104 = vst [vmem:[%s165_s3 + $0x8] sm:$0x1f] %v74_v21 }
  0x8e   :  { %v86_v22 = vpop.f32.mrf.mxu2  ;;  %v99_v23 = vpop.f32.mrf.mxu3 }
  0x8f   :  { %v87_v24 = vadd.f32 %v86_v22, %v22_v17  ;;  %v100_v25 = vadd.f32 %v99_v23, %v22_v17  ;;  %v62_v26 = vpop.f32.mrf.mxu0  ;;  %v75_v27 = vpop.f32.mrf.mxu1 }
  0x91   :  { %105 = vst [vmem:[%s165_s3 + $0x10] sm:$0x1f] %v87_v24 }
  0x92   :  { %106 = vst [vmem:[%s165_s3 + $0x18] sm:$0x1f] %v100_v25 }
  0x96   :  { %v88_v28 = vpop.f32.mrf.mxu2  ;;  %v101_v29 = vpop.f32.mrf.mxu3 }

// kernel: _lambda_.27
= control target key start
LH: loop header
LB: loop body
LE: loop exit
PB: predicated region body
PF: predicated region fallthrough
CT: control target
= control target key end

     0   :  { %s2530_s30 = smov 127   ;;  %s2531_s9 = smov 126   ;;  %vm108_vm0 = vcmask 1039360   ;;  %vm119_vm1 = vcmask 1043456   ;;  %vm115_vm2 = vcmask 64512   ;;  %vm331_vm3 = vcmask 1031168   ;;  %s3306_s0 = inlined_call_operand.vmem [shape: bf16[8,896], index: 0, kind: input, shape index: {}, may-alias: {0,1}]   ;;  %s3307_s1 = inlined_call_operand.vmem [shape: bf16[8,896], index: 1, kind: input, shape index: {}, may-alias: {0,1}]   ;;  %s3308_s4 = inlined_call_operand.vmem [shape: bf16[9,8,8], index: 4, kind: input, shape index: {}]   ;;  %s3309_s2 = inlined_call_operand.vmem [shape: bf16[8,896], index: 2, kind: input, shape index: {}, may-alias: {2,3}]   ;;  %s3310_s3 = inlined_call_operand.vmem [shape: bf16[8,896], index: 3, kind: input, shape index: {}, may-alias: {2,3}]   ;;  %s3311_s5 = inlined_call_operand.vmem [shape: bf16[9,8,8], index: 5, kind: input, shape index: {}]   ;;  %s3312_s6 = inlined_call_operand.vmem [shape: f32[8,1], index: 6, kind: input, shape index: {}]   ;;  %s3313_s7 = inlined_call_operand.vmem [shape: bf16[8,768], index: 7, kind: output, shape index: {}]  }
   0x1   :  { %v73_v0 = vld [vmem:[%s3306_s0 + $0x10] sm:$0xff]  ;;  %v72_v1 = vld [vmem:[%s3306_s0 + $0x8] sm:$0xff]  ;;  %v71_v4 = vld [vmem:[%s3306_s0] sm:$0xff]  ;;  %s2533_s10 = smov 109   ;;  %s2534_s11 = smov 108   ;;  %vm459_vm4 = vcmask 900096  }
   0x2   :  { %v82_v2 = vunpack.c.l.b16 %v73_v0  ;;  %v80_v3 = vunpack.c.l.b16 %v72_v1  ;;  %v79_v5 = vunpack.c.h.b16 %v71_v4  ;;  %v81_v9 = vunpack.c.h.b16 %v72_v1  ;;  %v2615_v15 = vld [vmem:[%s3307_s1 + $0x18] sm:$0xf]  ;;  %s2532_s1 = smov 110   ;;  %s2535_s12 = smov 92   ;;  %v2700_v22 = vld [vmem:[%s3308_s4 + $0x4] sm:$0xf] }
   0x3   :  { %v78_v10 = vunpack.c.l.b16 %v71_v4  ;;  %v83_v11 = vunpack.c.h.b16 %v73_v0  ;;  %s2536_s13 = smov 91   ;;  %s2537_s16 = smov 90   ;;  %v90_v52 = vld [vmem:[%s3308_s4] sm:$0xf]  ;;  %vm587_vm5 = vcmask 891904   ;;  %vm715_vm6 = vcmask 883712  }
   0x4   :  { %v2588_v6 = vpack.c.b16 %v82_v2, %v82_v2  ;;  %v2590_v7 = vpack.c.b16 %v80_v3, %v80_v3  ;;  %v2592_v8 = vpack.c.b16 %v79_v5, %v79_v5  ;;  %v2600_v12 = vpack.c.b16 %v81_v9, %v81_v9 }
   0x5   :  { %v2602_v13 = vpack.c.b16 %v78_v10, %v78_v10  ;;  %v2604_v14 = vpack.c.b16 %v83_v11, %v83_v11  ;;  %v2407_v10 = vld [vmem:[%s3308_s4 + $0x8] sm:$0xf]  ;;  %vm843_vm7 = vcmask 752640   ;;  %vm971_vm8 = vcmask 744448  }
   0x6   :  { %102 = vrot.lane.b32.xlu1 %v2588_v6, %s2530_s30  ;;  %98 = vrot.lane.b32.xlu0 %v2590_v7, %s2530_s30  ;;  %v223_v34 = vsel %vm119_vm1, %v2592_v8, 0  ;;  %v232_v36 = vsel %vm119_vm1, %v2588_v6, 0  ;;  %v226_v38 = vsel %vm119_vm1, %v2590_v7, 0  ;;  %v229_v43 = vsel %vm119_vm1, %v2600_v12, 0 }
   0x7   :  { %96 = vrot.lane.b32.xlu2 %v2592_v8, %s2530_s30  ;;  %v220_v30 = vsel %vm119_vm1, %v2602_v13, 0  ;;  %v235_v37 = vsel %vm119_vm1, %v2604_v14, 0  ;;  %vm1099_vm9 = vcmask 736256  }
   0xe   :  { %100 = vrot.lane.b32.xlu0 %v2600_v12, %s2530_s30  ;;  %94 = vrot.lane.b32.xlu1 %v2602_v13, %s2530_s30 }
   0xf   :  { %104 = vrot.lane.b32.xlu2 %v2604_v14, %s2530_s30 }
  0x16   :  { %106 = vrot.lane.b32.xlu0 %v2615_v15, %s2530_s30  ;;  %321 = vrot.lane.b32.xlu1 %v2590_v7, %s2531_s9 }
  0x17   :  { %323 = vrot.lane.b32.xlu2 %v2600_v12, %s2531_s9 }
  0x1e   :  { %325 = vrot.lane.b32.xlu0 %v2588_v6, %s2531_s9  ;;  %317 = vrot.lane.b32.xlu1 %v2602_v13, %s2531_s9 }
  0x1f   :  { %319 = vrot.lane.b32.xlu2 %v2592_v8, %s2531_s9 }
  0x26   :  { %445 = vrot.lane.b32.xlu0 %v2602_v13, %s2532_s1  ;;  %447 = vrot.lane.b32.xlu1 %v2592_v8, %s2532_s1 }
  0x27   :  { %449 = vrot.lane.b32.xlu2 %v2590_v7, %s2532_s1 }
  0x2e   :  { %327 = vrot.lane.b32.xlu0 %v2604_v14, %s2531_s9  ;;  %329 = vrot.lane.b32.xlu1 %v2615_v15, %s2531_s9 }
  0x2f   :  { %453 = vrot.lane.b32.xlu2 %v2588_v6, %s2532_s1 }
  0x36   :  { %457 = vrot.lane.b32.xlu1 %v2615_v15, %s2532_s1  ;;  %455 = vrot.lane.b32.xlu0 %v2604_v14, %s2532_s1 }
  0x37   :  { %451 = vrot.lane.b32.xlu2 %v2600_v12, %s2532_s1 }
  0x3e   :  { %579 = vrot.lane.b32.xlu1 %v2600_v12, %s2533_s10  ;;  %577 = vrot.lane.b32.xlu0 %v2590_v7, %s2533_s10 }
  0x3f   :  { %581 = vrot.lane.b32.xlu2 %v2588_v6, %s2533_s10 }
  0x46   :  { %575 = vrot.lane.b32.xlu1 %v2592_v8, %s2533_s10  ;;  %573 = vrot.lane.b32.xlu0 %v2602_v13, %s2533_s10 }
  0x47   :  { %701 = vrot.lane.b32.xlu2 %v2602_v13, %s2534_s11 }
  0x4e   :  { %705 = vrot.lane.b32.xlu1 %v2590_v7, %s2534_s11  ;;  %703 = vrot.lane.b32.xlu0 %v2592_v8, %s2534_s11 }
  0x4f   :  { %583 = vrot.lane.b32.xlu2 %v2604_v14, %s2533_s10 }
  0x56   :  { %709 = vrot.lane.b32.xlu1 %v2588_v6, %s2534_s11  ;;  %585 = vrot.lane.b32.xlu0 %v2615_v15, %s2533_s10 }
  0x57   :  { %711 = vrot.lane.b32.xlu2 %v2604_v14, %s2534_s11 }
  0x5e   :  { %707 = vrot.lane.b32.xlu1 %v2600_v12, %s2534_s11  ;;  %713 = vrot.lane.b32.xlu0 %v2615_v15, %s2534_s11 }
  0x5f   :  { %833 = vrot.lane.b32.xlu2 %v2590_v7, %s2535_s12 }
  0x61   :  { %v97_v16 = vpop.permute.xlu2 %96 }
  0x66   :  { %835 = vrot.lane.b32.xlu0 %v2600_v12, %s2535_s12  ;;  %837 = vrot.lane.b32.xlu1 %v2588_v6, %s2535_s12 }
  0x67   :  { %829 = vrot.lane.b32.xlu2 %v2602_v13, %s2535_s12 }
  0x69   :  { %v105_v17 = vpop.permute.xlu2 %104 }
  0x6e   :  { %831 = vrot.lane.b32.xlu0 %v2592_v8, %s2535_s12  ;;  %957 = vrot.lane.b32.xlu1 %v2602_v13, %s2536_s13 }
  0x6f   :  { %959 = vrot.lane.b32.xlu2 %v2592_v8, %s2536_s13 }
  0x71   :  { %v324_v23 = vpop.permute.xlu2 %323 }
  0x76   :  { %961 = vrot.lane.b32.xlu0 %v2590_v7, %s2536_s13  ;;  %839 = vrot.lane.b32.xlu1 %v2604_v14, %s2535_s12 }
  0x77   :  { %841 = vrot.lane.b32.xlu2 %v2615_v15, %s2535_s12 }
  0x78   :  { %v103_v18 = vpop.permute.xlu1 %102  ;;  %v99_v19 = vpop.permute.xlu0 %98 }
  0x79   :  { %v110_v20 = vsel %vm108_vm0, %v97_v16, %v99_v19  ;;  %v113_v26 = vsel %vm108_vm0, %v103_v18, %v105_v17  ;;  %v320_v39 = vpop.permute.xlu2 %319 }
  0x7a   :  { %v124_v21 = vsel %vm119_vm1, %v110_v20, 0  ;;  %v133_v35 = vsel %vm119_vm1, %v113_v26, 0  ;;  %v1212_v26 = vld [vmem:[%s3309_s2 + $0x8] sm:$0xff] }
  0x7b   :  { %158 = vmatpush.bf16.msra.mxu1 %v124_v21 }
  0x7e   :  { %2396 = vmatmul.msk.bf16.vlgmr.msra.gmra.mxu1 %vm115_vm2, %v2700_v22  ;;  %965 = vrot.lane.b32.xlu0 %v2588_v6, %s2536_s13 }
  0x7f   :  { %967 = vrot.lane.b32.xlu1 %v2604_v14, %s2536_s13  ;;  %969 = vrot.lane.b32.xlu2 %v2615_v15, %s2536_s13 }
  0x80   :  { %v101_v24 = vpop.permute.xlu0 %100  ;;  %v95_v25 = vpop.permute.xlu1 %94 }
  0x81   :  { %v109_v27 = vsel %vm108_vm0, %v95_v25, %v97_v16  ;;  %v111_v28 = vsel %vm108_vm0, %v99_v19, %v101_v24  ;;  %v112_v29 = vsel %vm108_vm0, %v101_v24, %v103_v18  ;;  %v450_v53 = vpop.permute.xlu2 %449 }
  0x82   :  { %v121_v31 = vsel %vm119_vm1, %v109_v27, 0  ;;  %v127_v32 = vsel %vm119_vm1, %v111_v28, 0  ;;  %v130_v33 = vsel %vm119_vm1, %v112_v29, 0  ;;  %v1213_v27 = vld [vmem:[%s3309_s2 + $0x10] sm:$0xff]  ;;  %v1221_v28 = vunpack.c.h.b16 %v1212_v26 }
  0x83   :  { %145 = vmatpush.bf16.msra.mxu0 %v121_v31  ;;  %171 = vmatpush.bf16.msra.mxu2 %v127_v32  ;;  %v1222_v29 = vunpack.c.l.b16 %v1213_v27 }
  0x84   :  { %184 = vmatpush.bf16.msra.mxu3 %v130_v33  ;;  %v2808_v32 = vpack.c.b16 %v1221_v28, %v1221_v28 }
  0x85   :  { %v2810_v33 = vpack.c.b16 %v1222_v29, %v1222_v29 }
  0x86   :  { %2395 = vmatmul.msk.bf16.vlgmr.msra.gmra.mxu0 %vm115_vm2, %v2700_v22  ;;  %2397 = vmatmul.msk.bf16.vlgmr.msra.gmra.mxu2 %vm115_vm2, %v2700_v22 }
  0x87   :  { %197 = vmatpush.bf16.msrb.mxu0 %v133_v35  ;;  %244 = vmatpush.bf16.msrb.mxu2 %v220_v30 }
  0x88   :  { %257 = vmatpush.bf16.msrb.mxu3 %v223_v34  ;;  %v107_v40 = vpop.permute.xlu0 %106  ;;  %v322_v41 = vpop.permute.xlu1 %321  ;;  %963 = vrot.lane.b32.xlu0 %v2600_v12, %s2536_s13 }
  0x89   :  { %2398 = vmatmul.msk.bf16.vlgmr.msra.gmra.mxu3 %vm115_vm2, %v2700_v22  ;;  %v114_v42 = vsel %vm108_vm0, %v105_v17, %v107_v40  ;;  %v333_v44 = vsel %vm331_vm3, %v320_v39, %v322_v41  ;;  %1089 = vrot.lane.b32.xlu1 %v2590_v7, %s2537_s16  ;;  %v334_v49 = vsel %vm331_vm3, %v322_v41, %v324_v23  ;;  %v454_v59 = vpop.permute.xlu2 %453  ;;  %v1211_v41 = vld [vmem:[%s3309_s2] sm:$0xff] }
  0x8a   :  { %v136_v45 = vsel %vm119_vm1, %v114_v42, 0  ;;  %1091 = vrot.lane.b32.xlu2 %v2600_v12, %s2537_s16  ;;  %v345_v46 = vsel %vm119_vm1, %v333_v44, 0  ;;  %v348_v54 = vsel %vm119_vm1, %v334_v49, 0  ;;  %v1219_v44 = vunpack.c.h.b16 %v1211_v41 }
  0x8b   :  { %296 = vmatpush.bf16.msra.mxu2 %v232_v36  ;;  %270 = vmatpush.bf16.msra.mxu0 %v226_v38  ;;  %v2414_v36 = vld [vmem:[%s3308_s4 + $0xc] sm:$0xf] }
  0x8c   :  { %309 = vmatpush.bf16.msra.mxu3 %v235_v37  ;;  %210 = vmatpush.bf16.msrb.mxu1 %v136_v45  ;;  %v1218_v45 = vunpack.c.l.b16 %v1211_v41 }
  0x8f   :  { %2400 = vmatmul.msk.bf16.vlgmr.msrb.gmra.mxu1 %vm115_vm2, %v2700_v22 }
  0x90   :  { %283 = vmatpush.bf16.msra.mxu1 %v229_v43  ;;  %v326_v47 = vpop.permute.xlu0 %325  ;;  %v318_v48 = vpop.permute.xlu1 %317  ;;  %1093 = vrot.lane.b32.xlu0 %v2588_v6, %s2537_s16 }
  0x91   :  { %1085 = vrot.lane.b32.xlu1 %v2602_v13, %s2537_s16  ;;  %v335_v50 = vsel %vm331_vm3, %v324_v23, %v326_v47  ;;  %v332_v51 = vsel %vm331_vm3, %v318_v48, %v320_v39  ;;  %v452_v6 = vpop.permute.xlu2 %451  ;;  %v2833_v48 = vpack.c.b16 %v1218_v45, %v1218_v45 }
  0x92   :  { %1087 = vrot.lane.b32.xlu2 %v2592_v8, %s2537_s16  ;;  %v351_v55 = vsel %vm119_vm1, %v335_v50, 0  ;;  %v342_v56 = vsel %vm119_vm1, %v332_v51, 0  ;;  %v463_v9 = vsel %vm459_vm4, %v452_v6, %v454_v59  ;;  %v1220_v51 = vunpack.c.l.b16 %v1212_v26 }
  0x93   :  { %v479_v11 = vsel %vm119_vm1, %v463_v9, 0 }
  0x94   :  { %379 = vmatpush.bf16.msrb.mxu1 %v345_v46 }
  0x96   :  { %2399 = vmatmul.msk.bf16.vlgmr.msrb.gmra.mxu0 %vm115_vm2, %v2700_v22  ;;  %2401 = vmatmul.msk.bf16.vlgmr.msrb.gmra.mxu2 %vm115_vm2, %v90_v52 }
  0x97   :  { %392 = vmatpush.bf16.msrb.mxu2 %v348_v54  ;;  %366 = vmatpush.bf16.msrb.mxu0 %v342_v56  ;;  %v2841_v54 = vpack.c.b16 %v1220_v51, %v1220_v51 }
  0x98   :  { %v446_v57 = vpop.permute.xlu0 %445  ;;  %v448_v58 = vpop.permute.xlu1 %447  ;;  %1095 = vrot.lane.b32.xlu0 %v2604_v14, %s2537_s16  ;;  %v462_v14 = vsel %vm459_vm4, %v450_v53, %v452_v6 }
  0x99   :  { %2402 = vmatmul.msk.bf16.vlgmr.msrb.gmra.mxu3 %vm115_vm2, %v90_v52  ;;  %1097 = vrot.lane.b32.xlu1 %v2615_v15, %s2537_s16  ;;  %v460_v0 = vsel %vm459_vm4, %v446_v57, %v448_v58  ;;  %v461_v1 = vsel %vm459_vm4, %v448_v58, %v450_v53  ;;  %v476_v17 = vsel %vm119_vm1, %v462_v14, 0  ;;  %v582_v18 = vpop.permute.xlu2 %581 }
  0x9a   :  { %405 = vmatpush.bf16.msrb.mxu3 %v351_v55  ;;  %v470_v4 = vsel %vm119_vm1, %v460_v0, 0  ;;  %v473_v5 = vsel %vm119_vm1, %v461_v1, 0  ;;  %1343 = vrot.lane.b32.xlu2 %v2841_v54, %s2530_s30 }
  0x9f   :  { %2404 = vmatmul.msk.bf16.vlgmr.msra.gmra.mxu1 %vm115_vm2, %v90_v52 }
  0xa0   :  { %v328_v60 = vpop.permute.xlu0 %327  ;;  %v330_v61 = vpop.permute.xlu1 %329  ;;  %1345 = vrot.lane.b32.xlu0 %v2808_v32, %s2530_s30 }
  0xa1   :  { %v336_v62 = vsel %vm331_vm3, %v326_v47, %v328_v60  ;;  %v337_v63 = vsel %vm331_vm3, %v328_v60, %v330_v61  ;;  %v702_v25 = vpop.permute.xlu2 %701  ;;  %1347 = vrot.lane.b32.xlu1 %v2810_v33, %s2530_s30  ;;  %v2831_v47 = vpack.c.b16 %v1219_v44, %v1219_v44 }
  0xa2   :  { %v357_v2 = vsel %vm119_vm1, %v337_v63, 0  ;;  %v354_v3 = vsel %vm119_vm1, %v336_v62, 0  ;;  %1339 = vrot.lane.b32.xlu2 %v2833_v48, %s2530_s30 }
  0xa3   :  { %431 = vmatpush.bf16.msra.mxu1 %v357_v2  ;;  %v2421_v2 = vld [vmem:[%s3308_s4 + $0x10] sm:$0xf] }
  0xa6   :  { %2403 = vmatmul.msk.bf16.vlgmr.msra.gmra.mxu0 %vm115_vm2, %v90_v52  ;;  %2405 = vmatmul.msk.bf16.vlgmr.msra.gmra.mxu2 %vm115_vm2, %v90_v52 }
  0xa7   :  { %418 = vmatpush.bf16.msra.mxu0 %v354_v3  ;;  %494 = vmatpush.bf16.msra.mxu2 %v470_v4 }
  0xa8   :  { %v458_v7 = vpop.permute.xlu1 %457  ;;  %v456_v8 = vpop.permute.xlu0 %455  ;;  %1341 = vrot.lane.b32.xlu0 %v2831_v47, %s2530_s30 }
  0xa9   :  { %2406 = vmatmul.msk.bf16.vlgmr.msra.gmra.mxu3 %vm115_vm2, %v90_v52  ;;  %v464_v15 = vsel %vm459_vm4, %v454_v59, %v456_v8  ;;  %v465_v16 = vsel %vm459_vm4, %v456_v8, %v458_v7  ;;  %v584_v42 = vpop.permute.xlu2 %583  ;;  %1466 = vrot.lane.b32.xlu1 %v2833_v48, %s2531_s9  ;;  %v1223_v52 = vunpack.c.h.b16 %v1213_v27 }
  0xaa   :  { %507 = vmatpush.bf16.msra.mxu3 %v473_v5  ;;  %v482_v19 = vsel %vm119_vm1, %v464_v15, 0  ;;  %v485_v20 = vsel %vm119_vm1, %v465_v16, 0  ;;  %v592_v56 = vsel %vm587_vm5, %v582_v18, %v584_v42  ;;  %1468 = vrot.lane.b32.xlu2 %v2831_v47, %s2531_s9 }
  0xab   :  { %v2843_v55 = vpack.c.b16 %v1223_v52, %v1223_v52  ;;  %v610_v60 = vsel %vm119_vm1, %v592_v56, 0 }
  0xaf   :  { %2409 = vmatmul.msk.bf16.vlgmr.msrb.gmra.mxu1 %vm115_vm2, %v2407_v10 }
  0xb0   :  { %533 = vmatpush.bf16.msrb.mxu1 %v479_v11  ;;  %v580_v12 = vpop.permute.xlu1 %579  ;;  %v578_v13 = vpop.permute.xlu0 %577  ;;  %1470 = vrot.lane.b32.xlu0 %v2841_v54, %s2531_s9 }
  0xb1   :  { %v590_v31 = vsel %vm587_vm5, %v578_v13, %v580_v12  ;;  %v591_v34 = vsel %vm587_vm5, %v580_v12, %v582_v18  ;;  %v712_v53 = vpop.permute.xlu2 %711  ;;  %1349 = vrot.lane.b32.xlu1 %v2843_v55, %s2530_s30 }
  0xb2   :  { %v604_v37 = vsel %vm119_vm1, %v590_v31, 0  ;;  %v607_v39 = vsel %vm119_vm1, %v591_v34, 0 }
  0xb6   :  { %2408 = vmatmul.msk.bf16.vlgmr.msrb.gmra.mxu0 %vm115_vm2, %v2407_v10  ;;  %2410 = vmatmul.msk.bf16.vlgmr.msrb.gmra.mxu2 %vm115_vm2, %v2407_v10 }
  0xb7   :  { %520 = vmatpush.bf16.msrb.mxu0 %v476_v17  ;;  %546 = vmatpush.bf16.msrb.mxu2 %v482_v19 }
  0xb8   :  { %v576_v21 = vpop.permute.xlu1 %575  ;;  %v574_v22 = vpop.permute.xlu0 %573  ;;  %1474 = vrot.lane.b32.xlu0 %v2810_v33, %s2531_s9 }
  0xb9   :  { %2411 = vmatmul.msk.bf16.vlgmr.msrb.gmra.mxu3 %vm115_vm2, %v2407_v10  ;;  %v589_v23 = vsel %vm587_vm5, %v576_v21, %v578_v13  ;;  %v588_v35 = vsel %vm587_vm5, %v574_v22, %v576_v21  ;;  %v834_v1 = vpop.permute.xlu2 %833  ;;  %1476 = vrot.lane.b32.xlu1 %v2843_v55, %s2531_s9  ;;  %v2428_v21 = vld [vmem:[%s3308_s4 + $0x14] sm:$0xf] }
  0xba   :  { %559 = vmatpush.bf16.msrb.mxu3 %v485_v20  ;;  %v601_v24 = vsel %vm119_vm1, %v589_v23, 0  ;;  %v598_v40 = vsel %vm119_vm1, %v588_v35, 0 }
  0xbf   :  { %2413 = vmatmul.msk.bf16.vlgmr.msra.gmra.mxu1 %vm115_vm2, %v2407_v10 }
  0xc0   :  { %635 = vmatpush.bf16.msra.mxu1 %v601_v24  ;;  %v704_v30 = vpop.permute.xlu0 %703  ;;  %v706_v38 = vpop.permute.xlu1 %705  ;;  %1472 = vrot.lane.b32.xlu0 %v2808_v32, %s2531_s9 }
  0xc1   :  { %v716_v57 = vsel %vm715_vm6, %v702_v25, %v704_v30  ;;  %v717_v58 = vsel %vm715_vm6, %v704_v30, %v706_v38  ;;  %1597 = vrot.lane.b32.xlu1 %v2841_v54, %s2532_s1  ;;  %v2916_v30 = vld [vmem:[%s3310_s3 + $0x18] sm:$0xf] }
  0xc2   :  { %v726_v61 = vsel %vm119_vm1, %v716_v57, 0  ;;  %v729_v62 = vsel %vm119_vm1, %v717_v58, 0  ;;  %1351 = vrot.lane.b32.xlu2 %v2916_v30, %s2530_s30 }
  0xc6   :  { %2412 = vmatmul.msk.bf16.vlgmr.msra.gmra.mxu0 %vm115_vm2, %v2407_v10  ;;  %2415 = vmatmul.msk.bf16.vlgmr.msra.gmra.mxu2 %vm115_vm2, %v2414_v36  ;;  %v830_v10 = vpop.permute.xlu2 %829 }
  0xc7   :  { %648 = vmatpush.bf16.msra.mxu2 %v604_v37  ;;  %622 = vmatpush.bf16.msra.mxu0 %v598_v40 }
  0xc8   :  { %v586_v43 = vpop.permute.xlu0 %585  ;;  %v710_v50 = vpop.permute.xlu1 %709  ;;  %1601 = vrot.lane.b32.xlu0 %v2810_v33, %s2532_s1 }
  0xc9   :  { %2416 = vmatmul.msk.bf16.vlgmr.msra.gmra.mxu3 %vm115_vm2, %v2414_v36  ;;  %v593_v46 = vsel %vm587_vm5, %v584_v42, %v586_v43  ;;  %v720_v6 = vsel %vm715_vm6, %v710_v50, %v712_v53  ;;  %1593 = vrot.lane.b32.xlu1 %v2833_v48, %s2532_s1 }
  0xca   :  { %661 = vmatpush.bf16.msra.mxu3 %v607_v39  ;;  %v613_v49 = vsel %vm119_vm1, %v593_v46, 0  ;;  %v738_v11 = vsel %vm119_vm1, %v720_v6, 0  ;;  %1478 = vrot.lane.b32.xlu2 %v2916_v30, %s2531_s9 }
  0xce   :  { %v960_v17 = vpop.permute.xlu2 %959 }
  0xcf   :  { %2418 = vmatmul.msk.bf16.vlgmr.msrb.gmra.mxu1 %vm115_vm2, %v2414_v36 }
  0xd0   :  { %687 = vmatpush.bf16.msrb.mxu1 %v613_v49  ;;  %v714_v59 = vpop.permute.xlu0 %713  ;;  %v708_v63 = vpop.permute.xlu1 %707  ;;  %1720 = vrot.lane.b32.xlu0 %v2833_v48, %s2533_s10 }
  0xd1   :  { %v719_v0 = vsel %vm715_vm6, %v708_v63, %v710_v50  ;;  %v718_v5 = vsel %vm715_vm6, %v706_v38, %v708_v63  ;;  %v721_v7 = vsel %vm715_vm6, %v712_v53, %v714_v59  ;;  %1722 = vrot.lane.b32.xlu1 %v2831_v47, %s2533_s10  ;;  %v2435_v53 = vld [vmem:[%s3308_s4 + $0x18] sm:$0xf] }
  0xd2   :  { %v735_v3 = vsel %vm119_vm1, %v719_v0, 0  ;;  %v732_v8 = vsel %vm119_vm1, %v718_v5, 0  ;;  %v741_v12 = vsel %vm119_vm1, %v721_v7, 0  ;;  %1599 = vrot.lane.b32.xlu2 %v2808_v32, %s2532_s1 }
  0xd6   :  { %2417 = vmatmul.msk.bf16.vlgmr.msrb.gmra.mxu0 %vm115_vm2, %v2414_v36  ;;  %2419 = vmatmul.msk.bf16.vlgmr.msrb.gmra.mxu2 %vm115_vm2, %v2414_v36  ;;  %v842_v26 = vpop.permute.xlu2 %841 }
  0xd7   :  { %674 = vmatpush.bf16.msrb.mxu0 %v610_v60  ;;  %750 = vmatpush.bf16.msrb.mxu2 %v726_v61 }
  0xd8   :  { %v836_v4 = vpop.permute.xlu0 %835  ;;  %v838_v9 = vpop.permute.xlu1 %837  ;;  %1603 = vrot.lane.b32.xlu0 %v2843_v55, %s2532_s1 }
  0xd9   :  { %2420 = vmatmul.msk.bf16.vlgmr.msrb.gmra.mxu3 %vm115_vm2, %v2414_v36  ;;  %v846_v18 = vsel %vm843_vm7, %v834_v1, %v836_v4  ;;  %v847_v19 = vsel %vm843_vm7, %v836_v4, %v838_v9  ;;  %1605 = vrot.lane.b32.xlu1 %v2916_v30, %s2532_s1 }
  0xda   :  { %763 = vmatpush.bf16.msrb.mxu3 %v729_v62  ;;  %v860_v22 = vsel %vm119_vm1, %v846_v18, 0  ;;  %v863_v24 = vsel %vm119_vm1, %v847_v19, 0  ;;  %1595 = vrot.lane.b32.xlu2 %v2831_v47, %s2532_s1 }
  0xde   :  { %v970_v38 = vpop.permute.xlu2 %969 }
  0xdf   :  { %2423 = vmatmul.msk.bf16.vlgmr.msra.gmra.mxu1 %vm115_vm2, %v2421_v2 }
  0xe0   :  { %789 = vmatpush.bf16.msra.mxu1 %v735_v3  ;;  %v832_v13 = vpop.permute.xlu0 %831  ;;  %v958_v16 = vpop.permute.xlu1 %957  ;;  %1730 = vrot.lane.b32.xlu0 %v2843_v55, %s2533_s10 }
  0xe1   :  { %v845_v14 = vsel %vm843_vm7, %v832_v13, %v834_v1  ;;  %v844_v20 = vsel %vm843_vm7, %v830_v10, %v832_v13  ;;  %v972_v36 = vsel %vm971_vm8, %v958_v16, %v960_v17  ;;  %1732 = vrot.lane.b32.xlu1 %v2916_v30, %s2533_s10 }
  0xe2   :  { %v857_v15 = vsel %vm119_vm1, %v845_v14, 0  ;;  %v854_v25 = vsel %vm119_vm1, %v844_v20, 0  ;;  %v982_v42 = vsel %vm119_vm1, %v972_v36, 0  ;;  %1724 = vrot.lane.b32.xlu2 %v2841_v54, %s2533_s10 }
  0xe6   :  { %2422 = vmatmul.msk.bf16.vlgmr.msra.gmra.mxu0 %vm115_vm2, %v2421_v2  ;;  %2424 = vmatmul.msk.bf16.vlgmr.msra.gmra.mxu2 %vm115_vm2, %v2421_v2  ;;  %v1092_v57 = vpop.permute.xlu2 %1091 }
  0xe7   :  { %776 = vmatpush.bf16.msra.mxu0 %v732_v8  ;;  %802 = vmatpush.bf16.msra.mxu2 %v738_v11 }
  0xe8   :  { %v962_v23 = vpop.permute.xlu0 %961  ;;  %v840_v27 = vpop.permute.xlu1 %839  ;;  %1851 = vrot.lane.b32.xlu0 %v2841_v54, %s2534_s11 }
  0xe9   :  { %2425 = vmatmul.msk.bf16.vlgmr.msra.gmra.mxu3 %vm115_vm2, %v2421_v2  ;;  %v849_v28 = vsel %vm843_vm7, %v840_v27, %v842_v26  ;;  %v848_v35 = vsel %vm843_vm7, %v838_v9, %v840_v27  ;;  %v973_v37 = vsel %vm971_vm8, %v960_v17, %v962_v23  ;;  %1853 = vrot.lane.b32.xlu1 %v2808_v32, %s2534_s11 }
  0xea   :  { %815 = vmatpush.bf16.msra.mxu3 %v741_v12  ;;  %v869_v31 = vsel %vm119_vm1, %v849_v28, 0  ;;  %v866_v41 = vsel %vm119_vm1, %v848_v35, 0  ;;  %v985_v43 = vsel %vm119_vm1, %v973_v37, 0  ;;  %1728 = vrot.lane.b32.xlu2 %v2810_v33, %s2533_s10 }
  0xee   :  { %v1088_v5 = vpop.permute.xlu2 %1087 }
  0xef   :  { %2427 = vmatmul.msk.bf16.vlgmr.msrb.gmra.mxu1 %vm115_vm2, %v2421_v2 }
  0xf0   :  { %891 = vmatpush.bf16.msrb.mxu1 %v857_v15  ;;  %v966_v34 = vpop.permute.xlu0 %965  ;;  %1847 = vrot.lane.b32.xlu0 %v2833_v48, %s2534_s11 }
  0xf1   :  { %v968_v45 = vpop.permute.xlu1 %967  ;;  %1849 = vrot.lane.b32.xlu1 %v2831_v47, %s2534_s11 }
  0xf2   :  { %v976_v61 = vsel %vm971_vm8, %v966_v34, %v968_v45  ;;  %v977_v62 = vsel %vm971_vm8, %v968_v45, %v970_v38  ;;  %1726 = vrot.lane.b32.xlu2 %v2808_v32, %s2533_s10 }
  0xf3   :  { %v994_v3 = vsel %vm119_vm1, %v976_v61, 0  ;;  %v997_v4 = vsel %vm119_vm1, %v977_v62, 0  ;;  %v2449_v62 = vld [vmem:[%s3308_s4 + $0x20] sm:$0xf] }
  0xf6   :  { %2426 = vmatmul.msk.bf16.vlgmr.msrb.gmra.mxu0 %vm115_vm2, %v2421_v2  ;;  %2429 = vmatmul.msk.bf16.vlgmr.msrb.gmra.mxu2 %vm115_vm2, %v2428_v21 }
  0xf7   :  { %904 = vmatpush.bf16.msrb.mxu2 %v860_v22  ;;  %878 = vmatpush.bf16.msrb.mxu0 %v854_v25 }
  0xf8   :  { %1976 = vrot.lane.b32.xlu0 %v2831_v47, %s2535_s12 }
  0xf9   :  { %2430 = vmatmul.msk.bf16.vlgmr.msrb.gmra.mxu3 %vm115_vm2, %v2428_v21  ;;  %1978 = vrot.lane.b32.xlu1 %v2841_v54, %s2535_s12 }
  0xfa   :  { %917 = vmatpush.bf16.msrb.mxu3 %v863_v24  ;;  %v964_v44 = vpop.permute.xlu0 %963  ;;  %v2442_v24 = vld [vmem:[%s3308_s4 + $0x1c] sm:$0xf]  ;;  %1855 = vrot.lane.b32.xlu2 %v2810_v33, %s2534_s11 }
  0xfb   :  { %v2911_v29 = vpop.f32.mrf.mxu1  ;;  %v975_v49 = vsel %vm971_vm8, %v964_v44, %v966_v34  ;;  %v974_v59 = vsel %vm971_vm8, %v962_v23, %v964_v44  ;;  %v1090_v63 = vpop.permute.xlu1 %1089 }
  0xfc   :  { %v991_v56 = vsel %vm119_vm1, %v975_v49, 0  ;;  %v988_v2 = vsel %vm119_vm1, %v974_v59, 0  ;;  %v1101_v7 = vsel %vm1099_vm9, %v1088_v5, %v1090_v63  ;;  %v1102_v18 = vsel %vm1099_vm9, %v1090_v63, %v1092_v57 }
  0xfd   :  { %v1113_v14 = vsel %vm119_vm1, %v1101_v7, 0  ;;  %v1116_v26 = vsel %vm119_vm1, %v1102_v18, 0 }
  0xff   :  { %2432 = vmatmul.msk.bf16.vlgmr.msra.gmra.mxu1 %vm115_vm2, %v2428_v21 }
 0x100   :  { %943 = vmatpush.bf16.msra.mxu1 %v869_v31  ;;  %1859 = vrot.lane.b32.xlu0 %v2916_v30, %s2534_s11 }
 0x101   :  { %1982 = vrot.lane.b32.xlu1 %v2810_v33, %s2535_s12 }
 0x102   :  { %v1094_v16 = vpop.permute.xlu0 %1093  ;;  %1974 = vrot.lane.b32.xlu2 %v2833_v48, %s2535_s12 }
 0x103   :  { %v162_v39 = vpop.f32.mrf.mxu1  ;;  %v147_v40 = vpop.f32.mrf.mxu0  ;;  %v1103_v20 = vsel %vm1099_vm9, %v1092_v57, %v1094_v16 }
 0x104   :  { %v1086_v15 = vpop.permute.xlu1 %1085  ;;  %v1119_v27 = vsel %vm119_vm1, %v1103_v20, 0 }
 0x106   :  { %2431 = vmatmul.msk.bf16.vlgmr.msra.gmra.mxu0 %vm115_vm2, %v2428_v21  ;;  %2433 = vmatmul.msk.bf16.vlgmr.msra.gmra.mxu2 %vm115_vm2, %v2428_v21 }
 0x107   :  { %930 = vmatpush.bf16.msra.mxu0 %v866_v41  ;;  %1006 = vmatpush.bf16.msra.mxu2 %v982_v42 }
 0x108   :  { %1986 = vrot.lane.b32.xlu0 %v2916_v30, %s2535_s12 }
 0x109   :  { %2434 = vmatmul.msk.bf16.vlgmr.msra.gmra.mxu3 %vm115_vm2, %v2428_v21  ;;  %v173_v46 = vpop.f32.mrf.mxu2  ;;  %v1100_v21 = vsel %vm1099_vm9, %v1086_v15, %v1088_v5  ;;  %1980 = vrot.lane.b32.xlu1 %v2808_v32, %s2535_s12 }
 0x10a   :  { %1019 = vmatpush.bf16.msra.mxu3 %v985_v43  ;;  %v1110_v28 = vsel %vm119_vm1, %v1100_v21, 0  ;;  %v1096_v31 = vpop.permute.xlu0 %1095  ;;  %1857 = vrot.lane.b32.xlu2 %v2843_v55, %s2534_s11 }
 0x10b   :  { %v149_v52 = vpop.f32.mrf.mxu0  ;;  %v1104_v44 = vsel %vm1099_vm9, %v1094_v16, %v1096_v31 }
 0x10c   :  { %v186_v50 = vpop.f32.mrf.mxu3  ;;  %v2942_v51 = vpop.f32.mrf.mxu1  ;;  %v1235_v52 = vsel %vm119_vm1, %v2833_v48, 0 }
 0x10f   :  { %2437 = vmatmul.msk.bf16.vlgmr.msrb.gmra.mxu1 %vm115_vm2, %v2435_v53 }
 0x110   :  { %1045 = vmatpush.bf16.msrb.mxu1 %v991_v56  ;;  %2107 = vrot.lane.b32.xlu0 %v2808_v32, %s2536_s13 }
 0x111   :  { %v175_v58 = vpop.f32.mrf.mxu2  ;;  %2109 = vrot.lane.b32.xlu1 %v2810_v33, %s2536_s13 }
 0x112   :  { %1984 = vrot.lane.b32.xlu2 %v2843_v55, %s2535_s12 }
 0x113   :  { %v199_v1 = vpop.f32.mrf.mxu0 }
 0x114   :  { %v188_v60 = vpop.f32.mrf.mxu3  ;;  %v214_v0 = vpop.f32.mrf.mxu1 }
 0x115   :  { %v1346_v0 = vpop.permute.xlu0 %1345 }
 0x116   :  { %2436 = vmatmul.msk.bf16.vlgmr.msrb.gmra.mxu0 %vm115_vm2, %v2435_v53  ;;  %2438 = vmatmul.msk.bf16.vlgmr.msrb.gmra.mxu2 %vm115_vm2, %v2435_v53 }
 0x117   :  { %1032 = vmatpush.bf16.msrb.mxu0 %v988_v2  ;;  %1058 = vmatpush.bf16.msrb.mxu2 %v994_v3  ;;  %v1244_v2 = vsel %vm119_vm1, %v2808_v32, 0 }
 0x118   :  { %2103 = vrot.lane.b32.xlu0 %v2831_v47, %s2536_s13 }
 0x119   :  { %2439 = vmatmul.msk.bf16.vlgmr.msrb.gmra.mxu3 %vm115_vm2, %v2435_v53  ;;  %v246_v6 = vpop.f32.mrf.mxu2  ;;  %2228 = vrot.lane.b32.xlu1 %v2833_v48, %s2537_s16 }
 0x11a   :  { %1071 = vmatpush.bf16.msrb.mxu3 %v997_v4  ;;  %v247_v9 = vadd.f32 %v246_v6, %v147_v40  ;;  %2105 = vrot.lane.b32.xlu2 %v2841_v54, %s2536_s13 }
 0x11b   :  { %v201_v11 = vpop.f32.mrf.mxu0 }
 0x11c   :  { %v259_v8 = vpop.f32.mrf.mxu3  ;;  %v285_v12 = vpop.f32.mrf.mxu1  ;;  %v1250_v11 = vsel %vm119_vm1, %v2843_v55, 0 }
 0x11d   :  { %v260_v10 = vadd.f32 %v259_v8, %v2911_v29  ;;  %v2972_v13 = vadd.f32 %v285_v12, %v186_v50  ;;  %v1098_v29 = vpop.permute.xlu1 %1097  ;;  %v1122_v50 = vsel %vm119_vm1, %v1104_v44, 0  ;;  %v1241_v12 = vsel %vm119_vm1, %v2841_v54, 0 }
 0x11e   :  { %v1105_v35 = vsel %vm1099_vm9, %v1096_v31, %v1098_v29 }
 0x11f   :  { %2441 = vmatmul.msk.bf16.vlgmr.msra.gmra.mxu1 %vm115_vm2, %v2435_v53  ;;  %v1125_v42 = vsel %vm119_vm1, %v1105_v35, 0 }
 0x120   :  { %1147 = vmatpush.bf16.msra.mxu1 %v1113_v14  ;;  %2232 = vrot.lane.b32.xlu0 %v2841_v54, %s2537_s16 }
 0x121   :  { %v248_v17 = vpop.f32.mrf.mxu2  ;;  %2111 = vrot.lane.b32.xlu1 %v2843_v55, %s2536_s13 }
 0x122   :  { %2101 = vrot.lane.b32.xlu2 %v2833_v48, %s2536_s13 }
 0x123   :  { %v272_v22 = vpop.f32.mrf.mxu0 }
 0x124   :  { %v261_v19 = vpop.f32.mrf.mxu3  ;;  %v287_v23 = vpop.f32.mrf.mxu1  ;;  %v273_v25 = vadd.f32 %v272_v22, %v173_v46 }
 0x125   :  { %v3042_v8 = vpop.permute.xlu1 %1347 }
 0x126   :  { %2440 = vmatmul.msk.bf16.vlgmr.msra.gmra.mxu0 %vm115_vm2, %v2435_v53  ;;  %2443 = vmatmul.msk.bf16.vlgmr.msra.gmra.mxu2 %vm115_vm2, %v2442_v24  ;;  %v1238_v53 = vsel %vm119_vm1, %v2831_v47, 0 }
 0x127   :  { %1160 = vmatpush.bf16.msra.mxu2 %v1116_v26  ;;  %1134 = vmatpush.bf16.msra.mxu0 %v1110_v28  ;;  %v1356_v28 = vsel %vm108_vm0, %v1346_v0, %v3042_v8 }
 0x128   :  { %2236 = vrot.lane.b32.xlu0 %v2810_v33, %s2537_s16 }
 0x129   :  { %2444 = vmatmul.msk.bf16.vlgmr.msra.gmra.mxu3 %vm115_vm2, %v2442_v24  ;;  %v298_v34 = vpop.f32.mrf.mxu2  ;;  %2238 = vrot.lane.b32.xlu1 %v2843_v55, %s2537_s16 }
 0x12a   :  { %1173 = vmatpush.bf16.msra.mxu3 %v1119_v27  ;;  %v299_v37 = vadd.f32 %v298_v34, %v199_v1  ;;  %v1344_v1 = vpop.permute.xlu2 %1343  ;;  %2230 = vrot.lane.b32.xlu2 %v2831_v47, %s2537_s16 }
 0x12b   :  { %v274_v39 = vpop.f32.mrf.mxu0  ;;  %v1355_v26 = vsel %vm108_vm0, %v1344_v1, %v1346_v0 }
 0x12c   :  { %v311_v36 = vpop.f32.mrf.mxu3  ;;  %v381_v40 = vpop.f32.mrf.mxu1  ;;  %v1369_v35 = vsel %vm119_vm1, %v1355_v26, 0 }
 0x12d   :  { %v312_v38 = vadd.f32 %v311_v36, %v2942_v51  ;;  %v3002_v41 = vadd.f32 %v381_v40, %v260_v10 }
 0x12f   :  { %2446 = vmatmul.msk.bf16.vlgmr.msrb.gmra.mxu1 %vm115_vm2, %v2442_v24 }
 0x130   :  { %1199 = vmatpush.bf16.msrb.mxu1 %v1125_v42  ;;  %2234 = vrot.lane.b32.xlu0 %v2808_v32, %s2537_s16 }
 0x131   :  { %v300_v43 = vpop.f32.mrf.mxu2 }
 0x132   :  { %v1340_v10 = vpop.permute.xlu2 %1339  ;;  %2113 = vrot.lane.b32.xlu2 %v2916_v30, %s2536_s13 }
 0x133   :  { %v368_v46 = vpop.f32.mrf.mxu0 }
 0x134   :  { %v313_v45 = vpop.f32.mrf.mxu3  ;;  %v383_v49 = vpop.f32.mrf.mxu1  ;;  %v437_v51 = vadd.f32 %v368_v46, %v247_v9  ;;  %v1247_v9 = vsel %vm119_vm1, %v2810_v33, 0  ;;  %v1230_v33 = vld [vmem:[%s3311_s5] sm:$0xf] }
 0x136   :  { %2445 = vmatmul.msk.bf16.vlgmr.msrb.gmra.mxu0 %vm115_vm2, %v2442_v24  ;;  %2447 = vmatmul.msk.bf16.vlgmr.msrb.gmra.mxu2 %vm115_vm2, %v2442_v24 }
 0x137   :  { %1186 = vmatpush.bf16.msrb.mxu0 %v1122_v50  ;;  %1259 = vmatpush.bf16.msrb.mxu2 %v1235_v52 }
 0x139   :  { %2448 = vmatmul.msk.bf16.vlgmr.msrb.gmra.mxu3 %vm115_vm2, %v2442_v24  ;;  %v394_v56 = vpop.f32.mrf.mxu2  ;;  %v1467_v24 = vpop.permute.xlu1 %1466 }
 0x13a   :  { %1272 = vmatpush.bf16.msrb.mxu3 %v1238_v53  ;;  %v439_v58 = vadd.f32 %v394_v56, %v273_v25  ;;  %v1469_v23 = vpop.permute.xlu2 %1468  ;;  %2240 = vrot.lane.b32.xlu2 %v2916_v30, %s2537_s16 }
 0x13b   :  { %v370_v60 = vpop.f32.mrf.mxu0 }
 0x13c   :  { %v407_v57 = vpop.f32.mrf.mxu3  ;;  %v433_v61 = vpop.f32.mrf.mxu1 }
 0x13d   :  { %v440_v59 = vadd.f32 %v407_v57, %v2972_v13  ;;  %v3031_v63 = vadd.f32 %v433_v61, %v312_v38  ;;  %v1342_v13 = vpop.permute.xlu0 %1341  ;;  %v1480_v57 = vsel %vm331_vm3, %v1467_v24, %v1469_v23 }
 0x13e   :  { %v1354_v15 = vsel %vm108_vm0, %v1342_v13, %v1344_v1  ;;  %v1353_v29 = vsel %vm108_vm0, %v1340_v10, %v1342_v13 }
 0x13f   :  { %2451 = vmatmul.msk.bf16.vlgmr.msra.gmra.mxu1 %vm115_vm2, %v2449_v62  ;;  %v1366_v22 = vsel %vm119_vm1, %v1354_v15, 0  ;;  %v1363_v38 = vsel %vm119_vm1, %v1353_v29, 0 }
 0x140   :  { %1298 = vmatpush.bf16.msra.mxu1 %v1244_v2 }
 0x141   :  { %v396_v3 = vpop.f32.mrf.mxu2  ;;  %v1350_v40 = vpop.permute.xlu1 %1349 }
 0x142   :  { %v1352_v39 = vpop.permute.xlu2 %1351  ;;  %v1357_v52 = vsel %vm108_vm0, %v3042_v8, %v1350_v40  ;;  %v2463_v8 = vld [vmem:[%s3311_s5 + $0x4] sm:$0xf] }
 0x143   :  { %v420_v5 = vpop.f32.mrf.mxu0  ;;  %v1358_v54 = vsel %vm108_vm0, %v1350_v40, %v1352_v39  ;;  %v1375_v48 = vsel %vm119_vm1, %v1357_v52, 0 }
 0x144   :  { %v409_v4 = vpop.f32.mrf.mxu3  ;;  %v435_v6 = vpop.f32.mrf.mxu1  ;;  %v441_v7 = vadd.f32 %v420_v5, %v299_v37  ;;  %v1372_v37 = vsel %vm119_vm1, %v1356_v28, 0  ;;  %v1378_v49 = vsel %vm119_vm1, %v1358_v54, 0 }
 0x145   :  { %v3079_v36 = vpop.permute.xlu0 %1470 }
 0x146   :  { %2450 = vmatmul.msk.bf16.vlgmr.msra.gmra.mxu0 %vm115_vm2, %v2449_v62  ;;  %2452 = vmatmul.msk.bf16.vlgmr.msra.gmra.mxu2 %vm115_vm2, %v2449_v62 }
 0x147   :  { %1311 = vmatpush.bf16.msra.mxu2 %v1247_v9  ;;  %1285 = vmatpush.bf16.msra.mxu0 %v1241_v12 }
 0x149   :  { %2453 = vmatmul.msk.bf16.vlgmr.msra.gmra.mxu3 %vm115_vm2, %v2449_v62  ;;  %v496_v14 = vpop.f32.mrf.mxu2 }
 0x14a   :  { %1324 = vmatpush.bf16.msra.mxu3 %v1250_v11  ;;  %v565_v16 = vadd.f32 %v496_v14, %v437_v51  ;;  %v1479_v53 = vpop.permute.xlu2 %1478 }
 0x14b   :  { %v422_v19 = vpop.f32.mrf.mxu0 }
 0x14c   :  { %v509_v17 = vpop.f32.mrf.mxu3  ;;  %v535_v20 = vpop.f32.mrf.mxu1 }
 0x14d   :  { %v566_v18 = vadd.f32 %v509_v17, %v3002_v41  ;;  %v3061_v21 = vadd.f32 %v535_v20, %v440_v59  ;;  %v1475_v50 = vpop.permute.xlu0 %1474  ;;  %v1477_v59 = vpop.permute.xlu1 %1476 }
 0x14e   :  { %v1485_v17 = vsel %vm331_vm3, %v1477_v59, %v1479_v53 }
 0x14f   :  { %2455 = vmatmul.msk.bf16.vlgmr.msrb.gmra.mxu1 %vm115_vm2, %v2449_v62 }
 0x150   :  { %1400 = vmatpush.bf16.msrb.mxu1 %v1366_v22 }
 0x151   :  { %v498_v25 = vpop.f32.mrf.mxu2 }
 0x152   :  { %v1600_v11 = vpop.permute.xlu2 %1599  ;;  %v1505_v25 = vsel %vm119_vm1, %v1485_v17, 0 }
 0x153   :  { %v522_v31 = vpop.f32.mrf.mxu0 }
 0x154   :  { %v511_v27 = vpop.f32.mrf.mxu3  ;;  %v537_v34 = vpop.f32.mrf.mxu1  ;;  %v567_v55 = vadd.f32 %v522_v31, %v439_v58  ;;  %v1481_v58 = vsel %vm331_vm3, %v1469_v23, %v3079_v36 }
 0x155   :  { %v1493_v0 = vsel %vm119_vm1, %v1481_v58, 0  ;;  %v1473_v1 = vpop.permute.xlu0 %1472  ;;  %v1598_v12 = vpop.permute.xlu1 %1597 }
 0x156   :  { %2454 = vmatmul.msk.bf16.vlgmr.msrb.gmra.mxu0 %vm115_vm2, %v2449_v62  ;;  %2457 = vmatmul.msk.bf16.vlgmr.msrb.gmra.mxu2 %vm115_vm2, %v1230_v33  ;;  %v1483_v3 = vsel %vm331_vm3, %v1473_v1, %v1475_v50  ;;  %v1482_v14 = vsel %vm331_vm3, %v3079_v36, %v1473_v1  ;;  %v1609_v39 = vsel %vm459_vm4, %v1598_v12, %v1600_v11 }
 0x157   :  { %1413 = vmatpush.bf16.msrb.mxu2 %v1369_v35  ;;  %1387 = vmatpush.bf16.msrb.mxu0 %v1363_v38  ;;  %v1499_v10 = vsel %vm119_vm1, %v1483_v3, 0  ;;  %v1496_v20 = vsel %vm119_vm1, %v1482_v14, 0 }
 0x159   :  { %2458 = vmatmul.msk.bf16.vlgmr.msrb.gmra.mxu3 %vm115_vm2, %v1230_v33  ;;  %v548_v41 = vpop.f32.mrf.mxu2 }
 0x15a   :  { %1426 = vmatpush.bf16.msrb.mxu3 %v1372_v37  ;;  %v569_v42 = vadd.f32 %v548_v41, %v441_v7  ;;  %v1596_v26 = vpop.permute.xlu2 %1595 }
 0x15b   :  { %v524_v44 = vpop.f32.mrf.mxu0  ;;  %v1608_v28 = vsel %vm459_vm4, %v1596_v26, %v1598_v12 }
 0x15c   :  { %v561_v32 = vpop.f32.mrf.mxu3  ;;  %v637_v45 = vpop.f32.mrf.mxu1  ;;  %v1620_v35 = vsel %vm119_vm1, %v1608_v28, 0 }
 0x15d   :  { %v570_v43 = vadd.f32 %v561_v32, %v3031_v63  ;;  %v3092_v46 = vadd.f32 %v637_v45, %v566_v18  ;;  %v1490_v63 = vsel %vm119_vm1, %v1480_v57, 0  ;;  %v1602_v22 = vpop.permute.xlu0 %1601  ;;  %v1594_v23 = vpop.permute.xlu1 %1593  ;;  %v1623_v45 = vsel %vm119_vm1, %v1609_v39, 0 }
 0x15e   :  { %v1610_v41 = vsel %vm459_vm4, %v1600_v11, %v1602_v22  ;;  %v1607_v54 = vsel %vm459_vm4, %v1594_v23, %v1596_v26 }
 0x15f   :  { %2460 = vmatmul.msk.bf16.vlgmr.msra.gmra.mxu1 %vm115_vm2, %v1230_v33 }
 0x160   :  { %1452 = vmatpush.bf16.msra.mxu1 %v1378_v49  ;;  %v1626_v49 = vsel %vm119_vm1, %v1610_v41, 0 }
 0x161   :  { %v550_v51 = vpop.f32.mrf.mxu2 }
 0x163   :  { %v624_v60 = vpop.f32.mrf.mxu0 }
 0x164   :  { %v563_v56 = vpop.f32.mrf.mxu3  ;;  %v639_v61 = vpop.f32.mrf.mxu1  ;;  %v693_v62 = vadd.f32 %v624_v60, %v565_v16  ;;  %v1484_v16 = vsel %vm331_vm3, %v1475_v50, %v1477_v59  ;;  %v1617_v50 = vsel %vm119_vm1, %v1607_v54, 0 }
 0x165   :  { %v1502_v24 = vsel %vm119_vm1, %v1484_v16, 0  ;;  %v1723_v36 = vpop.permute.xlu1 %1722  ;;  %v1721_v37 = vpop.permute.xlu0 %1720 }
 0x166   :  { %2459 = vmatmul.msk.bf16.vlgmr.msra.gmra.mxu0 %vm115_vm2, %v1230_v33  ;;  %2461 = vmatmul.msk.bf16.vlgmr.msra.gmra.mxu2 %vm115_vm2, %v1230_v33 }
 0x167   :  { %1439 = vmatpush.bf16.msra.mxu0 %v1375_v48  ;;  %1514 = vmatpush.bf16.msra.mxu2 %v1490_v63 }
 0x169   :  { %2462 = vmatmul.msk.bf16.vlgmr.msra.gmra.mxu3 %vm115_vm2, %v1230_v33  ;;  %v650_v2 = vpop.f32.mrf.mxu2 }
 0x16a   :  { %1527 = vmatpush.bf16.msra.mxu3 %v1493_v0  ;;  %v695_v4 = vadd.f32 %v650_v2, %v567_v55 }
 0x16b   :  { %v626_v6 = vpop.f32.mrf.mxu0 }
 0x16c   :  { %v663_v5 = vpop.f32.mrf.mxu3  ;;  %v689_v7 = vpop.f32.mrf.mxu1 }
 0x16d   :  { %v696_v47 = vadd.f32 %v663_v5, %v3061_v21  ;;  %v3116_v9 = vadd.f32 %v689_v7, %v570_v43  ;;  %v2470_v43 = vld [vmem:[%s3311_s5 + $0x8] sm:$0xf]  ;;  %v1606_v51 = vpop.permute.xlu1 %1605  ;;  %v1604_v52 = vpop.permute.xlu0 %1603 }
 0x16e   :  { %v1612_v56 = vsel %vm459_vm4, %v1604_v52, %v1606_v51  ;;  %v1611_v1 = vsel %vm459_vm4, %v1602_v22, %v1604_v52 }
 0x16f   :  { %2465 = vmatmul.msk.bf16.vlgmr.msrb.gmra.mxu1 %vm115_vm2, %v2463_v8  ;;  %v1632_v48 = vsel %vm119_vm1, %v1612_v56, 0 }
 0x170   :  { %1553 = vmatpush.bf16.msrb.mxu1 %v1499_v10 }
 0x171   :  { %v652_v13 = vpop.f32.mrf.mxu2 }
 0x173   :  { %v676_v18 = vpop.f32.mrf.mxu0 }
 0x174   :  { %v665_v15 = vpop.f32.mrf.mxu3  ;;  %v691_v19 = vpop.f32.mrf.mxu1  ;;  %v697_v21 = vadd.f32 %v676_v18, %v569_v42 }
 0x175   :  { %v1733_v2 = vpop.permute.xlu1 %1732 }
 0x176   :  { %2464 = vmatmul.msk.bf16.vlgmr.msrb.gmra.mxu0 %vm115_vm2, %v2463_v8  ;;  %2466 = vmatmul.msk.bf16.vlgmr.msrb.gmra.mxu2 %vm115_vm2, %v2463_v8 }
 0x177   :  { %1540 = vmatpush.bf16.msrb.mxu0 %v1496_v20  ;;  %1566 = vmatpush.bf16.msrb.mxu2 %v1502_v24  ;;  %v2477_v20 = vld [vmem:[%s3311_s5 + $0xc] sm:$0xf] }
 0x179   :  { %2467 = vmatmul.msk.bf16.vlgmr.msrb.gmra.mxu3 %vm115_vm2, %v2463_v8  ;;  %v752_v27 = vpop.f32.mrf.mxu2 }
 0x17a   :  { %1579 = vmatpush.bf16.msrb.mxu3 %v1505_v25  ;;  %v821_v29 = vadd.f32 %v752_v27, %v693_v62 }
 0x17b   :  { %v678_v34 = vpop.f32.mrf.mxu0 }
 0x17c   :  { %v765_v31 = vpop.f32.mrf.mxu3  ;;  %v791_v33 = vpop.f32.mrf.mxu1 }
 0x17d   :  { %v822_v30 = vadd.f32 %v765_v31, %v3092_v46  ;;  %v3136_v55 = vadd.f32 %v791_v33, %v696_v47  ;;  %v1725_v46 = vpop.permute.xlu2 %1724  ;;  %v1731_v47 = vpop.permute.xlu0 %1730 }
 0x17e   :  { %v1735_v5 = vsel %vm587_vm5, %v1723_v36, %v1725_v46  ;;  %v1854_v23 = vpop.permute.xlu1 %1853 }
 0x17f   :  { %2469 = vmatmul.msk.bf16.vlgmr.msra.gmra.mxu1 %vm115_vm2, %v2463_v8  ;;  %v1747_v11 = vsel %vm119_vm1, %v1735_v5, 0 }
 0x180   :  { %1654 = vmatpush.bf16.msra.mxu1 %v1620_v35 }
 0x181   :  { %v754_v38 = vpop.f32.mrf.mxu2 }
 0x183   :  { %v778_v42 = vpop.f32.mrf.mxu0 }
 0x184   :  { %v767_v40 = vpop.f32.mrf.mxu3  ;;  %v793_v32 = vpop.f32.mrf.mxu1  ;;  %v823_v44 = vadd.f32 %v778_v42, %v695_v4  ;;  %v1734_v4 = vsel %vm587_vm5, %v1721_v37, %v1723_v36 }
 0x185   :  { %v1729_v63 = vpop.permute.xlu2 %1728  ;;  %v1744_v10 = vsel %vm119_vm1, %v1734_v4, 0  ;;  %v1852_v24 = vpop.permute.xlu0 %1851 }
 0x186   :  { %2468 = vmatmul.msk.bf16.vlgmr.msra.gmra.mxu0 %vm115_vm2, %v2463_v8  ;;  %2471 = vmatmul.msk.bf16.vlgmr.msra.gmra.mxu2 %vm115_vm2, %v2470_v43  ;;  %v1629_v8 = vsel %vm119_vm1, %v1611_v1, 0  ;;  %v1738_v28 = vsel %vm587_vm5, %v1729_v63, %v1731_v47  ;;  %v1850_v38 = vpop.permute.xlu1 %1849  ;;  %v1863_v51 = vsel %vm715_vm6, %v1852_v24, %v1854_v23 }
 0x187   :  { %1667 = vmatpush.bf16.msra.mxu2 %v1623_v45  ;;  %1641 = vmatpush.bf16.msra.mxu0 %v1617_v50  ;;  %v1756_v36 = vsel %vm119_vm1, %v1738_v28, 0  ;;  %v1862_v40 = vsel %vm715_vm6, %v1850_v38, %v1852_v24 }
 0x188   :  { %v1874_v45 = vsel %vm119_vm1, %v1862_v40, 0 }
 0x189   :  { %2472 = vmatmul.msk.bf16.vlgmr.msra.gmra.mxu3 %vm115_vm2, %v2470_v43  ;;  %v804_v53 = vpop.f32.mrf.mxu2 }
 0x18a   :  { %1680 = vmatpush.bf16.msra.mxu3 %v1626_v49  ;;  %v825_v57 = vadd.f32 %v804_v53, %v697_v21 }
 0x18b   :  { %v780_v60 = vpop.f32.mrf.mxu0 }
 0x18c   :  { %v817_v58 = vpop.f32.mrf.mxu3  ;;  %v893_v61 = vpop.f32.mrf.mxu1 }
 0x18d   :  { %v826_v59 = vadd.f32 %v817_v58, %v3116_v9  ;;  %v3154_v62 = vadd.f32 %v893_v61, %v822_v30  ;;  %v1727_v12 = vpop.permute.xlu2 %1726  ;;  %v1848_v35 = vpop.permute.xlu0 %1847  ;;  %v1877_v61 = vsel %vm119_vm1, %v1863_v51, 0 }
 0x18e   :  { %v1737_v14 = vsel %vm587_vm5, %v1727_v12, %v1729_v63  ;;  %v1736_v26 = vsel %vm587_vm5, %v1725_v46, %v1727_v12  ;;  %v1861_v56 = vsel %vm715_vm6, %v1848_v35, %v1850_v38 }
 0x18f   :  { %2474 = vmatmul.msk.bf16.vlgmr.msrb.gmra.mxu1 %vm115_vm2, %v2470_v43  ;;  %v1753_v22 = vsel %vm119_vm1, %v1737_v14, 0  ;;  %v1750_v34 = vsel %vm119_vm1, %v1736_v26, 0  ;;  %v1871_v63 = vsel %vm119_vm1, %v1861_v56, 0 }
 0x190   :  { %1706 = vmatpush.bf16.msrb.mxu1 %v1632_v48 }
 0x191   :  { %v806_v0 = vpop.f32.mrf.mxu2 }
 0x193   :  { %v880_v6 = vpop.f32.mrf.mxu0 }
 0x194   :  { %v819_v3 = vpop.f32.mrf.mxu3  ;;  %v895_v7 = vpop.f32.mrf.mxu1  ;;  %v949_v9 = vadd.f32 %v880_v6, %v821_v29  ;;  %v1739_v29 = vsel %vm587_vm5, %v1731_v47, %v1733_v2 }
 0x195   :  { %v1759_v37 = vsel %vm119_vm1, %v1739_v29, 0  ;;  %v1977_v46 = vpop.permute.xlu0 %1976 }
 0x196   :  { %2473 = vmatmul.msk.bf16.vlgmr.msrb.gmra.mxu0 %vm115_vm2, %v2470_v43  ;;  %2475 = vmatmul.msk.bf16.vlgmr.msrb.gmra.mxu2 %vm115_vm2, %v2470_v43 }
 0x197   :  { %1693 = vmatpush.bf16.msrb.mxu0 %v1629_v8  ;;  %1768 = vmatpush.bf16.msrb.mxu2 %v1744_v10 }
 0x199   :  { %2476 = vmatmul.msk.bf16.vlgmr.msrb.gmra.mxu3 %vm115_vm2, %v2470_v43  ;;  %v906_v13 = vpop.f32.mrf.mxu2 }
 0x19a   :  { %1781 = vmatpush.bf16.msrb.mxu3 %v1747_v11  ;;  %v951_v15 = vadd.f32 %v906_v13, %v823_v44 }
 0x19b   :  { %v882_v18 = vpop.f32.mrf.mxu0 }
 0x19c   :  { %v919_v16 = vpop.f32.mrf.mxu3  ;;  %v945_v19 = vpop.f32.mrf.mxu1 }
 0x19d   :  { %v952_v17 = vadd.f32 %v919_v16, %v3136_v55  ;;  %v3172_v21 = vadd.f32 %v945_v19, %v826_v59  ;;  %v1856_v55 = vpop.permute.xlu2 %1855  ;;  %v2484_v59 = vld [vmem:[%s3311_s5 + $0x10] sm:$0xf]  ;;  %v1860_v0 = vpop.permute.xlu0 %1859 }
 0x19e   :  { %v1864_v53 = vsel %vm715_vm6, %v1854_v23, %v1856_v55 }
 0x19f   :  { %2479 = vmatmul.msk.bf16.vlgmr.msra.gmra.mxu1 %vm115_vm2, %v2477_v20  ;;  %v1880_v48 = vsel %vm119_vm1, %v1864_v53, 0 }
 0x1a0   :  { %1807 = vmatpush.bf16.msra.mxu1 %v1753_v22 }
 0x1a1   :  { %v908_v25 = vpop.f32.mrf.mxu2 }
 0x1a3   :  { %v932_v31 = vpop.f32.mrf.mxu0 }
 0x1a4   :  { %v921_v27 = vpop.f32.mrf.mxu3  ;;  %v947_v30 = vpop.f32.mrf.mxu1  ;;  %v953_v33 = vadd.f32 %v932_v31, %v825_v57 }
 0x1a5   :  { %v1975_v49 = vpop.permute.xlu2 %1974  ;;  %v1987_v13 = vpop.permute.xlu0 %1986 }
 0x1a6   :  { %2478 = vmatmul.msk.bf16.vlgmr.msra.gmra.mxu0 %vm115_vm2, %v2477_v20  ;;  %2480 = vmatmul.msk.bf16.vlgmr.msra.gmra.mxu2 %vm115_vm2, %v2477_v20 }
 0x1a7   :  { %1794 = vmatpush.bf16.msra.mxu0 %v1750_v34  ;;  %1820 = vmatpush.bf16.msra.mxu2 %v1756_v36  ;;  %v2491_v34 = vld [vmem:[%s3311_s5 + $0x14] sm:$0xf] }
 0x1a9   :  { %2481 = vmatmul.msk.bf16.vlgmr.msra.gmra.mxu3 %vm115_vm2, %v2477_v20  ;;  %v1008_v39 = vpop.f32.mrf.mxu2 }
 0x1aa   :  { %1833 = vmatpush.bf16.msra.mxu3 %v1759_v37  ;;  %v1077_v41 = vadd.f32 %v1008_v39, %v949_v9 }
 0x1ab   :  { %v934_v32 = vpop.f32.mrf.mxu0 }
 0x1ac   :  { %v1021_v54 = vpop.f32.mrf.mxu3  ;;  %v1047_v43 = vpop.f32.mrf.mxu1 }
 0x1ad   :  { %v1078_v42 = vadd.f32 %v1021_v54, %v3154_v62  ;;  %v3187_v44 = vadd.f32 %v1047_v43, %v952_v17  ;;  %v1979_v62 = vpop.permute.xlu1 %1978  ;;  %v1858_v1 = vpop.permute.xlu2 %1857 }
 0x1ae   :  { %v1866_v3 = vsel %vm715_vm6, %v1858_v1, %v1860_v0  ;;  %v1865_v12 = vsel %vm715_vm6, %v1856_v55, %v1858_v1  ;;  %v1989_v16 = vsel %vm843_vm7, %v1977_v46, %v1979_v62  ;;  %v2108_v35 = vpop.permute.xlu0 %2107 }
 0x1af   :  { %2483 = vmatmul.msk.bf16.vlgmr.msrb.gmra.mxu1 %vm115_vm2, %v2477_v20  ;;  %v1886_v9 = vsel %vm119_vm1, %v1866_v3, 0  ;;  %v2001_v23 = vsel %vm119_vm1, %v1989_v16, 0 }
 0x1b0   :  { %1908 = vmatpush.bf16.msrb.mxu1 %v1874_v45 }
 0x1b1   :  { %v1010_v50 = vpop.f32.mrf.mxu2 }
 0x1b3   :  { %v1034_v57 = vpop.f32.mrf.mxu0 }
 0x1b4   :  { %v1023_v52 = vpop.f32.mrf.mxu3  ;;  %v1049_v58 = vpop.f32.mrf.mxu1  ;;  %v1079_v60 = vadd.f32 %v1034_v57, %v951_v15  ;;  %v1988_v15 = vsel %vm843_vm7, %v1975_v49, %v1977_v46 }
 0x1b5   :  { %v1983_v10 = vpop.permute.xlu1 %1982  ;;  %v1985_v17 = vpop.permute.xlu2 %1984  ;;  %v1998_v22 = vsel %vm119_vm1, %v1988_v15, 0 }
 0x1b6   :  { %2482 = vmatmul.msk.bf16.vlgmr.msrb.gmra.mxu0 %vm115_vm2, %v2477_v20  ;;  %2485 = vmatmul.msk.bf16.vlgmr.msrb.gmra.mxu2 %vm115_vm2, %v2484_v59  ;;  %v1883_v20 = vsel %vm119_vm1, %v1865_v12, 0  ;;  %v1992_v40 = vsel %vm843_vm7, %v1983_v10, %v1985_v17  ;;  %v2104_v50 = vpop.permute.xlu0 %2103 }
 0x1b7   :  { %1921 = vmatpush.bf16.msrb.mxu2 %v1877_v61  ;;  %1895 = vmatpush.bf16.msrb.mxu0 %v1871_v63  ;;  %v2010_v46 = vsel %vm119_vm1, %v1992_v40, 0 }
 0x1b9   :  { %2486 = vmatmul.msk.bf16.vlgmr.msrb.gmra.mxu3 %vm115_vm2, %v2484_v59  ;;  %v1060_v2 = vpop.f32.mrf.mxu2 }
 0x1ba   :  { %1934 = vmatpush.bf16.msrb.mxu3 %v1880_v48  ;;  %v1081_v4 = vadd.f32 %v1060_v2, %v953_v33 }
 0x1bb   :  { %v1036_v6 = vpop.f32.mrf.mxu0 }
 0x1bc   :  { %v1073_v5 = vpop.f32.mrf.mxu3  ;;  %v1149_v7 = vpop.f32.mrf.mxu1 }
 0x1bd   :  { %v1082_v47 = vadd.f32 %v1073_v5, %v3172_v21  ;;  %v3205_v8 = vadd.f32 %v1149_v7, %v1078_v42  ;;  %v1981_v24 = vpop.permute.xlu1 %1980  ;;  %v2106_v36 = vpop.permute.xlu2 %2105 }
 0x1be   :  { %v1991_v26 = vsel %vm843_vm7, %v1981_v24, %v1983_v10  ;;  %v1990_v38 = vsel %vm843_vm7, %v1979_v62, %v1981_v24  ;;  %v2116_v52 = vsel %vm971_vm8, %v2104_v50, %v2106_v36  ;;  %v2117_v0 = vsel %vm971_vm8, %v2106_v36, %v2108_v35 }
 0x1bf   :  { %2488 = vmatmul.msk.bf16.vlgmr.msra.gmra.mxu1 %vm115_vm2, %v2484_v59  ;;  %v2007_v55 = vsel %vm119_vm1, %v1991_v26, 0  ;;  %v2004_v43 = vsel %vm119_vm1, %v1990_v38, 0  ;;  %v2128_v61 = vsel %vm119_vm1, %v2116_v52, 0  ;;  %v2131_v7 = vsel %vm119_vm1, %v2117_v0, 0 }
 0x1c0   :  { %1960 = vmatpush.bf16.msra.mxu1 %v1886_v9 }
 0x1c1   :  { %v1062_v11 = vpop.f32.mrf.mxu2 }
 0x1c3   :  { %v1136_v18 = vpop.f32.mrf.mxu0 }
 0x1c4   :  { %v1075_v14 = vpop.f32.mrf.mxu3  ;;  %v1151_v19 = vpop.f32.mrf.mxu1  ;;  %v1205_v21 = vadd.f32 %v1136_v18, %v1077_v41  ;;  %v1993_v41 = vsel %vm843_vm7, %v1985_v17, %v1987_v13 }
 0x1c5   :  { %v2102_v45 = vpop.permute.xlu2 %2101  ;;  %v2013_v49 = vsel %vm119_vm1, %v1993_v41, 0 }
 0x1c6   :  { %2487 = vmatmul.msk.bf16.vlgmr.msra.gmra.mxu0 %vm115_vm2, %v2484_v59  ;;  %2489 = vmatmul.msk.bf16.vlgmr.msra.gmra.mxu2 %vm115_vm2, %v2484_v59  ;;  %v2115_v3 = vsel %vm971_vm8, %v2102_v45, %v2104_v50 }
 0x1c7   :  { %1947 = vmatpush.bf16.msra.mxu0 %v1883_v20  ;;  %2022 = vmatpush.bf16.msra.mxu2 %v1998_v22  ;;  %v2125_v10 = vsel %vm119_vm1, %v2115_v3, 0 }
 0x1c9   :  { %2490 = vmatmul.msk.bf16.vlgmr.msra.gmra.mxu3 %vm115_vm2, %v2484_v59  ;;  %v1162_v25 = vpop.f32.mrf.mxu2 }
 0x1ca   :  { %2035 = vmatpush.bf16.msra.mxu3 %v2001_v23  ;;  %v1207_v27 = vadd.f32 %v1162_v25, %v1079_v60 }
 0x1cb   :  { %v1138_v31 = vpop.f32.mrf.mxu0 }
 0x1cc   :  { %v1175_v28 = vpop.f32.mrf.mxu3  ;;  %v1201_v30 = vpop.f32.mrf.mxu1 }
 0x1cd   :  { %v1208_v29 = vadd.f32 %v1175_v28, %v3187_v44  ;;  %v3223_v33 = vadd.f32 %v1201_v30, %v1082_v47  ;;  %v2110_v44 = vpop.permute.xlu1 %2109  ;;  %v2231_v48 = vpop.permute.xlu2 %2230  ;;  %v2498_v47 = vld [vmem:[%s3311_s5 + $0x18] sm:$0xf] }
 0x1ce   :  { %v2118_v2 = vsel %vm971_vm8, %v2108_v35, %v2110_v44 }
 0x1cf   :  { %2493 = vmatmul.msk.bf16.vlgmr.msrb.gmra.mxu1 %vm115_vm2, %v2491_v34  ;;  %v2134_v9 = vsel %vm119_vm1, %v2118_v2, 0 }
 0x1d0   :  { %2061 = vmatpush.bf16.msrb.mxu1 %v2007_v55 }
 0x1d1   :  { %v1164_v37 = vpop.f32.mrf.mxu2 }
 0x1d3   :  { %v1188_v54 = vpop.f32.mrf.mxu0 }
 0x1d4   :  { %v1177_v39 = vpop.f32.mrf.mxu3  ;;  %v1203_v42 = vpop.f32.mrf.mxu1  ;;  %v1209_v32 = vadd.f32 %v1188_v54, %v1081_v4  ;;  %v2505_v54 = vld [vmem:[%s3311_s5 + $0x1c] sm:$0xf] }
 0x1d5   :  { %v2229_v62 = vpop.permute.xlu1 %2228  ;;  %v2114_v11 = vpop.permute.xlu2 %2113 }
 0x1d6   :  { %2492 = vmatmul.msk.bf16.vlgmr.msrb.gmra.mxu0 %vm115_vm2, %v2491_v34  ;;  %2494 = vmatmul.msk.bf16.vlgmr.msrb.gmra.mxu2 %vm115_vm2, %v2491_v34  ;;  %v2242_v26 = vsel %vm1099_vm9, %v2229_v62, %v2231_v48  ;;  %v2538_v62 = vmov 0  }
 0x1d7   :  { %2048 = vmatpush.bf16.msrb.mxu0 %v2004_v43  ;;  %2074 = vmatpush.bf16.msrb.mxu2 %v2010_v46 }
 0x1d8   :  { %2528 = vset.pattern.permute.xlu1 %v2538_v62  ;;  %2529 = vset.pattern.permute.xlu0 %v2538_v62 }
 0x1d9   :  { %2495 = vmatmul.msk.bf16.vlgmr.msrb.gmra.mxu3 %vm115_vm2, %v2491_v34  ;;  %v1261_v51 = vpop.f32.mrf.mxu2 }
 0x1da   :  { %2087 = vmatpush.bf16.msrb.mxu3 %v2013_v49  ;;  %v1330_v53 = vadd.f32 %v1261_v51, %v1205_v21 }
 0x1db   :  { %v1190_v58 = vpop.f32.mrf.mxu0 }
 0x1dc   :  { %v1274_v56 = vpop.f32.mrf.mxu3  ;;  %v1300_v59 = vpop.f32.mrf.mxu1 }
 0x1dd   :  { %v1331_v57 = vadd.f32 %v1274_v56, %v3205_v8  ;;  %v1333_v60 = vadd.f32 %v1300_v59, %v1208_v29  ;;  %v2233_v8 = vpop.permute.xlu0 %2232  ;;  %v2112_v12 = vpop.permute.xlu1 %2111 }
 0x1de   :  { %v2120_v14 = vsel %vm971_vm8, %v2112_v12, %v2114_v11  ;;  %v2119_v24 = vsel %vm971_vm8, %v2110_v44, %v2112_v12  ;;  %v2241_v44 = vpop.permute.xlu2 %2240 }
 0x1df   :  { %2497 = vmatmul.msk.bf16.vlgmr.msra.gmra.mxu1 %vm115_vm2, %v2491_v34  ;;  %v2140_v21 = vsel %vm119_vm1, %v2120_v14, 0  ;;  %v2137_v30 = vsel %vm119_vm1, %v2119_v24, 0 }
 0x1e0   :  { %2162 = vmatpush.bf16.msra.mxu1 %v2128_v61 }
 0x1e1   :  { %v1263_v63 = vpop.f32.mrf.mxu2 }
 0x1e3   :  { %v1287_v4 = vpop.f32.mrf.mxu0 }
 0x1e4   :  { %v1276_v1 = vpop.f32.mrf.mxu3  ;;  %v1302_v5 = vpop.f32.mrf.mxu1  ;;  %v1332_v6 = vadd.f32 %v1287_v4, %v1207_v27  ;;  %v2243_v27 = vsel %vm1099_vm9, %v2231_v48, %v2233_v8 }
 0x1e5   :  { %v2237_v22 = vpop.permute.xlu0 %2236  ;;  %v2239_v43 = vpop.permute.xlu1 %2238 }
 0x1e6   :  { %2496 = vmatmul.msk.bf16.vlgmr.msra.gmra.mxu0 %vm115_vm2, %v2491_v34  ;;  %2499 = vmatmul.msk.bf16.vlgmr.msra.gmra.mxu2 %vm115_vm2, %v2498_v47  ;;  %v2252_v34 = vsel %vm119_vm1, %v2242_v26, 0  ;;  %v2246_v50 = vsel %vm1099_vm9, %v2237_v22, %v2239_v43  ;;  %v2247_v51 = vsel %vm1099_vm9, %v2239_v43, %v2241_v44 }
 0x1e7   :  { %2175 = vmatpush.bf16.msra.mxu2 %v2131_v7  ;;  %2149 = vmatpush.bf16.msra.mxu0 %v2125_v10  ;;  %v2264_v58 = vsel %vm119_vm1, %v2246_v50, 0  ;;  %v2267_v59 = vsel %vm119_vm1, %v2247_v51, 0  ;;  %v2512_v7 = vld [vmem:[%s3311_s5 + $0x20] sm:$0xf] }
 0x1e9   :  { %2500 = vmatmul.msk.bf16.vlgmr.msra.gmra.mxu3 %vm115_vm2, %v2498_v47  ;;  %v1313_v13 = vpop.f32.mrf.mxu2 }
 0x1ea   :  { %2188 = vmatpush.bf16.msra.mxu3 %v2134_v9  ;;  %v1334_v15 = vadd.f32 %v1313_v13, %v1209_v32 }
 0x1eb   :  { %v1289_v18 = vpop.f32.mrf.mxu0 }
 0x1ec   :  { %v1326_v16 = vpop.f32.mrf.mxu3  ;;  %v1402_v19 = vpop.f32.mrf.mxu1 }
 0x1ed   :  { %v1335_v17 = vadd.f32 %v1326_v16, %v3223_v33  ;;  %v3254_v20 = vadd.f32 %v1402_v19, %v1331_v57  ;;  %v2255_v33 = vsel %vm119_vm1, %v2243_v27, 0  ;;  %v2235_v55 = vpop.permute.xlu0 %2234 }
 0x1ee   :  { %v2245_v36 = vsel %vm1099_vm9, %v2235_v55, %v2237_v22  ;;  %v2244_v46 = vsel %vm1099_vm9, %v2233_v8, %v2235_v55 }
 0x1ef   :  { %2502 = vmatmul.msk.bf16.vlgmr.msrb.gmra.mxu1 %vm115_vm2, %v2498_v47  ;;  %v2261_v32 = vsel %vm119_vm1, %v2245_v36, 0  ;;  %v2258_v56 = vsel %vm119_vm1, %v2244_v46, 0 }
 0x1f0   :  { %2214 = vmatpush.bf16.msrb.mxu1 %v2140_v21 }
 0x1f1   :  { %v1315_v23 = vpop.f32.mrf.mxu2 }
 0x1f3   :  { %v1389_v28 = vpop.f32.mrf.mxu0 }
 0x1f4   :  { %v1328_v25 = vpop.f32.mrf.mxu3  ;;  %v1404_v29 = vpop.f32.mrf.mxu1  ;;  %v1458_v31 = vadd.f32 %v1389_v28, %v1330_v53 }
 0x1f6   :  { %2501 = vmatmul.msk.bf16.vlgmr.msrb.gmra.mxu0 %vm115_vm2, %v2498_v47  ;;  %2503 = vmatmul.msk.bf16.vlgmr.msrb.gmra.mxu2 %vm115_vm2, %v2498_v47 }
 0x1f7   :  { %2201 = vmatpush.bf16.msrb.mxu0 %v2137_v30  ;;  %2276 = vmatpush.bf16.msrb.mxu2 %v2252_v34 }
 0x1f9   :  { %2504 = vmatmul.msk.bf16.vlgmr.msrb.gmra.mxu3 %vm115_vm2, %v2498_v47  ;;  %v1415_v35 = vpop.f32.mrf.mxu2 }
 0x1fa   :  { %2289 = vmatpush.bf16.msrb.mxu3 %v2255_v33  ;;  %v1460_v37 = vadd.f32 %v1415_v35, %v1332_v6 }
 0x1fb   :  { %v1391_v40 = vpop.f32.mrf.mxu0 }
 0x1fc   :  { %v1428_v38 = vpop.f32.mrf.mxu3  ;;  %v1454_v41 = vpop.f32.mrf.mxu1 }
 0x1fd   :  { %v1461_v39 = vadd.f32 %v1428_v38, %v1333_v60  ;;  %v1463_v42 = vadd.f32 %v1454_v41, %v1335_v17  ;;  %v2353_v60 = vld [vmem:[%s3312_s6] sm:$0xff] }
 0x1fe   :  { %2356 = vperm.xlu1 %2528, %v2353_v60  }
 0x1ff   :  { %2507 = vmatmul.msk.bf16.vlgmr.msra.gmra.mxu1 %vm115_vm2, %v2505_v54 }
 0x200   :  { %2315 = vmatpush.bf16.msra.mxu1 %v2261_v32 }
 0x201   :  { %v1417_v45 = vpop.f32.mrf.mxu2 }
 0x203   :  { %v1441_v52 = vpop.f32.mrf.mxu0 }
 0x204   :  { %v1430_v49 = vpop.f32.mrf.mxu3  ;;  %v1456_v53 = vpop.f32.mrf.mxu1  ;;  %v1462_v57 = vadd.f32 %v1441_v52, %v1334_v15 }
 0x206   :  { %2506 = vmatmul.msk.bf16.vlgmr.msra.gmra.mxu0 %vm115_vm2, %v2505_v54  ;;  %2508 = vmatmul.msk.bf16.vlgmr.msra.gmra.mxu2 %vm115_vm2, %v2505_v54 }
 0x207   :  { %2302 = vmatpush.bf16.msra.mxu0 %v2258_v56  ;;  %2328 = vmatpush.bf16.msra.mxu2 %v2264_v58 }
 0x209   :  { %2509 = vmatmul.msk.bf16.vlgmr.msra.gmra.mxu3 %vm115_vm2, %v2505_v54  ;;  %v1516_v61 = vpop.f32.mrf.mxu2 }
 0x20a   :  { %2341 = vmatpush.bf16.msra.mxu3 %v2267_v59  ;;  %v1585_v48 = vadd.f32 %v1516_v61, %v1458_v31 }
 0x20b   :  { %v1443_v1 = vpop.f32.mrf.mxu0 }
 0x20c   :  { %v1529_v63 = vpop.f32.mrf.mxu3  ;;  %v1555_v2 = vpop.f32.mrf.mxu1 }
 0x20d   :  { %v1586_v0 = vadd.f32 %v1529_v63, %v3254_v20  ;;  %v1588_v3 = vadd.f32 %v1555_v2, %v1461_v39 }
 0x20f   :  { %2511 = vmatmul.msk.bf16.vlgmr.msrb.gmra.mxu1 %vm115_vm2, %v2505_v54 }
 0x211   :  { %v1518_v4 = vpop.f32.mrf.mxu2 }
 0x213   :  { %v1542_v47 = vpop.f32.mrf.mxu0 }
 0x214   :  { %v1531_v5 = vpop.f32.mrf.mxu3  ;;  %v1557_v6 = vpop.f32.mrf.mxu1  ;;  %v1587_v8 = vadd.f32 %v1542_v47, %v1460_v37 }
 0x216   :  { %2510 = vmatmul.msk.bf16.vlgmr.msrb.gmra.mxu0 %vm115_vm2, %v2505_v54  ;;  %2513 = vmatmul.msk.bf16.vlgmr.msrb.gmra.mxu2 %vm115_vm2, %v2512_v7 }
 0x219   :  { %2514 = vmatmul.msk.bf16.vlgmr.msrb.gmra.mxu3 %vm115_vm2, %v2512_v7  ;;  %v1568_v9 = vpop.f32.mrf.mxu2 }
 0x21a   :  { %v1589_v10 = vadd.f32 %v1568_v9, %v1462_v57 }
 0x21b   :  { %v1544_v13 = vpop.f32.mrf.mxu0 }
 0x21c   :  { %v1581_v11 = vpop.f32.mrf.mxu3  ;;  %v1656_v14 = vpop.f32.mrf.mxu1 }
 0x21d   :  { %v1590_v12 = vadd.f32 %v1581_v11, %v1463_v42  ;;  %v1713_v15 = vadd.f32 %v1656_v14, %v1586_v0 }
 0x21f   :  { %2516 = vmatmul.msk.bf16.vlgmr.msra.gmra.mxu1 %vm115_vm2, %v2512_v7 }
 0x221   :  { %v1570_v16 = vpop.f32.mrf.mxu2 }
 0x223   :  { %v1643_v18 = vpop.f32.mrf.mxu0 }
 0x224   :  { %v1583_v17 = vpop.f32.mrf.mxu3  ;;  %v1658_v19 = vpop.f32.mrf.mxu1  ;;  %v1712_v20 = vadd.f32 %v1643_v18, %v1585_v48 }
 0x226   :  { %2515 = vmatmul.msk.bf16.vlgmr.msra.gmra.mxu0 %vm115_vm2, %v2512_v7  ;;  %2517 = vmatmul.msk.bf16.vlgmr.msra.gmra.mxu2 %vm115_vm2, %v2512_v7 }
 0x229   :  { %2518 = vmatmul.msk.bf16.vlgmr.msra.gmra.mxu3 %vm115_vm2, %v2512_v7  ;;  %v1669_v21 = vpop.f32.mrf.mxu2 }
 0x22a   :  { %v1714_v22 = vadd.f32 %v1669_v21, %v1587_v8 }
 0x22b   :  { %v1645_v25 = vpop.f32.mrf.mxu0 }
 0x22c   :  { %v1682_v23 = vpop.f32.mrf.mxu3  ;;  %v1708_v26 = vpop.f32.mrf.mxu1 }
 0x22d   :  { %v1715_v24 = vadd.f32 %v1682_v23, %v1588_v3  ;;  %v1717_v27 = vadd.f32 %v1708_v26, %v1590_v12 }
 0x231   :  { %v1671_v28 = vpop.f32.mrf.mxu2 }
 0x233   :  { %v1695_v31 = vpop.f32.mrf.mxu0 }
 0x234   :  { %v1684_v29 = vpop.f32.mrf.mxu3  ;;  %v1710_v30 = vpop.f32.mrf.mxu1  ;;  %v1716_v34 = vadd.f32 %v1695_v31, %v1589_v10 }
 0x239   :  { %v1770_v33 = vpop.f32.mrf.mxu2 }
 0x23a   :  { %v1839_v55 = vadd.f32 %v1770_v33, %v1712_v20 }
 0x23b   :  { %v1697_v37 = vpop.f32.mrf.mxu0 }
 0x23c   :  { %v1783_v35 = vpop.f32.mrf.mxu3  ;;  %v1809_v38 = vpop.f32.mrf.mxu1 }
 0x23d   :  { %v1840_v36 = vadd.f32 %v1783_v35, %v1713_v15  ;;  %v1842_v39 = vadd.f32 %v1809_v38, %v1715_v24 }
 0x241   :  { %v1772_v40 = vpop.f32.mrf.mxu2 }
 0x243   :  { %v1796_v54 = vpop.f32.mrf.mxu0 }
 0x244   :  { %v1785_v41 = vpop.f32.mrf.mxu3  ;;  %v1811_v42 = vpop.f32.mrf.mxu1  ;;  %v1841_v32 = vadd.f32 %v1796_v54, %v1714_v22 }
 0x249   :  { %v1822_v43 = vpop.f32.mrf.mxu2 }
 0x24a   :  { %v1843_v44 = vadd.f32 %v1822_v43, %v1716_v34 }
 0x24b   :  { %v1798_v49 = vpop.f32.mrf.mxu0 }
 0x24c   :  { %v1835_v45 = vpop.f32.mrf.mxu3  ;;  %v1910_v50 = vpop.f32.mrf.mxu1 }
 0x24d   :  { %v1844_v46 = vadd.f32 %v1835_v45, %v1717_v27  ;;  %v1967_v51 = vadd.f32 %v1910_v50, %v1840_v36 }
 0x251   :  { %v1824_v52 = vpop.f32.mrf.mxu2 }
 0x253   :  { %v1897_v56 = vpop.f32.mrf.mxu0 }
 0x254   :  { %v1837_v53 = vpop.f32.mrf.mxu3  ;;  %v1912_v57 = vpop.f32.mrf.mxu1  ;;  %v1966_v58 = vadd.f32 %v1897_v56, %v1839_v55 }
 0x259   :  { %v1923_v59 = vpop.f32.mrf.mxu2 }
 0x25a   :  { %v1968_v60 = vadd.f32 %v1923_v59, %v1841_v32 }
 0x25b   :  { %v1899_v48 = vpop.f32.mrf.mxu0 }
 0x25c   :  { %v1936_v61 = vpop.f32.mrf.mxu3  ;;  %v1962_v63 = vpop.f32.mrf.mxu1 }
 0x25d   :  { %v1969_v62 = vadd.f32 %v1936_v61, %v1842_v39  ;;  %v1971_v0 = vadd.f32 %v1962_v63, %v1844_v46 }
 0x261   :  { %v1925_v1 = vpop.f32.mrf.mxu2 }
 0x263   :  { %v1949_v3 = vpop.f32.mrf.mxu0 }
 0x264   :  { %v1938_v2 = vpop.f32.mrf.mxu3  ;;  %v1964_v4 = vpop.f32.mrf.mxu1  ;;  %v1970_v5 = vadd.f32 %v1949_v3, %v1843_v44 }
 0x269   :  { %v2024_v47 = vpop.f32.mrf.mxu2 }
 0x26a   :  { %v2093_v29 = vadd.f32 %v2024_v47, %v1966_v58 }
 0x26b   :  { %v1951_v7 = vpop.f32.mrf.mxu0 }
 0x26c   :  { %v2037_v6 = vpop.f32.mrf.mxu3  ;;  %v2063_v8 = vpop.f32.mrf.mxu1 }
 0x26d   :  { %v2094_v31 = vadd.f32 %v2037_v6, %v1967_v51  ;;  %v2096_v40 = vadd.f32 %v2063_v8, %v1969_v62 }
 0x270   :  { %v2357_v55 = vpop.permute.xlu1 %2356 }
 0x271   :  { %v2026_v9 = vpop.f32.mrf.mxu2 }
 0x273   :  { %v2050_v11 = vpop.f32.mrf.mxu0 }
 0x274   :  { %v2039_v10 = vpop.f32.mrf.mxu3  ;;  %v2065_v12 = vpop.f32.mrf.mxu1  ;;  %v2095_v44 = vadd.f32 %v2050_v11, %v1968_v60 }
 0x279   :  { %v2076_v13 = vpop.f32.mrf.mxu2 }
 0x27a   :  { %v2097_v58 = vadd.f32 %v2076_v13, %v1970_v5 }
 0x27b   :  { %v2052_v15 = vpop.f32.mrf.mxu0 }
 0x27c   :  { %v2089_v14 = vpop.f32.mrf.mxu3  ;;  %v2164_v16 = vpop.f32.mrf.mxu1 }
 0x27d   :  { %v2221_v34 = vadd.f32 %v2164_v16, %v2094_v31  ;;  %v2098_v61 = vadd.f32 %v2089_v14, %v1971_v0 }
 0x281   :  { %v2078_v17 = vpop.f32.mrf.mxu2 }
 0x283   :  { %v2151_v19 = vpop.f32.mrf.mxu0 }
 0x284   :  { %v2091_v18 = vpop.f32.mrf.mxu3  ;;  %v2166_v20 = vpop.f32.mrf.mxu1  ;;  %v2220_v30 = vadd.f32 %v2151_v19, %v2093_v29 }
 0x289   :  { %v2177_v21 = vpop.f32.mrf.mxu2 }
 0x28a   :  { %v2222_v50 = vadd.f32 %v2177_v21, %v2095_v44 }
 0x28b   :  { %v2153_v23 = vpop.f32.mrf.mxu0 }
 0x28c   :  { %v2190_v22 = vpop.f32.mrf.mxu3  ;;  %v2216_v24 = vpop.f32.mrf.mxu1 }
 0x28d   :  { %v2223_v42 = vadd.f32 %v2190_v22, %v2096_v40  ;;  %v2225_v60 = vadd.f32 %v2216_v24, %v2098_v61 }
 0x291   :  { %v2179_v25 = vpop.f32.mrf.mxu2 }
 0x293   :  { %v2203_v27 = vpop.f32.mrf.mxu0 }
 0x294   :  { %v2192_v26 = vpop.f32.mrf.mxu3  ;;  %v2218_v28 = vpop.f32.mrf.mxu1  ;;  %v2224_v62 = vadd.f32 %v2203_v27, %v2097_v58 }
 0x299   :  { %v2278_v33 = vpop.f32.mrf.mxu2 }
 0x29a   :  { %v2347_v35 = vadd.f32 %v2278_v33, %v2220_v30 }
 0x29b   :  { %v2205_v38 = vpop.f32.mrf.mxu0 }
 0x29c   :  { %v2291_v36 = vpop.f32.mrf.mxu3  ;;  %v2317_v39 = vpop.f32.mrf.mxu1  ;;  %v2359_v41 = vadd.f32 %v2357_v55, %v2347_v35 }
 0x29d   :  { %v2348_v37 = vadd.f32 %v2291_v36, %v2221_v34  ;;  %v2350_v45 = vadd.f32 %v2317_v39, %v2223_v42 }
 0x29e   :  { %v2365_v32 = vmax.f32 %v2359_v41, 0.0 }
 0x29f   :  { %v2360_v54 = vadd.f32 %v2357_v55, %v2348_v37  ;;  %v2362_v57 = vadd.f32 %v2357_v55, %v2350_v45 }
 0x2a1   :  { %v2366_v43 = vmax.f32 %v2360_v54, 0.0  ;;  %v2280_v49 = vpop.f32.mrf.mxu2  ;;  %v2368_v63 = vmax.f32 %v2362_v57, 0.0 }
 0x2a3   :  { %v2371_v46 = vpack.c.bf16 %v2366_v43, %v2365_v32  ;;  %v2304_v52 = vpop.f32.mrf.mxu0 }
 0x2a4   :  { %v2293_v51 = vpop.f32.mrf.mxu3  ;;  %v2319_v53 = vpop.f32.mrf.mxu1  ;;  %v2349_v56 = vadd.f32 %v2304_v52, %v2222_v50 }
 0x2a5   :  { %2374 = vst [vmem:[%s3313_s7] sm:$0xff] %v2371_v46 }
 0x2a6   :  { %v2361_v59 = vadd.f32 %v2357_v55, %v2349_v56 }
 0x2a8   :  { %v2367_v48 = vmax.f32 %v2361_v59, 0.0 }
 0x2a9   :  { %v2330_v1 = vpop.f32.mrf.mxu2 }
 0x2aa   :  { %v2372_v2 = vpack.c.bf16 %v2368_v63, %v2367_v48  ;;  %v2351_v3 = vadd.f32 %v2330_v1, %v2224_v62 }
 0x2ab   :  { %v2306_v6 = vpop.f32.mrf.mxu0 }
 0x2ac   :  { %v2343_v4 = vpop.f32.mrf.mxu3  ;;  %2375 = vst [vmem:[%s3313_s7 + $0x8] sm:$0xff] %v2372_v2  ;;  %v2363_v7 = vadd.f32 %v2357_v55, %v2351_v3 }
 0x2ad   :  { %v2352_v47 = vadd.f32 %v2343_v4, %v2225_v60 }
 0x2ae   :  { %v2369_v9 = vmax.f32 %v2363_v7, 0.0 }
 0x2af   :  { %v2364_v8 = vadd.f32 %v2357_v55, %v2352_v47 }
 0x2b1   :  { %v2370_v5 = vmax.f32 %v2364_v8, 0.0  ;;  %v2332_v0 = vpop.f32.mrf.mxu2 }
 0x2b3   :  { %v2373_v10 = vpack.c.bf16 %v2370_v5, %v2369_v9 }
 0x2b4   :  { %v2345_v11 = vpop.f32.mrf.mxu3 }
 0x2b5   :  { %2376 = vst [vmem:[%s3313_s7 + $0x10] sm:$0xff] %v2373_v10 }

</bundles_post_ra>
